<compile_context>
chip_gen: v7x
topology: tpu7x:2x2x1
jax: 0.10.0
libtpu: 0.0.40
codegen_flags: <defaults>
</compile_context>

<pallas_src>
import functools

import jax
import jax.numpy as jnp
from jax.experimental import pallas as pl
from jax.experimental.pallas import tpu as pltpu

_VMEM_LIMIT_BYTES = 32 * 1024 * 1024  # safe on v5e/v6e/v7x (v7x scoped default)


# --------------------------------------------------------------- tile pickers
def _pad_to(v, m):
    return -(-v // m) * m


def _pick_image_tile(m_imgs, H, W, Cin, Cout, x_itemsize):
    """Images per grid step for conv3x3, with lane-padding-aware VMEM math."""
    cin_l = _pad_to(Cin, 128)
    cout_l = _pad_to(Cout, 128)

    def vmem_bytes(d):
        x_blk = d * H * _pad_to(W, 8) * cin_l * x_itemsize
        pad_scr = d * (H + 2) * _pad_to(W + 2, 8) * cin_l * x_itemsize
        out_blk = _pad_to(d * H * W, 8) * cout_l * 4
        w_blk = 9 * _pad_to(Cin, 8) * cout_l * x_itemsize
        stat_blk = _pad_to(2, 8) * (cin_l + cout_l) * 4
        # inputs/outputs are double-buffered by the BlockSpec pipeline
        return 2 * (x_blk + out_blk + w_blk + stat_blk) + pad_scr

    def acc_bytes(d):  # traced f32 accumulator lives in vregs (lane-padded)
        return d * H * W * cout_l * 4

    budget = 12 * 1024 * 1024
    acc_budget = 128 * 1024
    valid = [d for d in range(1, m_imgs + 1)
             if m_imgs % d == 0 and (d * H * W) % 8 == 0]
    if not valid:
        return m_imgs
    fit = [d for d in valid
           if vmem_bytes(d) <= budget and acc_bytes(d) <= acc_budget]
    fit2 = [d for d in fit if m_imgs // d >= 2]   # >=2 grid steps (2 TCs on v7x)
    if fit2:
        return max(fit2)
    if fit:
        return max(fit)
    return min(valid)


def _pick_lane_tile(F, T, n_streams):
    """Lane tile for the LIF kernels; keeps the recurrence register-resident."""
    if F % 128 != 0:
        return F
    # live f32 values per lane ~= n_streams*(T rows) + state/scale/shift;
    # keep them within ~3/4 of the 256 KiB vreg file, and cap at 1024 lanes.
    budget_f32 = (192 * 1024) // 4
    cap = (budget_f32 // (n_streams * T + 5)) // 128 * 128
    cap = max(128, min(cap, 1024, F))
    best = 128
    d = 128
    while d <= cap:
        if F % d == 0:
            best = d
        d += 128
    return best


# ------------------------------------------------------------------ conv 3x3
def _conv3x3_kernel(x_ref, w_ref, b_ref, o_ref, ystat_ref, *rest,
                    H, W, Cin, Cout, tb, with_xstat):
    # x_ref: (tb, H, W, Cin)   w_ref: (9, Cin, Cout)   b_ref: (1, Cout)
    # o_ref: (tb*H*W, Cout)    ystat_ref: (1, 2, Cout)
    # optional xstat_ref: (1, 2, Cin); pad_ref: VMEM (tb, H+2, W+2, Cin)
    if with_xstat:
        xstat_ref, pad_ref = rest
    else:
        xstat_ref = None
        (pad_ref,) = rest
    M = tb * H * W

    # Zero only the halo ring every step (interior is fully overwritten below;
    # per-step ring-zero stays correct if the grid is split across cores).
    zrow = jnp.zeros((tb, 1, W + 2, Cin), dtype=pad_ref.dtype)
    zcol = jnp.zeros((tb, H + 2, 1, Cin), dtype=pad_ref.dtype)
    pad_ref[:, 0:1, :, :] = zrow
    pad_ref[:, H + 1:H + 2, :, :] = zrow
    pad_ref[:, :, 0:1, :] = zcol
    pad_ref[:, :, W + 1:W + 2, :] = zcol

    xv = x_ref[...]
    pad_ref[:, 1:H + 1, 1:W + 1, :] = xv

    if with_xstat:
        xr = xv.reshape(M, Cin).astype(jnp.float32)
        xs = jnp.sum(xr, axis=0, keepdims=True)
        xss = jnp.sum(xr * xr, axis=0, keepdims=True)
        xstat_ref[0] = jnp.concatenate([xs, xss], axis=0)        # one store

    # Single f32 accumulator over the 9 taps; taps are Ref-sliced strided loads.
    acc = jnp.zeros((M, Cout), jnp.float32)
    for kh in range(3):
        for kw in range(3):
            tap = pad_ref[:, kh:kh + H, kw:kw + W, :].reshape(M, Cin)
            acc = acc + jnp.dot(tap, w_ref[kh * 3 + kw],
                                preferred_element_type=jnp.float32)

    y = acc + b_ref[...]                                         # (M, Cout)
    o_ref[...] = y                                               # one store
    ys = jnp.sum(y, axis=0, keepdims=True)
    yss = jnp.sum(y * y, axis=0, keepdims=True)
    ystat_ref[0] = jnp.concatenate([ys, yss], axis=0)            # one store


def conv3x3(x_nhwc, w, b, *, with_xstat=False):
    # x_nhwc: (M_imgs, H, W, Cin);  w: (3, 3, Cin, Cout);  b: (Cout,)
    # Returns (y_rows, y_stats[, x_stats]) where stats are (2, C) = [sum, sumsq].
    m_imgs, H, W, Cin = x_nhwc.shape
    Cout = w.shape[-1]
    x_itemsize = jnp.dtype(x_nhwc.dtype).itemsize
    tb = _pick_image_tile(m_imgs, H, W, Cin, Cout, x_itemsize)
    G = m_imgs // tb

    kern = functools.partial(_conv3x3_kernel, H=H, W=W, Cin=Cin, Cout=Cout,
                             tb=tb, with_xstat=with_xstat)

    out_shape = [jax.ShapeDtypeStruct((m_imgs * H * W, Cout), jnp.float32),
                 jax.ShapeDtypeStruct((G, 2, Cout), jnp.float32)]
    out_specs = [pl.BlockSpec((tb * H * W, Cout), lambda i: (i, 0)),
                 pl.BlockSpec((1, 2, Cout), lambda i: (i, 0, 0))]
    if with_xstat:
        out_shape.append(jax.ShapeDtypeStruct((G, 2, Cin), jnp.float32))
        out_specs.append(pl.BlockSpec((1, 2, Cin), lambda i: (i, 0, 0)))

    # Weights pre-cast once in the wrapper to match the input dtype (bf16 for
    # the spike-input conv); bias stays f32 (added to the f32 accumulator).
    w9 = w.reshape(9, Cin, Cout).astype(x_nhwc.dtype)
    b2d = b.reshape(1, Cout).astype(jnp.float32)

    res = pl.pallas_call(
        kern,
        out_shape=tuple(out_shape),
        grid=(G,),
        in_specs=[
            pl.BlockSpec((tb, H, W, Cin), lambda i: (i, 0, 0, 0)),
            pl.BlockSpec((9, Cin, Cout), lambda i: (0, 0, 0)),   # resident
            pl.BlockSpec((1, Cout), lambda i: (0, 0)),
        ],
        out_specs=tuple(out_specs),
        scratch_shapes=[pltpu.VMEM((tb, H + 2, W + 2, Cin), x_nhwc.dtype)],
        compiler_params=pltpu.CompilerParams(
            dimension_semantics=("parallel",),
            vmem_limit_bytes=_VMEM_LIMIT_BYTES),
    )(x_nhwc, w9, b2d)

    if with_xstat:
        y, ystat, xstat = res
        return y, jnp.sum(ystat, axis=0), jnp.sum(xstat, axis=0)
    y, ystat = res
    return y, jnp.sum(ystat, axis=0)


# ---------------------------------------------------------- TEBN affine fold
def _tebn_affine(stats, n_rows, gamma, beta, hw, eps=1e-5):
    # Fold BN (training-mode batch stats) into per-element scale/shift vectors
    # along the flattened F = H*W*C axis (lane-dense).
    # TODO(synk): E[x^2]-E[x]^2 in f32 can lose precision when |mean| >> std;
    # a two-pass / Welford reduction would be more robust.
    mean = stats[0] / n_rows
    var = jnp.maximum(stats[1] / n_rows - mean * mean, 0.0)
    inv = jax.lax.rsqrt(var + eps)
    scale = gamma * inv                      # (C,)
    shift = beta - mean * scale              # (C,)
    a_vec = jnp.tile(scale, hw).reshape(1, 1, -1)
    b_vec = jnp.tile(shift, hw).reshape(1, 1, -1)
    return a_vec, b_vec


# --------------------------------------------- fused TEBN-normalize + LIF
def _norm_lif_kernel(p_ref, y_ref, a_ref, b_ref, o_ref, *, tau, v_th, T):
    # p_ref: SMEM (T,);  y_ref: (1, T, tf);  a_ref/b_ref: (1, 1, tf)
    a = a_ref[...]
    b = b_ref[...]
    y = y_ref[...]                            # single block load
    mem = jnp.zeros_like(a)
    spikes = []
    for t in range(T):                        # short, unrolled recurrence
        x_in = (y[:, t:t + 1, :] * a + b) * p_ref[t]
        mem = tau * mem + x_in
        s = mem >= v_th
        spikes.append(s.astype(jnp.float32))
        mem = jnp.where(s, 0.0, mem)          # hard reset via select
    o_ref[...] = jnp.concatenate(spikes, axis=1).astype(o_ref.dtype)  # 1 store


def _add_norm_lif_kernel(p2_ref, p3_ref, y_ref, r_ref,
                         a2_ref, b2_ref, a3_ref, b3_ref, o_ref,
                         *, tau, v_th, T):
    a2 = a2_ref[...]
    b2 = b2_ref[...]
    a3 = a3_ref[...]
    b3 = b3_ref[...]
    y = y_ref[...]
    r = r_ref[...]
    mem = jnp.zeros_like(a2)
    spikes = []
    for t in range(T):
        left = (y[:, t:t + 1, :] * a2 + b2) * p2_ref[t]
        right = (r[:, t:t + 1, :] * a3 + b3) * p3_ref[t]
        mem = tau * mem + (left + right)
        s = mem >= v_th
        spikes.append(s.astype(jnp.float32))
        mem = jnp.where(s, 0.0, mem)
    o_ref[...] = jnp.concatenate(spikes, axis=1).astype(o_ref.dtype)


def _lif_common(N, T, F, n_streams):
    tf = _pick_lane_tile(F, T, n_streams)
    grid = (F // tf, N)                      # F outer so a/b blocks stay resident
    y_spec = pl.BlockSpec((1, T, tf), lambda f, n: (n, 0, f))
    v_spec = pl.BlockSpec((1, 1, tf), lambda f, n: (0, 0, f))
    smem_spec = pl.BlockSpec(memory_space=pltpu.MemorySpace.SMEM)
    cp = pltpu.CompilerParams(dimension_semantics=("parallel", "parallel"),
                              vmem_limit_bytes=_VMEM_LIMIT_BYTES)
    return grid, y_spec, v_spec, smem_spec, cp


def norm_lif(y_ntf, a_vec, b_vec, p, *, tau, v_th=1.0, out_dtype=jnp.float32):
    N, T, F = y_ntf.shape
    grid, y_spec, v_spec, smem_spec, cp = _lif_common(N, T, F, n_streams=2)
    return pl.pallas_call(
        functools.partial(_norm_lif_kernel, tau=tau, v_th=v_th, T=T),
        out_shape=jax.ShapeDtypeStruct((N, T, F), out_dtype),
        grid=grid,
        in_specs=[smem_spec, y_spec, v_spec, v_spec],
        out_specs=y_spec,
        compiler_params=cp,
    )(p, y_ntf, a_vec, b_vec)


def add_norm_lif(y_ntf, r_ntf, a2, b2, a3, b3, p2, p3, *, tau, v_th=1.0):
    N, T, F = y_ntf.shape
    grid, y_spec, v_spec, smem_spec, cp = _lif_common(N, T, F, n_streams=3)
    return pl.pallas_call(
        functools.partial(_add_norm_lif_kernel, tau=tau, v_th=v_th, T=T),
        out_shape=jax.ShapeDtypeStruct((N, T, F), jnp.float32),
        grid=grid,
        in_specs=[smem_spec, smem_spec, y_spec, y_spec,
                  v_spec, v_spec, v_spec, v_spec],
        out_specs=y_spec,
        compiler_params=cp,
    )(p2, p3, y_ntf, r_ntf, a2, b2, a3, b3)


# ------------------------------------------------------------------ BasicBlock
def basic_block_forward(x, params, tau=0.25, v_th=1.0, eps=1e-5):
    # x: (N, T, C, H, W)  -- PyTorch convention
    N, T, Cin, H, W = x.shape
    Cout = params["w1"].shape[-1]
    assert Cin == Cout, "residual add (downsample=None) requires in_ch == out_ch"
    HW = H * W
    R = N * T * HW

    x_nhwc = jnp.transpose(x, (0, 1, 3, 4, 2))                  # (N,T,H,W,C)

    # conv1 (SeqToANNContainer: (N,T) folded into batch) + fused per-channel
    # stats of its output (TEBN1) and of its input x (TEBN3, residual path).
    y1, st1, st3 = conv3x3(x_nhwc.reshape(N * T, H, W, Cin),
                           params["w1"], params["b1"], with_xstat=True)

    # TEBN1 affine + p1 + LIF fused in one kernel; spikes emitted in bf16.
    a1, b1 = _tebn_affine(st1, R, params["g1"], params["be1"], HW, eps)
    s1 = norm_lif(y1.reshape(N, T, HW * Cout), a1, b1, params["p1"],
                  tau=tau, v_th=v_th, out_dtype=jnp.bfloat16)

    # conv2 on bf16 spikes (exact in bf16 -> native MXU path) + fused stats.
    y2, st2 = conv3x3(s1.reshape(N * T, H, W, Cout),
                      params["w2"], params["b2"], with_xstat=False)

    # TEBN2 / TEBN3(residual) normalize + add + LIF fused in one kernel.
    a2, b2 = _tebn_affine(st2, R, params["g2"], params["be2"], HW, eps)
    a3, b3 = _tebn_affine(st3, R, params["g3"], params["be3"], HW, eps)
    out = add_norm_lif(y2.reshape(N, T, HW * Cout),
                       x_nhwc.reshape(N, T, HW * Cin),
                       a2, b2, a3, b3, params["p2"], params["p3"],
                       tau=tau, v_th=v_th)

    out = out.reshape(N, T, H, W, Cout)
    return jnp.transpose(out, (0, 1, 4, 2, 3))                  # (N,T,C,H,W)


# ------------------------------------------------------------------ params
def init_params(key, in_ch, out_ch, T=4):
    k1, k2, k3, k4 = jax.random.split(key, 4)
    bound1 = 1.0 / (in_ch * 9) ** 0.5
    bound2 = 1.0 / (out_ch * 9) ** 0.5
    return {
        "w1": jax.random.uniform(k1, (3, 3, in_ch, out_ch), jnp.float32,
                                 -bound1, bound1),
        "b1": jax.random.uniform(k2, (out_ch,), jnp.float32, -bound1, bound1),
        "w2": jax.random.uniform(k3, (3, 3, out_ch, out_ch), jnp.float32,
                                 -bound2, bound2),
        "b2": jax.random.uniform(k4, (out_ch,), jnp.float32, -bound2, bound2),
        "g1": jnp.ones((out_ch,), jnp.float32),
        "be1": jnp.zeros((out_ch,), jnp.float32),
        "p1": jnp.ones((T,), jnp.float32),
        "g2": jnp.ones((out_ch,), jnp.float32),
        "be2": jnp.zeros((out_ch,), jnp.float32),
        "p2": jnp.ones((T,), jnp.float32),
        "g3": jnp.ones((out_ch,), jnp.float32),
        "be3": jnp.zeros((out_ch,), jnp.float32),
        "p3": jnp.ones((T,), jnp.float32),
    }


if __name__ == "__main__":
    key = jax.random.PRNGKey(0)
    N, T, C, H, W = 2, 4, 4, 16, 16
    kx, kp = jax.random.split(key)
    x = jax.random.normal(kx, (N, T, C, H, W), jnp.float32)
    params = init_params(kp, in_ch=C, out_ch=C, T=T)

    fwd = jax.jit(functools.partial(basic_block_forward, tau=0.25))
    out = fwd(x, params)
    jax.block_until_ready(out)

    assert out.shape == (N, T, C, H, W)
    assert out.dtype == jnp.float32
    # LIF output must be binary spikes
    assert bool(jnp.all((out == 0.0) | (out == 1.0)))
    print("KERNEL_OK")
</pallas_src>

<mosaic_0001>
module attributes {stable_mosaic.version = 11 : i64} {
  func.func @_conv3x3_kernel(%arg0: i32, %arg1: memref<1x16x16x4xf32, #tpu.memory_space<vmem>>, %arg2: memref<9x4x4xf32, #tpu.memory_space<vmem>>, %arg3: memref<1x4xf32, #tpu.memory_space<vmem>>, %arg4: memref<256x4xf32, #tpu.memory_space<vmem>>, %arg5: memref<1x2x4xf32, #tpu.memory_space<vmem>>, %arg6: memref<1x2x4xf32, #tpu.memory_space<vmem>>, %arg7: memref<1x18x18x4xf32, #tpu.memory_space<vmem>>) attributes {dimension_semantics = [#tpu.dimension_semantics<parallel>], iteration_bounds = array<i64: 8>, scalar_prefetch = 0 : i64, scratch_operands = 1 : i64, tpu.core_type = #tpu.core_type<tc>, window_params = [{transform_indices = @transform_0, window_bounds = array<i64: 1, 16, 16, 4>}, {pipeline_mode = #tpu.pipeline_mode<synchronous>, transform_indices = @transform_1, window_bounds = array<i64: 9, 4, 4>}, {pipeline_mode = #tpu.pipeline_mode<synchronous>, transform_indices = @transform_2, window_bounds = array<i64: 1, 4>}, {transform_indices = @transform_3, window_bounds = array<i64: 256, 4>}, {transform_indices = @transform_4, window_bounds = array<i64: 1, 2, 4>}, {transform_indices = @transform_5, window_bounds = array<i64: 1, 2, 4>}]} {
    %cst = arith.constant 0.000000e+00 : f32
    %0 = vector.broadcast %cst : f32 to vector<1x1x18x4xf32>
    %cst_0 = arith.constant 0.000000e+00 : f32
    %1 = vector.broadcast %cst_0 : f32 to vector<1x18x1x4xf32>
    %c0 = arith.constant 0 : index
    %c0_1 = arith.constant 0 : index
    %c0_2 = arith.constant 0 : index
    %c0_3 = arith.constant 0 : index
    %2 = vector.load %arg7[%c0, %c0_1, %c0_2, %c0_3] : memref<1x18x18x4xf32, #tpu.memory_space<vmem>>, vector<1x1x18x4xf32>
    tpu.vector_store %arg7[%c0, %c0_1, %c0_2, %c0_3], %0 {strides = array<i32>} : memref<1x18x18x4xf32, #tpu.memory_space<vmem>>, vector<1x1x18x4xf32>,
    %c0_4 = arith.constant 0 : index
    %c17 = arith.constant 17 : index
    %c0_5 = arith.constant 0 : index
    %c0_6 = arith.constant 0 : index
    %3 = vector.load %arg7[%c0_4, %c17, %c0_5, %c0_6] : memref<1x18x18x4xf32, #tpu.memory_space<vmem>>, vector<1x1x18x4xf32>
    tpu.vector_store %arg7[%c0_4, %c17, %c0_5, %c0_6], %0 {strides = array<i32>} : memref<1x18x18x4xf32, #tpu.memory_space<vmem>>, vector<1x1x18x4xf32>,
    %c0_7 = arith.constant 0 : index
    %c0_8 = arith.constant 0 : index
    %c0_9 = arith.constant 0 : index
    %c0_10 = arith.constant 0 : index
    %4 = vector.load %arg7[%c0_7, %c0_8, %c0_9, %c0_10] : memref<1x18x18x4xf32, #tpu.memory_space<vmem>>, vector<1x18x1x4xf32>
    tpu.vector_store %arg7[%c0_7, %c0_8, %c0_9, %c0_10], %1 {strides = array<i32>} : memref<1x18x18x4xf32, #tpu.memory_space<vmem>>, vector<1x18x1x4xf32>,
    %c0_11 = arith.constant 0 : index
    %c0_12 = arith.constant 0 : index
    %c17_13 = arith.constant 17 : index
    %c0_14 = arith.constant 0 : index
    %5 = vector.load %arg7[%c0_11, %c0_12, %c17_13, %c0_14] : memref<1x18x18x4xf32, #tpu.memory_space<vmem>>, vector<1x18x1x4xf32>
    tpu.vector_store %arg7[%c0_11, %c0_12, %c17_13, %c0_14], %1 {strides = array<i32>} : memref<1x18x18x4xf32, #tpu.memory_space<vmem>>, vector<1x18x1x4xf32>,
    %c0_15 = arith.constant 0 : index
    %c0_16 = arith.constant 0 : index
    %c0_17 = arith.constant 0 : index
    %c0_18 = arith.constant 0 : index
    %6 = vector.load %arg1[%c0_15, %c0_16, %c0_17, %c0_18] : memref<1x16x16x4xf32, #tpu.memory_space<vmem>>, vector<1x16x16x4xf32>
    %c0_19 = arith.constant 0 : index
    %c1 = arith.constant 1 : index
    %c1_20 = arith.constant 1 : index
    %c0_21 = arith.constant 0 : index
    %7 = vector.load %arg7[%c0_19, %c1, %c1_20, %c0_21] : memref<1x18x18x4xf32, #tpu.memory_space<vmem>>, vector<1x16x16x4xf32>
    tpu.vector_store %arg7[%c0_19, %c1, %c1_20, %c0_21], %6 {strides = array<i32>} : memref<1x18x18x4xf32, #tpu.memory_space<vmem>>, vector<1x16x16x4xf32>,
    %8 = vector.shape_cast %6 : vector<1x16x16x4xf32> to vector<256x4xf32>
    %cst_22 = arith.constant dense<0.000000e+00> : vector<4xf32>
    %9 = vector.multi_reduction <add>, %8, %cst_22 [0] : vector<256x4xf32> to vector<4xf32>
    %10 = vector.shape_cast %9 : vector<4xf32> to vector<1x4xf32>
    %11 = arith.mulf %8, %8 : vector<256x4xf32>
    %cst_23 = arith.constant dense<0.000000e+00> : vector<4xf32>
    %12 = vector.multi_reduction <add>, %11, %cst_23 [0] : vector<256x4xf32> to vector<4xf32>
    %13 = vector.shape_cast %12 : vector<4xf32> to vector<1x4xf32>
    %14 = tpu.concatenate %10, %13 in 0 : vector<1x4xf32>, vector<1x4xf32> -> vector<2x4xf32>
    %c0_24 = arith.constant 0 : index
    %c0_25 = arith.constant 0 : index
    %c0_26 = arith.constant 0 : index
    %15 = vector.load %arg6[%c0_24, %c0_25, %c0_26] : memref<1x2x4xf32, #tpu.memory_space<vmem>>, vector<1x2x4xf32>
    %16 = vector.shape_cast %15 : vector<1x2x4xf32> to vector<2x4xf32>
    %17 = vector.shape_cast %14 : vector<2x4xf32> to vector<1x2x4xf32>
    tpu.vector_store %arg6[%c0_24, %c0_25, %c0_26], %17 {strides = array<i32>} : memref<1x2x4xf32, #tpu.memory_space<vmem>>, vector<1x2x4xf32>,
    %cst_27 = arith.constant 0.000000e+00 : f32
    %18 = vector.broadcast %cst_27 : f32 to vector<256x4xf32>
    %c0_28 = arith.constant 0 : index
    %c0_29 = arith.constant 0 : index
    %c0_30 = arith.constant 0 : index
    %c0_31 = arith.constant 0 : index
    %19 = vector.load %arg7[%c0_28, %c0_29, %c0_30, %c0_31] : memref<1x18x18x4xf32, #tpu.memory_space<vmem>>, vector<1x16x16x4xf32>
    %20 = vector.shape_cast %19 : vector<1x16x16x4xf32> to vector<256x4xf32>
    %c0_32 = arith.constant 0 : index
    %c0_33 = arith.constant 0 : index
    %c0_34 = arith.constant 0 : index
    %21 = vector.load %arg2[%c0_32, %c0_33, %c0_34] : memref<9x4x4xf32, #tpu.memory_space<vmem>>, vector<1x4x4xf32>
    %22 = vector.shape_cast %21 : vector<1x4x4xf32> to vector<4x4xf32>
    %cst_35 = arith.constant dense<0.000000e+00> : vector<256x4xf32>
    %23 = tpu.matmul %20, %22, %cst_35 {dimension_numbers = #tpu.dot_dimension_numbers<[1], [0], [0], [1], [0, 0, 1, 1], [], []>} : vector<256x4xf32>, vector<4x4xf32>, vector<256x4xf32> -> vector<256x4xf32>
    %24 = arith.addf %18, %23 : vector<256x4xf32>
    %c0_36 = arith.constant 0 : index
    %c0_37 = arith.constant 0 : index
    %c1_38 = arith.constant 1 : index
    %c0_39 = arith.constant 0 : index
    %25 = vector.load %arg7[%c0_36, %c0_37, %c1_38, %c0_39] : memref<1x18x18x4xf32, #tpu.memory_space<vmem>>, vector<1x16x16x4xf32>
    %26 = vector.shape_cast %25 : vector<1x16x16x4xf32> to vector<256x4xf32>
    %c1_40 = arith.constant 1 : index
    %c0_41 = arith.constant 0 : index
    %c0_42 = arith.constant 0 : index
    %27 = vector.load %arg2[%c1_40, %c0_41, %c0_42] : memref<9x4x4xf32, #tpu.memory_space<vmem>>, vector<1x4x4xf32>
    %28 = vector.shape_cast %27 : vector<1x4x4xf32> to vector<4x4xf32>
    %cst_43 = arith.constant dense<0.000000e+00> : vector<256x4xf32>
    %29 = tpu.matmul %26, %28, %cst_43 {dimension_numbers = #tpu.dot_dimension_numbers<[1], [0], [0], [1], [0, 0, 1, 1], [], []>} : vector<256x4xf32>, vector<4x4xf32>, vector<256x4xf32> -> vector<256x4xf32>
    %30 = arith.addf %24, %29 : vector<256x4xf32>
    %c0_44 = arith.constant 0 : index
    %c0_45 = arith.constant 0 : index
    %c2 = arith.constant 2 : index
    %c0_46 = arith.constant 0 : index
    %31 = vector.load %arg7[%c0_44, %c0_45, %c2, %c0_46] : memref<1x18x18x4xf32, #tpu.memory_space<vmem>>, vector<1x16x16x4xf32>
    %32 = vector.shape_cast %31 : vector<1x16x16x4xf32> to vector<256x4xf32>
    %c2_47 = arith.constant 2 : index
    %c0_48 = arith.constant 0 : index
    %c0_49 = arith.constant 0 : index
    %33 = vector.load %arg2[%c2_47, %c0_48, %c0_49] : memref<9x4x4xf32, #tpu.memory_space<vmem>>, vector<1x4x4xf32>
    %34 = vector.shape_cast %33 : vector<1x4x4xf32> to vector<4x4xf32>
    %cst_50 = arith.constant dense<0.000000e+00> : vector<256x4xf32>
    %35 = tpu.matmul %32, %34, %cst_50 {dimension_numbers = #tpu.dot_dimension_numbers<[1], [0], [0], [1], [0, 0, 1, 1], [], []>} : vector<256x4xf32>, vector<4x4xf32>, vector<256x4xf32> -> vector<256x4xf32>
    %36 = arith.addf %30, %35 : vector<256x4xf32>
    %c0_51 = arith.constant 0 : index
    %c1_52 = arith.constant 1 : index
    %c0_53 = arith.constant 0 : index
    %c0_54 = arith.constant 0 : index
    %37 = vector.load %arg7[%c0_51, %c1_52, %c0_53, %c0_54] : memref<1x18x18x4xf32, #tpu.memory_space<vmem>>, vector<1x16x16x4xf32>
    %38 = vector.shape_cast %37 : vector<1x16x16x4xf32> to vector<256x4xf32>
    %c3 = arith.constant 3 : index
    %c0_55 = arith.constant 0 : index
    %c0_56 = arith.constant 0 : index
    %39 = vector.load %arg2[%c3, %c0_55, %c0_56] : memref<9x4x4xf32, #tpu.memory_space<vmem>>, vector<1x4x4xf32>
    %40 = vector.shape_cast %39 : vector<1x4x4xf32> to vector<4x4xf32>
    %cst_57 = arith.constant dense<0.000000e+00> : vector<256x4xf32>
    %41 = tpu.matmul %38, %40, %cst_57 {dimension_numbers = #tpu.dot_dimension_numbers<[1], [0], [0], [1], [0, 0, 1, 1], [], []>} : vector<256x4xf32>, vector<4x4xf32>, vector<256x4xf32> -> vector<256x4xf32>
    %42 = arith.addf %36, %41 : vector<256x4xf32>
    %c0_58 = arith.constant 0 : index
    %c1_59 = arith.constant 1 : index
    %c1_60 = arith.constant 1 : index
    %c0_61 = arith.constant 0 : index
    %43 = vector.load %arg7[%c0_58, %c1_59, %c1_60, %c0_61] : memref<1x18x18x4xf32, #tpu.memory_space<vmem>>, vector<1x16x16x4xf32>
    %44 = vector.shape_cast %43 : vector<1x16x16x4xf32> to vector<256x4xf32>
    %c4 = arith.constant 4 : index
    %c0_62 = arith.constant 0 : index
    %c0_63 = arith.constant 0 : index
    %45 = vector.load %arg2[%c4, %c0_62, %c0_63] : memref<9x4x4xf32, #tpu.memory_space<vmem>>, vector<1x4x4xf32>
    %46 = vector.shape_cast %45 : vector<1x4x4xf32> to vector<4x4xf32>
    %cst_64 = arith.constant dense<0.000000e+00> : vector<256x4xf32>
    %47 = tpu.matmul %44, %46, %cst_64 {dimension_numbers = #tpu.dot_dimension_numbers<[1], [0], [0], [1], [0, 0, 1, 1], [], []>} : vector<256x4xf32>, vector<4x4xf32>, vector<256x4xf32> -> vector<256x4xf32>
    %48 = arith.addf %42, %47 : vector<256x4xf32>
    %c0_65 = arith.constant 0 : index
    %c1_66 = arith.constant 1 : index
    %c2_67 = arith.constant 2 : index
    %c0_68 = arith.constant 0 : index
    %49 = vector.load %arg7[%c0_65, %c1_66, %c2_67, %c0_68] : memref<1x18x18x4xf32, #tpu.memory_space<vmem>>, vector<1x16x16x4xf32>
    %50 = vector.shape_cast %49 : vector<1x16x16x4xf32> to vector<256x4xf32>
    %c5 = arith.constant 5 : index
    %c0_69 = arith.constant 0 : index
    %c0_70 = arith.constant 0 : index
    %51 = vector.load %arg2[%c5, %c0_69, %c0_70] : memref<9x4x4xf32, #tpu.memory_space<vmem>>, vector<1x4x4xf32>
    %52 = vector.shape_cast %51 : vector<1x4x4xf32> to vector<4x4xf32>
    %cst_71 = arith.constant dense<0.000000e+00> : vector<256x4xf32>
    %53 = tpu.matmul %50, %52, %cst_71 {dimension_numbers = #tpu.dot_dimension_numbers<[1], [0], [0], [1], [0, 0, 1, 1], [], []>} : vector<256x4xf32>, vector<4x4xf32>, vector<256x4xf32> -> vector<256x4xf32>
    %54 = arith.addf %48, %53 : vector<256x4xf32>
    %c0_72 = arith.constant 0 : index
    %c2_73 = arith.constant 2 : index
    %c0_74 = arith.constant 0 : index
    %c0_75 = arith.constant 0 : index
    %55 = vector.load %arg7[%c0_72, %c2_73, %c0_74, %c0_75] : memref<1x18x18x4xf32, #tpu.memory_space<vmem>>, vector<1x16x16x4xf32>
    %56 = vector.shape_cast %55 : vector<1x16x16x4xf32> to vector<256x4xf32>
    %c6 = arith.constant 6 : index
    %c0_76 = arith.constant 0 : index
    %c0_77 = arith.constant 0 : index
    %57 = vector.load %arg2[%c6, %c0_76, %c0_77] : memref<9x4x4xf32, #tpu.memory_space<vmem>>, vector<1x4x4xf32>
    %58 = vector.shape_cast %57 : vector<1x4x4xf32> to vector<4x4xf32>
    %cst_78 = arith.constant dense<0.000000e+00> : vector<256x4xf32>
    %59 = tpu.matmul %56, %58, %cst_78 {dimension_numbers = #tpu.dot_dimension_numbers<[1], [0], [0], [1], [0, 0, 1, 1], [], []>} : vector<256x4xf32>, vector<4x4xf32>, vector<256x4xf32> -> vector<256x4xf32>
    %60 = arith.addf %54, %59 : vector<256x4xf32>
    %c0_79 = arith.constant 0 : index
    %c2_80 = arith.constant 2 : index
    %c1_81 = arith.constant 1 : index
    %c0_82 = arith.constant 0 : index
    %61 = vector.load %arg7[%c0_79, %c2_80, %c1_81, %c0_82] : memref<1x18x18x4xf32, #tpu.memory_space<vmem>>, vector<1x16x16x4xf32>
    %62 = vector.shape_cast %61 : vector<1x16x16x4xf32> to vector<256x4xf32>
    %c7 = arith.constant 7 : index
    %c0_83 = arith.constant 0 : index
    %c0_84 = arith.constant 0 : index
    %63 = vector.load %arg2[%c7, %c0_83, %c0_84] : memref<9x4x4xf32, #tpu.memory_space<vmem>>, vector<1x4x4xf32>
    %64 = vector.shape_cast %63 : vector<1x4x4xf32> to vector<4x4xf32>
    %cst_85 = arith.constant dense<0.000000e+00> : vector<256x4xf32>
    %65 = tpu.matmul %62, %64, %cst_85 {dimension_numbers = #tpu.dot_dimension_numbers<[1], [0], [0], [1], [0, 0, 1, 1], [], []>} : vector<256x4xf32>, vector<4x4xf32>, vector<256x4xf32> -> vector<256x4xf32>
    %66 = arith.addf %60, %65 : vector<256x4xf32>
    %c0_86 = arith.constant 0 : index
    %c2_87 = arith.constant 2 : index
    %c2_88 = arith.constant 2 : index
    %c0_89 = arith.constant 0 : index
    %67 = vector.load %arg7[%c0_86, %c2_87, %c2_88, %c0_89] : memref<1x18x18x4xf32, #tpu.memory_space<vmem>>, vector<1x16x16x4xf32>
    %68 = vector.shape_cast %67 : vector<1x16x16x4xf32> to vector<256x4xf32>
    %c8 = arith.constant 8 : index
    %c0_90 = arith.constant 0 : index
    %c0_91 = arith.constant 0 : index
    %69 = vector.load %arg2[%c8, %c0_90, %c0_91] : memref<9x4x4xf32, #tpu.memory_space<vmem>>, vector<1x4x4xf32>
    %70 = vector.shape_cast %69 : vector<1x4x4xf32> to vector<4x4xf32>
    %cst_92 = arith.constant dense<0.000000e+00> : vector<256x4xf32>
    %71 = tpu.matmul %68, %70, %cst_92 {dimension_numbers = #tpu.dot_dimension_numbers<[1], [0], [0], [1], [0, 0, 1, 1], [], []>} : vector<256x4xf32>, vector<4x4xf32>, vector<256x4xf32> -> vector<256x4xf32>
    %72 = arith.addf %66, %71 : vector<256x4xf32>
    %c0_93 = arith.constant 0 : index
    %c0_94 = arith.constant 0 : index
    %73 = vector.load %arg3[%c0_93, %c0_94] : memref<1x4xf32, #tpu.memory_space<vmem>>, vector<1x4xf32>
    %74 = vector.broadcast %73 : vector<1x4xf32> to vector<256x4xf32>
    %75 = arith.addf %72, %74 : vector<256x4xf32>
    %c0_95 = arith.constant 0 : index
    %c0_96 = arith.constant 0 : index
    %76 = vector.load %arg4[%c0_95, %c0_96] : memref<256x4xf32, #tpu.memory_space<vmem>>, vector<256x4xf32>
    tpu.vector_store %arg4[%c0_95, %c0_96], %75 {strides = array<i32>} : memref<256x4xf32, #tpu.memory_space<vmem>>, vector<256x4xf32>,
    %cst_97 = arith.constant dense<0.000000e+00> : vector<4xf32>
    %77 = vector.multi_reduction <add>, %75, %cst_97 [0] : vector<256x4xf32> to vector<4xf32>
    %78 = vector.shape_cast %77 : vector<4xf32> to vector<1x4xf32>
    %79 = arith.mulf %75, %75 : vector<256x4xf32>
    %cst_98 = arith.constant dense<0.000000e+00> : vector<4xf32>
    %80 = vector.multi_reduction <add>, %79, %cst_98 [0] : vector<256x4xf32> to vector<4xf32>
    %81 = vector.shape_cast %80 : vector<4xf32> to vector<1x4xf32>
    %82 = tpu.concatenate %78, %81 in 0 : vector<1x4xf32>, vector<1x4xf32> -> vector<2x4xf32>
    %c0_99 = arith.constant 0 : index
    %c0_100 = arith.constant 0 : index
    %c0_101 = arith.constant 0 : index
    %83 = vector.load %arg5[%c0_99, %c0_100, %c0_101] : memref<1x2x4xf32, #tpu.memory_space<vmem>>, vector<1x2x4xf32>
    %84 = vector.shape_cast %83 : vector<1x2x4xf32> to vector<2x4xf32>
    %85 = vector.shape_cast %82 : vector<2x4xf32> to vector<1x2x4xf32>
    tpu.vector_store %arg5[%c0_99, %c0_100, %c0_101], %85 {strides = array<i32>} : memref<1x2x4xf32, #tpu.memory_space<vmem>>, vector<1x2x4xf32>,
    return
  }
  func.func @transform_0(%arg0: i32) -> (i32, i32, i32, i32) {
    %c0_i32 = arith.constant 0 : i32
    %c0_i32_0 = arith.constant 0 : i32
    %c0_i32_1 = arith.constant 0 : i32
    %c0_i32_2 = arith.constant 0 : i32
    return %arg0, %c0_i32, %c0_i32_0, %c0_i32_1 : i32, i32, i32, i32
  }
  func.func @transform_1(%arg0: i32) -> (i32, i32, i32) {
    %c0_i32 = arith.constant 0 : i32
    %c0_i32_0 = arith.constant 0 : i32
    %c0_i32_1 = arith.constant 0 : i32
    %c0_i32_2 = arith.constant 0 : i32
    return %c0_i32, %c0_i32_0, %c0_i32_1 : i32, i32, i32
  }
  func.func @transform_2(%arg0: i32) -> (i32, i32) {
    %c0_i32 = arith.constant 0 : i32
    %c0_i32_0 = arith.constant 0 : i32
    %c0_i32_1 = arith.constant 0 : i32
    return %c0_i32, %c0_i32_0 : i32, i32
  }
  func.func @transform_3(%arg0: i32) -> (i32, i32) {
    %c0_i32 = arith.constant 0 : i32
    %c0_i32_0 = arith.constant 0 : i32
    return %arg0, %c0_i32 : i32, i32
  }
  func.func @transform_4(%arg0: i32) -> (i32, i32, i32) {
    %c0_i32 = arith.constant 0 : i32
    %c0_i32_0 = arith.constant 0 : i32
    %c0_i32_1 = arith.constant 0 : i32
    return %arg0, %c0_i32, %c0_i32_0 : i32, i32, i32
  }
  func.func @transform_5(%arg0: i32) -> (i32, i32, i32) {
    %c0_i32 = arith.constant 0 : i32
    %c0_i32_0 = arith.constant 0 : i32
    %c0_i32_1 = arith.constant 0 : i32
    return %arg0, %c0_i32, %c0_i32_0 : i32, i32, i32
  }
}

module attributes {stable_mosaic.version = 11 : i64} {
  func.func @_norm_lif_kernel(%arg0: i32, %arg1: i32, %arg2: memref<4xf32, #tpu.memory_space<smem>>, %arg3: memref<1x4x1024xf32, #tpu.memory_space<vmem>>, %arg4: memref<1x1x1024xf32, #tpu.memory_space<vmem>>, %arg5: memref<1x1x1024xf32, #tpu.memory_space<vmem>>, %arg6: memref<1x4x1024xbf16, #tpu.memory_space<vmem>>) attributes {dimension_semantics = [#tpu.dimension_semantics<parallel>, #tpu.dimension_semantics<parallel>], iteration_bounds = array<i64: 1, 2>, scalar_prefetch = 0 : i64, scratch_operands = 0 : i64, tpu.core_type = #tpu.core_type<tc>, window_params = [{transform_indices = @transform_0, window_bounds = array<i64: 4>}, {transform_indices = @transform_1, window_bounds = array<i64: 1, 4, 1024>}, {transform_indices = @transform_2, window_bounds = array<i64: 1, 1, 1024>}, {transform_indices = @transform_3, window_bounds = array<i64: 1, 1, 1024>}, {transform_indices = @transform_4, window_bounds = array<i64: 1, 4, 1024>}]} {
    %c0 = arith.constant 0 : index
    %c0_0 = arith.constant 0 : index
    %c0_1 = arith.constant 0 : index
    %0 = vector.load %arg4[%c0, %c0_0, %c0_1] : memref<1x1x1024xf32, #tpu.memory_space<vmem>>, vector<1x1x1024xf32>
    %c0_2 = arith.constant 0 : index
    %c0_3 = arith.constant 0 : index
    %c0_4 = arith.constant 0 : index
    %1 = vector.load %arg5[%c0_2, %c0_3, %c0_4] : memref<1x1x1024xf32, #tpu.memory_space<vmem>>, vector<1x1x1024xf32>
    %c0_5 = arith.constant 0 : index
    %c0_6 = arith.constant 0 : index
    %c0_7 = arith.constant 0 : index
    %2 = vector.load %arg3[%c0_5, %c0_6, %c0_7] : memref<1x4x1024xf32, #tpu.memory_space<vmem>>, vector<1x4x1024xf32>
    %cst = arith.constant 0.000000e+00 : f32
    %3 = vector.broadcast %cst : f32 to vector<1x1x1024xf32>
    %4 = vector.extract_strided_slice %2 {offsets = [0, 0, 0], sizes = [1, 1, 1024], strides = [1, 1, 1]} : vector<1x4x1024xf32> to vector<1x1x1024xf32>
    %5 = arith.mulf %4, %0 : vector<1x1x1024xf32>
    %6 = arith.addf %5, %1 : vector<1x1x1024xf32>
    %c0_8 = arith.constant 0 : index
    %7 = memref.load %arg2[%c0_8] : memref<4xf32, #tpu.memory_space<smem>>
    %8 = vector.broadcast %7 : f32 to vector<1x1x1024xf32>
    %9 = arith.mulf %6, %8 : vector<1x1x1024xf32>
    %cst_9 = arith.constant 2.500000e-01 : f32
    %10 = vector.broadcast %cst_9 : f32 to vector<1x1x1024xf32>
    %11 = arith.mulf %10, %3 : vector<1x1x1024xf32>
    %12 = arith.addf %11, %9 : vector<1x1x1024xf32>
    %cst_10 = arith.constant 1.000000e+00 : f32
    %13 = vector.broadcast %cst_10 : f32 to vector<1x1x1024xf32>
    %14 = arith.cmpf oge, %12, %13 : vector<1x1x1024xf32>
    %15 = arith.extui %14 : vector<1x1x1024xi1> to vector<1x1x1024xi32>
    %16 = arith.sitofp %15 : vector<1x1x1024xi32> to vector<1x1x1024xf32>
    %cst_11 = arith.constant 0.000000e+00 : f32
    %17 = vector.broadcast %cst_11 : f32 to vector<1x1x1024xf32>
    %18 = arith.select %14, %17, %12 : vector<1x1x1024xi1>, vector<1x1x1024xf32>
    %19 = vector.extract_strided_slice %2 {offsets = [0, 1, 0], sizes = [1, 1, 1024], strides = [1, 1, 1]} : vector<1x4x1024xf32> to vector<1x1x1024xf32>
    %20 = arith.mulf %19, %0 : vector<1x1x1024xf32>
    %21 = arith.addf %20, %1 : vector<1x1x1024xf32>
    %c1 = arith.constant 1 : index
    %22 = memref.load %arg2[%c1] : memref<4xf32, #tpu.memory_space<smem>>
    %23 = vector.broadcast %22 : f32 to vector<1x1x1024xf32>
    %24 = arith.mulf %21, %23 : vector<1x1x1024xf32>
    %cst_12 = arith.constant 2.500000e-01 : f32
    %25 = vector.broadcast %cst_12 : f32 to vector<1x1x1024xf32>
    %26 = arith.mulf %25, %18 : vector<1x1x1024xf32>
    %27 = arith.addf %26, %24 : vector<1x1x1024xf32>
    %cst_13 = arith.constant 1.000000e+00 : f32
    %28 = vector.broadcast %cst_13 : f32 to vector<1x1x1024xf32>
    %29 = arith.cmpf oge, %27, %28 : vector<1x1x1024xf32>
    %30 = arith.extui %29 : vector<1x1x1024xi1> to vector<1x1x1024xi32>
    %31 = arith.sitofp %30 : vector<1x1x1024xi32> to vector<1x1x1024xf32>
    %cst_14 = arith.constant 0.000000e+00 : f32
    %32 = vector.broadcast %cst_14 : f32 to vector<1x1x1024xf32>
    %33 = arith.select %29, %32, %27 : vector<1x1x1024xi1>, vector<1x1x1024xf32>
    %34 = vector.extract_strided_slice %2 {offsets = [0, 2, 0], sizes = [1, 1, 1024], strides = [1, 1, 1]} : vector<1x4x1024xf32> to vector<1x1x1024xf32>
    %35 = arith.mulf %34, %0 : vector<1x1x1024xf32>
    %36 = arith.addf %35, %1 : vector<1x1x1024xf32>
    %c2 = arith.constant 2 : index
    %37 = memref.load %arg2[%c2] : memref<4xf32, #tpu.memory_space<smem>>
    %38 = vector.broadcast %37 : f32 to vector<1x1x1024xf32>
    %39 = arith.mulf %36, %38 : vector<1x1x1024xf32>
    %cst_15 = arith.constant 2.500000e-01 : f32
    %40 = vector.broadcast %cst_15 : f32 to vector<1x1x1024xf32>
    %41 = arith.mulf %40, %33 : vector<1x1x1024xf32>
    %42 = arith.addf %41, %39 : vector<1x1x1024xf32>
    %cst_16 = arith.constant 1.000000e+00 : f32
    %43 = vector.broadcast %cst_16 : f32 to vector<1x1x1024xf32>
    %44 = arith.cmpf oge, %42, %43 : vector<1x1x1024xf32>
    %45 = arith.extui %44 : vector<1x1x1024xi1> to vector<1x1x1024xi32>
    %46 = arith.sitofp %45 : vector<1x1x1024xi32> to vector<1x1x1024xf32>
    %cst_17 = arith.constant 0.000000e+00 : f32
    %47 = vector.broadcast %cst_17 : f32 to vector<1x1x1024xf32>
    %48 = arith.select %44, %47, %42 : vector<1x1x1024xi1>, vector<1x1x1024xf32>
    %49 = vector.extract_strided_slice %2 {offsets = [0, 3, 0], sizes = [1, 1, 1024], strides = [1, 1, 1]} : vector<1x4x1024xf32> to vector<1x1x1024xf32>
    %50 = arith.mulf %49, %0 : vector<1x1x1024xf32>
    %51 = arith.addf %50, %1 : vector<1x1x1024xf32>
    %c3 = arith.constant 3 : index
    %52 = memref.load %arg2[%c3] : memref<4xf32, #tpu.memory_space<smem>>
    %53 = vector.broadcast %52 : f32 to vector<1x1x1024xf32>
    %54 = arith.mulf %51, %53 : vector<1x1x1024xf32>
    %cst_18 = arith.constant 2.500000e-01 : f32
    %55 = vector.broadcast %cst_18 : f32 to vector<1x1x1024xf32>
    %56 = arith.mulf %55, %48 : vector<1x1x1024xf32>
    %57 = arith.addf %56, %54 : vector<1x1x1024xf32>
    %cst_19 = arith.constant 1.000000e+00 : f32
    %58 = vector.broadcast %cst_19 : f32 to vector<1x1x1024xf32>
    %59 = arith.cmpf oge, %57, %58 : vector<1x1x1024xf32>
    %60 = arith.extui %59 : vector<1x1x1024xi1> to vector<1x1x1024xi32>
    %61 = arith.sitofp %60 : vector<1x1x1024xi32> to vector<1x1x1024xf32>
    %62 = tpu.concatenate %16, %31, %46, %61 in 1 : vector<1x1x1024xf32>, vector<1x1x1024xf32>, vector<1x1x1024xf32>, vector<1x1x1024xf32> -> vector<1x4x1024xf32>
    %63 = arith.truncf %62 : vector<1x4x1024xf32> to vector<1x4x1024xbf16>
    %c0_20 = arith.constant 0 : index
    %c0_21 = arith.constant 0 : index
    %c0_22 = arith.constant 0 : index
    %64 = vector.load %arg6[%c0_20, %c0_21, %c0_22] : memref<1x4x1024xbf16, #tpu.memory_space<vmem>>, vector<1x4x1024xbf16>
    tpu.vector_store %arg6[%c0_20, %c0_21, %c0_22], %63 {strides = array<i32>} : memref<1x4x1024xbf16, #tpu.memory_space<vmem>>, vector<1x4x1024xbf16>,
    return
  }
  func.func @transform_0(%arg0: i32, %arg1: i32) -> i32 {
    %c0_i32 = arith.constant 0 : i32
    %c0_i32_0 = arith.constant 0 : i32
    return %c0_i32 : i32
  }
  func.func @transform_1(%arg0: i32, %arg1: i32) -> (i32, i32, i32) {
    %c0_i32 = arith.constant 0 : i32
    %c0_i32_0 = arith.constant 0 : i32
    return %arg1, %c0_i32, %arg0 : i32, i32, i32
  }
  func.func @transform_2(%arg0: i32, %arg1: i32) -> (i32, i32, i32) {
    %c0_i32 = arith.constant 0 : i32
    %c0_i32_0 = arith.constant 0 : i32
    %c0_i32_1 = arith.constant 0 : i32
    return %c0_i32, %c0_i32_0, %arg0 : i32, i32, i32
  }
  func.func @transform_3(%arg0: i32, %arg1: i32) -> (i32, i32, i32) {
    %c0_i32 = arith.constant 0 : i32
    %c0_i32_0 = arith.constant 0 : i32
    %c0_i32_1 = arith.constant 0 : i32
    return %c0_i32, %c0_i32_0, %arg0 : i32, i32, i32
  }
  func.func @transform_4(%arg0: i32, %arg1: i32) -> (i32, i32, i32) {
    %c0_i32 = arith.constant 0 : i32
    %c0_i32_0 = arith.constant 0 : i32
    return %arg1, %c0_i32, %arg0 : i32, i32, i32
  }
}

module attributes {stable_mosaic.version = 11 : i64} {
  func.func @_conv3x3_kernel(%arg0: i32, %arg1: memref<1x16x16x4xbf16, #tpu.memory_space<vmem>>, %arg2: memref<9x4x4xbf16, #tpu.memory_space<vmem>>, %arg3: memref<1x4xf32, #tpu.memory_space<vmem>>, %arg4: memref<256x4xf32, #tpu.memory_space<vmem>>, %arg5: memref<1x2x4xf32, #tpu.memory_space<vmem>>, %arg6: memref<1x18x18x4xbf16, #tpu.memory_space<vmem>>) attributes {dimension_semantics = [#tpu.dimension_semantics<parallel>], iteration_bounds = array<i64: 8>, scalar_prefetch = 0 : i64, scratch_operands = 1 : i64, tpu.core_type = #tpu.core_type<tc>, window_params = [{transform_indices = @transform_0, window_bounds = array<i64: 1, 16, 16, 4>}, {pipeline_mode = #tpu.pipeline_mode<synchronous>, transform_indices = @transform_1, window_bounds = array<i64: 9, 4, 4>}, {pipeline_mode = #tpu.pipeline_mode<synchronous>, transform_indices = @transform_2, window_bounds = array<i64: 1, 4>}, {transform_indices = @transform_3, window_bounds = array<i64: 256, 4>}, {transform_indices = @transform_4, window_bounds = array<i64: 1, 2, 4>}]} {
    %cst = arith.constant 0.000000e+00 : bf16
    %0 = vector.broadcast %cst : bf16 to vector<1x1x18x4xbf16>
    %cst_0 = arith.constant 0.000000e+00 : bf16
    %1 = vector.broadcast %cst_0 : bf16 to vector<1x18x1x4xbf16>
    %c0 = arith.constant 0 : index
    %c0_1 = arith.constant 0 : index
    %c0_2 = arith.constant 0 : index
    %c0_3 = arith.constant 0 : index
    %2 = vector.load %arg6[%c0, %c0_1, %c0_2, %c0_3] : memref<1x18x18x4xbf16, #tpu.memory_space<vmem>>, vector<1x1x18x4xbf16>
    tpu.vector_store %arg6[%c0, %c0_1, %c0_2, %c0_3], %0 {strides = array<i32>} : memref<1x18x18x4xbf16, #tpu.memory_space<vmem>>, vector<1x1x18x4xbf16>,
    %c0_4 = arith.constant 0 : index
    %c17 = arith.constant 17 : index
    %c0_5 = arith.constant 0 : index
    %c0_6 = arith.constant 0 : index
    %3 = vector.load %arg6[%c0_4, %c17, %c0_5, %c0_6] : memref<1x18x18x4xbf16, #tpu.memory_space<vmem>>, vector<1x1x18x4xbf16>
    tpu.vector_store %arg6[%c0_4, %c17, %c0_5, %c0_6], %0 {strides = array<i32>} : memref<1x18x18x4xbf16, #tpu.memory_space<vmem>>, vector<1x1x18x4xbf16>,
    %c0_7 = arith.constant 0 : index
    %c0_8 = arith.constant 0 : index
    %c0_9 = arith.constant 0 : index
    %c0_10 = arith.constant 0 : index
    %4 = vector.load %arg6[%c0_7, %c0_8, %c0_9, %c0_10] : memref<1x18x18x4xbf16, #tpu.memory_space<vmem>>, vector<1x18x1x4xbf16>
    tpu.vector_store %arg6[%c0_7, %c0_8, %c0_9, %c0_10], %1 {strides = array<i32>} : memref<1x18x18x4xbf16, #tpu.memory_space<vmem>>, vector<1x18x1x4xbf16>,
    %c0_11 = arith.constant 0 : index
    %c0_12 = arith.constant 0 : index
    %c17_13 = arith.constant 17 : index
    %c0_14 = arith.constant 0 : index
    %5 = vector.load %arg6[%c0_11, %c0_12, %c17_13, %c0_14] : memref<1x18x18x4xbf16, #tpu.memory_space<vmem>>, vector<1x18x1x4xbf16>
    tpu.vector_store %arg6[%c0_11, %c0_12, %c17_13, %c0_14], %1 {strides = array<i32>} : memref<1x18x18x4xbf16, #tpu.memory_space<vmem>>, vector<1x18x1x4xbf16>,
    %c0_15 = arith.constant 0 : index
    %c0_16 = arith.constant 0 : index
    %c0_17 = arith.constant 0 : index
    %c0_18 = arith.constant 0 : index
    %6 = vector.load %arg1[%c0_15, %c0_16, %c0_17, %c0_18] : memref<1x16x16x4xbf16, #tpu.memory_space<vmem>>, vector<1x16x16x4xbf16>
    %c0_19 = arith.constant 0 : index
    %c1 = arith.constant 1 : index
    %c1_20 = arith.constant 1 : index
    %c0_21 = arith.constant 0 : index
    %7 = vector.load %arg6[%c0_19, %c1, %c1_20, %c0_21] : memref<1x18x18x4xbf16, #tpu.memory_space<vmem>>, vector<1x16x16x4xbf16>
    tpu.vector_store %arg6[%c0_19, %c1, %c1_20, %c0_21], %6 {strides = array<i32>} : memref<1x18x18x4xbf16, #tpu.memory_space<vmem>>, vector<1x16x16x4xbf16>,
    %cst_22 = arith.constant 0.000000e+00 : f32
    %8 = vector.broadcast %cst_22 : f32 to vector<256x4xf32>
    %c0_23 = arith.constant 0 : index
    %c0_24 = arith.constant 0 : index
    %c0_25 = arith.constant 0 : index
    %c0_26 = arith.constant 0 : index
    %9 = vector.load %arg6[%c0_23, %c0_24, %c0_25, %c0_26] : memref<1x18x18x4xbf16, #tpu.memory_space<vmem>>, vector<1x16x16x4xbf16>
    %10 = vector.shape_cast %9 : vector<1x16x16x4xbf16> to vector<256x4xbf16>
    %c0_27 = arith.constant 0 : index
    %c0_28 = arith.constant 0 : index
    %c0_29 = arith.constant 0 : index
    %11 = vector.load %arg2[%c0_27, %c0_28, %c0_29] : memref<9x4x4xbf16, #tpu.memory_space<vmem>>, vector<1x4x4xbf16>
    %12 = vector.shape_cast %11 : vector<1x4x4xbf16> to vector<4x4xbf16>
    %cst_30 = arith.constant dense<0.000000e+00> : vector<256x4xf32>
    %13 = tpu.matmul %10, %12, %cst_30 {dimension_numbers = #tpu.dot_dimension_numbers<[1], [0], [0], [1], [0, 0, 1, 1], [], []>} : vector<256x4xbf16>, vector<4x4xbf16>, vector<256x4xf32> -> vector<256x4xf32>
    %14 = arith.addf %8, %13 : vector<256x4xf32>
    %c0_31 = arith.constant 0 : index
    %c0_32 = arith.constant 0 : index
    %c1_33 = arith.constant 1 : index
    %c0_34 = arith.constant 0 : index
    %15 = vector.load %arg6[%c0_31, %c0_32, %c1_33, %c0_34] : memref<1x18x18x4xbf16, #tpu.memory_space<vmem>>, vector<1x16x16x4xbf16>
    %16 = vector.shape_cast %15 : vector<1x16x16x4xbf16> to vector<256x4xbf16>
    %c1_35 = arith.constant 1 : index
    %c0_36 = arith.constant 0 : index
    %c0_37 = arith.constant 0 : index
    %17 = vector.load %arg2[%c1_35, %c0_36, %c0_37] : memref<9x4x4xbf16, #tpu.memory_space<vmem>>, vector<1x4x4xbf16>
    %18 = vector.shape_cast %17 : vector<1x4x4xbf16> to vector<4x4xbf16>
    %cst_38 = arith.constant dense<0.000000e+00> : vector<256x4xf32>
    %19 = tpu.matmul %16, %18, %cst_38 {dimension_numbers = #tpu.dot_dimension_numbers<[1], [0], [0], [1], [0, 0, 1, 1], [], []>} : vector<256x4xbf16>, vector<4x4xbf16>, vector<256x4xf32> -> vector<256x4xf32>
    %20 = arith.addf %14, %19 : vector<256x4xf32>
    %c0_39 = arith.constant 0 : index
    %c0_40 = arith.constant 0 : index
    %c2 = arith.constant 2 : index
    %c0_41 = arith.constant 0 : index
    %21 = vector.load %arg6[%c0_39, %c0_40, %c2, %c0_41] : memref<1x18x18x4xbf16, #tpu.memory_space<vmem>>, vector<1x16x16x4xbf16>
    %22 = vector.shape_cast %21 : vector<1x16x16x4xbf16> to vector<256x4xbf16>
    %c2_42 = arith.constant 2 : index
    %c0_43 = arith.constant 0 : index
    %c0_44 = arith.constant 0 : index
    %23 = vector.load %arg2[%c2_42, %c0_43, %c0_44] : memref<9x4x4xbf16, #tpu.memory_space<vmem>>, vector<1x4x4xbf16>
    %24 = vector.shape_cast %23 : vector<1x4x4xbf16> to vector<4x4xbf16>
    %cst_45 = arith.constant dense<0.000000e+00> : vector<256x4xf32>
    %25 = tpu.matmul %22, %24, %cst_45 {dimension_numbers = #tpu.dot_dimension_numbers<[1], [0], [0], [1], [0, 0, 1, 1], [], []>} : vector<256x4xbf16>, vector<4x4xbf16>, vector<256x4xf32> -> vector<256x4xf32>
    %26 = arith.addf %20, %25 : vector<256x4xf32>
    %c0_46 = arith.constant 0 : index
    %c1_47 = arith.constant 1 : index
    %c0_48 = arith.constant 0 : index
    %c0_49 = arith.constant 0 : index
    %27 = vector.load %arg6[%c0_46, %c1_47, %c0_48, %c0_49] : memref<1x18x18x4xbf16, #tpu.memory_space<vmem>>, vector<1x16x16x4xbf16>
    %28 = vector.shape_cast %27 : vector<1x16x16x4xbf16> to vector<256x4xbf16>
    %c3 = arith.constant 3 : index
    %c0_50 = arith.constant 0 : index
    %c0_51 = arith.constant 0 : index
    %29 = vector.load %arg2[%c3, %c0_50, %c0_51] : memref<9x4x4xbf16, #tpu.memory_space<vmem>>, vector<1x4x4xbf16>
    %30 = vector.shape_cast %29 : vector<1x4x4xbf16> to vector<4x4xbf16>
    %cst_52 = arith.constant dense<0.000000e+00> : vector<256x4xf32>
    %31 = tpu.matmul %28, %30, %cst_52 {dimension_numbers = #tpu.dot_dimension_numbers<[1], [0], [0], [1], [0, 0, 1, 1], [], []>} : vector<256x4xbf16>, vector<4x4xbf16>, vector<256x4xf32> -> vector<256x4xf32>
    %32 = arith.addf %26, %31 : vector<256x4xf32>
    %c0_53 = arith.constant 0 : index
    %c1_54 = arith.constant 1 : index
    %c1_55 = arith.constant 1 : index
    %c0_56 = arith.constant 0 : index
    %33 = vector.load %arg6[%c0_53, %c1_54, %c1_55, %c0_56] : memref<1x18x18x4xbf16, #tpu.memory_space<vmem>>, vector<1x16x16x4xbf16>
    %34 = vector.shape_cast %33 : vector<1x16x16x4xbf16> to vector<256x4xbf16>
    %c4 = arith.constant 4 : index
    %c0_57 = arith.constant 0 : index
    %c0_58 = arith.constant 0 : index
    %35 = vector.load %arg2[%c4, %c0_57, %c0_58] : memref<9x4x4xbf16, #tpu.memory_space<vmem>>, vector<1x4x4xbf16>
    %36 = vector.shape_cast %35 : vector<1x4x4xbf16> to vector<4x4xbf16>
    %cst_59 = arith.constant dense<0.000000e+00> : vector<256x4xf32>
    %37 = tpu.matmul %34, %36, %cst_59 {dimension_numbers = #tpu.dot_dimension_numbers<[1], [0], [0], [1], [0, 0, 1, 1], [], []>} : vector<256x4xbf16>, vector<4x4xbf16>, vector<256x4xf32> -> vector<256x4xf32>
    %38 = arith.addf %32, %37 : vector<256x4xf32>
    %c0_60 = arith.constant 0 : index
    %c1_61 = arith.constant 1 : index
    %c2_62 = arith.constant 2 : index
    %c0_63 = arith.constant 0 : index
    %39 = vector.load %arg6[%c0_60, %c1_61, %c2_62, %c0_63] : memref<1x18x18x4xbf16, #tpu.memory_space<vmem>>, vector<1x16x16x4xbf16>
    %40 = vector.shape_cast %39 : vector<1x16x16x4xbf16> to vector<256x4xbf16>
    %c5 = arith.constant 5 : index
    %c0_64 = arith.constant 0 : index
    %c0_65 = arith.constant 0 : index
    %41 = vector.load %arg2[%c5, %c0_64, %c0_65] : memref<9x4x4xbf16, #tpu.memory_space<vmem>>, vector<1x4x4xbf16>
    %42 = vector.shape_cast %41 : vector<1x4x4xbf16> to vector<4x4xbf16>
    %cst_66 = arith.constant dense<0.000000e+00> : vector<256x4xf32>
    %43 = tpu.matmul %40, %42, %cst_66 {dimension_numbers = #tpu.dot_dimension_numbers<[1], [0], [0], [1], [0, 0, 1, 1], [], []>} : vector<256x4xbf16>, vector<4x4xbf16>, vector<256x4xf32> -> vector<256x4xf32>
    %44 = arith.addf %38, %43 : vector<256x4xf32>
    %c0_67 = arith.constant 0 : index
    %c2_68 = arith.constant 2 : index
    %c0_69 = arith.constant 0 : index
    %c0_70 = arith.constant 0 : index
    %45 = vector.load %arg6[%c0_67, %c2_68, %c0_69, %c0_70] : memref<1x18x18x4xbf16, #tpu.memory_space<vmem>>, vector<1x16x16x4xbf16>
    %46 = vector.shape_cast %45 : vector<1x16x16x4xbf16> to vector<256x4xbf16>
    %c6 = arith.constant 6 : index
    %c0_71 = arith.constant 0 : index
    %c0_72 = arith.constant 0 : index
    %47 = vector.load %arg2[%c6, %c0_71, %c0_72] : memref<9x4x4xbf16, #tpu.memory_space<vmem>>, vector<1x4x4xbf16>
    %48 = vector.shape_cast %47 : vector<1x4x4xbf16> to vector<4x4xbf16>
    %cst_73 = arith.constant dense<0.000000e+00> : vector<256x4xf32>
    %49 = tpu.matmul %46, %48, %cst_73 {dimension_numbers = #tpu.dot_dimension_numbers<[1], [0], [0], [1], [0, 0, 1, 1], [], []>} : vector<256x4xbf16>, vector<4x4xbf16>, vector<256x4xf32> -> vector<256x4xf32>
    %50 = arith.addf %44, %49 : vector<256x4xf32>
    %c0_74 = arith.constant 0 : index
    %c2_75 = arith.constant 2 : index
    %c1_76 = arith.constant 1 : index
    %c0_77 = arith.constant 0 : index
    %51 = vector.load %arg6[%c0_74, %c2_75, %c1_76, %c0_77] : memref<1x18x18x4xbf16, #tpu.memory_space<vmem>>, vector<1x16x16x4xbf16>
    %52 = vector.shape_cast %51 : vector<1x16x16x4xbf16> to vector<256x4xbf16>
    %c7 = arith.constant 7 : index
    %c0_78 = arith.constant 0 : index
    %c0_79 = arith.constant 0 : index
    %53 = vector.load %arg2[%c7, %c0_78, %c0_79] : memref<9x4x4xbf16, #tpu.memory_space<vmem>>, vector<1x4x4xbf16>
    %54 = vector.shape_cast %53 : vector<1x4x4xbf16> to vector<4x4xbf16>
    %cst_80 = arith.constant dense<0.000000e+00> : vector<256x4xf32>
    %55 = tpu.matmul %52, %54, %cst_80 {dimension_numbers = #tpu.dot_dimension_numbers<[1], [0], [0], [1], [0, 0, 1, 1], [], []>} : vector<256x4xbf16>, vector<4x4xbf16>, vector<256x4xf32> -> vector<256x4xf32>
    %56 = arith.addf %50, %55 : vector<256x4xf32>
    %c0_81 = arith.constant 0 : index
    %c2_82 = arith.constant 2 : index
    %c2_83 = arith.constant 2 : index
    %c0_84 = arith.constant 0 : index
    %57 = vector.load %arg6[%c0_81, %c2_82, %c2_83, %c0_84] : memref<1x18x18x4xbf16, #tpu.memory_space<vmem>>, vector<1x16x16x4xbf16>
    %58 = vector.shape_cast %57 : vector<1x16x16x4xbf16> to vector<256x4xbf16>
    %c8 = arith.constant 8 : index
    %c0_85 = arith.constant 0 : index
    %c0_86 = arith.constant 0 : index
    %59 = vector.load %arg2[%c8, %c0_85, %c0_86] : memref<9x4x4xbf16, #tpu.memory_space<vmem>>, vector<1x4x4xbf16>
    %60 = vector.shape_cast %59 : vector<1x4x4xbf16> to vector<4x4xbf16>
    %cst_87 = arith.constant dense<0.000000e+00> : vector<256x4xf32>
    %61 = tpu.matmul %58, %60, %cst_87 {dimension_numbers = #tpu.dot_dimension_numbers<[1], [0], [0], [1], [0, 0, 1, 1], [], []>} : vector<256x4xbf16>, vector<4x4xbf16>, vector<256x4xf32> -> vector<256x4xf32>
    %62 = arith.addf %56, %61 : vector<256x4xf32>
    %c0_88 = arith.constant 0 : index
    %c0_89 = arith.constant 0 : index
    %63 = vector.load %arg3[%c0_88, %c0_89] : memref<1x4xf32, #tpu.memory_space<vmem>>, vector<1x4xf32>
    %64 = vector.broadcast %63 : vector<1x4xf32> to vector<256x4xf32>
    %65 = arith.addf %62, %64 : vector<256x4xf32>
    %c0_90 = arith.constant 0 : index
    %c0_91 = arith.constant 0 : index
    %66 = vector.load %arg4[%c0_90, %c0_91] : memref<256x4xf32, #tpu.memory_space<vmem>>, vector<256x4xf32>
    tpu.vector_store %arg4[%c0_90, %c0_91], %65 {strides = array<i32>} : memref<256x4xf32, #tpu.memory_space<vmem>>, vector<256x4xf32>,
    %cst_92 = arith.constant dense<0.000000e+00> : vector<4xf32>
    %67 = vector.multi_reduction <add>, %65, %cst_92 [0] : vector<256x4xf32> to vector<4xf32>
    %68 = vector.shape_cast %67 : vector<4xf32> to vector<1x4xf32>
    %69 = arith.mulf %65, %65 : vector<256x4xf32>
    %cst_93 = arith.constant dense<0.000000e+00> : vector<4xf32>
    %70 = vector.multi_reduction <add>, %69, %cst_93 [0] : vector<256x4xf32> to vector<4xf32>
    %71 = vector.shape_cast %70 : vector<4xf32> to vector<1x4xf32>
    %72 = tpu.concatenate %68, %71 in 0 : vector<1x4xf32>, vector<1x4xf32> -> vector<2x4xf32>
    %c0_94 = arith.constant 0 : index
    %c0_95 = arith.constant 0 : index
    %c0_96 = arith.constant 0 : index
    %73 = vector.load %arg5[%c0_94, %c0_95, %c0_96] : memref<1x2x4xf32, #tpu.memory_space<vmem>>, vector<1x2x4xf32>
    %74 = vector.shape_cast %73 : vector<1x2x4xf32> to vector<2x4xf32>
    %75 = vector.shape_cast %72 : vector<2x4xf32> to vector<1x2x4xf32>
    tpu.vector_store %arg5[%c0_94, %c0_95, %c0_96], %75 {strides = array<i32>} : memref<1x2x4xf32, #tpu.memory_space<vmem>>, vector<1x2x4xf32>,
    return
  }
  func.func @transform_0(%arg0: i32) -> (i32, i32, i32, i32) {
    %c0_i32 = arith.constant 0 : i32
    %c0_i32_0 = arith.constant 0 : i32
    %c0_i32_1 = arith.constant 0 : i32
    %c0_i32_2 = arith.constant 0 : i32
    return %arg0, %c0_i32, %c0_i32_0, %c0_i32_1 : i32, i32, i32, i32
  }
  func.func @transform_1(%arg0: i32) -> (i32, i32, i32) {
    %c0_i32 = arith.constant 0 : i32
    %c0_i32_0 = arith.constant 0 : i32
    %c0_i32_1 = arith.constant 0 : i32
    %c0_i32_2 = arith.constant 0 : i32
    return %c0_i32, %c0_i32_0, %c0_i32_1 : i32, i32, i32
  }
  func.func @transform_2(%arg0: i32) -> (i32, i32) {
    %c0_i32 = arith.constant 0 : i32
    %c0_i32_0 = arith.constant 0 : i32
    %c0_i32_1 = arith.constant 0 : i32
    return %c0_i32, %c0_i32_0 : i32, i32
  }
  func.func @transform_3(%arg0: i32) -> (i32, i32) {
    %c0_i32 = arith.constant 0 : i32
    %c0_i32_0 = arith.constant 0 : i32
    return %arg0, %c0_i32 : i32, i32
  }
  func.func @transform_4(%arg0: i32) -> (i32, i32, i32) {
    %c0_i32 = arith.constant 0 : i32
    %c0_i32_0 = arith.constant 0 : i32
    %c0_i32_1 = arith.constant 0 : i32
    return %arg0, %c0_i32, %c0_i32_0 : i32, i32, i32
  }
}

module attributes {stable_mosaic.version = 11 : i64} {
  func.func @_add_norm_lif_kernel(%arg0: i32, %arg1: i32, %arg2: memref<4xf32, #tpu.memory_space<smem>>, %arg3: memref<4xf32, #tpu.memory_space<smem>>, %arg4: memref<1x4x1024xf32, #tpu.memory_space<vmem>>, %arg5: memref<1x4x1024xf32, #tpu.memory_space<vmem>>, %arg6: memref<1x1x1024xf32, #tpu.memory_space<vmem>>, %arg7: memref<1x1x1024xf32, #tpu.memory_space<vmem>>, %arg8: memref<1x1x1024xf32, #tpu.memory_space<vmem>>, %arg9: memref<1x1x1024xf32, #tpu.memory_space<vmem>>, %arg10: memref<1x4x1024xf32, #tpu.memory_space<vmem>>) attributes {dimension_semantics = [#tpu.dimension_semantics<parallel>, #tpu.dimension_semantics<parallel>], iteration_bounds = array<i64: 1, 2>, scalar_prefetch = 0 : i64, scratch_operands = 0 : i64, tpu.core_type = #tpu.core_type<tc>, window_params = [{transform_indices = @transform_0, window_bounds = array<i64: 4>}, {transform_indices = @transform_1, window_bounds = array<i64: 4>}, {transform_indices = @transform_2, window_bounds = array<i64: 1, 4, 1024>}, {transform_indices = @transform_3, window_bounds = array<i64: 1, 4, 1024>}, {transform_indices = @transform_4, window_bounds = array<i64: 1, 1, 1024>}, {transform_indices = @transform_5, window_bounds = array<i64: 1, 1, 1024>}, {transform_indices = @transform_6, window_bounds = array<i64: 1, 1, 1024>}, {transform_indices = @transform_7, window_bounds = array<i64: 1, 1, 1024>}, {transform_indices = @transform_8, window_bounds = array<i64: 1, 4, 1024>}]} {
    %c0 = arith.constant 0 : index
    %c0_0 = arith.constant 0 : index
    %c0_1 = arith.constant 0 : index
    %0 = vector.load %arg6[%c0, %c0_0, %c0_1] : memref<1x1x1024xf32, #tpu.memory_space<vmem>>, vector<1x1x1024xf32>
    %c0_2 = arith.constant 0 : index
    %c0_3 = arith.constant 0 : index
    %c0_4 = arith.constant 0 : index
    %1 = vector.load %arg7[%c0_2, %c0_3, %c0_4] : memref<1x1x1024xf32, #tpu.memory_space<vmem>>, vector<1x1x1024xf32>
    %c0_5 = arith.constant 0 : index
    %c0_6 = arith.constant 0 : index
    %c0_7 = arith.constant 0 : index
    %2 = vector.load %arg8[%c0_5, %c0_6, %c0_7] : memref<1x1x1024xf32, #tpu.memory_space<vmem>>, vector<1x1x1024xf32>
    %c0_8 = arith.constant 0 : index
    %c0_9 = arith.constant 0 : index
    %c0_10 = arith.constant 0 : index
    %3 = vector.load %arg9[%c0_8, %c0_9, %c0_10] : memref<1x1x1024xf32, #tpu.memory_space<vmem>>, vector<1x1x1024xf32>
    %c0_11 = arith.constant 0 : index
    %c0_12 = arith.constant 0 : index
    %c0_13 = arith.constant 0 : index
    %4 = vector.load %arg4[%c0_11, %c0_12, %c0_13] : memref<1x4x1024xf32, #tpu.memory_space<vmem>>, vector<1x4x1024xf32>
    %c0_14 = arith.constant 0 : index
    %c0_15 = arith.constant 0 : index
    %c0_16 = arith.constant 0 : index
    %5 = vector.load %arg5[%c0_14, %c0_15, %c0_16] : memref<1x4x1024xf32, #tpu.memory_space<vmem>>, vector<1x4x1024xf32>
    %cst = arith.constant 0.000000e+00 : f32
    %6 = vector.broadcast %cst : f32 to vector<1x1x1024xf32>
    %7 = vector.extract_strided_slice %4 {offsets = [0, 0, 0], sizes = [1, 1, 1024], strides = [1, 1, 1]} : vector<1x4x1024xf32> to vector<1x1x1024xf32>
    %8 = arith.mulf %7, %0 : vector<1x1x1024xf32>
    %9 = arith.addf %8, %1 : vector<1x1x1024xf32>
    %c0_17 = arith.constant 0 : index
    %10 = memref.load %arg2[%c0_17] : memref<4xf32, #tpu.memory_space<smem>>
    %11 = vector.broadcast %10 : f32 to vector<1x1x1024xf32>
    %12 = arith.mulf %9, %11 : vector<1x1x1024xf32>
    %13 = vector.extract_strided_slice %5 {offsets = [0, 0, 0], sizes = [1, 1, 1024], strides = [1, 1, 1]} : vector<1x4x1024xf32> to vector<1x1x1024xf32>
    %14 = arith.mulf %13, %2 : vector<1x1x1024xf32>
    %15 = arith.addf %14, %3 : vector<1x1x1024xf32>
    %c0_18 = arith.constant 0 : index
    %16 = memref.load %arg3[%c0_18] : memref<4xf32, #tpu.memory_space<smem>>
    %17 = vector.broadcast %16 : f32 to vector<1x1x1024xf32>
    %18 = arith.mulf %15, %17 : vector<1x1x1024xf32>
    %cst_19 = arith.constant 2.500000e-01 : f32
    %19 = vector.broadcast %cst_19 : f32 to vector<1x1x1024xf32>
    %20 = arith.mulf %19, %6 : vector<1x1x1024xf32>
    %21 = arith.addf %12, %18 : vector<1x1x1024xf32>
    %22 = arith.addf %20, %21 : vector<1x1x1024xf32>
    %cst_20 = arith.constant 1.000000e+00 : f32
    %23 = vector.broadcast %cst_20 : f32 to vector<1x1x1024xf32>
    %24 = arith.cmpf oge, %22, %23 : vector<1x1x1024xf32>
    %25 = arith.extui %24 : vector<1x1x1024xi1> to vector<1x1x1024xi32>
    %26 = arith.sitofp %25 : vector<1x1x1024xi32> to vector<1x1x1024xf32>
    %cst_21 = arith.constant 0.000000e+00 : f32
    %27 = vector.broadcast %cst_21 : f32 to vector<1x1x1024xf32>
    %28 = arith.select %24, %27, %22 : vector<1x1x1024xi1>, vector<1x1x1024xf32>
    %29 = vector.extract_strided_slice %4 {offsets = [0, 1, 0], sizes = [1, 1, 1024], strides = [1, 1, 1]} : vector<1x4x1024xf32> to vector<1x1x1024xf32>
    %30 = arith.mulf %29, %0 : vector<1x1x1024xf32>
    %31 = arith.addf %30, %1 : vector<1x1x1024xf32>
    %c1 = arith.constant 1 : index
    %32 = memref.load %arg2[%c1] : memref<4xf32, #tpu.memory_space<smem>>
    %33 = vector.broadcast %32 : f32 to vector<1x1x1024xf32>
    %34 = arith.mulf %31, %33 : vector<1x1x1024xf32>
    %35 = vector.extract_strided_slice %5 {offsets = [0, 1, 0], sizes = [1, 1, 1024], strides = [1, 1, 1]} : vector<1x4x1024xf32> to vector<1x1x1024xf32>
    %36 = arith.mulf %35, %2 : vector<1x1x1024xf32>
    %37 = arith.addf %36, %3 : vector<1x1x1024xf32>
    %c1_22 = arith.constant 1 : index
    %38 = memref.load %arg3[%c1_22] : memref<4xf32, #tpu.memory_space<smem>>
    %39 = vector.broadcast %38 : f32 to vector<1x1x1024xf32>
    %40 = arith.mulf %37, %39 : vector<1x1x1024xf32>
    %cst_23 = arith.constant 2.500000e-01 : f32
    %41 = vector.broadcast %cst_23 : f32 to vector<1x1x1024xf32>
    %42 = arith.mulf %41, %28 : vector<1x1x1024xf32>
    %43 = arith.addf %34, %40 : vector<1x1x1024xf32>
    %44 = arith.addf %42, %43 : vector<1x1x1024xf32>
    %cst_24 = arith.constant 1.000000e+00 : f32
    %45 = vector.broadcast %cst_24 : f32 to vector<1x1x1024xf32>
    %46 = arith.cmpf oge, %44, %45 : vector<1x1x1024xf32>
    %47 = arith.extui %46 : vector<1x1x1024xi1> to vector<1x1x1024xi32>
    %48 = arith.sitofp %47 : vector<1x1x1024xi32> to vector<1x1x1024xf32>
    %cst_25 = arith.constant 0.000000e+00 : f32
    %49 = vector.broadcast %cst_25 : f32 to vector<1x1x1024xf32>
    %50 = arith.select %46, %49, %44 : vector<1x1x1024xi1>, vector<1x1x1024xf32>
    %51 = vector.extract_strided_slice %4 {offsets = [0, 2, 0], sizes = [1, 1, 1024], strides = [1, 1, 1]} : vector<1x4x1024xf32> to vector<1x1x1024xf32>
    %52 = arith.mulf %51, %0 : vector<1x1x1024xf32>
    %53 = arith.addf %52, %1 : vector<1x1x1024xf32>
    %c2 = arith.constant 2 : index
    %54 = memref.load %arg2[%c2] : memref<4xf32, #tpu.memory_space<smem>>
    %55 = vector.broadcast %54 : f32 to vector<1x1x1024xf32>
    %56 = arith.mulf %53, %55 : vector<1x1x1024xf32>
    %57 = vector.extract_strided_slice %5 {offsets = [0, 2, 0], sizes = [1, 1, 1024], strides = [1, 1, 1]} : vector<1x4x1024xf32> to vector<1x1x1024xf32>
    %58 = arith.mulf %57, %2 : vector<1x1x1024xf32>
    %59 = arith.addf %58, %3 : vector<1x1x1024xf32>
    %c2_26 = arith.constant 2 : index
    %60 = memref.load %arg3[%c2_26] : memref<4xf32, #tpu.memory_space<smem>>
    %61 = vector.broadcast %60 : f32 to vector<1x1x1024xf32>
    %62 = arith.mulf %59, %61 : vector<1x1x1024xf32>
    %cst_27 = arith.constant 2.500000e-01 : f32
    %63 = vector.broadcast %cst_27 : f32 to vector<1x1x1024xf32>
    %64 = arith.mulf %63, %50 : vector<1x1x1024xf32>
    %65 = arith.addf %56, %62 : vector<1x1x1024xf32>
    %66 = arith.addf %64, %65 : vector<1x1x1024xf32>
    %cst_28 = arith.constant 1.000000e+00 : f32
    %67 = vector.broadcast %cst_28 : f32 to vector<1x1x1024xf32>
    %68 = arith.cmpf oge, %66, %67 : vector<1x1x1024xf32>
    %69 = arith.extui %68 : vector<1x1x1024xi1> to vector<1x1x1024xi32>
    %70 = arith.sitofp %69 : vector<1x1x1024xi32> to vector<1x1x1024xf32>
    %cst_29 = arith.constant 0.000000e+00 : f32
    %71 = vector.broadcast %cst_29 : f32 to vector<1x1x1024xf32>
    %72 = arith.select %68, %71, %66 : vector<1x1x1024xi1>, vector<1x1x1024xf32>
    %73 = vector.extract_strided_slice %4 {offsets = [0, 3, 0], sizes = [1, 1, 1024], strides = [1, 1, 1]} : vector<1x4x1024xf32> to vector<1x1x1024xf32>
    %74 = arith.mulf %73, %0 : vector<1x1x1024xf32>
    %75 = arith.addf %74, %1 : vector<1x1x1024xf32>
    %c3 = arith.constant 3 : index
    %76 = memref.load %arg2[%c3] : memref<4xf32, #tpu.memory_space<smem>>
    %77 = vector.broadcast %76 : f32 to vector<1x1x1024xf32>
    %78 = arith.mulf %75, %77 : vector<1x1x1024xf32>
    %79 = vector.extract_strided_slice %5 {offsets = [0, 3, 0], sizes = [1, 1, 1024], strides = [1, 1, 1]} : vector<1x4x1024xf32> to vector<1x1x1024xf32>
    %80 = arith.mulf %79, %2 : vector<1x1x1024xf32>
    %81 = arith.addf %80, %3 : vector<1x1x1024xf32>
    %c3_30 = arith.constant 3 : index
    %82 = memref.load %arg3[%c3_30] : memref<4xf32, #tpu.memory_space<smem>>
    %83 = vector.broadcast %82 : f32 to vector<1x1x1024xf32>
    %84 = arith.mulf %81, %83 : vector<1x1x1024xf32>
    %cst_31 = arith.constant 2.500000e-01 : f32
    %85 = vector.broadcast %cst_31 : f32 to vector<1x1x1024xf32>
    %86 = arith.mulf %85, %72 : vector<1x1x1024xf32>
    %87 = arith.addf %78, %84 : vector<1x1x1024xf32>
    %88 = arith.addf %86, %87 : vector<1x1x1024xf32>
    %cst_32 = arith.constant 1.000000e+00 : f32
    %89 = vector.broadcast %cst_32 : f32 to vector<1x1x1024xf32>
    %90 = arith.cmpf oge, %88, %89 : vector<1x1x1024xf32>
    %91 = arith.extui %90 : vector<1x1x1024xi1> to vector<1x1x1024xi32>
    %92 = arith.sitofp %91 : vector<1x1x1024xi32> to vector<1x1x1024xf32>
    %93 = tpu.concatenate %26, %48, %70, %92 in 1 : vector<1x1x1024xf32>, vector<1x1x1024xf32>, vector<1x1x1024xf32>, vector<1x1x1024xf32> -> vector<1x4x1024xf32>
    %c0_33 = arith.constant 0 : index
    %c0_34 = arith.constant 0 : index
    %c0_35 = arith.constant 0 : index
    %94 = vector.load %arg10[%c0_33, %c0_34, %c0_35] : memref<1x4x1024xf32, #tpu.memory_space<vmem>>, vector<1x4x1024xf32>
    tpu.vector_store %arg10[%c0_33, %c0_34, %c0_35], %93 {strides = array<i32>} : memref<1x4x1024xf32, #tpu.memory_space<vmem>>, vector<1x4x1024xf32>,
    return
  }
  func.func @transform_0(%arg0: i32, %arg1: i32) -> i32 {
    %c0_i32 = arith.constant 0 : i32
    %c0_i32_0 = arith.constant 0 : i32
    return %c0_i32 : i32
  }
  func.func @transform_1(%arg0: i32, %arg1: i32) -> i32 {
    %c0_i32 = arith.constant 0 : i32
    %c0_i32_0 = arith.constant 0 : i32
    return %c0_i32 : i32
  }
  func.func @transform_2(%arg0: i32, %arg1: i32) -> (i32, i32, i32) {
    %c0_i32 = arith.constant 0 : i32
    %c0_i32_0 = arith.constant 0 : i32
    return %arg1, %c0_i32, %arg0 : i32, i32, i32
  }
  func.func @transform_3(%arg0: i32, %arg1: i32) -> (i32, i32, i32) {
    %c0_i32 = arith.constant 0 : i32
    %c0_i32_0 = arith.constant 0 : i32
    return %arg1, %c0_i32, %arg0 : i32, i32, i32
  }
  func.func @transform_4(%arg0: i32, %arg1: i32) -> (i32, i32, i32) {
    %c0_i32 = arith.constant 0 : i32
    %c0_i32_0 = arith.constant 0 : i32
    %c0_i32_1 = arith.constant 0 : i32
    return %c0_i32, %c0_i32_0, %arg0 : i32, i32, i32
  }
  func.func @transform_5(%arg0: i32, %arg1: i32) -> (i32, i32, i32) {
    %c0_i32 = arith.constant 0 : i32
    %c0_i32_0 = arith.constant 0 : i32
    %c0_i32_1 = arith.constant 0 : i32
    return %c0_i32, %c0_i32_0, %arg0 : i32, i32, i32
  }
  func.func @transform_6(%arg0: i32, %arg1: i32) -> (i32, i32, i32) {
    %c0_i32 = arith.constant 0 : i32
    %c0_i32_0 = arith.constant 0 : i32
    %c0_i32_1 = arith.constant 0 : i32
    return %c0_i32, %c0_i32_0, %arg0 : i32, i32, i32
  }
  func.func @transform_7(%arg0: i32, %arg1: i32) -> (i32, i32, i32) {
    %c0_i32 = arith.constant 0 : i32
    %c0_i32_0 = arith.constant 0 : i32
    %c0_i32_1 = arith.constant 0 : i32
    return %c0_i32, %c0_i32_0, %arg0 : i32, i32, i32
  }
  func.func @transform_8(%arg0: i32, %arg1: i32) -> (i32, i32, i32) {
    %c0_i32 = arith.constant 0 : i32
    %c0_i32_0 = arith.constant 0 : i32
    return %arg1, %c0_i32, %arg0 : i32, i32, i32
  }
}

</mosaic_0001>

<bundles_post_ra>
// kernel: tile.58
= control target key start
LH: loop header
LB: loop body
LE: loop exit
PB: predicated region body
PF: predicated region fallthrough
CT: control target
= control target key end

     0   :  { %s208_s0 = inlined_call_operand.vmem [shape: f32[4], index: 0, kind: input, shape index: {}]   ;;  %s209_s1 = inlined_call_operand.vmem [shape: f32[256,4], index: 1, kind: output, shape index: {}]  }
   0x1   :  { %v4_v0 = vld [vmem:[%s208_s0] ss:$0 sm:$0xff] }
   0x2   :  { %5 = vst [vmem:[%s209_s1] sm:$0xff] %v4_v0  ;;  %68 = vst [vmem:[%s209_s1 + $0x8] sm:$0xff] %v4_v0 }
   0x3   :  { %69 = vst [vmem:[%s209_s1 + $0x10] sm:$0xff] %v4_v0  ;;  %70 = vst [vmem:[%s209_s1 + $0x18] sm:$0xff] %v4_v0 }
   0x4   :  { %71 = vst [vmem:[%s209_s1 + $0x20] sm:$0xff] %v4_v0  ;;  %72 = vst [vmem:[%s209_s1 + $0x28] sm:$0xff] %v4_v0 }
   0x5   :  { %73 = vst [vmem:[%s209_s1 + $0x30] sm:$0xff] %v4_v0  ;;  %74 = vst [vmem:[%s209_s1 + $0x38] sm:$0xff] %v4_v0 }
   0x6   :  { %75 = vst [vmem:[%s209_s1 + $0x40] sm:$0xff] %v4_v0  ;;  %76 = vst [vmem:[%s209_s1 + $0x48] sm:$0xff] %v4_v0 }
   0x7   :  { %77 = vst [vmem:[%s209_s1 + $0x50] sm:$0xff] %v4_v0  ;;  %78 = vst [vmem:[%s209_s1 + $0x58] sm:$0xff] %v4_v0 }
   0x8   :  { %79 = vst [vmem:[%s209_s1 + $0x60] sm:$0xff] %v4_v0  ;;  %80 = vst [vmem:[%s209_s1 + $0x68] sm:$0xff] %v4_v0 }
   0x9   :  { %81 = vst [vmem:[%s209_s1 + $0x70] sm:$0xff] %v4_v0  ;;  %82 = vst [vmem:[%s209_s1 + $0x78] sm:$0xff] %v4_v0 }
   0xa   :  { %83 = vst [vmem:[%s209_s1 + $0x80] sm:$0xff] %v4_v0  ;;  %84 = vst [vmem:[%s209_s1 + $0x88] sm:$0xff] %v4_v0 }
   0xb   :  { %85 = vst [vmem:[%s209_s1 + $0x90] sm:$0xff] %v4_v0  ;;  %86 = vst [vmem:[%s209_s1 + $0x98] sm:$0xff] %v4_v0 }
   0xc   :  { %87 = vst [vmem:[%s209_s1 + $0xa0] sm:$0xff] %v4_v0  ;;  %88 = vst [vmem:[%s209_s1 + $0xa8] sm:$0xff] %v4_v0 }
   0xd   :  { %89 = vst [vmem:[%s209_s1 + $0xb0] sm:$0xff] %v4_v0  ;;  %90 = vst [vmem:[%s209_s1 + $0xb8] sm:$0xff] %v4_v0 }
   0xe   :  { %91 = vst [vmem:[%s209_s1 + $0xc0] sm:$0xff] %v4_v0  ;;  %92 = vst [vmem:[%s209_s1 + $0xc8] sm:$0xff] %v4_v0 }
   0xf   :  { %93 = vst [vmem:[%s209_s1 + $0xd0] sm:$0xff] %v4_v0  ;;  %94 = vst [vmem:[%s209_s1 + $0xd8] sm:$0xff] %v4_v0 }
  0x10   :  { %95 = vst [vmem:[%s209_s1 + $0xe0] sm:$0xff] %v4_v0  ;;  %96 = vst [vmem:[%s209_s1 + $0xe8] sm:$0xff] %v4_v0 }
  0x11   :  { %97 = vst [vmem:[%s209_s1 + $0xf0] sm:$0xff] %v4_v0  ;;  %98 = vst [vmem:[%s209_s1 + $0xf8] sm:$0xff] %v4_v0 }

// kernel: tile.59
= control target key start
LH: loop header
LB: loop body
LE: loop exit
PB: predicated region body
PF: predicated region fallthrough
CT: control target
= control target key end

     0   :  { %vm5_vm0 = vcmask 1041409   ;;  %vm9_vm1 = vcmask 1042434   ;;  %vm13_vm2 = vcmask 1043459   ;;  %vm17_vm3 = vcmask 1044484   ;;  %s1465_s19 = smov 124   ;;  %s1466_s9 = smov 116   ;;  %s2522_s0 = inlined_call_operand.vmem [shape: f32[256,4], index: 0, kind: input, shape index: {}]   ;;  %s2523_s1 = inlined_call_operand.vmem [shape: f32[1,1,1024], index: 1, kind: output, shape index: {}]  }
   0x1   :  { %v1179_v0 = vld [vmem:[%s2522_s0 + $0x1f] sm:$0x1]   ;;  %vm21_vm4 = vcmask 1045509   ;;  %vm25_vm5 = vcmask 1046534   ;;  %vm29_vm6 = vcmask 1047559   ;;  %s1467_s26 = smov 120  }
   0x2   :  { %v1180_v1 = vld [vmem:[%s2522_s0 + $0x3e] sm:$0x2]   ;;  %v1195_v10 = vld [vmem:[%s2522_s0 + $0x1d] sm:$0x1]   ;;  %v1187_v25 = vld [vmem:[%s2522_s0 + $0x1e] sm:$0x1]  }
   0x3   :  { %v39_v2 = vsel %vm5_vm0, %v1180_v1, %v1179_v0  ;;  %v1181_v3 = vld [vmem:[%s2522_s0 + $0x5d] sm:$0x4]   ;;  %v1196_v11 = vld [vmem:[%s2522_s0 + $0x3c] sm:$0x2]   ;;  %v1188_v26 = vld [vmem:[%s2522_s0 + $0x3d] sm:$0x2]  }
   0x4   :  { %v1182_v4 = vld [vmem:[%s2522_s0 + $0x7c] sm:$0x8]   ;;  %v43_v6 = vsel %vm9_vm1, %v1181_v3, %v39_v2  ;;  %v1197_v12 = vld [vmem:[%s2522_s0 + $0x5b] sm:$0x4]   ;;  %v109_v15 = vsel %vm5_vm0, %v1196_v11, %v1195_v10  ;;  %v1189_v27 = vld [vmem:[%s2522_s0 + $0x5c] sm:$0x4]   ;;  %v74_v30 = vsel %vm5_vm0, %v1188_v26, %v1187_v25 }
   0x5   :  { %v1183_v5 = vld [vmem:[%s2522_s0 + $0x9b] sm:$0x10]   ;;  %v47_v9 = vsel %vm13_vm2, %v1182_v4, %v43_v6  ;;  %v1198_v16 = vld [vmem:[%s2522_s0 + $0x7a] sm:$0x8]   ;;  %v113_v19 = vsel %vm9_vm1, %v1197_v12, %v109_v15  ;;  %v1190_v31 = vld [vmem:[%s2522_s0 + $0x7b] sm:$0x8]   ;;  %v78_v34 = vsel %vm9_vm1, %v1189_v27, %v74_v30 }
   0x6   :  { %v1184_v7 = vld [vmem:[%s2522_s0 + $0xba] sm:$0x20]   ;;  %v51_v13 = vsel %vm17_vm3, %v1183_v5, %v47_v9  ;;  %v1199_v17 = vld [vmem:[%s2522_s0 + $0x99] sm:$0x10]   ;;  %v117_v24 = vsel %vm13_vm2, %v1198_v16, %v113_v19  ;;  %v1191_v32 = vld [vmem:[%s2522_s0 + $0x9a] sm:$0x10]   ;;  %v82_v39 = vsel %vm13_vm2, %v1190_v31, %v78_v34 }
   0x7   :  { %v1185_v8 = vld [vmem:[%s2522_s0 + $0xd9] sm:$0x40]   ;;  %v55_v18 = vsel %vm21_vm4, %v1184_v7, %v51_v13  ;;  %v1200_v20 = vld [vmem:[%s2522_s0 + $0xb8] sm:$0x20]   ;;  %v121_v29 = vsel %vm17_vm3, %v1199_v17, %v117_v24  ;;  %v1192_v35 = vld [vmem:[%s2522_s0 + $0xb9] sm:$0x20]   ;;  %v86_v44 = vsel %vm17_vm3, %v1191_v32, %v82_v39 }
   0x8   :  { %v1186_v14 = vld [vmem:[%s2522_s0 + $0xf8] sm:$0x80]   ;;  %v1201_v21 = vld [vmem:[%s2522_s0 + $0xd7] sm:$0x40]   ;;  %v59_v23 = vsel %vm25_vm5, %v1185_v8, %v55_v18  ;;  %v125_v33 = vsel %vm21_vm4, %v1200_v20, %v121_v29  ;;  %v1193_v36 = vld [vmem:[%s2522_s0 + $0xd8] sm:$0x40]   ;;  %v90_v49 = vsel %vm21_vm4, %v1192_v35, %v86_v44 }
   0x9   :  { %v1202_v22 = vld [vmem:[%s2522_s0 + $0xf6] sm:$0x80]   ;;  %v63_v28 = vsel %vm29_vm6, %v1186_v14, %v59_v23  ;;  %v1203_v37 = vld [vmem:[%s2522_s0 + $0x1c] sm:$0x1]   ;;  %v129_v38 = vsel %vm25_vm5, %v1201_v21, %v125_v33  ;;  %v1194_v45 = vld [vmem:[%s2522_s0 + $0xf7] sm:$0x80]   ;;  %v94_v54 = vsel %vm25_vm5, %v1193_v36, %v90_v49 }
   0xa   :  { %64 = vrot.lane.b32.xlu0 %v63_v28, %s1465_s19  ;;  %v1204_v40 = vld [vmem:[%s2522_s0 + $0x3b] sm:$0x2]   ;;  %v133_v43 = vsel %vm29_vm6, %v1202_v22, %v129_v38  ;;  %v1211_v53 = vld [vmem:[%s2522_s0 + $0x1b] sm:$0x1]   ;;  %v98_v59 = vsel %vm29_vm6, %v1194_v45, %v94_v54  ;;  %v1219_v3 = vld [vmem:[%s2522_s0 + $0x1a] sm:$0x1]  }
   0xb   :  { %v1205_v41 = vld [vmem:[%s2522_s0 + $0x5a] sm:$0x4]   ;;  %v144_v46 = vsel %vm5_vm0, %v1204_v40, %v1203_v37  ;;  %134 = vrot.lane.b32.xlu1 %v133_v43, %s1466_s9  ;;  %v1212_v56 = vld [vmem:[%s2522_s0 + $0x3a] sm:$0x2]   ;;  %v1220_v4 = vld [vmem:[%s2522_s0 + $0x39] sm:$0x2]  }
   0xc   :  { %v1206_v42 = vld [vmem:[%s2522_s0 + $0x79] sm:$0x8]   ;;  %v148_v50 = vsel %vm9_vm1, %v1205_v41, %v144_v46  ;;  %v1213_v57 = vld [vmem:[%s2522_s0 + $0x59] sm:$0x4]   ;;  %v179_v61 = vsel %vm5_vm0, %v1212_v56, %v1211_v53  ;;  %v214_v7 = vsel %vm5_vm0, %v1220_v4, %v1219_v3  ;;  %v1221_v8 = vld [vmem:[%s2522_s0 + $0x58] sm:$0x4]  }
   0xd   :  { %v1207_v47 = vld [vmem:[%s2522_s0 + $0x98] sm:$0x10]   ;;  %v152_v55 = vsel %vm13_vm2, %v1206_v42, %v148_v50  ;;  %v1214_v58 = vld [vmem:[%s2522_s0 + $0x78] sm:$0x8]   ;;  %v183_v1 = vsel %vm9_vm1, %v1213_v57, %v179_v61  ;;  %v1222_v9 = vld [vmem:[%s2522_s0 + $0x77] sm:$0x8]   ;;  %v218_v14 = vsel %vm9_vm1, %v1221_v8, %v214_v7 }
   0xe   :  { %v1208_v48 = vld [vmem:[%s2522_s0 + $0xb7] sm:$0x20]   ;;  %v156_v60 = vsel %vm17_vm3, %v1207_v47, %v152_v55  ;;  %v1215_v62 = vld [vmem:[%s2522_s0 + $0x97] sm:$0x10]   ;;  %99 = vrot.lane.b32.xlu0 %v98_v59, %s1467_s26  ;;  %v187_v6 = vsel %vm13_vm2, %v1214_v58, %v183_v1  ;;  %v1223_v10 = vld [vmem:[%s2522_s0 + $0x96] sm:$0x10]   ;;  %v222_v18 = vsel %vm13_vm2, %v1222_v9, %v218_v14 }
   0xf   :  { %v1209_v51 = vld [vmem:[%s2522_s0 + $0xd6] sm:$0x40]   ;;  %v1216_v63 = vld [vmem:[%s2522_s0 + $0xb6] sm:$0x20]   ;;  %v160_v0 = vsel %vm21_vm4, %v1208_v48, %v156_v60  ;;  %v191_v12 = vsel %vm17_vm3, %v1215_v62, %v187_v6  ;;  %v1224_v15 = vld [vmem:[%s2522_s0 + $0xb5] sm:$0x20]   ;;  %v226_v23 = vsel %vm17_vm3, %v1223_v10, %v222_v18 }
  0x10   :  { %v1210_v52 = vld [vmem:[%s2522_s0 + $0xf5] sm:$0x80]   ;;  %v1217_v2 = vld [vmem:[%s2522_s0 + $0xd5] sm:$0x40]   ;;  %v164_v5 = vsel %vm25_vm5, %v1209_v51, %v160_v0  ;;  %v1225_v16 = vld [vmem:[%s2522_s0 + $0xd4] sm:$0x40]   ;;  %v195_v17 = vsel %vm21_vm4, %v1216_v63, %v191_v12  ;;  %v230_v29 = vsel %vm21_vm4, %v1224_v15, %v226_v23 }
  0x11   :  { %v168_v11 = vsel %vm29_vm6, %v1210_v52, %v164_v5  ;;  %v1218_v13 = vld [vmem:[%s2522_s0 + $0xf4] sm:$0x80]   ;;  %s1468_s16 = smov 112   ;;  %v1226_v19 = vld [vmem:[%s2522_s0 + $0xf3] sm:$0x80]   ;;  %v199_v22 = vsel %vm25_vm5, %v1217_v2, %v195_v17  ;;  %s1469_s4 = smov 108   ;;  %v234_v33 = vsel %vm25_vm5, %v1225_v16, %v230_v29 }
  0x12   :  { %169 = vrot.lane.b32.xlu1 %v168_v11, %s1468_s16  ;;  %v1227_v20 = vld [vmem:[%s2522_s0 + $0x19] sm:$0x1]   ;;  %v203_v28 = vsel %vm29_vm6, %v1218_v13, %v199_v22  ;;  %v1235_v35 = vld [vmem:[%s2522_s0 + $0x18] sm:$0x1]   ;;  %v238_v38 = vsel %vm29_vm6, %v1226_v19, %v234_v33  ;;  %s1470_s17 = smov 104   ;;  %s1471_s5 = smov 100  }
  0x13   :  { %v1228_v21 = vld [vmem:[%s2522_s0 + $0x38] sm:$0x2]   ;;  %204 = vrot.lane.b32.xlu0 %v203_v28, %s1469_s4  ;;  %v1236_v36 = vld [vmem:[%s2522_s0 + $0x37] sm:$0x2]   ;;  %v1243_v51 = vld [vmem:[%s2522_s0 + $0x17] sm:$0x1]  }
  0x14   :  { %v249_v24 = vsel %vm5_vm0, %v1228_v21, %v1227_v20  ;;  %v1229_v25 = vld [vmem:[%s2522_s0 + $0x57] sm:$0x4]   ;;  %v1237_v37 = vld [vmem:[%s2522_s0 + $0x56] sm:$0x4]   ;;  %v284_v41 = vsel %vm5_vm0, %v1236_v36, %v1235_v35  ;;  %v1244_v52 = vld [vmem:[%s2522_s0 + $0x36] sm:$0x2]  }
  0x15   :  { %v1230_v26 = vld [vmem:[%s2522_s0 + $0x76] sm:$0x8]   ;;  %v253_v30 = vsel %vm9_vm1, %v1229_v25, %v249_v24  ;;  %v1238_v42 = vld [vmem:[%s2522_s0 + $0x75] sm:$0x8]   ;;  %v288_v45 = vsel %vm9_vm1, %v1237_v37, %v284_v41  ;;  %v1245_v53 = vld [vmem:[%s2522_s0 + $0x55] sm:$0x4]   ;;  %v319_v56 = vsel %vm5_vm0, %v1244_v52, %v1243_v51 }
  0x16   :  { %v1231_v27 = vld [vmem:[%s2522_s0 + $0x95] sm:$0x10]   ;;  %v257_v34 = vsel %vm13_vm2, %v1230_v26, %v253_v30  ;;  %v1239_v43 = vld [vmem:[%s2522_s0 + $0x94] sm:$0x10]   ;;  %239 = vrot.lane.b32.xlu1 %v238_v38, %s1470_s17  ;;  %v292_v50 = vsel %vm13_vm2, %v1238_v42, %v288_v45  ;;  %v1246_v57 = vld [vmem:[%s2522_s0 + $0x74] sm:$0x8]   ;;  %v323_v60 = vsel %vm9_vm1, %v1245_v53, %v319_v56 }
  0x17   :  { %v1232_v31 = vld [vmem:[%s2522_s0 + $0xb4] sm:$0x20]   ;;  %v261_v39 = vsel %vm17_vm3, %v1231_v27, %v257_v34  ;;  %v1240_v46 = vld [vmem:[%s2522_s0 + $0xb3] sm:$0x20]   ;;  %v296_v55 = vsel %vm17_vm3, %v1239_v43, %v292_v50  ;;  %v1247_v58 = vld [vmem:[%s2522_s0 + $0x93] sm:$0x10]   ;;  %v327_v1 = vsel %vm13_vm2, %v1246_v57, %v323_v60 }
  0x18   :  { %v1233_v32 = vld [vmem:[%s2522_s0 + $0xd3] sm:$0x40]   ;;  %v265_v44 = vsel %vm21_vm4, %v1232_v31, %v261_v39  ;;  %v1241_v47 = vld [vmem:[%s2522_s0 + $0xd2] sm:$0x40]   ;;  %v300_v59 = vsel %vm21_vm4, %v1240_v46, %v296_v55  ;;  %v1248_v61 = vld [vmem:[%s2522_s0 + $0xb2] sm:$0x20]   ;;  %v331_v6 = vsel %vm17_vm3, %v1247_v58, %v327_v1 }
  0x19   :  { %v1234_v40 = vld [vmem:[%s2522_s0 + $0xf2] sm:$0x80]   ;;  %v1242_v48 = vld [vmem:[%s2522_s0 + $0xf1] sm:$0x80]   ;;  %v269_v49 = vsel %vm25_vm5, %v1233_v32, %v265_v44  ;;  %v1249_v62 = vld [vmem:[%s2522_s0 + $0xd1] sm:$0x40]   ;;  %v304_v0 = vsel %vm25_vm5, %v1241_v47, %v300_v59  ;;  %v335_v11 = vsel %vm21_vm4, %v1248_v61, %v331_v6 }
  0x1a   :  { %v273_v54 = vsel %vm29_vm6, %v1234_v40, %v269_v49  ;;  %v1251_v63 = vld [vmem:[%s2522_s0 + $0x16] sm:$0x1]   ;;  %v308_v5 = vsel %vm29_vm6, %v1242_v48, %v304_v0  ;;  %v1250_v7 = vld [vmem:[%s2522_s0 + $0xf0] sm:$0x80]   ;;  %s1472_s24 = smov 96   ;;  %v339_v16 = vsel %vm25_vm5, %v1249_v62, %v335_v11  ;;  %s1473_s12 = smov 92  }
  0x1b   :  { %274 = vrot.lane.b32.xlu0 %v273_v54, %s1471_s5  ;;  %v1252_v2 = vld [vmem:[%s2522_s0 + $0x35] sm:$0x2]   ;;  %309 = vrot.lane.b32.xlu1 %v308_v5, %s1472_s24  ;;  %v1259_v15 = vld [vmem:[%s2522_s0 + $0x15] sm:$0x1]   ;;  %v343_v21 = vsel %vm29_vm6, %v1250_v7, %v339_v16  ;;  %s1474_s2 = smov 88   ;;  %s1475_s19 = smov 84  }
  0x1c   :  { %v1253_v3 = vld [vmem:[%s2522_s0 + $0x54] sm:$0x4]   ;;  %v354_v8 = vsel %vm5_vm0, %v1252_v2, %v1251_v63  ;;  %v1260_v18 = vld [vmem:[%s2522_s0 + $0x34] sm:$0x2]   ;;  %v1267_v29 = vld [vmem:[%s2522_s0 + $0x14] sm:$0x1]  }
  0x1d   :  { %v1254_v4 = vld [vmem:[%s2522_s0 + $0x73] sm:$0x8]   ;;  %v358_v12 = vsel %vm9_vm1, %v1253_v3, %v354_v8  ;;  %v1261_v19 = vld [vmem:[%s2522_s0 + $0x53] sm:$0x4]   ;;  %v389_v23 = vsel %vm5_vm0, %v1260_v18, %v1259_v15  ;;  %v1268_v30 = vld [vmem:[%s2522_s0 + $0x33] sm:$0x2]  }
  0x1e   :  { %v1255_v9 = vld [vmem:[%s2522_s0 + $0x92] sm:$0x10]   ;;  %v362_v17 = vsel %vm13_vm2, %v1254_v4, %v358_v12  ;;  %v1262_v20 = vld [vmem:[%s2522_s0 + $0x72] sm:$0x8]   ;;  %v393_v27 = vsel %vm9_vm1, %v1261_v19, %v389_v23  ;;  %v424_v33 = vsel %vm5_vm0, %v1268_v30, %v1267_v29  ;;  %v1269_v34 = vld [vmem:[%s2522_s0 + $0x52] sm:$0x4]  }
  0x1f   :  { %v1256_v10 = vld [vmem:[%s2522_s0 + $0xb1] sm:$0x20]   ;;  %v366_v22 = vsel %vm17_vm3, %v1255_v9, %v362_v17  ;;  %v1263_v24 = vld [vmem:[%s2522_s0 + $0x91] sm:$0x10]   ;;  %344 = vrot.lane.b32.xlu0 %v343_v21, %s1473_s12  ;;  %v397_v32 = vsel %vm13_vm2, %v1262_v20, %v393_v27  ;;  %v1270_v35 = vld [vmem:[%s2522_s0 + $0x71] sm:$0x8]   ;;  %v428_v40 = vsel %vm9_vm1, %v1269_v34, %v424_v33 }
  0x20   :  { %v1257_v13 = vld [vmem:[%s2522_s0 + $0xd0] sm:$0x40]   ;;  %v1264_v25 = vld [vmem:[%s2522_s0 + $0xb0] sm:$0x20]   ;;  %v370_v26 = vsel %vm21_vm4, %v1256_v10, %v366_v22  ;;  %v1271_v36 = vld [vmem:[%s2522_s0 + $0x90] sm:$0x10]   ;;  %v401_v38 = vsel %vm17_vm3, %v1263_v24, %v397_v32  ;;  %v432_v44 = vsel %vm13_vm2, %v1270_v35, %v428_v40 }
  0x21   :  { %v1258_v14 = vld [vmem:[%s2522_s0 + $0xef] sm:$0x80]   ;;  %v1265_v28 = vld [vmem:[%s2522_s0 + $0xcf] sm:$0x40]   ;;  %v374_v31 = vsel %vm25_vm5, %v1257_v13, %v370_v26  ;;  %v1272_v41 = vld [vmem:[%s2522_s0 + $0xaf] sm:$0x20]   ;;  %v405_v43 = vsel %vm21_vm4, %v1264_v25, %v401_v38  ;;  %v436_v49 = vsel %vm17_vm3, %v1271_v36, %v432_v44 }
  0x22   :  { %v378_v37 = vsel %vm29_vm6, %v1258_v14, %v374_v31  ;;  %v1266_v39 = vld [vmem:[%s2522_s0 + $0xee] sm:$0x80]   ;;  %v1273_v42 = vld [vmem:[%s2522_s0 + $0xce] sm:$0x40]   ;;  %v1275_v46 = vld [vmem:[%s2522_s0 + $0x13] sm:$0x1]   ;;  %v409_v48 = vsel %vm25_vm5, %v1265_v28, %v405_v43  ;;  %v440_v55 = vsel %vm21_vm4, %v1272_v41, %v436_v49 }
  0x23   :  { %379 = vrot.lane.b32.xlu1 %v378_v37, %s1474_s2  ;;  %v1274_v45 = vld [vmem:[%s2522_s0 + $0xed] sm:$0x80]   ;;  %v1276_v47 = vld [vmem:[%s2522_s0 + $0x32] sm:$0x2]   ;;  %v413_v54 = vsel %vm29_vm6, %v1266_v39, %v409_v48  ;;  %v444_v59 = vsel %vm25_vm5, %v1273_v42, %v440_v55  ;;  %v1283_v61 = vld [vmem:[%s2522_s0 + $0x12] sm:$0x1]  }
  0x24   :  { %v459_v50 = vsel %vm5_vm0, %v1276_v47, %v1275_v46  ;;  %v1277_v51 = vld [vmem:[%s2522_s0 + $0x51] sm:$0x4]   ;;  %414 = vrot.lane.b32.xlu0 %v413_v54, %s1475_s19  ;;  %v1284_v62 = vld [vmem:[%s2522_s0 + $0x31] sm:$0x2]   ;;  %v448_v0 = vsel %vm29_vm6, %v1274_v45, %v444_v59  ;;  %s1476_s3 = smov 80   ;;  %s1477_s20 = smov 76  }
  0x25   :  { %v1278_v52 = vld [vmem:[%s2522_s0 + $0x70] sm:$0x8]   ;;  %v463_v56 = vsel %vm9_vm1, %v1277_v51, %v459_v50  ;;  %v1285_v63 = vld [vmem:[%s2522_s0 + $0x50] sm:$0x4]   ;;  %v494_v3 = vsel %vm5_vm0, %v1284_v62, %v1283_v61  ;;  %v1291_v13 = vld [vmem:[%s2522_s0 + $0x11] sm:$0x1]  }
  0x26   :  { %v1279_v53 = vld [vmem:[%s2522_s0 + $0x8f] sm:$0x10]   ;;  %v467_v60 = vsel %vm13_vm2, %v1278_v52, %v463_v56  ;;  %v1286_v4 = vld [vmem:[%s2522_s0 + $0x6f] sm:$0x8]   ;;  %v498_v7 = vsel %vm9_vm1, %v1285_v63, %v494_v3  ;;  %v1292_v14 = vld [vmem:[%s2522_s0 + $0x30] sm:$0x2]  }
  0x27   :  { %v1280_v57 = vld [vmem:[%s2522_s0 + $0xae] sm:$0x20]   ;;  %v471_v1 = vsel %vm17_vm3, %v1279_v53, %v467_v60  ;;  %v1287_v5 = vld [vmem:[%s2522_s0 + $0x8e] sm:$0x10]   ;;  %449 = vrot.lane.b32.xlu1 %v448_v0, %s1476_s3  ;;  %v502_v12 = vsel %vm13_vm2, %v1286_v4, %v498_v7  ;;  %v1293_v15 = vld [vmem:[%s2522_s0 + $0x4f] sm:$0x4]   ;;  %v529_v18 = vsel %vm5_vm0, %v1292_v14, %v1291_v13 }
  0x28   :  { %v1281_v58 = vld [vmem:[%s2522_s0 + $0xcd] sm:$0x40]   ;;  %v475_v6 = vsel %vm21_vm4, %v1280_v57, %v471_v1  ;;  %v1288_v8 = vld [vmem:[%s2522_s0 + $0xad] sm:$0x20]   ;;  %v506_v17 = vsel %vm17_vm3, %v1287_v5, %v502_v12  ;;  %v1294_v19 = vld [vmem:[%s2522_s0 + $0x6e] sm:$0x8]   ;;  %v533_v22 = vsel %vm9_vm1, %v1293_v15, %v529_v18 }
  0x29   :  { %v1282_v2 = vld [vmem:[%s2522_s0 + $0xec] sm:$0x80]   ;;  %v1289_v9 = vld [vmem:[%s2522_s0 + $0xcc] sm:$0x40]   ;;  %v479_v11 = vsel %vm25_vm5, %v1281_v58, %v475_v6  ;;  %v1295_v20 = vld [vmem:[%s2522_s0 + $0x8d] sm:$0x10]   ;;  %v510_v21 = vsel %vm21_vm4, %v1288_v8, %v506_v17  ;;  %v537_v27 = vsel %vm13_vm2, %v1294_v19, %v533_v22 }
  0x2a   :  { %v1290_v10 = vld [vmem:[%s2522_s0 + $0xeb] sm:$0x80]   ;;  %v483_v16 = vsel %vm29_vm6, %v1282_v2, %v479_v11  ;;  %v1296_v23 = vld [vmem:[%s2522_s0 + $0xac] sm:$0x20]   ;;  %v1299_v25 = vld [vmem:[%s2522_s0 + $0x10] sm:$0x1]   ;;  %v514_v26 = vsel %vm25_vm5, %v1289_v9, %v510_v21  ;;  %v541_v32 = vsel %vm17_vm3, %v1295_v20, %v537_v27 }
  0x2b   :  { %484 = vrot.lane.b32.xlu0 %v483_v16, %s1477_s20  ;;  %v1297_v24 = vld [vmem:[%s2522_s0 + $0xcb] sm:$0x40]   ;;  %v1300_v28 = vld [vmem:[%s2522_s0 + $0x2f] sm:$0x2]   ;;  %v518_v31 = vsel %vm29_vm6, %v1290_v10, %v514_v26  ;;  %s1478_s10 = smov 72   ;;  %v545_v37 = vsel %vm21_vm4, %v1296_v23, %v541_v32  ;;  %s1479_s27 = smov 68  }
  0x2c   :  { %v1301_v29 = vld [vmem:[%s2522_s0 + $0x4e] sm:$0x4]   ;;  %v1298_v33 = vld [vmem:[%s2522_s0 + $0xea] sm:$0x80]   ;;  %v564_v34 = vsel %vm5_vm0, %v1300_v28, %v1299_v25  ;;  %519 = vrot.lane.b32.xlu1 %v518_v31, %s1478_s10  ;;  %v1307_v41 = vld [vmem:[%s2522_s0 + $0xf] sm:$0x1]   ;;  %v549_v42 = vsel %vm25_vm5, %v1297_v24, %v545_v37 }
  0x2d   :  { %v1302_v30 = vld [vmem:[%s2522_s0 + $0x6d] sm:$0x8]   ;;  %v568_v38 = vsel %vm9_vm1, %v1301_v29, %v564_v34  ;;  %v1308_v44 = vld [vmem:[%s2522_s0 + $0x2e] sm:$0x2]   ;;  %v553_v47 = vsel %vm29_vm6, %v1298_v33, %v549_v42  ;;  %v1315_v55 = vld [vmem:[%s2522_s0 + $0xe] sm:$0x1]  }
  0x2e   :  { %v1303_v35 = vld [vmem:[%s2522_s0 + $0x8c] sm:$0x10]   ;;  %v572_v43 = vsel %vm13_vm2, %v1302_v30, %v568_v38  ;;  %v1309_v45 = vld [vmem:[%s2522_s0 + $0x4d] sm:$0x4]   ;;  %v599_v49 = vsel %vm5_vm0, %v1308_v44, %v1307_v41  ;;  %v1316_v56 = vld [vmem:[%s2522_s0 + $0x2d] sm:$0x2]  }
  0x2f   :  { %v1304_v36 = vld [vmem:[%s2522_s0 + $0xab] sm:$0x20]   ;;  %v1310_v46 = vld [vmem:[%s2522_s0 + $0x6c] sm:$0x8]   ;;  %v576_v48 = vsel %vm17_vm3, %v1303_v35, %v572_v43  ;;  %554 = vrot.lane.b32.xlu0 %v553_v47, %s1479_s27  ;;  %v603_v53 = vsel %vm9_vm1, %v1309_v45, %v599_v49  ;;  %v634_v59 = vsel %vm5_vm0, %v1316_v56, %v1315_v55  ;;  %v1317_v60 = vld [vmem:[%s2522_s0 + $0x4c] sm:$0x4]  }
  0x30   :  { %v1305_v39 = vld [vmem:[%s2522_s0 + $0xca] sm:$0x40]   ;;  %v1311_v50 = vld [vmem:[%s2522_s0 + $0x8b] sm:$0x10]   ;;  %v580_v52 = vsel %vm21_vm4, %v1304_v36, %v576_v48  ;;  %v607_v58 = vsel %vm13_vm2, %v1310_v46, %v603_v53  ;;  %v1318_v61 = vld [vmem:[%s2522_s0 + $0x6b] sm:$0x8]   ;;  %v638_v2 = vsel %vm9_vm1, %v1317_v60, %v634_v59 }
  0x31   :  { %v1306_v40 = vld [vmem:[%s2522_s0 + $0xe9] sm:$0x80]   ;;  %v1312_v51 = vld [vmem:[%s2522_s0 + $0xaa] sm:$0x20]   ;;  %v584_v57 = vsel %vm25_vm5, %v1305_v39, %v580_v52  ;;  %v1319_v62 = vld [vmem:[%s2522_s0 + $0x8a] sm:$0x10]   ;;  %v611_v0 = vsel %vm17_vm3, %v1311_v50, %v607_v58  ;;  %v642_v6 = vsel %vm13_vm2, %v1318_v61, %v638_v2 }
  0x32   :  { %v1313_v54 = vld [vmem:[%s2522_s0 + $0xc9] sm:$0x40]   ;;  %v588_v63 = vsel %vm29_vm6, %v1306_v40, %v584_v57  ;;  %v1320_v3 = vld [vmem:[%s2522_s0 + $0xa9] sm:$0x20]   ;;  %s1480_s17 = smov 64   ;;  %v615_v5 = vsel %vm21_vm4, %v1312_v51, %v611_v0  ;;  %v646_v11 = vsel %vm17_vm3, %v1319_v62, %v642_v6  ;;  %s1481_s5 = smov 60  }
  0x33   :  { %v1314_v1 = vld [vmem:[%s2522_s0 + $0xe8] sm:$0x80]   ;;  %v1321_v4 = vld [vmem:[%s2522_s0 + $0xc8] sm:$0x40]   ;;  %589 = vrot.lane.b32.xlu1 %v588_v63, %s1480_s17  ;;  %v1323_v8 = vld [vmem:[%s2522_s0 + $0xd] sm:$0x1]   ;;  %v619_v10 = vsel %vm25_vm5, %v1313_v54, %v615_v5  ;;  %v650_v17 = vsel %vm21_vm4, %v1320_v3, %v646_v11 }
  0x34   :  { %v1322_v7 = vld [vmem:[%s2522_s0 + $0xe7] sm:$0x80]   ;;  %v1324_v9 = vld [vmem:[%s2522_s0 + $0x2c] sm:$0x2]   ;;  %v623_v16 = vsel %vm29_vm6, %v1314_v1, %v619_v10  ;;  %v654_v21 = vsel %vm25_vm5, %v1321_v4, %v650_v17  ;;  %v1331_v23 = vld [vmem:[%s2522_s0 + $0xc] sm:$0x1]  }
  0x35   :  { %v669_v12 = vsel %vm5_vm0, %v1324_v9, %v1323_v8  ;;  %v1325_v13 = vld [vmem:[%s2522_s0 + $0x4b] sm:$0x4]   ;;  %624 = vrot.lane.b32.xlu0 %v623_v16, %s1481_s5  ;;  %v1332_v24 = vld [vmem:[%s2522_s0 + $0x2b] sm:$0x2]   ;;  %v658_v26 = vsel %vm29_vm6, %v1322_v7, %v654_v21  ;;  %s1482_s18 = smov 56   ;;  %s1483_s6 = smov 52  }
  0x36   :  { %v1326_v14 = vld [vmem:[%s2522_s0 + $0x6a] sm:$0x8]   ;;  %v673_v18 = vsel %vm9_vm1, %v1325_v13, %v669_v12  ;;  %v1333_v25 = vld [vmem:[%s2522_s0 + $0x4a] sm:$0x4]   ;;  %v704_v29 = vsel %vm5_vm0, %v1332_v24, %v1331_v23  ;;  %v1339_v39 = vld [vmem:[%s2522_s0 + $0xb] sm:$0x1]  }
  0x37   :  { %v1327_v15 = vld [vmem:[%s2522_s0 + $0x89] sm:$0x10]   ;;  %v677_v22 = vsel %vm13_vm2, %v1326_v14, %v673_v18  ;;  %v1334_v30 = vld [vmem:[%s2522_s0 + $0x69] sm:$0x8]   ;;  %659 = vrot.lane.b32.xlu1 %v658_v26, %s1482_s18  ;;  %v708_v33 = vsel %vm9_vm1, %v1333_v25, %v704_v29  ;;  %v1340_v40 = vld [vmem:[%s2522_s0 + $0x2a] sm:$0x2]  }
  0x38   :  { %v1328_v19 = vld [vmem:[%s2522_s0 + $0xa8] sm:$0x20]   ;;  %v681_v27 = vsel %vm17_vm3, %v1327_v15, %v677_v22  ;;  %v1335_v31 = vld [vmem:[%s2522_s0 + $0x88] sm:$0x10]   ;;  %v712_v38 = vsel %vm13_vm2, %v1334_v30, %v708_v33  ;;  %v1341_v41 = vld [vmem:[%s2522_s0 + $0x49] sm:$0x4]   ;;  %v739_v44 = vsel %vm5_vm0, %v1340_v40, %v1339_v39 }
  0x39   :  { %v1329_v20 = vld [vmem:[%s2522_s0 + $0xc7] sm:$0x40]   ;;  %v685_v32 = vsel %vm21_vm4, %v1328_v19, %v681_v27  ;;  %v1336_v34 = vld [vmem:[%s2522_s0 + $0xa7] sm:$0x20]   ;;  %v716_v43 = vsel %vm17_vm3, %v1335_v31, %v712_v38  ;;  %v1342_v45 = vld [vmem:[%s2522_s0 + $0x68] sm:$0x8]   ;;  %v743_v48 = vsel %vm9_vm1, %v1341_v41, %v739_v44 }
  0x3a   :  { %v1330_v28 = vld [vmem:[%s2522_s0 + $0xe6] sm:$0x80]   ;;  %v1337_v35 = vld [vmem:[%s2522_s0 + $0xc6] sm:$0x40]   ;;  %v689_v37 = vsel %vm25_vm5, %v1329_v20, %v685_v32  ;;  %v1343_v46 = vld [vmem:[%s2522_s0 + $0x87] sm:$0x10]   ;;  %v720_v47 = vsel %vm21_vm4, %v1336_v34, %v716_v43  ;;  %v747_v53 = vsel %vm13_vm2, %v1342_v45, %v743_v48 }
  0x3b   :  { %v1338_v36 = vld [vmem:[%s2522_s0 + $0xe5] sm:$0x80]   ;;  %v693_v42 = vsel %vm29_vm6, %v1330_v28, %v689_v37  ;;  %v1344_v49 = vld [vmem:[%s2522_s0 + $0xa6] sm:$0x20]   ;;  %v1347_v51 = vld [vmem:[%s2522_s0 + $0xa] sm:$0x1]   ;;  %v724_v52 = vsel %vm25_vm5, %v1337_v35, %v720_v47  ;;  %v751_v58 = vsel %vm17_vm3, %v1343_v46, %v747_v53 }
  0x3c   :  { %694 = vrot.lane.b32.xlu0 %v693_v42, %s1483_s6  ;;  %v1345_v50 = vld [vmem:[%s2522_s0 + $0xc5] sm:$0x40]   ;;  %v1348_v54 = vld [vmem:[%s2522_s0 + $0x29] sm:$0x2]   ;;  %v728_v57 = vsel %vm29_vm6, %v1338_v36, %v724_v52  ;;  %s1484_s25 = smov 48   ;;  %v755_v63 = vsel %vm21_vm4, %v1344_v49, %v751_v58  ;;  %s1485_s13 = smov 44  }
  0x3d   :  { %v1349_v55 = vld [vmem:[%s2522_s0 + $0x48] sm:$0x4]   ;;  %v1346_v59 = vld [vmem:[%s2522_s0 + $0xe4] sm:$0x80]   ;;  %v774_v60 = vsel %vm5_vm0, %v1348_v54, %v1347_v51  ;;  %729 = vrot.lane.b32.xlu1 %v728_v57, %s1484_s25  ;;  %v1355_v3 = vld [vmem:[%s2522_s0 + $0x9] sm:$0x1]   ;;  %v759_v4 = vsel %vm25_vm5, %v1345_v50, %v755_v63 }
  0x3e   :  { %v1350_v56 = vld [vmem:[%s2522_s0 + $0x67] sm:$0x8]   ;;  %v778_v0 = vsel %vm9_vm1, %v1349_v55, %v774_v60  ;;  %v1356_v6 = vld [vmem:[%s2522_s0 + $0x28] sm:$0x2]   ;;  %v763_v9 = vsel %vm29_vm6, %v1346_v59, %v759_v4  ;;  %v1363_v17 = vld [vmem:[%s2522_s0 + $0x8] sm:$0x1]  }
  0x3f   :  { %v1351_v61 = vld [vmem:[%s2522_s0 + $0x86] sm:$0x10]   ;;  %v782_v5 = vsel %vm13_vm2, %v1350_v56, %v778_v0  ;;  %v1357_v7 = vld [vmem:[%s2522_s0 + $0x47] sm:$0x4]   ;;  %v809_v11 = vsel %vm5_vm0, %v1356_v6, %v1355_v3  ;;  %v1364_v18 = vld [vmem:[%s2522_s0 + $0x27] sm:$0x2]  }
  0x40   :  { %v1352_v62 = vld [vmem:[%s2522_s0 + $0xa5] sm:$0x20]   ;;  %v1358_v8 = vld [vmem:[%s2522_s0 + $0x66] sm:$0x8]   ;;  %v786_v10 = vsel %vm17_vm3, %v1351_v61, %v782_v5  ;;  %764 = vrot.lane.b32.xlu0 %v763_v9, %s1485_s13  ;;  %v813_v15 = vsel %vm9_vm1, %v1357_v7, %v809_v11  ;;  %v844_v21 = vsel %vm5_vm0, %v1364_v18, %v1363_v17  ;;  %v1365_v22 = vld [vmem:[%s2522_s0 + $0x46] sm:$0x4]  }
  0x41   :  { %v1353_v1 = vld [vmem:[%s2522_s0 + $0xc4] sm:$0x40]   ;;  %v1359_v12 = vld [vmem:[%s2522_s0 + $0x85] sm:$0x10]   ;;  %v790_v14 = vsel %vm21_vm4, %v1352_v62, %v786_v10  ;;  %v817_v20 = vsel %vm13_vm2, %v1358_v8, %v813_v15  ;;  %v1366_v23 = vld [vmem:[%s2522_s0 + $0x65] sm:$0x8]   ;;  %v848_v28 = vsel %vm9_vm1, %v1365_v22, %v844_v21 }
  0x42   :  { %v1354_v2 = vld [vmem:[%s2522_s0 + $0xe3] sm:$0x80]   ;;  %v1360_v13 = vld [vmem:[%s2522_s0 + $0xa4] sm:$0x20]   ;;  %v794_v19 = vsel %vm25_vm5, %v1353_v1, %v790_v14  ;;  %v1367_v24 = vld [vmem:[%s2522_s0 + $0x84] sm:$0x10]   ;;  %v821_v26 = vsel %vm17_vm3, %v1359_v12, %v817_v20  ;;  %v852_v32 = vsel %vm13_vm2, %v1366_v23, %v848_v28 }
  0x43   :  { %v1361_v16 = vld [vmem:[%s2522_s0 + $0xc3] sm:$0x40]   ;;  %v798_v25 = vsel %vm29_vm6, %v1354_v2, %v794_v19  ;;  %v1368_v29 = vld [vmem:[%s2522_s0 + $0xa3] sm:$0x20]   ;;  %s1486_s3 = smov 40   ;;  %v825_v31 = vsel %vm21_vm4, %v1360_v13, %v821_v26  ;;  %v856_v37 = vsel %vm17_vm3, %v1367_v24, %v852_v32  ;;  %s1487_s20 = smov 36  }
  0x44   :  { %v1362_v27 = vld [vmem:[%s2522_s0 + $0xe2] sm:$0x80]   ;;  %v1369_v30 = vld [vmem:[%s2522_s0 + $0xc2] sm:$0x40]   ;;  %799 = vrot.lane.b32.xlu1 %v798_v25, %s1486_s3  ;;  %v1371_v34 = vld [vmem:[%s2522_s0 + $0x7] sm:$0x1]   ;;  %v829_v36 = vsel %vm25_vm5, %v1361_v16, %v825_v31  ;;  %v860_v43 = vsel %vm21_vm4, %v1368_v29, %v856_v37 }
  0x45   :  { %v1370_v33 = vld [vmem:[%s2522_s0 + $0xe1] sm:$0x80]   ;;  %v1372_v35 = vld [vmem:[%s2522_s0 + $0x26] sm:$0x2]   ;;  %v833_v42 = vsel %vm29_vm6, %v1362_v27, %v829_v36  ;;  %v864_v47 = vsel %vm25_vm5, %v1369_v30, %v860_v43  ;;  %v1379_v49 = vld [vmem:[%s2522_s0 + $0x6] sm:$0x1]  }
  0x46   :  { %v879_v38 = vsel %vm5_vm0, %v1372_v35, %v1371_v34  ;;  %v1373_v39 = vld [vmem:[%s2522_s0 + $0x45] sm:$0x4]   ;;  %834 = vrot.lane.b32.xlu0 %v833_v42, %s1487_s20  ;;  %v1380_v50 = vld [vmem:[%s2522_s0 + $0x25] sm:$0x2]   ;;  %v868_v52 = vsel %vm29_vm6, %v1370_v33, %v864_v47  ;;  %s1488_s4 = smov 32   ;;  %s1489_s21 = smov 28  }
  0x47   :  { %v1374_v40 = vld [vmem:[%s2522_s0 + $0x64] sm:$0x8]   ;;  %v883_v44 = vsel %vm9_vm1, %v1373_v39, %v879_v38  ;;  %v1381_v51 = vld [vmem:[%s2522_s0 + $0x44] sm:$0x4]   ;;  %v914_v55 = vsel %vm5_vm0, %v1380_v50, %v1379_v49  ;;  %v1387_v1 = vld [vmem:[%s2522_s0 + $0x5] sm:$0x1]  }
  0x48   :  { %v1375_v41 = vld [vmem:[%s2522_s0 + $0x83] sm:$0x10]   ;;  %v887_v48 = vsel %vm13_vm2, %v1374_v40, %v883_v44  ;;  %v1382_v56 = vld [vmem:[%s2522_s0 + $0x63] sm:$0x8]   ;;  %869 = vrot.lane.b32.xlu1 %v868_v52, %s1488_s4  ;;  %v918_v59 = vsel %vm9_vm1, %v1381_v51, %v914_v55  ;;  %v1388_v2 = vld [vmem:[%s2522_s0 + $0x24] sm:$0x2]  }
  0x49   :  { %v1376_v45 = vld [vmem:[%s2522_s0 + $0xa2] sm:$0x20]   ;;  %v891_v53 = vsel %vm17_vm3, %v1375_v41, %v887_v48  ;;  %v1383_v57 = vld [vmem:[%s2522_s0 + $0x82] sm:$0x10]   ;;  %v922_v0 = vsel %vm13_vm2, %v1382_v56, %v918_v59  ;;  %v1389_v3 = vld [vmem:[%s2522_s0 + $0x43] sm:$0x4]   ;;  %v949_v6 = vsel %vm5_vm0, %v1388_v2, %v1387_v1 }
  0x4a   :  { %v1377_v46 = vld [vmem:[%s2522_s0 + $0xc1] sm:$0x40]   ;;  %v895_v58 = vsel %vm21_vm4, %v1376_v45, %v891_v53  ;;  %v1384_v60 = vld [vmem:[%s2522_s0 + $0xa1] sm:$0x20]   ;;  %v926_v5 = vsel %vm17_vm3, %v1383_v57, %v922_v0  ;;  %v1390_v7 = vld [vmem:[%s2522_s0 + $0x62] sm:$0x8]   ;;  %v953_v10 = vsel %vm9_vm1, %v1389_v3, %v949_v6 }
  0x4b   :  { %v1378_v54 = vld [vmem:[%s2522_s0 + $0xe0] sm:$0x80]   ;;  %v1385_v61 = vld [vmem:[%s2522_s0 + $0xc0] sm:$0x40]   ;;  %v899_v63 = vsel %vm25_vm5, %v1377_v46, %v895_v58  ;;  %v1391_v8 = vld [vmem:[%s2522_s0 + $0x81] sm:$0x10]   ;;  %v930_v9 = vsel %vm21_vm4, %v1384_v60, %v926_v5  ;;  %v957_v15 = vsel %vm13_vm2, %v1390_v7, %v953_v10 }
  0x4c   :  { %v1386_v62 = vld [vmem:[%s2522_s0 + $0xdf] sm:$0x80]   ;;  %v903_v4 = vsel %vm29_vm6, %v1378_v54, %v899_v63  ;;  %v1392_v11 = vld [vmem:[%s2522_s0 + $0xa0] sm:$0x20]   ;;  %v1395_v13 = vld [vmem:[%s2522_s0 + $0x4] sm:$0x1]   ;;  %v934_v14 = vsel %vm25_vm5, %v1385_v61, %v930_v9  ;;  %v961_v20 = vsel %vm17_vm3, %v1391_v8, %v957_v15 }
  0x4d   :  { %904 = vrot.lane.b32.xlu0 %v903_v4, %s1489_s21  ;;  %v1393_v12 = vld [vmem:[%s2522_s0 + $0xbf] sm:$0x40]   ;;  %v1396_v16 = vld [vmem:[%s2522_s0 + $0x23] sm:$0x2]   ;;  %v938_v19 = vsel %vm29_vm6, %v1386_v62, %v934_v14  ;;  %s1490_s11 = smov 24   ;;  %v965_v25 = vsel %vm21_vm4, %v1392_v11, %v961_v20  ;;  %s1491_s28 = smov 20  }
  0x4e   :  { %v1397_v17 = vld [vmem:[%s2522_s0 + $0x42] sm:$0x4]   ;;  %v1394_v21 = vld [vmem:[%s2522_s0 + $0xde] sm:$0x80]   ;;  %v984_v22 = vsel %vm5_vm0, %v1396_v16, %v1395_v13  ;;  %939 = vrot.lane.b32.xlu1 %v938_v19, %s1490_s11  ;;  %v1403_v29 = vld [vmem:[%s2522_s0 + $0x3] sm:$0x1]   ;;  %v969_v30 = vsel %vm25_vm5, %v1393_v12, %v965_v25 }
  0x4f   :  { %v1398_v18 = vld [vmem:[%s2522_s0 + $0x61] sm:$0x8]   ;;  %v988_v26 = vsel %vm9_vm1, %v1397_v17, %v984_v22  ;;  %v1404_v32 = vld [vmem:[%s2522_s0 + $0x22] sm:$0x2]   ;;  %v973_v35 = vsel %vm29_vm6, %v1394_v21, %v969_v30  ;;  %v1411_v43 = vld [vmem:[%s2522_s0 + $0x2] sm:$0x1]  }
  0x50   :  { %v1399_v23 = vld [vmem:[%s2522_s0 + $0x80] sm:$0x10]   ;;  %v992_v31 = vsel %vm13_vm2, %v1398_v18, %v988_v26  ;;  %v1405_v33 = vld [vmem:[%s2522_s0 + $0x41] sm:$0x4]   ;;  %v1019_v37 = vsel %vm5_vm0, %v1404_v32, %v1403_v29  ;;  %v1412_v44 = vld [vmem:[%s2522_s0 + $0x21] sm:$0x2]  }
  0x51   :  { %v1400_v24 = vld [vmem:[%s2522_s0 + $0x9f] sm:$0x20]   ;;  %v1406_v34 = vld [vmem:[%s2522_s0 + $0x60] sm:$0x8]   ;;  %v996_v36 = vsel %vm17_vm3, %v1399_v23, %v992_v31  ;;  %974 = vrot.lane.b32.xlu0 %v973_v35, %s1491_s28  ;;  %v1023_v41 = vsel %vm9_vm1, %v1405_v33, %v1019_v37  ;;  %v1054_v47 = vsel %vm5_vm0, %v1412_v44, %v1411_v43  ;;  %v1413_v48 = vld [vmem:[%s2522_s0 + $0x40] sm:$0x4]  }
  0x52   :  { %v1401_v27 = vld [vmem:[%s2522_s0 + $0xbe] sm:$0x40]   ;;  %v1407_v38 = vld [vmem:[%s2522_s0 + $0x7f] sm:$0x10]   ;;  %v1000_v40 = vsel %vm21_vm4, %v1400_v24, %v996_v36  ;;  %v1027_v46 = vsel %vm13_vm2, %v1406_v34, %v1023_v41  ;;  %v1414_v49 = vld [vmem:[%s2522_s0 + $0x5f] sm:$0x8]   ;;  %v1058_v54 = vsel %vm9_vm1, %v1413_v48, %v1054_v47 }
  0x53   :  { %v1402_v28 = vld [vmem:[%s2522_s0 + $0xdd] sm:$0x80]   ;;  %v1408_v39 = vld [vmem:[%s2522_s0 + $0x9e] sm:$0x20]   ;;  %v1004_v45 = vsel %vm25_vm5, %v1401_v27, %v1000_v40  ;;  %v1415_v50 = vld [vmem:[%s2522_s0 + $0x7e] sm:$0x10]   ;;  %v1031_v52 = vsel %vm17_vm3, %v1407_v38, %v1027_v46  ;;  %v1062_v58 = vsel %vm13_vm2, %v1414_v49, %v1058_v54 }
  0x54   :  { %v1409_v42 = vld [vmem:[%s2522_s0 + $0xbd] sm:$0x40]   ;;  %v1008_v51 = vsel %vm29_vm6, %v1402_v28, %v1004_v45  ;;  %v1416_v55 = vld [vmem:[%s2522_s0 + $0x9d] sm:$0x20]   ;;  %s1492_s18 = smov 16   ;;  %v1035_v57 = vsel %vm21_vm4, %v1408_v39, %v1031_v52  ;;  %v1066_v63 = vsel %vm17_vm3, %v1415_v50, %v1062_v58  ;;  %s1493_s4 = smov 12  }
  0x55   :  { %v1410_v53 = vld [vmem:[%s2522_s0 + $0xdc] sm:$0x80]   ;;  %v1417_v56 = vld [vmem:[%s2522_s0 + $0xbc] sm:$0x40]   ;;  %1009 = vrot.lane.b32.xlu1 %v1008_v51, %s1492_s18  ;;  %v1419_v60 = vld [vmem:[%s2522_s0 + $0x1] sm:$0x1]   ;;  %v1039_v62 = vsel %vm25_vm5, %v1409_v42, %v1035_v57  ;;  %v1070_v5 = vsel %vm21_vm4, %v1416_v55, %v1066_v63 }
  0x56   :  { %v1418_v59 = vld [vmem:[%s2522_s0 + $0xdb] sm:$0x80]   ;;  %v1420_v61 = vld [vmem:[%s2522_s0 + $0x20] sm:$0x2]   ;;  %v1043_v4 = vsel %vm29_vm6, %v1410_v53, %v1039_v62  ;;  %v1074_v8 = vsel %vm25_vm5, %v1417_v56, %v1070_v5  ;;  %v1173_v14 = vld [vmem:[%s2522_s0 + $0x3e] sm:$0x4]  }
  0x57   :  { %v1089_v0 = vsel %vm5_vm0, %v1420_v61, %v1419_v60  ;;  %v1421_v1 = vld [vmem:[%s2522_s0 + $0x3f] sm:$0x4]   ;;  %1044 = vrot.lane.b32.xlu0 %v1043_v4, %s1493_s4  ;;  %v1078_v11 = vsel %vm29_vm6, %v1418_v59, %v1074_v8  ;;  %s1494_s11 = smov 8   ;;  %v1174_v16 = vld [vmem:[%s2522_s0 + $0x5d] sm:$0x8]   ;;  %s1495_s22 = smov 4  }
  0x58   :  { %v1422_v2 = vld [vmem:[%s2522_s0 + $0x5e] sm:$0x8]   ;;  %v1093_v6 = vsel %vm9_vm1, %v1421_v1, %v1089_v0  ;;  %v2_v17 = vld [vmem:[%s2522_s0] sm:$0x1]   ;;  %vm31_vm7 = vcmask 31744   ;;  %vm66_vm8 = vcmask 1048544  }
  0x59   :  { %v1423_v3 = vld [vmem:[%s2522_s0 + $0x7d] sm:$0x10]   ;;  %v1097_v9 = vsel %vm13_vm2, %v1422_v2, %v1093_v6  ;;  %1079 = vrot.lane.b32.xlu1 %v1078_v11, %s1494_s11  ;;  %v1172_v18 = vld [vmem:[%s2522_s0 + $0x1f] sm:$0x2]   ;;  %vm101_vm9 = vcmask 1015744   ;;  %vm136_vm10 = vcmask 982944  }
  0x5a   :  { %v1424_v7 = vld [vmem:[%s2522_s0 + $0x9c] sm:$0x20]   ;;  %v1101_v12 = vsel %vm17_vm3, %v1423_v3, %v1097_v9  ;;  %v1175_v20 = vld [vmem:[%s2522_s0 + $0x7c] sm:$0x10]   ;;  %v6_v21 = vsel %vm5_vm0, %v1172_v18, %v2_v17  ;;  %vm171_vm11 = vcmask 950144   ;;  %vm206_vm12 = vcmask 917344  }
  0x5b   :  { %v1425_v10 = vld [vmem:[%s2522_s0 + $0xbb] sm:$0x40]   ;;  %v1105_v15 = vsel %vm21_vm4, %v1424_v7, %v1101_v12  ;;  %v1176_v23 = vld [vmem:[%s2522_s0 + $0x9b] sm:$0x20]   ;;  %v10_v24 = vsel %vm9_vm1, %v1173_v14, %v6_v21  ;;  %vm241_vm13 = vcmask 884544   ;;  %vm276_vm14 = vcmask 851744  }
  0x5c   :  { %v1426_v13 = vld [vmem:[%s2522_s0 + $0xda] sm:$0x80]   ;;  %v1109_v19 = vsel %vm25_vm5, %v1425_v10, %v1105_v15  ;;  %v1177_v25 = vld [vmem:[%s2522_s0 + $0xba] sm:$0x40]   ;;  %v14_v26 = vsel %vm13_vm2, %v1174_v16, %v10_v24  ;;  %vm311_vm15 = vcmask 818944   ;;  %vm346_vm0 = vcmask 786144  }
  0x5d   :  { %v1113_v22 = vsel %vm29_vm6, %v1426_v13, %v1109_v19  ;;  %v1178_v27 = vld [vmem:[%s2522_s0 + $0xd9] sm:$0x80]   ;;  %v18_v28 = vsel %vm17_vm3, %v1175_v20, %v14_v26  ;;  %vm381_vm1 = vcmask 753344   ;;  %vm416_vm2 = vcmask 720544  }
  0x5e   :  { %1114 = vrot.lane.b32.xlu0 %v1113_v22, %s1495_s22  ;;  %v22_v29 = vsel %vm21_vm4, %v1176_v23, %v18_v28  ;;  %vm451_vm3 = vcmask 687744   ;;  %vm486_vm4 = vcmask 654944  }
  0x5f   :  { %v26_v30 = vsel %vm25_vm5, %v1177_v25, %v22_v29  ;;  %vm521_vm5 = vcmask 622144  }
  0x60   :  { %v30_v31 = vsel %vm29_vm6, %v1178_v27, %v26_v30  ;;  %vm556_vm6 = vcmask 589344  }
  0x61   :  { %32 = vst.msk [vmem:[#allocation0] ss:$8 sm:$0xf] %vm31_vm7, %v30_v31   ;;  %33 = vst.msk [vmem:[#allocation0] ss:$8 sm:$0xf0] %vm31_vm7, %v30_v31  }
  0x62   :  { %vm591_vm7 = vcmask 556544  }
  0x7c   :  { %v65_v32 = vpop.permute.xlu0 %64  }
  0x7d   :  { %67 = vst.msk [vmem:[#allocation0] ss:$8 sm:$0xf] %vm66_vm8, %v65_v32   ;;  %68 = vst.msk [vmem:[#allocation0] ss:$8 sm:$0xf0] %vm66_vm8, %v65_v32   ;;  %v135_v33 = vpop.permute.xlu1 %134  }
  0x7e   :  { %vm626_vm8 = vcmask 523744  }
  0x80   :  { %v100_v34 = vpop.permute.xlu0 %99  }
  0x81   :  { %102 = vst.msk [vmem:[#allocation0] ss:$8 sm:$0xf] %vm101_vm9, %v100_v34   ;;  %103 = vst.msk [vmem:[#allocation0] ss:$8 sm:$0xf0] %vm101_vm9, %v100_v34  }
  0x82   :  { %137 = vst.msk [vmem:[#allocation0] ss:$8 sm:$0xf] %vm136_vm10, %v135_v33   ;;  %138 = vst.msk [vmem:[#allocation0] ss:$8 sm:$0xf0] %vm136_vm10, %v135_v33  }
  0x83   :  { %vm661_vm9 = vcmask 490944   ;;  %vm696_vm10 = vcmask 458144  }
  0x84   :  { %v170_v35 = vpop.permute.xlu1 %169  }
  0x85   :  { %172 = vst.msk [vmem:[#allocation0] ss:$8 sm:$0xf] %vm171_vm11, %v170_v35   ;;  %173 = vst.msk [vmem:[#allocation0] ss:$8 sm:$0xf0] %vm171_vm11, %v170_v35   ;;  %v205_v36 = vpop.permute.xlu0 %204  }
  0x86   :  { %207 = vst.msk [vmem:[#allocation0] ss:$8 sm:$0xf] %vm206_vm12, %v205_v36   ;;  %208 = vst.msk [vmem:[#allocation0] ss:$8 sm:$0xf0] %vm206_vm12, %v205_v36  }
  0x87   :  { %vm731_vm11 = vcmask 425344   ;;  %vm766_vm12 = vcmask 392544  }
  0x88   :  { %v240_v37 = vpop.permute.xlu1 %239  }
  0x89   :  { %242 = vst.msk [vmem:[#allocation0] ss:$8 sm:$0xf] %vm241_vm13, %v240_v37   ;;  %243 = vst.msk [vmem:[#allocation0] ss:$8 sm:$0xf0] %vm241_vm13, %v240_v37  }
  0x8a   :  { %vm801_vm13 = vcmask 359744  }
  0x8d   :  { %v275_v38 = vpop.permute.xlu0 %274   ;;  %v310_v39 = vpop.permute.xlu1 %309  }
  0x8e   :  { %277 = vst.msk [vmem:[#allocation0] ss:$8 sm:$0xf] %vm276_vm14, %v275_v38   ;;  %278 = vst.msk [vmem:[#allocation0] ss:$8 sm:$0xf0] %vm276_vm14, %v275_v38  }
  0x8f   :  { %312 = vst.msk [vmem:[#allocation0] ss:$8 sm:$0xf] %vm311_vm15, %v310_v39   ;;  %313 = vst.msk [vmem:[#allocation0] ss:$8 sm:$0xf0] %vm311_vm15, %v310_v39  }
  0x90   :  { %vm836_vm14 = vcmask 326944   ;;  %vm871_vm15 = vcmask 294144  }
  0x91   :  { %v345_v40 = vpop.permute.xlu0 %344  }
  0x92   :  { %347 = vst.msk [vmem:[#allocation0] ss:$8 sm:$0xf] %vm346_vm0, %v345_v40   ;;  %348 = vst.msk [vmem:[#allocation0] ss:$8 sm:$0xf0] %vm346_vm0, %v345_v40  }
  0x93   :  { %vm906_vm0 = vcmask 261344  }
  0x95   :  { %v380_v41 = vpop.permute.xlu1 %379  }
  0x96   :  { %382 = vst.msk [vmem:[#allocation0] ss:$8 sm:$0xf] %vm381_vm1, %v380_v41   ;;  %383 = vst.msk [vmem:[#allocation0] ss:$8 sm:$0xf0] %vm381_vm1, %v380_v41   ;;  %v415_v42 = vpop.permute.xlu0 %414  }
  0x97   :  { %417 = vst.msk [vmem:[#allocation0] ss:$8 sm:$0xf] %vm416_vm2, %v415_v42   ;;  %418 = vst.msk [vmem:[#allocation0] ss:$8 sm:$0xf0] %vm416_vm2, %v415_v42  }
  0x98   :  { %vm941_vm1 = vcmask 228544   ;;  %vm976_vm2 = vcmask 195744  }
  0x99   :  { %v450_v43 = vpop.permute.xlu1 %449  }
  0x9a   :  { %452 = vst.msk [vmem:[#allocation0] ss:$8 sm:$0xf] %vm451_vm3, %v450_v43   ;;  %453 = vst.msk [vmem:[#allocation0] ss:$8 sm:$0xf0] %vm451_vm3, %v450_v43  }
  0x9b   :  { %vm1011_vm3 = vcmask 162944  }
  0x9d   :  { %v485_v44 = vpop.permute.xlu0 %484  }
  0x9e   :  { %487 = vst.msk [vmem:[#allocation0] ss:$8 sm:$0xf] %vm486_vm4, %v485_v44   ;;  %488 = vst.msk [vmem:[#allocation0] ss:$8 sm:$0xf0] %vm486_vm4, %v485_v44   ;;  %v520_v45 = vpop.permute.xlu1 %519  }
  0x9f   :  { %522 = vst.msk [vmem:[#allocation0] ss:$8 sm:$0xf] %vm521_vm5, %v520_v45   ;;  %523 = vst.msk [vmem:[#allocation0] ss:$8 sm:$0xf0] %vm521_vm5, %v520_v45  }
  0xa0   :  { %vm1046_vm4 = vcmask 130144   ;;  %vm1081_vm5 = vcmask 97344  }
  0xa1   :  { %v555_v46 = vpop.permute.xlu0 %554  }
  0xa2   :  { %557 = vst.msk [vmem:[#allocation0] ss:$8 sm:$0xf] %vm556_vm6, %v555_v46   ;;  %558 = vst.msk [vmem:[#allocation0] ss:$8 sm:$0xf0] %vm556_vm6, %v555_v46  }
  0xa3   :  { %vm1116_vm6 = vcmask 64544  }
  0xa5   :  { %v590_v47 = vpop.permute.xlu1 %589  }
  0xa6   :  { %592 = vst.msk [vmem:[#allocation0] ss:$8 sm:$0xf] %vm591_vm7, %v590_v47   ;;  %593 = vst.msk [vmem:[#allocation0] ss:$8 sm:$0xf0] %vm591_vm7, %v590_v47  }
  0xa7   :  { %v625_v48 = vpop.permute.xlu0 %624  }
  0xa8   :  { %627 = vst.msk [vmem:[#allocation0] ss:$8 sm:$0xf] %vm626_vm8, %v625_v48   ;;  %628 = vst.msk [vmem:[#allocation0] ss:$8 sm:$0xf0] %vm626_vm8, %v625_v48  }
  0xa9   :  { %v660_v49 = vpop.permute.xlu1 %659  }
  0xaa   :  { %662 = vst.msk [vmem:[#allocation0] ss:$8 sm:$0xf] %vm661_vm9, %v660_v49   ;;  %663 = vst.msk [vmem:[#allocation0] ss:$8 sm:$0xf0] %vm661_vm9, %v660_v49  }
  0xae   :  { %v695_v50 = vpop.permute.xlu0 %694  }
  0xaf   :  { %697 = vst.msk [vmem:[#allocation0] ss:$8 sm:$0xf] %vm696_vm10, %v695_v50   ;;  %698 = vst.msk [vmem:[#allocation0] ss:$8 sm:$0xf0] %vm696_vm10, %v695_v50   ;;  %v730_v51 = vpop.permute.xlu1 %729  }
  0xb0   :  { %732 = vst.msk [vmem:[#allocation0] ss:$8 sm:$0xf] %vm731_vm11, %v730_v51   ;;  %733 = vst.msk [vmem:[#allocation0] ss:$8 sm:$0xf0] %vm731_vm11, %v730_v51  }
  0xb2   :  { %v765_v52 = vpop.permute.xlu0 %764  }
  0xb3   :  { %767 = vst.msk [vmem:[#allocation0] ss:$8 sm:$0xf] %vm766_vm12, %v765_v52   ;;  %768 = vst.msk [vmem:[#allocation0] ss:$8 sm:$0xf0] %vm766_vm12, %v765_v52  }
  0xb6   :  { %v800_v53 = vpop.permute.xlu1 %799  }
  0xb7   :  { %802 = vst.msk [vmem:[#allocation0] ss:$8 sm:$0xf] %vm801_vm13, %v800_v53   ;;  %803 = vst.msk [vmem:[#allocation0] ss:$8 sm:$0xf0] %vm801_vm13, %v800_v53  }
  0xb8   :  { %v835_v54 = vpop.permute.xlu0 %834  }
  0xb9   :  { %837 = vst.msk [vmem:[#allocation0] ss:$8 sm:$0xf] %vm836_vm14, %v835_v54   ;;  %838 = vst.msk [vmem:[#allocation0] ss:$8 sm:$0xf0] %vm836_vm14, %v835_v54  }
  0xba   :  { %v870_v55 = vpop.permute.xlu1 %869  }
  0xbb   :  { %872 = vst.msk [vmem:[#allocation0] ss:$8 sm:$0xf] %vm871_vm15, %v870_v55   ;;  %873 = vst.msk [vmem:[#allocation0] ss:$8 sm:$0xf0] %vm871_vm15, %v870_v55  }
  0xbf   :  { %v905_v56 = vpop.permute.xlu0 %904  }
  0xc0   :  { %907 = vst.msk [vmem:[#allocation0] ss:$8 sm:$0xf] %vm906_vm0, %v905_v56   ;;  %908 = vst.msk [vmem:[#allocation0] ss:$8 sm:$0xf0] %vm906_vm0, %v905_v56   ;;  %v940_v57 = vpop.permute.xlu1 %939  }
  0xc1   :  { %942 = vst.msk [vmem:[#allocation0] ss:$8 sm:$0xf] %vm941_vm1, %v940_v57   ;;  %943 = vst.msk [vmem:[#allocation0] ss:$8 sm:$0xf0] %vm941_vm1, %v940_v57  }
  0xc3   :  { %v975_v58 = vpop.permute.xlu0 %974  }
  0xc4   :  { %977 = vst.msk [vmem:[#allocation0] ss:$8 sm:$0xf] %vm976_vm2, %v975_v58   ;;  %978 = vst.msk [vmem:[#allocation0] ss:$8 sm:$0xf0] %vm976_vm2, %v975_v58  }
  0xc7   :  { %v1010_v59 = vpop.permute.xlu1 %1009  }
  0xc8   :  { %1012 = vst.msk [vmem:[#allocation0] ss:$8 sm:$0xf] %vm1011_vm3, %v1010_v59   ;;  %1013 = vst.msk [vmem:[#allocation0] ss:$8 sm:$0xf0] %vm1011_vm3, %v1010_v59  }
  0xc9   :  { %v1045_v60 = vpop.permute.xlu0 %1044  }
  0xca   :  { %1047 = vst.msk [vmem:[#allocation0] ss:$8 sm:$0xf] %vm1046_vm4, %v1045_v60   ;;  %1048 = vst.msk [vmem:[#allocation0] ss:$8 sm:$0xf0] %vm1046_vm4, %v1045_v60  }
  0xcb   :  { %v1080_v61 = vpop.permute.xlu1 %1079  }
  0xcc   :  { %1082 = vst.msk [vmem:[#allocation0] ss:$8 sm:$0xf] %vm1081_vm5, %v1080_v61   ;;  %1083 = vst.msk [vmem:[#allocation0] ss:$8 sm:$0xf0] %vm1081_vm5, %v1080_v61  }
  0xd0   :  { %v1115_v62 = vpop.permute.xlu0 %1114  }
  0xd1   :  { %1117 = vst.msk [vmem:[#allocation0] ss:$8 sm:$0xf] %vm1116_vm6, %v1115_v62   ;;  %1118 = vst.msk [vmem:[#allocation0] ss:$8 sm:$0xf0] %vm1116_vm6, %v1115_v62  }
  0xd8   :  { %v1122_v63 = vld [vmem:[#allocation0] sm:$0x1]  ;;  %v1126_v0 = vld [vmem:[#allocation0 + $0x8] sm:$0x1]  ;;  %v1131_v1 = vld [vmem:[#allocation0 + $0x10] sm:$0x1] }
  0xd9   :  { %1124 = vst [vmem:[%s2523_s1] sm:$0x1] %v1122_v63  ;;  %1427 = vst [vmem:[%s2523_s1 + $0x1] sm:$0x1] %v1126_v0  ;;  %v1137_v2 = vld [vmem:[#allocation0 + $0x18] sm:$0x1] }
  0xda   :  { %1428 = vst [vmem:[%s2523_s1 + $0x2] sm:$0x1] %v1131_v1  ;;  %v1143_v3 = vld [vmem:[#allocation0 + $0x20] sm:$0x1]  ;;  %v1149_v4 = vld [vmem:[#allocation0 + $0x28] sm:$0x1] }
  0xdb   :  { %1429 = vst [vmem:[%s2523_s1 + $0x3] sm:$0x1] %v1137_v2  ;;  %1430 = vst [vmem:[%s2523_s1 + $0x4] sm:$0x1] %v1143_v3  ;;  %v1155_v5 = vld [vmem:[#allocation0 + $0x30] sm:$0x1] }
  0xdc   :  { %1431 = vst [vmem:[%s2523_s1 + $0x5] sm:$0x1] %v1149_v4  ;;  %v1161_v6 = vld [vmem:[#allocation0 + $0x38] sm:$0x1]  ;;  %1432 = vst [vmem:[%s2523_s1 + $0x6] sm:$0x1] %v1155_v5 }
  0xdd   :  { %1433 = vst [vmem:[%s2523_s1 + $0x7] sm:$0x1] %v1161_v6 }

// kernel: basic_block_forward.5
= control target key start
LH: loop header
LB: loop body
LE: loop exit
PB: predicated region body
PF: predicated region fallthrough
CT: control target
= control target key end

     0   :  { %9 = vsyncpa [#allocation3], 0  ;;  %s1077_s15 = smov 0   ;;  %s1079_s16 = smov 0   ;;  %s1315_s0 = inlined_call_operand.vmem [shape: f32[4], index: 0, kind: input, shape index: {}]   ;;  %s1316_s1 = inlined_call_operand.vmem [shape: f32[2,4,1024], index: 1, kind: input, shape index: {}]   ;;  %s1317_s2 = inlined_call_operand.vmem [shape: f32[1,1,1024], index: 2, kind: input, shape index: {}]   ;;  %s1318_s3 = inlined_call_operand.vmem [shape: f32[1,1,1024], index: 3, kind: input, shape index: {}]   ;;  %s1319_s4 = inlined_call_operand.vmem [shape: bf16[2,4,1024], index: 4, kind: output, shape index: {}]  }
   0x1   :  { %s1081_s17 = smov 0  }
   0x2 LB: > { %s909_s18 = sadd.s32 4294967295, %s1043_s17   ;;  %s24_s19 = sadd.s32 1, %s1039_s16  ;;  %s1043_s17 = sphi %s1081_s17, %s15_s17   ;;  %s1039_s16 = sphi %s1079_s16, %s1323_s16   ;;  %s1035_s15 = sphi %s1077_s15, %s1322_s15  }
   0x3   : > { %p25_p0 = scmp.ge.s32.totalorder %s24_s19, 2  ;;  %p911_p1 = scmp.ge.s32.totalorder %s1043_s17, 1 }
   0x4   : > { %p161_p2 = scmp.lt.s32.totalorder %s1043_s17, 3  ;;  %p1102_p4 = scmp.eq.s32.totalorder %s909_s18, 0 }
   0x5   : > { %s1325_s19 = smov (%p25_p0, %s24_s19), 0  ;;  %s174_s24 = sshll.u32 %s1315_s0, 4  ;;  %s175_s24 = int_to_ptr.vmem [resolvable:$true] %s174_s24 }
   0x6   : > { %p1098_p3 = pnand %p911_p1, %p161_p2  ;;  %s1002_s25 = scalar_lea.vmem %s175_s24, 16 }
   0x7   : > { %p1003_p7 = scmp.ne.s32.totalorder %s175_s24, %s1002_s25  ;;  %p1010_p11 = scmp.lt.s32.totalorder %s175_s24, %s175_s24 }
   0x8   : > { %p965_p5 = pneg %p1098_p3  ;;  %p1011_p12 = scmp.lt.s32.totalorder %s1002_s25, %s1002_s25 }
   0xa   : > { %p966_p6 = pnand %p1102_p4, %p965_p5  ;;  %p1012_p13 = por %p1011_p12, %p1010_p11 }
   0xc   : > { %p1004_p8 = pneg %p966_p6 }
   0xe   : > { %p1005_p9 = pnand %p1004_p8, %p1003_p7 }
  0x10   : > { %p1006_p10 = pneg %p1005_p9 }
  0x12   : > { %p1013_p0 = pnand %p1012_p13, %p1006_p10 }
  0x14   : > { %1016 = shalt.err (!%p1013_p0)
}
  0x15   : > { %s1045_s26 = smov [#allocation2]   ;;  %216 = sbr.rel (%p1098_p3) target bundleno = 90 (0x5a), region = 36 }
  0x16   : > { %968 = dma.vmem_to_smem (!%p966_p6), %s175_s24, 16, %s1045_s26, [#allocation3]  }
  0x1c   : > { %1030 = dma.done.wait (%p1102_p4), [#allocation3], 16  }
  0x1d   : > { %1032 = vsyncadd (%p1102_p4), [#allocation3], 4294967280 }
  0x1e   : > { %222 = sfence }
  0x1f   : > { %p260_p1 = scmp.lt.s32.totalorder %s1035_s15, 1  ;;  %v299_v0 = vlaneseq  ;;  %v1046_v1 = vmov 286326784   ;;  %v1047_v3 = vmov 858989090   ;;  %s1120_s27 = sld [smem:[#allocation2]]  ;;  %v289_v12 = vld [vmem:[%s1317_s2] sm:$0xff] }
  0x20   : > { %v297_v2 = vunpack.c.l.s4 %v1046_v1  ;;  %v304_v4 = vunpack.c.l.s4 %v1047_v3  ;;  %v1048_v6 = vmov 1431651396   ;;  %v1049_v8 = vmov 2004313702   ;;  %s1125_s28 = sld [smem:[#allocation2 + $0x1]]  ;;  %s1127_s29 = sld [smem:[#allocation2 + $0x2]] }
  0x21   : > { %s1327_s15 = smov (!%p260_p1, %s1035_s15), 1  ;;  %v300_v5 = vshrl.u32 %v299_v0, 7  ;;  %v311_v7 = vunpack.c.l.s4 %v1048_v6  ;;  %v318_v9 = vunpack.c.l.s4 %v1049_v8  ;;  %v290_v13 = vld [vmem:[%s1318_s3] sm:$0xff]  ;;  %s944_s12 = sld [smem:[#allocation2 + $0x3]]  ;;  %v1050_v22 = vmov 1983009808  }
  0x22   : > { %v298_v10 = vunpack.c.0.s8 %v297_v2  ;;  %v305_v11 = vunpack.c.0.s8 %v304_v4  ;;  %s959_s30 = sshll.u32 %s1327_s15, 5  ;;  %v751_v23 = vunpack.c.l.s4 %v1050_v22  ;;  %v1051_v60 = vmov 0.0   ;;  %s960_s13 = sshll.u32 %s1327_s15, 4 }
  0x23   : > { %v312_v14 = vunpack.c.0.s8 %v311_v7  ;;  %v319_v15 = vunpack.c.0.s8 %v318_v9  ;;  %s267_s11 = scalar_lea.vmem %s1316_s1, %s959_s30  ;;  %v1140_v37 = vsub.s32 0, %v300_v5  ;;  %v1148_v45 = vsub.s32 4, %v300_v5  ;;  %s287_s20 = scalar_lea.vmem %s1319_s4, %s960_s13 }
  0x24   : > { %v301_v16 = vsub.s32 %v298_v10, %v300_v5  ;;  %v308_v17 = vsub.s32 %v305_v11, %v300_v5  ;;  %v291_v18 = vld [vmem:[%s267_s11] sm:$0xff]  ;;  %v292_v19 = vld [vmem:[%s267_s11 + $0x8] sm:$0xff]  ;;  %v293_v24 = vld [vmem:[%s267_s11 + $0x10] sm:$0xff]  ;;  %v752_v41 = vunpack.c.0.s8 %v751_v23  ;;  %vm705_vm12 = vcmask 1040384  }
  0x25   : > { %v315_v20 = vsub.s32 %v312_v14, %v300_v5  ;;  %v322_v21 = vsub.s32 %v319_v15, %v300_v5  ;;  %v294_v25 = vld [vmem:[%s267_s11 + $0x18] sm:$0xff]  ;;  %v370_v36 = vstv %s1120_s27  ;;  %vm714_vm15 = vcmask 1041408  }
  0x26   : > { %v302_v26 = vrot.slane %v289_v12, %v301_v16  ;;  %v309_v27 = vrot.slane %v289_v12, %v308_v17  ;;  %v339_v28 = vrot.slane %v290_v13, %v301_v16  ;;  %v346_v29 = vrot.slane %v290_v13, %v308_v17 }
  0x27   : > { %v316_v30 = vrot.slane %v289_v12, %v315_v20  ;;  %v323_v31 = vrot.slane %v289_v12, %v322_v21  ;;  %v353_v32 = vrot.slane %v290_v13, %v315_v20  ;;  %v360_v33 = vrot.slane %v290_v13, %v322_v21 }
  0x28   : > { %v328_v34 = vmul.f32 %v302_v26, %v291_v18  ;;  %v329_v35 = vmul.f32 %v309_v27, %v292_v19  ;;  %v396_v40 = vstv %s1125_s28  ;;  %v442_v44 = vstv %s1127_s29 }
  0x29   : > { %v330_v38 = vmul.f32 %v316_v30, %v293_v24  ;;  %v331_v39 = vmul.f32 %v323_v31, %v294_v25  ;;  %v1154_v48 = vstv %s944_s12  ;;  %v1156_v49 = vsub.s32 %v752_v41, %v300_v5 }
  0x2a   : > { %v1143_v42 = vadd.f32 %v339_v28, %v328_v34  ;;  %v1145_v43 = vadd.f32 %v346_v29, %v329_v35 }
  0x2b   : > { %v1150_v46 = vadd.f32 %v353_v32, %v330_v38  ;;  %v1152_v47 = vadd.f32 %v360_v33, %v331_v39 }
  0x2c   : > { %v371_v50 = vmul.f32 %v370_v36, %v1143_v42  ;;  %v372_v51 = vmul.f32 %v370_v36, %v1145_v43  ;;  %v397_v52 = vmul.f32 %v396_v40, %v1143_v42  ;;  %v398_v53 = vmul.f32 %v396_v40, %v1145_v43 }
  0x2d   : > { %v373_v54 = vmul.f32 %v370_v36, %v1150_v46  ;;  %v374_v55 = vmul.f32 %v370_v36, %v1152_v47  ;;  %v399_v56 = vmul.f32 %v396_v40, %v1150_v46  ;;  %v400_v57 = vmul.f32 %v396_v40, %v1152_v47 }
  0x2e   : > { %vm379_vm0 = vcmp.ge.f32.partialorder %v371_v50, 1.0  ;;  %vm380_vm1 = vcmp.ge.f32.partialorder %v372_v51, 1.0  ;;  %v927_v58 = vrot.slane %v397_v52, 9  ;;  %v928_v59 = vrot.slane %v398_v53, 9 }
  0x2f   : > { %vm381_vm2 = vcmp.ge.f32.partialorder %v373_v54, 1.0  ;;  %vm382_vm3 = vcmp.ge.f32.partialorder %v374_v55, 1.0  ;;  %v1167_v61 = vsel %vm379_vm0, 1.0, %v1051_v60  ;;  %v1170_v62 = vsel %vm380_vm1, 1.0, %v1051_v60 }
  0x30   : > { %v1173_v63 = vsel %vm381_vm2, 1.0, %v1051_v60  ;;  %v1176_v0 = vsel %vm382_vm3, 1.0, %v1051_v60  ;;  %v391_v1 = vsel %vm379_vm0, 0.0, %v371_v50  ;;  %v392_v2 = vsel %vm380_vm1, 0.0, %v372_v51 }
  0x31   : > { %v393_v3 = vsel %vm381_vm2, 0.0, %v373_v54  ;;  %v394_v4 = vsel %vm382_vm3, 0.0, %v374_v55  ;;  %v401_v5 = vmul.f32 0.25, %v391_v1  ;;  %v402_v6 = vmul.f32 0.25, %v392_v2 }
  0x32   : > { %v403_v7 = vmul.f32 0.25, %v393_v3  ;;  %v404_v8 = vmul.f32 0.25, %v394_v4  ;;  %v929_v9 = vrot.slane %v399_v56, 9  ;;  %v930_v10 = vrot.slane %v400_v57, 9 }
  0x33   : > { %v421_v11 = vadd.f32 %v927_v58, %v401_v5  ;;  %v422_v12 = vadd.f32 %v928_v59, %v402_v6  ;;  %v443_v13 = vmul.f32 %v442_v44, %v1143_v42  ;;  %v444_v14 = vmul.f32 %v442_v44, %v1145_v43 }
  0x34   : > { %v423_v15 = vadd.f32 %v929_v9, %v403_v7  ;;  %v424_v16 = vadd.f32 %v930_v10, %v404_v8  ;;  %v445_v17 = vmul.f32 %v442_v44, %v1150_v46  ;;  %v446_v18 = vmul.f32 %v442_v44, %v1152_v47 }
  0x35   : > { %vm425_vm4 = vcmp.ge.f32.partialorder %v421_v11, 1.0  ;;  %vm426_vm5 = vcmp.ge.f32.partialorder %v422_v12, 1.0  ;;  %v936_v19 = vrot.slane %v443_v13, 10  ;;  %v937_v20 = vrot.slane %v444_v14, 10 }
  0x36   : > { %vm427_vm6 = vcmp.ge.f32.partialorder %v423_v15, 1.0  ;;  %vm428_vm7 = vcmp.ge.f32.partialorder %v424_v16, 1.0  ;;  %v1183_v21 = vsel %vm425_vm4, 1.0, %v1051_v60  ;;  %v1186_v22 = vsel %vm426_vm5, 1.0, %v1051_v60 }
  0x37   : > { %v1189_v23 = vsel %vm427_vm6, 1.0, %v1051_v60  ;;  %v1192_v24 = vsel %vm428_vm7, 1.0, %v1051_v60  ;;  %v437_v25 = vsel %vm425_vm4, 0.0, %v421_v11  ;;  %v438_v26 = vsel %vm426_vm5, 0.0, %v422_v12 }
  0x38   : > { %v439_v27 = vsel %vm427_vm6, 0.0, %v423_v15  ;;  %v440_v28 = vsel %vm428_vm7, 0.0, %v424_v16  ;;  %v447_v29 = vmul.f32 0.25, %v437_v25  ;;  %v448_v30 = vmul.f32 0.25, %v438_v26 }
  0x39   : > { %v449_v31 = vmul.f32 0.25, %v439_v27  ;;  %v450_v32 = vmul.f32 0.25, %v440_v28  ;;  %v938_v33 = vrot.slane %v445_v17, 10  ;;  %v939_v34 = vrot.slane %v446_v18, 10 }
  0x3a   : > { %v467_v35 = vadd.f32 %v936_v19, %v447_v29  ;;  %v468_v36 = vadd.f32 %v937_v20, %v448_v30  ;;  %v489_v38 = vmul.f32 %v1154_v48, %v1143_v42  ;;  %v490_v39 = vmul.f32 %v1154_v48, %v1145_v43 }
  0x3b   : > { %v469_v40 = vadd.f32 %v938_v33, %v449_v31  ;;  %v470_v41 = vadd.f32 %v939_v34, %v450_v32  ;;  %v491_v44 = vmul.f32 %v1154_v48, %v1150_v46  ;;  %v492_v50 = vmul.f32 %v1154_v48, %v1152_v47 }
  0x3c   : > { %vm471_vm8 = vcmp.ge.f32.partialorder %v467_v35, 1.0  ;;  %vm472_vm9 = vcmp.ge.f32.partialorder %v468_v36, 1.0  ;;  %v945_v51 = vrot.slane %v489_v38, 11  ;;  %v946_v52 = vrot.slane %v490_v39, 11 }
  0x3d   : > { %vm473_vm10 = vcmp.ge.f32.partialorder %v469_v40, 1.0  ;;  %vm474_vm11 = vcmp.ge.f32.partialorder %v470_v41, 1.0  ;;  %v1203_v53 = vsel %vm471_vm8, 1.0, %v1051_v60  ;;  %v1206_v42 = vsel %vm472_vm9, 1.0, %v1051_v60 }
  0x3e   : > { %v1209_v43 = vsel %vm473_vm10, 1.0, %v1051_v60  ;;  %v1212_v46 = vsel %vm474_vm11, 1.0, %v1051_v60  ;;  %v483_v54 = vsel %vm471_vm8, 0.0, %v467_v35  ;;  %v484_v47 = vsel %vm472_vm9, 0.0, %v468_v36 }
  0x3f   : > { %v485_v48 = vsel %vm473_vm10, 0.0, %v469_v40  ;;  %v486_v55 = vsel %vm474_vm11, 0.0, %v470_v41  ;;  %v493_v56 = vmul.f32 0.25, %v483_v54  ;;  %v494_v57 = vmul.f32 0.25, %v484_v47 }
  0x40   : > { %v495_v58 = vmul.f32 0.25, %v485_v48  ;;  %v496_v59 = vmul.f32 0.25, %v486_v55  ;;  %v947_v1 = vrot.slane %v491_v44, 11  ;;  %v948_v2 = vrot.slane %v492_v50, 11 }
  0x41   : > { %v513_v3 = vadd.f32 %v945_v51, %v493_v56  ;;  %v514_v4 = vadd.f32 %v946_v52, %v494_v57  ;;  %v536_v5 = vrot.slane %v1167_v61, %v1140_v37  ;;  %v540_v6 = vrot.slane %v1167_v61, %v1148_v45 }
  0x42   : > { %v515_v7 = vadd.f32 %v947_v1, %v495_v58  ;;  %v516_v8 = vadd.f32 %v948_v2, %v496_v59  ;;  %v544_v9 = vrot.slane %v1170_v62, %v1140_v37  ;;  %v548_v10 = vrot.slane %v1170_v62, %v1148_v45 }
  0x43   : > { %vm517_vm13 = vcmp.ge.f32.partialorder %v513_v3, 1.0  ;;  %vm518_vm14 = vcmp.ge.f32.partialorder %v514_v4, 1.0  ;;  %v552_v11 = vrot.slane %v1173_v63, %v1140_v37  ;;  %v556_v12 = vrot.slane %v1173_v63, %v1148_v45 }
  0x44   : > { %vm519_vm0 = vcmp.ge.f32.partialorder %v515_v7, 1.0  ;;  %vm520_vm1 = vcmp.ge.f32.partialorder %v516_v8, 1.0  ;;  %v949_v61 = vsel %vm517_vm13, 1.0, %v1051_v60  ;;  %v950_v13 = vsel %vm518_vm14, 1.0, %v1051_v60 }
  0x45   : > { %v951_v14 = vsel %vm519_vm0, 1.0, %v1051_v60  ;;  %v952_v15 = vsel %vm520_vm1, 1.0, %v1051_v60  ;;  %v560_v62 = vrot.slane %v1176_v0, %v1140_v37  ;;  %v564_v16 = vrot.slane %v1176_v0, %v1148_v45 }
  0x46   : > { %vm723_vm2 = vcmask 1042432   ;;  %v580_v63 = vrot.slane %v1183_v21, %v1140_v37  ;;  %v584_v17 = vrot.slane %v1183_v21, %v1148_v45  ;;  %v588_v18 = vrot.slane %v1186_v22, %v1140_v37 }
  0x47   : > { %v592_v19 = vrot.slane %v1186_v22, %v1148_v45  ;;  %v596_v60 = vrot.slane %v1189_v23, %v1140_v37  ;;  %v600_v20 = vrot.slane %v1189_v23, %v1148_v45  ;;  %v604_v0 = vrot.slane %v1192_v24, %v1140_v37 }
  0x48   : > { %v608_v25 = vrot.slane %v1192_v24, %v1148_v45  ;;  %v624_v21 = vrot.slane %v1203_v53, %v1140_v37  ;;  %v628_v26 = vrot.slane %v1203_v53, %v1148_v45  ;;  %v632_v22 = vrot.slane %v1206_v42, %v1140_v37 }
  0x49   : > { %v636_v27 = vrot.slane %v1206_v42, %v1148_v45  ;;  %v640_v23 = vrot.slane %v1209_v43, %v1140_v37  ;;  %v644_v28 = vrot.slane %v1209_v43, %v1148_v45  ;;  %v648_v24 = vrot.slane %v1212_v46, %v1140_v37 }
  0x4a   : > { %v652_v29 = vrot.slane %v1212_v46, %v1148_v45  ;;  %v668_v30 = vrot.slane %v949_v61, %v1140_v37  ;;  %v672_v31 = vrot.slane %v949_v61, %v1148_v45  ;;  %v676_v32 = vrot.slane %v950_v13, %v1140_v37 }
  0x4b   : > { %v680_v33 = vrot.slane %v950_v13, %v1148_v45  ;;  %v684_v34 = vrot.slane %v951_v14, %v1140_v37  ;;  %v688_v35 = vrot.slane %v951_v14, %v1148_v45  ;;  %v692_v36 = vrot.slane %v952_v15, %v1140_v37 }
  0x4c   : > { %v696_v38 = vrot.slane %v952_v15, %v1148_v45  ;;  %v706_v39 = vsel %vm705_vm12, %v536_v5, %v580_v63  ;;  %v707_v40 = vsel %vm705_vm12, %v540_v6, %v584_v17  ;;  %v708_v41 = vsel %vm705_vm12, %v544_v9, %v588_v18 }
  0x4d   : > { %v709_v44 = vsel %vm705_vm12, %v548_v10, %v592_v19  ;;  %v710_v50 = vsel %vm705_vm12, %v552_v11, %v596_v60  ;;  %v711_v51 = vsel %vm705_vm12, %v556_v12, %v600_v20  ;;  %v712_v52 = vsel %vm705_vm12, %v560_v62, %v604_v0 }
  0x4e   : > { %v713_v53 = vsel %vm705_vm12, %v564_v16, %v608_v25  ;;  %v715_v37 = vsel %vm714_vm15, %v706_v39, %v624_v21  ;;  %v716_v45 = vsel %vm714_vm15, %v707_v40, %v628_v26  ;;  %v717_v42 = vsel %vm714_vm15, %v708_v41, %v632_v22 }
  0x4f   : > { %v718_v43 = vsel %vm714_vm15, %v709_v44, %v636_v27  ;;  %v719_v46 = vsel %vm714_vm15, %v710_v50, %v640_v23  ;;  %v720_v54 = vsel %vm714_vm15, %v711_v51, %v644_v28  ;;  %v721_v47 = vsel %vm714_vm15, %v712_v52, %v648_v24 }
  0x50   : > { %v722_v48 = vsel %vm714_vm15, %v713_v53, %v652_v29  ;;  %v724_v55 = vsel %vm723_vm2, %v715_v37, %v668_v30  ;;  %v725_v56 = vsel %vm723_vm2, %v716_v45, %v672_v31  ;;  %v726_v57 = vsel %vm723_vm2, %v717_v42, %v676_v32 }
  0x51   : > { %v727_v58 = vsel %vm723_vm2, %v718_v43, %v680_v33  ;;  %v728_v59 = vsel %vm723_vm2, %v719_v46, %v684_v34  ;;  %v729_v1 = vsel %vm723_vm2, %v720_v54, %v688_v35  ;;  %v730_v2 = vsel %vm723_vm2, %v721_v47, %v692_v36 }
  0x52   : > { %v731_v3 = vsel %vm723_vm2, %v722_v48, %v696_v38  ;;  %v953_v4 = vpack.c.bf16 %v725_v56, %v724_v55  ;;  %v954_v5 = vpack.c.bf16 %v727_v58, %v726_v57  ;;  %v955_v6 = vpack.c.bf16 %v729_v1, %v728_v59 }
  0x53   : > { %v956_v7 = vpack.c.bf16 %v731_v3, %v730_v2 }
  0x54   : > { %v756_v8 = vrot.slane %v953_v4, %v1156_v49  ;;  %v763_v9 = vrot.slane %v954_v5, %v1156_v49  ;;  %v773_v10 = vrot.slane %v955_v6, %v1156_v49 }
  0x55   : > { %v780_v11 = vrot.slane %v956_v7, %v1156_v49 }
  0x56   : > { %v764_v12 = vcombine.low %v756_v8, %v763_v9 }
  0x57   : > { %v781_v61 = vcombine.low %v773_v10, %v780_v11 }
  0x58   : > { %784 = vst [vmem:[%s287_s20] sm:$0xff] %v764_v12 }
  0x59   : > { %785 = vst [vmem:[%s287_s20 + $0x8] sm:$0xff] %v781_v61 }
  0x5a PF: > { %s15_s17 = sadd.s32 1, %s1043_s17   ;;  %s1322_s15 = smov %s1039_s16 }
  0x5b   : > { %p12_p2 = scmp.ge.s32.totalorder %s15_s17, 4   ;;  %s1323_s16 = smov %s1325_s19 }
  0x5d   :  { %14 = sbr.rel (!%p12_p2) target bundleno = 2 (0x2), region = 77 }
  0x64   :  { %816 = vsyncpa [#allocation3], 1 }
  0x65   :  { %818 = vsyncpa [#allocation3 + $0x1], 1 }

// kernel: basic_block_forward.4
= control target key start
LH: loop header
LB: loop body
LE: loop exit
PB: predicated region body
PF: predicated region fallthrough
CT: control target
= control target key end

     0   :  { %s5713_s18 = smov 0   ;;  %s7095_s0 = inlined_call_operand.vmem [shape: f32[8,16,16,4], index: 0, kind: input, shape index: {}]   ;;  %s7096_s1 = inlined_call_operand.vmem [shape: f32[9,4,4], index: 1, kind: input, shape index: {}]   ;;  %s7097_s2 = inlined_call_operand.vmem [shape: f32[1,4], index: 2, kind: input, shape index: {}]   ;;  %s7098_s3 = inlined_call_operand.vmem [shape: f32[2048,4], index: 3, kind: output, shape index: {0}]   ;;  %s7099_s4 = inlined_call_operand.vmem [shape: f32[8,2,4], index: 4, kind: output, shape index: {1}]   ;;  %s7100_s5 = inlined_call_operand.vmem [shape: f32[8,2,4], index: 5, kind: output, shape index: {2}]  }
   0x1 LB: > { %s5719_s19 = sadd.s32 4294967295, %s5680_s18   ;;  %p4343_p0 = scmp.ge.s32.totalorder %s5680_s18, 1  ;;  %s5680_s18 = sphi %s5713_s18, %s16_s18  }
   0x2   : > { %p192_p1 = scmp.lt.s32.totalorder %s5680_s18, 9 }
   0x4   : > { %p193_p2 = pnand %p4343_p0, %p192_p1 }
   0x6   : > { %196 = sbr.rel (%p193_p2) target bundleno = 566 (0x236), region = 32 }
   0xd   : > { %v4350_v0 = vld [vmem:[%s7096_s1 + $0x4] sm:$0xf]  ;;  %vm694_vm0 = vcmask 1043456   ;;  %vm247_vm1 = vcmask 31744   ;;  %vm250_vm2 = vcmask 25600   ;;  %v5682_v1 = vmov 0.0  }
   0xe   : > { %4956 = vmatprep.subr.msk.mxu1 %vm694_vm0, %v4350_v0  ;;  %248 = vst.msk [vmem:[#allocation2] sm:$0xff] %vm247_vm1, %v5682_v1  ;;  %249 = vst.msk [vmem:[#allocation2 + $0x8] sm:$0xff] %vm247_vm1, %v5682_v1  ;;  %vm256_vm3 = vcmask 24576   ;;  %v5736_v2 = vld [vmem:[%s7096_s1 + $0x10] sm:$0xf]  ;;  %p228_p3 = scmp.lt.s32.totalorder %s5719_s19, 7 }
   0xf   : > { %253 = vst.msk [vmem:[#allocation2 + $0x198] sm:$0xff] %vm247_vm1, %v5682_v1  ;;  %254 = vst.msk [vmem:[#allocation2 + $0x1a0] sm:$0xff] %vm247_vm1, %v5682_v1  ;;  %v5742_v3 = vld [vmem:[%s7096_s1] sm:$0xf]  ;;  %4957 = vmatpush3.msk.msra.mxu1 %vm694_vm0, %v4350_v0  ;;  %5156 = vmatprep.subr.msk.mxu0 %vm694_vm0, %v5736_v2  ;;  %v5786_v4 = vld [vmem:[%s7096_s1 + $0x14] sm:$0xf] }
  0x10   : > { %251 = vst.msk [vmem:[#allocation2 + $0x10] sm:$0x3] %vm250_vm2, %v5682_v1  ;;  %255 = vst.msk [vmem:[#allocation2 + $0x1a8] sm:$0x3] %vm250_vm2, %v5682_v1  ;;  %5157 = vmatpush3.msk.msra.mxu0 %vm694_vm0, %v5736_v2  ;;  %s5793_s28 = scalar_select %p228_p3, %s5719_s19, 7  ;;  %5006 = vmatprep.subr.msk.mxu1 %vm694_vm0, %v5742_v3  ;;  %vm528_vm4 = vcmask 1040384  }
  0x11   : > { %275 = vst.msk [vmem:[#allocation2 + $0x11] sm:$0x1] %vm256_vm3, %v5682_v1  ;;  %257 = vst.msk [vmem:[#allocation2] sm:$0x1] %vm256_vm3, %v5682_v1  ;;  %5206 = vmatprep.subr.msk.mxu0 %vm694_vm0, %v5786_v4  ;;  %v5811_v8 = vld [vmem:[%s7096_s1 + $0x8] sm:$0xf] }
  0x12   : > { %258 = vst.msk [vmem:[#allocation2 + $0x18] sm:$0x1] %vm256_vm3, %v5682_v1  ;;  %259 = vst.msk [vmem:[#allocation2 + $0x30] sm:$0x1] %vm256_vm3, %v5682_v1  ;;  %s4658_s29 = sshll.u32 %s5793_s28, 8  ;;  %s4348_s22 = sshll.u32 %s5793_s28, 1 }
  0x13   : > { %260 = vst.msk [vmem:[#allocation2 + $0x48] sm:$0x1] %vm256_vm3, %v5682_v1  ;;  %261 = vst.msk [vmem:[#allocation2 + $0x60] sm:$0x1] %vm256_vm3, %v5682_v1  ;;  %s5803_s7 = scalar_lea.vmem %s7095_s0, %s4658_s29  ;;  %v5925_v61 = vld [vmem:[%s7096_s1 + $0x18] sm:$0xf]  ;;  %s246_s25 = scalar_lea.vmem %s7100_s5, %s4348_s22 }
  0x14   : > { %262 = vst.msk [vmem:[#allocation2 + $0x78] sm:$0x1] %vm256_vm3, %v5682_v1  ;;  %263 = vst.msk [vmem:[#allocation2 + $0x90] sm:$0x1] %vm256_vm3, %v5682_v1  ;;  %v293_v5 = vld [vmem:[%s5803_s7] sm:$0xff]  ;;  %v294_v6 = vld [vmem:[%s5803_s7 + $0x8] sm:$0xff]  ;;  %s242_s10 = scalar_lea.vmem %s7099_s4, %s4348_s22 }
  0x15   : > { %264 = vst.msk [vmem:[#allocation2 + $0xa8] sm:$0x1] %vm256_vm3, %v5682_v1  ;;  %265 = vst.msk [vmem:[#allocation2 + $0xc0] sm:$0x1] %vm256_vm3, %v5682_v1  ;;  %v295_v7 = vld [vmem:[%s5803_s7 + $0x10] sm:$0xff]  ;;  %v564_v9 = vld [vmem:[#allocation2 + $0x1] sm:$0xff]  ;;  %v427_v12 = vmul.f32 %v293_v5, %v293_v5  ;;  %v428_v14 = vmul.f32 %v294_v6, %v294_v6 }
  0x16   : > { %266 = vst.msk [vmem:[#allocation2 + $0xd8] sm:$0x1] %vm256_vm3, %v5682_v1  ;;  %267 = vst.msk [vmem:[#allocation2 + $0xf0] sm:$0x1] %vm256_vm3, %v5682_v1  ;;  %v358_v11 = vsel %vm247_vm1, %v293_v5, 0.0  ;;  %v359_v13 = vsel %vm247_vm1, %v294_v6, 0.0  ;;  %4958 = vmatprep.mubr.msk.f32.mxu1 %vm247_vm1, %v564_v9  ;;  %v429_v18 = vmul.f32 %v295_v7, %v295_v7 }
  0x17   : > { %268 = vst.msk [vmem:[#allocation2 + $0x108] sm:$0x1] %vm256_vm3, %v5682_v1  ;;  %269 = vst.msk [vmem:[#allocation2 + $0x120] sm:$0x1] %vm256_vm3, %v5682_v1  ;;  %v565_v10 = vld [vmem:[#allocation2 + $0x9] sm:$0xff]  ;;  %v296_v15 = vld [vmem:[%s5803_s7 + $0x18] sm:$0xff]  ;;  %v360_v16 = vadd.f32 %v359_v13, %v358_v11 }
  0x18   : > { %270 = vst.msk [vmem:[#allocation2 + $0x138] sm:$0x1] %vm256_vm3, %v5682_v1  ;;  %271 = vst.msk [vmem:[#allocation2 + $0x150] sm:$0x1] %vm256_vm3, %v5682_v1  ;;  %v361_v17 = vsel %vm247_vm1, %v295_v7, 0.0  ;;  %v297_v19 = vld [vmem:[%s5803_s7 + $0x20] sm:$0xff]  ;;  %4959 = vmatmul.mubr.msk.f32.vlgmr.msra.gmra.mrb[0].mxu1 %vm247_vm1, %v565_v10  ;;  %v430_v25 = vmul.f32 %v296_v15, %v296_v15 }
  0x19   : > { %272 = vst.msk [vmem:[#allocation2 + $0x168] sm:$0x1] %vm256_vm3, %v5682_v1  ;;  %273 = vst.msk [vmem:[#allocation2 + $0x180] sm:$0x1] %vm256_vm3, %v5682_v1  ;;  %v298_v20 = vld [vmem:[%s5803_s7 + $0x28] sm:$0xff]  ;;  %v299_v21 = vld [vmem:[%s5803_s7 + $0x30] sm:$0xff]  ;;  %5007 = vmatpush3.msk.msra.mxu1 %vm694_vm0, %v5742_v3  ;;  %v362_v30 = vadd.f32 %v361_v17, %v360_v16  ;;  %v431_v32 = vmul.f32 %v297_v19, %v297_v19 }
  0x1a   : > { %274 = vst.msk [vmem:[#allocation2 + $0x198] sm:$0x1] %vm256_vm3, %v5682_v1  ;;  %276 = vst.msk [vmem:[#allocation2 + $0x29] sm:$0x1] %vm256_vm3, %v5682_v1  ;;  %v459_v22 = vsel %vm247_vm1, %v427_v12, 0.0  ;;  %v460_v23 = vsel %vm247_vm1, %v428_v14, 0.0  ;;  %v432_v38 = vmul.f32 %v298_v20, %v298_v20  ;;  %5056 = vmatprep.subr.msk.mxu1 %vm694_vm0, %v5811_v8  ;;  %v433_v49 = vmul.f32 %v299_v21, %v299_v21 }
  0x1b   : > { %277 = vst.msk [vmem:[#allocation2 + $0x41] sm:$0x1] %vm256_vm3, %v5682_v1  ;;  %278 = vst.msk [vmem:[#allocation2 + $0x59] sm:$0x1] %vm256_vm3, %v5682_v1  ;;  %v363_v24 = vsel %vm247_vm1, %v296_v15, 0.0  ;;  %v5833_v26 = vld [vmem:[%s5803_s7 + $0x38] sm:$0xff]  ;;  %v461_v29 = vadd.f32 %v460_v23, %v459_v22 }
  0x1c   : > { %279 = vst.msk [vmem:[#allocation2 + $0x71] sm:$0x1] %vm256_vm3, %v5682_v1  ;;  %280 = vst.msk [vmem:[#allocation2 + $0x89] sm:$0x1] %vm256_vm3, %v5682_v1  ;;  %v5836_v27 = vld [vmem:[%s5803_s7 + $0x40] sm:$0xff]  ;;  %v5839_v28 = vld [vmem:[%s5803_s7 + $0x48] sm:$0xff]  ;;  %v364_v43 = vadd.f32 %v363_v24, %v362_v30  ;;  %v434_v60 = vmul.f32 %v5833_v26, %v5833_v26 }
  0x1d   : > { %281 = vst.msk [vmem:[#allocation2 + $0xa1] sm:$0x1] %vm256_vm3, %v5682_v1  ;;  %282 = vst.msk [vmem:[#allocation2 + $0xb9] sm:$0x1] %vm256_vm3, %v5682_v1  ;;  %v462_v31 = vsel %vm247_vm1, %v429_v18, 0.0  ;;  %v5851_v33 = vld [vmem:[%s5803_s7 + $0x50] sm:$0xff]  ;;  %v436_v11 = vmul.f32 %v5839_v28, %v5839_v28 }
  0x1e   : > { %283 = vst.msk [vmem:[#allocation2 + $0xd1] sm:$0x1] %vm256_vm3, %v5682_v1  ;;  %284 = vst.msk [vmem:[#allocation2 + $0xe9] sm:$0x1] %vm256_vm3, %v5682_v1  ;;  %v5854_v34 = vld [vmem:[%s5803_s7 + $0x58] sm:$0xff]  ;;  %v5857_v35 = vld [vmem:[%s5803_s7 + $0x60] sm:$0xff]  ;;  %v463_v42 = vadd.f32 %v462_v31, %v461_v29  ;;  %v437_v17 = vmul.f32 %v5851_v33, %v5851_v33 }
  0x1f   : > { %285 = vst.msk [vmem:[#allocation2 + $0x101] sm:$0x1] %vm256_vm3, %v5682_v1  ;;  %286 = vst.msk [vmem:[#allocation2 + $0x119] sm:$0x1] %vm256_vm3, %v5682_v1  ;;  %v464_v36 = vsel %vm247_vm1, %v430_v25, 0.0  ;;  %v365_v37 = vsel %vm247_vm1, %v297_v19, 0.0  ;;  %v438_v23 = vmul.f32 %v5854_v34, %v5854_v34 }
  0x20   : > { %287 = vst.msk [vmem:[#allocation2 + $0x131] sm:$0x1] %vm256_vm3, %v5682_v1  ;;  %288 = vst.msk [vmem:[#allocation2 + $0x149] sm:$0x1] %vm256_vm3, %v5682_v1  ;;  %v5868_v39 = vld [vmem:[%s5803_s7 + $0x68] sm:$0xff]  ;;  %v5871_v40 = vld [vmem:[%s5803_s7 + $0x70] sm:$0xff]  ;;  %v465_v56 = vadd.f32 %v464_v36, %v463_v42  ;;  %v366_v57 = vadd.f32 %v365_v37, %v364_v43 }
  0x21   : > { %289 = vst.msk [vmem:[#allocation2 + $0x161] sm:$0x1] %vm256_vm3, %v5682_v1  ;;  %290 = vst.msk [vmem:[#allocation2 + $0x179] sm:$0x1] %vm256_vm3, %v5682_v1  ;;  %v5874_v41 = vld [vmem:[%s5803_s7 + $0x78] sm:$0xff]  ;;  %v5885_v44 = vld [vmem:[%s5803_s7 + $0x80] sm:$0xff] }
  0x22   : > { %291 = vst.msk [vmem:[#allocation2 + $0x191] sm:$0x1] %vm256_vm3, %v5682_v1  ;;  %292 = vst.msk [vmem:[#allocation2 + $0x1a9] sm:$0x1] %vm256_vm3, %v5682_v1  ;;  %v5888_v45 = vld [vmem:[%s5803_s7 + $0x88] sm:$0xff]  ;;  %v5891_v46 = vld [vmem:[%s5803_s7 + $0x90] sm:$0xff] }
  0x23   : > { %326 = vst.msk [vmem:[#allocation2 + $0x19] sm:$0xff] %vm247_vm1, %v293_v5  ;;  %327 = vst.msk [vmem:[#allocation2 + $0x21] sm:$0xff] %vm247_vm1, %v294_v6  ;;  %v466_v47 = vsel %vm247_vm1, %v431_v32, 0.0  ;;  %v367_v48 = vsel %vm247_vm1, %v298_v20, 0.0  ;;  %v5902_v50 = vld [vmem:[%s5803_s7 + $0x98] sm:$0xff]  ;;  %v5905_v51 = vld [vmem:[%s5803_s7 + $0xa0] sm:$0xff]  ;;  %v435_v5 = vmul.f32 %v5836_v27, %v5836_v27  ;;  %v439_v32 = vmul.f32 %v5857_v35, %v5857_v35 }
  0x24   : > { %328 = vst.msk [vmem:[#allocation2 + $0x31] sm:$0xff] %vm247_vm1, %v295_v7  ;;  %329 = vst.msk [vmem:[#allocation2 + $0x39] sm:$0xff] %vm247_vm1, %v296_v15  ;;  %v5908_v52 = vld [vmem:[%s5803_s7 + $0xa8] sm:$0xff]  ;;  %v468_v58 = vsel %vm247_vm1, %v432_v38, 0.0  ;;  %v369_v59 = vsel %vm247_vm1, %v299_v21, 0.0  ;;  %v467_v62 = vadd.f32 %v466_v47, %v465_v56  ;;  %v368_v63 = vadd.f32 %v367_v48, %v366_v57  ;;  %v5972_v24 = vld [vmem:[%s5803_s7 + $0xb0] sm:$0xff] }
  0x25   : > { %330 = vst.msk [vmem:[#allocation2 + $0x49] sm:$0xff] %vm247_vm1, %v297_v19  ;;  %331 = vst.msk [vmem:[#allocation2 + $0x51] sm:$0xff] %vm247_vm1, %v298_v20  ;;  %v470_v1 = vsel %vm247_vm1, %v433_v49, 0.0  ;;  %v371_v3 = vsel %vm247_vm1, %v5833_v26, 0.0  ;;  %v373_v10 = vsel %vm247_vm1, %v5836_v27, 0.0  ;;  %v474_v15 = vsel %vm247_vm1, %v435_v5, 0.0 }
  0x26   : > { %332 = vst.msk [vmem:[#allocation2 + $0x61] sm:$0xff] %vm247_vm1, %v299_v21  ;;  %333 = vst.msk [vmem:[#allocation2 + $0x69] sm:$0xff] %vm247_vm1, %v5833_v26  ;;  %v469_v7 = vadd.f32 %v468_v58, %v467_v62  ;;  %v370_v9 = vadd.f32 %v369_v59, %v368_v63  ;;  %v375_v16 = vsel %vm247_vm1, %v5839_v28, 0.0  ;;  %v476_v21 = vsel %vm247_vm1, %v436_v11, 0.0  ;;  %v6012_v42 = vld [vmem:[%s5803_s7 + $0xd8] sm:$0xff]  ;;  %v6024_v49 = vld [vmem:[%s5803_s7 + $0xe0] sm:$0xff] }
  0x27   : > { %334 = vst.msk [vmem:[#allocation2 + $0x79] sm:$0xff] %vm247_vm1, %v5836_v27  ;;  %335 = vst.msk [vmem:[#allocation2 + $0x81] sm:$0xff] %vm247_vm1, %v5839_v28  ;;  %v377_v22 = vsel %vm247_vm1, %v5851_v33, 0.0  ;;  %v5981_v27 = vld [vmem:[%s5803_s7 + $0xb8] sm:$0xff]  ;;  %v5984_v28 = vld [vmem:[%s5803_s7 + $0xc0] sm:$0xff]  ;;  %v478_v30 = vsel %vm247_vm1, %v437_v17, 0.0  ;;  %v440_v48 = vmul.f32 %v5868_v39, %v5868_v39  ;;  %v441_v58 = vmul.f32 %v5871_v40, %v5871_v40 }
  0x28   : > { %336 = vst.msk [vmem:[#allocation2 + $0x91] sm:$0xff] %vm247_vm1, %v5851_v33  ;;  %337 = vst.msk [vmem:[#allocation2 + $0x99] sm:$0xff] %vm247_vm1, %v5854_v34  ;;  %v471_v12 = vadd.f32 %v470_v1, %v469_v7  ;;  %v372_v13 = vadd.f32 %v371_v3, %v370_v9  ;;  %v379_v31 = vsel %vm247_vm1, %v5854_v34, 0.0  ;;  %v6002_v33 = vld [vmem:[%s5803_s7 + $0xc8] sm:$0xff]  ;;  %v6009_v34 = vld [vmem:[%s5803_s7 + $0xd0] sm:$0xff]  ;;  %v480_v43 = vsel %vm247_vm1, %v438_v23, 0.0 }
  0x29   : > { %338 = vst.msk [vmem:[#allocation2 + $0xa9] sm:$0xff] %vm247_vm1, %v5857_v35  ;;  %339 = vst.msk [vmem:[#allocation2 + $0xb1] sm:$0xff] %vm247_vm1, %v5868_v39  ;;  %v381_v47 = vsel %vm247_vm1, %v5857_v35, 0.0  ;;  %v6033_v35 = vld [vmem:[%s5803_s7 + $0xe8] sm:$0xff]  ;;  %v482_v56 = vsel %vm247_vm1, %v439_v32, 0.0  ;;  %v383_v57 = vsel %vm247_vm1, %v5868_v39, 0.0  ;;  %v442_v3 = vmul.f32 %v5874_v41, %v5874_v41 }
  0x2a   : > { %340 = vst.msk [vmem:[#allocation2 + $0xc1] sm:$0xff] %vm247_vm1, %v5871_v40  ;;  %341 = vst.msk [vmem:[#allocation2 + $0xc9] sm:$0xff] %vm247_vm1, %v5874_v41  ;;  %v566_v53 = vld [vmem:[#allocation2 + $0x19] sm:$0xff]  ;;  %v567_v54 = vld [vmem:[#allocation2 + $0x21] sm:$0xff]  ;;  %v374_v20 = vadd.f32 %v373_v10, %v372_v13  ;;  %v484_v63 = vsel %vm247_vm1, %v440_v48, 0.0  ;;  %v385_v1 = vsel %vm247_vm1, %v5871_v40, 0.0 }
  0x2b   : > { %342 = vst.msk [vmem:[#allocation2 + $0xd9] sm:$0xff] %vm247_vm1, %v5885_v44  ;;  %343 = vst.msk [vmem:[#allocation2 + $0xe1] sm:$0xff] %vm247_vm1, %v5888_v45  ;;  %v568_v55 = vld [vmem:[#allocation2 + $0x31] sm:$0xff]  ;;  %4961 = vmatprep.mubr.msk.f32.mxu1 %vm247_vm1, %v566_v53  ;;  %5158 = vmatprep.mubr.msk.f32.mxu0 %vm247_vm1, %v566_v53  ;;  %v5932_v0 = vld [vmem:[#allocation2 + $0x39] sm:$0xff]  ;;  %v486_v40 = vsel %vm247_vm1, %v441_v58, 0.0  ;;  %v387_v9 = vsel %vm247_vm1, %v5874_v41, 0.0 }
  0x2c   : > { %344 = vst.msk [vmem:[#allocation2 + $0xf1] sm:$0xff] %vm247_vm1, %v5891_v46  ;;  %345 = vst.msk [vmem:[#allocation2 + $0xf9] sm:$0xff] %vm247_vm1, %v5902_v50  ;;  %4962 = vmatmul.mubr.msk.f32.gmra.mrb[2].mxu1 %vm247_vm1, %v567_v54  ;;  %5159 = vmatmul.mubr.msk.f32.vlgmr.msra.gmra.mrb[0].mxu0 %vm247_vm1, %v567_v54  ;;  %v5940_v6 = vld [vmem:[#allocation2 + $0x49] sm:$0xff]  ;;  %v5957_v14 = vld [vmem:[#allocation2 + $0x51] sm:$0xff]  ;;  %v376_v26 = vadd.f32 %v375_v16, %v374_v20  ;;  %v488_v13 = vsel %vm247_vm1, %v442_v3, 0.0  ;;  %v444_v16 = vmul.f32 %v5888_v45, %v5888_v45  ;;  %s4346_s26 = sshll.u32 %s5719_s19, 5 }
  0x2d   : > { %346 = vst.msk [vmem:[#allocation2 + $0x109] sm:$0xff] %vm247_vm1, %v5905_v51  ;;  %347 = vst.msk [vmem:[#allocation2 + $0x111] sm:$0xff] %vm247_vm1, %v5908_v52  ;;  %5207 = vmatpush3.msk.msra.mxu0 %vm694_vm0, %v5786_v4  ;;  %4964 = vmatprep.mubr.msk.f32.mxu1 %vm247_vm1, %v568_v55  ;;  %v472_v4 = vsel %vm247_vm1, %v434_v60, 0.0  ;;  %v5964_v18 = vld [vmem:[#allocation2 + $0x61] sm:$0xff]  ;;  %v5990_v29 = vld [vmem:[#allocation2 + $0x69] sm:$0xff]  ;;  %v391_v20 = vsel %vm247_vm1, %v5888_v45, 0.0 }
  0x2e   : > { %5161 = vmatprep.mubr.msk.f32.mxu0 %vm247_vm1, %v568_v55  ;;  %5256 = vmatprep.subr.msk.mxu0 %vm694_vm0, %v5925_v61  ;;  %v473_v19 = vadd.f32 %v472_v4, %v471_v12  ;;  %348 = vst.msk [vmem:[#allocation2 + $0x121] sm:$0xff] %vm247_vm1, %v5972_v24  ;;  %349 = vst.msk [vmem:[#allocation2 + $0x129] sm:$0xff] %vm247_vm1, %v5981_v27  ;;  %v6004_v36 = vld [vmem:[#allocation2 + $0x79] sm:$0xff]  ;;  %v378_v38 = vadd.f32 %v377_v22, %v376_v26  ;;  %v6039_v55 = vld [vmem:[#allocation2 + $0x81] sm:$0xff]  ;;  %v492_v26 = vsel %vm247_vm1, %v444_v16, 0.0  ;;  %p234_p4 = scmp.lt.s32.totalorder %s4346_s26, 255 }
  0x2f   : > { %350 = vst.msk [vmem:[#allocation2 + $0x139] sm:$0xff] %vm247_vm1, %v5984_v28  ;;  %351 = vst.msk [vmem:[#allocation2 + $0x141] sm:$0xff] %vm247_vm1, %v6002_v33  ;;  %v6048_v59 = vld [vmem:[#allocation2 + $0x91] sm:$0xff]  ;;  %v6063_v7 = vld [vmem:[#allocation2 + $0x99] sm:$0xff]  ;;  %v443_v4 = vmul.f32 %v5885_v44, %v5885_v44 }
  0x30   : > { %4965 = vmatmul.mubr.msk.f32.gmra.mrb[4].mxu1 %vm247_vm1, %v5932_v0  ;;  %5162 = vmatmul.mubr.msk.f32.gmra.mrb[2].mxu0 %vm247_vm1, %v5932_v0  ;;  %v475_v25 = vadd.f32 %v474_v15, %v473_v19  ;;  %352 = vst.msk [vmem:[#allocation2 + $0x151] sm:$0xff] %vm247_vm1, %v6009_v34  ;;  %353 = vst.msk [vmem:[#allocation2 + $0x159] sm:$0xff] %vm247_vm1, %v6012_v42  ;;  %v380_v54 = vadd.f32 %v379_v31, %v378_v38  ;;  %v6070_v10 = vld [vmem:[#allocation2 + $0xa9] sm:$0xff]  ;;  %v389_v15 = vsel %vm247_vm1, %v5885_v44, 0.0  ;;  %v6085_v19 = vld [vmem:[#allocation2 + $0xb1] sm:$0xff]  ;;  %s7220_s26 = smov (!%p234_p4, %s4346_s26), 255 }
  0x31   : > { %4967 = vmatprep.mubr.msk.f32.mxu1 %vm247_vm1, %v5940_v6  ;;  %5164 = vmatprep.mubr.msk.f32.mxu0 %vm247_vm1, %v5940_v6  ;;  %7147 = vst [vmem:[#allocation3_spill] sm:$0xff] %v6024_v49  ;;  %354 = vst.msk [vmem:[#allocation2 + $0x169] sm:$0xff] %vm247_vm1, %v6024_v49  ;;  %v490_v44 = vsel %vm247_vm1, %v443_v4, 0.0  ;;  %v6092_v22 = vld [vmem:[#allocation2 + $0xc1] sm:$0xff]  ;;  %v446_v31 = vmul.f32 %v5902_v50, %v5902_v50  ;;  %s4347_s27 = sshll.u32 %s7220_s26, 3 }
  0x32   : > { %v477_v37 = vadd.f32 %v476_v21, %v475_v25  ;;  %7148 = vst [vmem:[#allocation4_spill] sm:$0xff] %v6033_v35  ;;  %355 = vst.msk [vmem:[#allocation2 + $0x171] sm:$0xff] %vm247_vm1, %v6033_v35  ;;  %v382_v62 = vadd.f32 %v381_v47, %v380_v54  ;;  %v445_v21 = vmul.f32 %v5891_v46, %v5891_v46  ;;  %v6116_v48 = vld [vmem:[#allocation2 + $0xd9] sm:$0xff]  ;;  %s6915_s19 = scalar_lea.vmem %s7098_s3, %s4347_s27 }
  0x33   : > { %v447_v47 = vmul.f32 %v5905_v51, %v5905_v51  ;;  %7150 = vst [vmem:[#allocation6_spill] sm:$0xff] %v6116_v48  ;;  %v496_v58 = vsel %vm247_vm1, %v446_v31, 0.0  ;;  %v452_v31 = vmul.f32 %v6002_v33, %v6002_v33  ;;  %v6373_v35 = vld [vmem:[#allocation2 + $0x78] sm:$0xff] }
  0x34   : > { %4968 = vmatmul.mubr.msk.f32.gmra.mrb[6].mxu1 %vm247_vm1, %v5957_v14  ;;  %5165 = vmatmul.mubr.msk.f32.gmra.mrb[4].mxu0 %vm247_vm1, %v5957_v14  ;;  %v479_v53 = vadd.f32 %v478_v30, %v477_v37  ;;  %v384_v5 = vadd.f32 %v383_v57, %v382_v62  ;;  %v393_v30 = vsel %vm247_vm1, %v5891_v46, 0.0  ;;  %v6107_v46 = vld [vmem:[#allocation2 + $0xc9] sm:$0xff]  ;;  %v6109_v37 = vld [vmem:[#allocation2 + $0x1a] sm:$0xff]  ;;  %v494_v38 = vsel %vm247_vm1, %v445_v21, 0.0  ;;  %7176 = vst [vmem:[#allocation32_spill] sm:$0xff] %v6373_v35 }
  0x35   : > { %4970 = vmatprep.mubr.msk.f32.mxu1 %vm247_vm1, %v5964_v18  ;;  %5167 = vmatprep.mubr.msk.f32.mxu0 %vm247_vm1, %v5964_v18  ;;  %7149 = vst [vmem:[#allocation5_spill] sm:$0xff] %v6107_v46  ;;  %v6122_v57 = vld [vmem:[%s5803_s7 + $0xf8] sm:$0xff]  ;;  %v448_v62 = vmul.f32 %v5908_v52, %v5908_v52  ;;  %v498_v3 = vsel %vm247_vm1, %v447_v47, 0.0  ;;  %v451_v21 = vmul.f32 %v5984_v28, %v5984_v28  ;;  %v407_v47 = vsel %vm247_vm1, %v6002_v33, 0.0 }
  0x36   : > { %v481_v60 = vadd.f32 %v480_v43, %v479_v53  ;;  %v386_v12 = vadd.f32 %v385_v1, %v384_v5  ;;  %v395_v43 = vsel %vm247_vm1, %v5902_v50, 0.0  ;;  %7152 = vst [vmem:[#allocation8_spill] sm:$0xff] %v6122_v57  ;;  %357 = vst.msk [vmem:[#allocation2 + $0x189] sm:$0xff] %vm247_vm1, %v6122_v57  ;;  %v6143_v1 = vld [vmem:[#allocation2 + $0x22] sm:$0xff]  ;;  %v449_v5 = vmul.f32 %v5972_v24, %v5972_v24 }
  0x37   : > { %v6357_v57 = vld [vmem:[#allocation2 + $0x60] sm:$0xff] }
  0x38   : > { %4971 = vmatmul.mubr.msk.f32.gmra.mrb[8].mxu1 %vm247_vm1, %v5990_v29  ;;  %5168 = vmatmul.mubr.msk.f32.gmra.mrb[6].mxu0 %vm247_vm1, %v5990_v29  ;;  %v483_v39 = vadd.f32 %v482_v56, %v481_v60  ;;  %v388_v17 = vadd.f32 %v387_v9, %v386_v12  ;;  %v6119_v56 = vld [vmem:[%s5803_s7 + $0xf0] sm:$0xff]  ;;  %v397_v60 = vsel %vm247_vm1, %v5905_v51, 0.0  ;;  %v6141_v51 = vld [vmem:[#allocation2 + $0xe1] sm:$0xff]  ;;  %v500_v12 = vsel %vm247_vm1, %v448_v62, 0.0  ;;  %7174 = vst [vmem:[#allocation30_spill] sm:$0xff] %v6357_v57 }
  0x39   : > { %4973 = vmatprep.mubr.msk.f32.mxu1 %vm247_vm1, %v6004_v36  ;;  %5170 = vmatprep.mubr.msk.f32.mxu0 %vm247_vm1, %v6004_v36  ;;  %7151 = vst [vmem:[#allocation7_spill] sm:$0xff] %v6119_v56  ;;  %356 = vst.msk [vmem:[#allocation2 + $0x181] sm:$0xff] %vm247_vm1, %v6119_v56  ;;  %v6371_v56 = vld [vmem:[#allocation2 + $0x12a] sm:$0xff] }
  0x3a   : > { %v485_v11 = vadd.f32 %v484_v63, %v483_v39  ;;  %v390_v25 = vadd.f32 %v389_v15, %v388_v17  ;;  %7153 = vst [vmem:[#allocation9_spill] sm:$0xff] %v6141_v51  ;;  %v399_v39 = vsel %vm247_vm1, %v5908_v52, 0.0  ;;  %v450_v15 = vmul.f32 %v5981_v27, %v5981_v27  ;;  %v6162_v52 = vld [vmem:[%s7096_s1 + $0x1c] sm:$0xf] }
  0x3b   : > { %v6174_v17 = vld [vmem:[#allocation2 + $0x3a] sm:$0xff] }
  0x3c   : > { %4974 = vmatmul.mubr.msk.f32.gmra.mrb[10].mxu1 %vm247_vm1, %v6039_v55  ;;  %5171 = vmatmul.mubr.msk.f32.gmra.mrb[8].mxu0 %vm247_vm1, %v6039_v55  ;;  %v487_v41 = vadd.f32 %v486_v40, %v485_v11  ;;  %v392_v32 = vadd.f32 %v391_v20, %v390_v25  ;;  %v6150_v40 = vld [vmem:[#allocation2 + $0xf1] sm:$0xff]  ;;  %v403_v20 = vsel %vm247_vm1, %v5981_v27, 0.0  ;;  %v405_v27 = vsel %vm247_vm1, %v5984_v28, 0.0 }
  0x3d   : > { %4976 = vmatprep.mubr.msk.f32.mxu1 %vm247_vm1, %v6048_v59  ;;  %5173 = vmatprep.mubr.msk.f32.mxu0 %vm247_vm1, %v6048_v59  ;;  %7154 = vst [vmem:[#allocation10_spill] sm:$0xff] %v6150_v40  ;;  %v6152_v11 = vld [vmem:[#allocation2 + $0x32] sm:$0xff] }
  0x3e   : > { %v489_v23 = vadd.f32 %v488_v13, %v487_v41  ;;  %v394_v54 = vadd.f32 %v393_v30, %v392_v32  ;;  %v401_v13 = vsel %vm247_vm1, %v5972_v24, 0.0  ;;  %v6172_v24 = vld [vmem:[#allocation2 + $0xf9] sm:$0xff]  ;;  %v504_v30 = vsel %vm247_vm1, %v450_v15, 0.0 }
  0x3f   : > { %7155 = vst [vmem:[#allocation11_spill] sm:$0xff] %v6172_v24  ;;  %v6204_v28 = vld [vmem:[#allocation2 + $0x52] sm:$0xff] }
  0x40   : > { %4977 = vmatmul.mubr.msk.f32.gmra.mrb[12].mxu1 %vm247_vm1, %v6063_v7  ;;  %5174 = vmatmul.mubr.msk.f32.gmra.mrb[10].mxu0 %vm247_vm1, %v6063_v7  ;;  %v491_v45 = vadd.f32 %v490_v44, %v489_v23  ;;  %v396_v63 = vadd.f32 %v395_v43, %v394_v54  ;;  %v502_v44 = vsel %vm247_vm1, %v449_v5, 0.0  ;;  %v6183_v23 = vld [vmem:[#allocation2 + $0x109] sm:$0xff]  ;;  %v506_v43 = vsel %vm247_vm1, %v451_v21, 0.0  ;;  %v6211_v54 = vld [vmem:[#allocation2 + $0x121] sm:$0xff] }
  0x41   : > { %4979 = vmatprep.mubr.msk.f32.mxu1 %vm247_vm1, %v6070_v10  ;;  %5176 = vmatprep.mubr.msk.f32.mxu0 %vm247_vm1, %v6070_v10  ;;  %7156 = vst [vmem:[#allocation12_spill] sm:$0xff] %v6183_v23  ;;  %7158 = vst [vmem:[#allocation14_spill] sm:$0xff] %v6211_v54  ;;  %v6228_v5 = vld [vmem:[#allocation2 + $0x129] sm:$0xff] }
  0x42   : > { %v493_v53 = vadd.f32 %v492_v26, %v491_v45  ;;  %v398_v4 = vadd.f32 %v397_v60, %v396_v63  ;;  %v409_v63 = vsel %vm247_vm1, %v6009_v34, 0.0  ;;  %7159 = vst [vmem:[#allocation15_spill] sm:$0xff] %v6228_v5 }
  0x44   : > { %4980 = vmatmul.mubr.msk.f32.gmra.mrb[14].mxu1 %vm247_vm1, %v6085_v19  ;;  %5177 = vmatmul.mubr.msk.f32.gmra.mrb[12].mxu0 %vm247_vm1, %v6085_v19  ;;  %v495_v50 = vadd.f32 %v494_v38, %v493_v53  ;;  %v400_v41 = vadd.f32 %v399_v39, %v398_v4  ;;  %v6202_v38 = vld [vmem:[#allocation2 + $0x111] sm:$0xff]  ;;  %v453_v53 = vmul.f32 %v6009_v34, %v6009_v34  ;;  %v411_v4 = vsel %vm247_vm1, %v6012_v42, 0.0 }
  0x45   : > { %4982 = vmatprep.mubr.msk.f32.mxu1 %vm247_vm1, %v6092_v22  ;;  %5179 = vmatprep.mubr.msk.f32.mxu0 %vm247_vm1, %v6092_v22  ;;  %7157 = vst [vmem:[#allocation13_spill] sm:$0xff] %v6202_v38  ;;  %v6230_v34 = vld [vmem:[#allocation2 + $0x6a] sm:$0xff] }
  0x46   : > { %v497_v9 = vadd.f32 %v496_v58, %v495_v50  ;;  %v402_v26 = vadd.f32 %v401_v13, %v400_v41  ;;  %v6213_v58 = vld [vmem:[#allocation2 + $0x62] sm:$0xff]  ;;  %v508_v50 = vsel %vm247_vm1, %v452_v31, 0.0  ;;  %v6237_v13 = vld [vmem:[#allocation2 + $0x7a] sm:$0xff] }
  0x48   : > { %4983 = vmatmul.mubr.msk.f32.gmra.mrb[16].mxu1 %vm247_vm1, %v6107_v46  ;;  %5180 = vmatmul.mubr.msk.f32.gmra.mrb[14].mxu0 %vm247_vm1, %v6107_v46  ;;  %v499_v16 = vadd.f32 %v498_v3, %v497_v9  ;;  %v404_v32 = vadd.f32 %v403_v20, %v402_v26  ;;  %v454_v3 = vmul.f32 %v6012_v42, %v6012_v42  ;;  %v510_v9 = vsel %vm247_vm1, %v453_v53, 0.0  ;;  %v6250_v42 = vld [vmem:[#allocation2 + $0x141] sm:$0xff]  ;;  %v6254_v26 = vld [vmem:[#allocation2 + $0x151] sm:$0xff] }
  0x49   : > { %4985 = vmatprep.mubr.msk.f32.mxu1 %vm247_vm1, %v6116_v48  ;;  %5208 = vmatprep.mubr.msk.f32.mxu0 %vm247_vm1, %v6109_v37  ;;  %7161 = vst [vmem:[#allocation17_spill] sm:$0xff] %v6250_v42  ;;  %7162 = vst [vmem:[#allocation18_spill] sm:$0xff] %v6254_v26  ;;  %v6286_v53 = vld [vmem:[#allocation2 + $0x171] sm:$0xff]  ;;  %v6454_v46 = vld [vmem:[%s7096_s1 + $0x20] sm:$0xf] }
  0x4a   : > { %v501_v25 = vadd.f32 %v500_v12, %v499_v16  ;;  %v406_v62 = vadd.f32 %v405_v27, %v404_v32  ;;  %v6235_v12 = vld [vmem:[#allocation2 + $0x139] sm:$0xff]  ;;  %v512_v41 = vsel %vm247_vm1, %v454_v3, 0.0  ;;  %7167 = vst [vmem:[#allocation23_spill] sm:$0xff] %v6286_v53  ;;  %v6299_v3 = vld [vmem:[#allocation2 + $0xca] sm:$0xff] }
  0x4b   : > { %7160 = vst [vmem:[#allocation16_spill] sm:$0xff] %v6235_v12  ;;  %v6272_v32 = vld [vmem:[#allocation2 + $0x9a] sm:$0xff] }
  0x4c   : > { %4986 = vmatmul.mubr.msk.f32.gmra.mrb[18].mxu1 %vm247_vm1, %v6141_v51  ;;  %5209 = vmatmul.mubr.msk.f32.vlgmr.msra.gmra.mrb[0].mxu0 %vm247_vm1, %v6143_v1  ;;  %v503_v45 = vadd.f32 %v502_v44, %v501_v25  ;;  %v408_v39 = vadd.f32 %v407_v47, %v406_v62  ;;  %v413_v44 = vsel %vm247_vm1, %v6024_v49, 0.0  ;;  %v6252_v25 = vld [vmem:[#allocation2 + $0x82] sm:$0xff]  ;;  %v6276_v47 = vld [vmem:[#allocation2 + $0xaa] sm:$0xff]  ;;  %v6375_v49 = vld [vmem:[#allocation2 + $0x13a] sm:$0xff] }
  0x4d   : > { %5257 = vmatpush3.msk.msra.mxu0 %vm694_vm0, %v5925_v61  ;;  %4988 = vmatprep.mubr.msk.f32.mxu1 %vm247_vm1, %v6150_v40  ;;  %v6185_v61 = vld [vmem:[#allocation2 + $0x4a] sm:$0xff]  ;;  %v531_v62 = vld [vmem:[#allocation2] sm:$0xff]  ;;  %v6437_v48 = vld [vmem:[#allocation2 + $0xd8] sm:$0xff] }
  0x4e   : > { %5211 = vmatprep.mubr.msk.f32.mxu0 %vm247_vm1, %v6152_v11  ;;  %5306 = vmatprep.subr.msk.mxu0 %vm694_vm0, %v6162_v52  ;;  %v505_v60 = vadd.f32 %v504_v30, %v503_v45  ;;  %v410_v16 = vadd.f32 %v409_v63, %v408_v39  ;;  %v6256_v30 = vld [vmem:[#allocation2 + $0x92] sm:$0xff]  ;;  %v532_v63 = vld [vmem:[#allocation2 + $0x8] sm:$0xff]  ;;  %v6303_v39 = vld [vmem:[#allocation2 + $0xda] sm:$0xff] }
  0x4f   : > { %v6270_v45 = vld [vmem:[#allocation2 + $0x159] sm:$0xff]  ;;  %v6423_v40 = vld [vmem:[#allocation2 + $0x182] sm:$0xff] }
  0x50   : > { %4989 = vmatmul.mubr.msk.f32.gmra.mrb[20].mxu1 %vm247_vm1, %v6172_v24  ;;  %5212 = vmatmul.mubr.msk.f32.gmra.mrb[2].mxu0 %vm247_vm1, %v6174_v17  ;;  %v507_v33 = vadd.f32 %v506_v43, %v505_v60  ;;  %v412_v21 = vadd.f32 %v411_v4, %v410_v16  ;;  %7165 = vst [vmem:[#allocation21_spill] sm:$0xff] %v6270_v45  ;;  %v6274_v43 = vld [vmem:[#allocation2 + $0x169] sm:$0xff]  ;;  %v6288_v60 = vld [vmem:[#allocation2 + $0xb2] sm:$0xff]  ;;  %v6317_v4 = vld [vmem:[#allocation2 + $0x20] sm:$0xff] }
  0x51   : > { %4991 = vmatprep.mubr.msk.f32.mxu1 %vm247_vm1, %v6183_v23  ;;  %5214 = vmatprep.mubr.msk.f32.mxu0 %vm247_vm1, %v6185_v61  ;;  %7166 = vst [vmem:[#allocation22_spill] sm:$0xff] %v6274_v43  ;;  %7169 = vst [vmem:[#allocation25_spill] sm:$0xff] %v6317_v4  ;;  %v6323_v16 = vld [vmem:[#allocation2 + $0x30] sm:$0xff]  ;;  %v6421_v24 = vld [vmem:[#allocation2 + $0xc0] sm:$0xff] }
  0x52   : > { %v509_v15 = vadd.f32 %v508_v50, %v507_v33  ;;  %v6260_v31 = vadd.f32 %v413_v44, %v412_v21  ;;  %v6290_v50 = vld [vmem:[#allocation2 + $0xc2] sm:$0xff]  ;;  %v6301_v33 = vld [vmem:[#allocation2 + $0x18] sm:$0xff]  ;;  %7170 = vst [vmem:[#allocation26_spill] sm:$0xff] %v6323_v16  ;;  %v6343_v21 = vld [vmem:[#allocation2 + $0x10a] sm:$0xff] }
  0x53   : > { %7168 = vst [vmem:[#allocation24_spill] sm:$0xff] %v6301_v33  ;;  %v6339_v44 = vld [vmem:[#allocation2 + $0xfa] sm:$0xff]  ;;  %v6419_v23 = vld [vmem:[#allocation2 + $0x172] sm:$0xff]  ;;  %7181 = vst [vmem:[#allocation37_spill] sm:$0xff] %v6423_v40 }
  0x54   : > { %4992 = vmatmul.mubr.msk.f32.gmra.mrb[22].mxu1 %vm247_vm1, %v6202_v38  ;;  %5215 = vmatmul.mubr.msk.f32.gmra.mrb[4].mxu0 %vm247_vm1, %v6204_v28  ;;  %v511_v20 = vadd.f32 %v510_v9, %v509_v15  ;;  %7164 = vst [vmem:[#allocation20_spill] sm:$0xff] %v6260_v31  ;;  %v6311_v9 = vld [vmem:[%s7096_s1 + $0xc] sm:$0xf]  ;;  %v6319_v15 = vld [vmem:[#allocation2 + $0xe2] sm:$0xff]  ;;  %v6417_v38 = vld [vmem:[#allocation2 + $0xb0] sm:$0xff] }
  0x55   : > { %4994 = vmatprep.mubr.msk.f32.mxu1 %vm247_vm1, %v6211_v54  ;;  %5217 = vmatprep.mubr.msk.f32.mxu0 %vm247_vm1, %v6213_v58  ;;  %v6359_v31 = vld [vmem:[#allocation2 + $0x122] sm:$0xff]  ;;  %v6407_v54 = vld [vmem:[#allocation2 + $0x16a] sm:$0xff]  ;;  %7180 = vst [vmem:[#allocation36_spill] sm:$0xff] %v6417_v38 }
  0x56   : > { %v6258_v27 = vadd.f32 %v512_v41, %v511_v20  ;;  %v6325_v41 = vld [vmem:[#allocation2 + $0xf2] sm:$0xff]  ;;  %v6341_v20 = vld [vmem:[#allocation2 + $0x48] sm:$0xff] }
  0x57   : > { %7172 = vst [vmem:[#allocation28_spill] sm:$0xff] %v6341_v20  ;;  %v6433_v51 = vld [vmem:[#allocation2 + $0xc8] sm:$0xff] }
  0x58   : > { %4995 = vmatmul.mubr.msk.f32.gmra.mrb[24].mxu1 %vm247_vm1, %v6228_v5  ;;  %5218 = vmatmul.mubr.msk.f32.gmra.mrb[6].mxu0 %vm247_vm1, %v6230_v34  ;;  %7163 = vst [vmem:[#allocation19_spill] sm:$0xff] %v6258_v27  ;;  %v6369_v27 = vld [vmem:[#allocation2 + $0x68] sm:$0xff] }
  0x59   : > { %4997 = vmatprep.mubr.msk.f32.mxu1 %vm247_vm1, %v6235_v12  ;;  %5220 = vmatprep.mubr.msk.f32.mxu0 %vm247_vm1, %v6237_v13  ;;  %7175 = vst [vmem:[#allocation31_spill] sm:$0xff] %v6369_v27  ;;  %v6403_v12 = vld [vmem:[#allocation2 + $0x15a] sm:$0xff]  ;;  %v6405_v5 = vld [vmem:[#allocation2 + $0xa8] sm:$0xff] }
  0x5c   : > { %4998 = vmatmul.mubr.msk.f32.gmra.mrb[26].mxu1 %vm247_vm1, %v6250_v42  ;;  %5221 = vmatmul.mubr.msk.f32.gmra.mrb[8].mxu0 %vm247_vm1, %v6252_v25  ;;  %v6401_v42 = vld [vmem:[#allocation2 + $0x98] sm:$0xff] }
  0x5d   : > { %5000 = vmatprep.mubr.msk.f32.mxu1 %vm247_vm1, %v6254_v26  ;;  %5223 = vmatprep.mubr.msk.f32.mxu0 %vm247_vm1, %v6256_v30  ;;  %v6391_v26 = vld [vmem:[#allocation2 + $0x152] sm:$0xff]  ;;  %7179 = vst [vmem:[#allocation35_spill] sm:$0xff] %v6401_v42 }
  0x60   : > { %5001 = vmatmul.mubr.msk.f32.gmra.mrb[28].mxu1 %vm247_vm1, %v6270_v45  ;;  %5224 = vmatmul.mubr.msk.f32.gmra.mrb[10].mxu0 %vm247_vm1, %v6272_v32  ;;  %v6389_v45 = vld [vmem:[#allocation2 + $0x90] sm:$0xff] }
  0x61   : > { %5003 = vmatprep.mubr.msk.f32.mxu1 %vm247_vm1, %v6274_v43  ;;  %5226 = vmatprep.mubr.msk.f32.mxu0 %vm247_vm1, %v6276_v47  ;;  %v6387_v43 = vld [vmem:[#allocation2 + $0x142] sm:$0xff]  ;;  %7178 = vst [vmem:[#allocation34_spill] sm:$0xff] %v6389_v45 }
  0x64   : > { %5004 = vmatmul.mubr.msk.f32.gmra.mrb[30].mxu1 %vm247_vm1, %v6286_v53  ;;  %5227 = vmatmul.mubr.msk.f32.gmra.mrb[12].mxu0 %vm247_vm1, %v6288_v60  ;;  %v6385_v53 = vld [vmem:[#allocation2 + $0x80] sm:$0xff] }
  0x65   : > { %5008 = vmatprep.mubr.msk.f32.mxu1 %vm247_vm1, %v531_v62  ;;  %5229 = vmatprep.mubr.msk.f32.mxu0 %vm247_vm1, %v6290_v50  ;;  %v6353_v62 = vld [vmem:[#allocation2 + $0x50] sm:$0xff]  ;;  %7177 = vst [vmem:[#allocation33_spill] sm:$0xff] %v6385_v53 }
  0x66   : > { %7173 = vst [vmem:[#allocation29_spill] sm:$0xff] %v6353_v62 }
  0x68   : > { %5009 = vmatmul.mubr.msk.f32.vlgmr.msra.gmra.mrb[0].mxu1 %vm247_vm1, %v532_v63  ;;  %5230 = vmatmul.mubr.msk.f32.gmra.mrb[14].mxu0 %vm247_vm1, %v6299_v3  ;;  %v6355_v63 = vld [vmem:[#allocation2 + $0x112] sm:$0xff] }
  0x69   : > { %5011 = vmatprep.mubr.msk.f32.mxu1 %vm247_vm1, %v6301_v33  ;;  %5232 = vmatprep.mubr.msk.f32.mxu0 %vm247_vm1, %v6303_v39  ;;  %v6447_v33 = vld [vmem:[#allocation2 + $0xe0] sm:$0xff] }
  0x6a   : > { %5057 = vmatpush3.msk.msra.mxu1 %vm694_vm0, %v5811_v8  ;;  %v6337_v8 = vld [vmem:[#allocation2 + $0x38] sm:$0xff] }
  0x6b   : > { %5106 = vmatprep.subr.msk.mxu1 %vm694_vm0, %v6311_v9  ;;  %7171 = vst [vmem:[#allocation27_spill] sm:$0xff] %v6337_v8 }
  0x6c   : > { %5012 = vmatmul.mubr.msk.f32.gmra.mrb[2].mxu1 %vm247_vm1, %v6317_v4  ;;  %5233 = vmatmul.mubr.msk.f32.gmra.mrb[16].mxu0 %vm247_vm1, %v6319_v15  ;;  %v6435_v4 = vld [vmem:[#allocation2 + $0x18a] sm:$0xff] }
  0x6d   : > { %5014 = vmatprep.mubr.msk.f32.mxu1 %vm247_vm1, %v6323_v16  ;;  %5235 = vmatprep.mubr.msk.f32.mxu0 %vm247_vm1, %v6325_v41  ;;  %7182 = vst [vmem:[#allocation38_spill] sm:$0xff] %v6435_v4 }
  0x70   : > { %5015 = vmatmul.mubr.msk.f32.gmra.mrb[4].mxu1 %vm247_vm1, %v6337_v8  ;;  %5236 = vmatmul.mubr.msk.f32.gmra.mrb[18].mxu0 %vm247_vm1, %v6339_v44 }
  0x71   : > { %5017 = vmatprep.mubr.msk.f32.mxu1 %vm247_vm1, %v6341_v20  ;;  %5238 = vmatprep.mubr.msk.f32.mxu0 %vm247_vm1, %v6343_v21 }
  0x74   : > { %5018 = vmatmul.mubr.msk.f32.gmra.mrb[6].mxu1 %vm247_vm1, %v6353_v62  ;;  %5239 = vmatmul.mubr.msk.f32.gmra.mrb[20].mxu0 %vm247_vm1, %v6355_v63 }
  0x75   : > { %5020 = vmatprep.mubr.msk.f32.mxu1 %vm247_vm1, %v6357_v57  ;;  %5241 = vmatprep.mubr.msk.f32.mxu0 %vm247_vm1, %v6359_v31 }
  0x78   : > { %5021 = vmatmul.mubr.msk.f32.gmra.mrb[8].mxu1 %vm247_vm1, %v6369_v27  ;;  %5242 = vmatmul.mubr.msk.f32.gmra.mrb[22].mxu0 %vm247_vm1, %v6371_v56 }
  0x79   : > { %5023 = vmatprep.mubr.msk.f32.mxu1 %vm247_vm1, %v6373_v35  ;;  %5244 = vmatprep.mubr.msk.f32.mxu0 %vm247_vm1, %v6375_v49 }
  0x7c   : > { %5024 = vmatmul.mubr.msk.f32.gmra.mrb[10].mxu1 %vm247_vm1, %v6385_v53  ;;  %5245 = vmatmul.mubr.msk.f32.gmra.mrb[24].mxu0 %vm247_vm1, %v6387_v43 }
  0x7d   : > { %5026 = vmatprep.mubr.msk.f32.mxu1 %vm247_vm1, %v6389_v45  ;;  %5247 = vmatprep.mubr.msk.f32.mxu0 %vm247_vm1, %v6391_v26 }
  0x80   : > { %5027 = vmatmul.mubr.msk.f32.gmra.mrb[12].mxu1 %vm247_vm1, %v6401_v42  ;;  %5248 = vmatmul.mubr.msk.f32.gmra.mrb[26].mxu0 %vm247_vm1, %v6403_v12 }
  0x81   : > { %5029 = vmatprep.mubr.msk.f32.mxu1 %vm247_vm1, %v6405_v5  ;;  %5250 = vmatprep.mubr.msk.f32.mxu0 %vm247_vm1, %v6407_v54 }
  0x84   : > { %5030 = vmatmul.mubr.msk.f32.gmra.mrb[14].mxu1 %vm247_vm1, %v6417_v38  ;;  %5251 = vmatmul.mubr.msk.f32.gmra.mrb[28].mxu0 %vm247_vm1, %v6419_v23 }
  0x85   : > { %5032 = vmatprep.mubr.msk.f32.mxu1 %vm247_vm1, %v6421_v24  ;;  %5253 = vmatprep.mubr.msk.f32.mxu0 %vm247_vm1, %v6423_v40  ;;  %v6449_v40 = vld [vmem:[#allocation2 + $0xf0] sm:$0xff] }
  0x88   : > { %5033 = vmatmul.mubr.msk.f32.gmra.mrb[16].mxu1 %vm247_vm1, %v6433_v51  ;;  %5254 = vmatmul.mubr.msk.f32.gmra.mrb[30].mxu0 %vm247_vm1, %v6435_v4  ;;  %v6464_v4 = vld [vmem:[#allocation2 + $0xf8] sm:$0xff] }
  0x89   : > { %5035 = vmatprep.mubr.msk.f32.mxu1 %vm247_vm1, %v6437_v48  ;;  %5258 = vmatprep.mubr.msk.f32.mxu0 %vm247_vm1, %v6323_v16  ;;  %v6468_v16 = vld [vmem:[#allocation2 + $0x108] sm:$0xff] }
  0x8c   : > { %5036 = vmatmul.mubr.msk.f32.gmra.mrb[18].mxu1 %vm247_vm1, %v6447_v33  ;;  %5259 = vmatmul.mubr.msk.f32.vlgmr.msra.gmra.mrb[0].mxu0 %vm247_vm1, %v6337_v8  ;;  %v6494_v8 = vld [vmem:[#allocation2 + $0x138] sm:$0xff] }
  0x8d   : > { %5307 = vmatpush3.msk.msra.mxu0 %vm694_vm0, %v6162_v52  ;;  %5038 = vmatprep.mubr.msk.f32.mxu1 %vm247_vm1, %v6449_v40  ;;  %v6480_v52 = vld [vmem:[#allocation2 + $0x110] sm:$0xff] }
  0x8e   : > { %5261 = vmatprep.mubr.msk.f32.mxu0 %vm247_vm1, %v6341_v20  ;;  %5356 = vmatprep.subr.msk.mxu0 %vm694_vm0, %v6454_v46  ;;  %v6482_v20 = vld [vmem:[#allocation2 + $0x120] sm:$0xff] }
  0x90   : > { %5039 = vmatmul.mubr.msk.f32.gmra.mrb[20].mxu1 %vm247_vm1, %v6464_v4  ;;  %5262 = vmatmul.mubr.msk.f32.gmra.mrb[2].mxu0 %vm247_vm1, %v6353_v62  ;;  %v6492_v62 = vld [vmem:[#allocation2 + $0x128] sm:$0xff] }
  0x91   : > { %5041 = vmatprep.mubr.msk.f32.mxu1 %vm247_vm1, %v6468_v16  ;;  %5264 = vmatprep.mubr.msk.f32.mxu0 %vm247_vm1, %v6357_v57  ;;  %v6506_v57 = vld [vmem:[#allocation2 + $0x150] sm:$0xff] }
  0x94   : > { %5042 = vmatmul.mubr.msk.f32.gmra.mrb[22].mxu1 %vm247_vm1, %v6480_v52  ;;  %5265 = vmatmul.mubr.msk.f32.gmra.mrb[4].mxu0 %vm247_vm1, %v6369_v27  ;;  %v6504_v27 = vld [vmem:[#allocation2 + $0x140] sm:$0xff] }
  0x95   : > { %5044 = vmatprep.mubr.msk.f32.mxu1 %vm247_vm1, %v6482_v20  ;;  %5267 = vmatprep.mubr.msk.f32.mxu0 %vm247_vm1, %v6373_v35  ;;  %v6518_v35 = vld [vmem:[#allocation2 + $0x168] sm:$0xff] }
  0x98   : > { %5045 = vmatmul.mubr.msk.f32.gmra.mrb[24].mxu1 %vm247_vm1, %v6492_v62  ;;  %5268 = vmatmul.mubr.msk.f32.gmra.mrb[6].mxu0 %vm247_vm1, %v6385_v53  ;;  %v6516_v53 = vld [vmem:[#allocation2 + $0x158] sm:$0xff] }
  0x99   : > { %5047 = vmatprep.mubr.msk.f32.mxu1 %vm247_vm1, %v6494_v8  ;;  %5270 = vmatprep.mubr.msk.f32.mxu0 %vm247_vm1, %v6389_v45  ;;  %v1247_v45 = vld [vmem:[#allocation2 + $0x2] sm:$0xff] }
  0x9c   : > { %5048 = vmatmul.mubr.msk.f32.gmra.mrb[26].mxu1 %vm247_vm1, %v6504_v27  ;;  %5271 = vmatmul.mubr.msk.f32.gmra.mrb[8].mxu0 %vm247_vm1, %v6401_v42  ;;  %v6528_v42 = vld [vmem:[#allocation2 + $0x170] sm:$0xff] }
  0x9d   : > { %5050 = vmatprep.mubr.msk.f32.mxu1 %vm247_vm1, %v6506_v57  ;;  %5273 = vmatprep.mubr.msk.f32.mxu0 %vm247_vm1, %v6405_v5 }
  0xa0   : > { %5051 = vmatmul.mubr.msk.f32.gmra.mrb[28].mxu1 %vm247_vm1, %v6516_v53  ;;  %5274 = vmatmul.mubr.msk.f32.gmra.mrb[10].mxu0 %vm247_vm1, %v6417_v38  ;;  %v1248_v38 = vld [vmem:[#allocation2 + $0xa] sm:$0xff] }
  0xa1   : > { %5053 = vmatprep.mubr.msk.f32.mxu1 %vm247_vm1, %v6518_v35  ;;  %5276 = vmatprep.mubr.msk.f32.mxu0 %vm247_vm1, %v6421_v24 }
  0xa4   : > { %5054 = vmatmul.mubr.msk.f32.gmra.mrb[30].mxu1 %vm247_vm1, %v6528_v42  ;;  %5277 = vmatmul.mubr.msk.f32.gmra.mrb[12].mxu0 %vm247_vm1, %v6433_v51 }
  0xa5   : > { %5058 = vmatprep.mubr.msk.f32.mxu1 %vm247_vm1, %v1247_v45  ;;  %5279 = vmatprep.mubr.msk.f32.mxu0 %vm247_vm1, %v6437_v48  ;;  %v3198_v45 = vld [vmem:[#allocation2 + $0x31] sm:$0xff] }
  0xa8   : > { %5059 = vmatmul.mubr.msk.f32.vlgmr.msra.gmra.mrb[0].mxu1 %vm247_vm1, %v1248_v38  ;;  %5280 = vmatmul.mubr.msk.f32.gmra.mrb[14].mxu0 %vm247_vm1, %v6447_v33  ;;  %v2839_v38 = vld [vmem:[#allocation2 + $0x1a0] sm:$0xff] }
  0xa9   : > { %5061 = vmatprep.mubr.msk.f32.mxu1 %vm247_vm1, %v6109_v37  ;;  %5282 = vmatprep.mubr.msk.f32.mxu0 %vm247_vm1, %v6449_v40  ;;  %v6598_v37 = vld [vmem:[#allocation2 + $0x188] sm:$0xff] }
  0xaa   : > { %5107 = vmatpush3.msk.msra.mxu1 %vm694_vm0, %v6311_v9  ;;  %v7195_v9 = vld [vmem:[#allocation13_spill] sm:$0xff] }
  0xab   : > { %5406 = vmatprep.subr.msk.mxu1 %vm694_vm0, %v5736_v2  ;;  %v6588_v2 = vld [vmem:[#allocation2 + $0x180] sm:$0xff] }
  0xac   : > { %5062 = vmatmul.mubr.msk.f32.gmra.mrb[2].mxu1 %vm247_vm1, %v6143_v1  ;;  %5283 = vmatmul.mubr.msk.f32.gmra.mrb[16].mxu0 %vm247_vm1, %v6464_v4  ;;  %v2838_v1 = vld [vmem:[#allocation2 + $0x198] sm:$0xff] }
  0xad   : > { %5064 = vmatprep.mubr.msk.f32.mxu1 %vm247_vm1, %v6152_v11  ;;  %5285 = vmatprep.mubr.msk.f32.mxu0 %vm247_vm1, %v6468_v16 }
  0xb0   : > { %5065 = vmatmul.mubr.msk.f32.gmra.mrb[4].mxu1 %vm247_vm1, %v6174_v17  ;;  %5286 = vmatmul.mubr.msk.f32.gmra.mrb[18].mxu0 %vm247_vm1, %v6480_v52 }
  0xb1   : > { %5067 = vmatprep.mubr.msk.f32.mxu1 %vm247_vm1, %v6185_v61  ;;  %5288 = vmatprep.mubr.msk.f32.mxu0 %vm247_vm1, %v6482_v20 }
  0xb4   : > { %5068 = vmatmul.mubr.msk.f32.gmra.mrb[6].mxu1 %vm247_vm1, %v6204_v28  ;;  %5289 = vmatmul.mubr.msk.f32.gmra.mrb[20].mxu0 %vm247_vm1, %v6492_v62 }
  0xb5   : > { %5070 = vmatprep.mubr.msk.f32.mxu1 %vm247_vm1, %v6213_v58  ;;  %5291 = vmatprep.mubr.msk.f32.mxu0 %vm247_vm1, %v6494_v8 }
  0xb8   : > { %5071 = vmatmul.mubr.msk.f32.gmra.mrb[8].mxu1 %vm247_vm1, %v6230_v34  ;;  %5292 = vmatmul.mubr.msk.f32.gmra.mrb[22].mxu0 %vm247_vm1, %v6504_v27 }
  0xb9   : > { %5073 = vmatprep.mubr.msk.f32.mxu1 %vm247_vm1, %v6237_v13  ;;  %5294 = vmatprep.mubr.msk.f32.mxu0 %vm247_vm1, %v6506_v57 }
  0xbc   : > { %5074 = vmatmul.mubr.msk.f32.gmra.mrb[10].mxu1 %vm247_vm1, %v6252_v25  ;;  %5295 = vmatmul.mubr.msk.f32.gmra.mrb[24].mxu0 %vm247_vm1, %v6516_v53 }
  0xbd   : > { %5076 = vmatprep.mubr.msk.f32.mxu1 %vm247_vm1, %v6256_v30  ;;  %5297 = vmatprep.mubr.msk.f32.mxu0 %vm247_vm1, %v6518_v35 }
  0xc0   : > { %5077 = vmatmul.mubr.msk.f32.gmra.mrb[12].mxu1 %vm247_vm1, %v6272_v32  ;;  %5298 = vmatmul.mubr.msk.f32.gmra.mrb[26].mxu0 %vm247_vm1, %v6528_v42 }
  0xc1   : > { %5079 = vmatprep.mubr.msk.f32.mxu1 %vm247_vm1, %v6276_v47  ;;  %5300 = vmatprep.mubr.msk.f32.mxu0 %vm247_vm1, %v6588_v2 }
  0xc4   : > { %5080 = vmatmul.mubr.msk.f32.gmra.mrb[14].mxu1 %vm247_vm1, %v6288_v60  ;;  %5301 = vmatmul.mubr.msk.f32.gmra.mrb[28].mxu0 %vm247_vm1, %v6598_v37 }
  0xc5   : > { %5082 = vmatprep.mubr.msk.f32.mxu1 %vm247_vm1, %v6290_v50  ;;  %5303 = vmatprep.mubr.msk.f32.mxu0 %vm247_vm1, %v2838_v1  ;;  %v7196_v1 = vld [vmem:[#allocation30_spill] sm:$0xff] }
  0xc8   : > { %5083 = vmatmul.mubr.msk.f32.gmra.mrb[16].mxu1 %vm247_vm1, %v6299_v3  ;;  %5304 = vmatmul.mubr.msk.f32.gmra.mrb[30].mxu0 %vm247_vm1, %v2839_v38  ;;  %v7197_v38 = vld [vmem:[#allocation14_spill] sm:$0xff] }
  0xc9   : > { %5085 = vmatprep.mubr.msk.f32.mxu1 %vm247_vm1, %v6303_v39  ;;  %5308 = vmatprep.mubr.msk.f32.mxu0 %vm247_vm1, %v3198_v45  ;;  %v7198_v45 = vld [vmem:[#allocation31_spill] sm:$0xff] }
  0xcc   : > { %5086 = vmatmul.mubr.msk.f32.gmra.mrb[18].mxu1 %vm247_vm1, %v6319_v15  ;;  %5309 = vmatmul.mubr.msk.f32.vlgmr.msra.gmra.mrb[0].mxu0 %vm247_vm1, %v5932_v0  ;;  %v7183_v0 = vld [vmem:[#allocation5_spill] sm:$0xff] }
  0xcd   : > { %5357 = vmatpush3.msk.msra.mxu0 %vm694_vm0, %v6454_v46  ;;  %5088 = vmatprep.mubr.msk.f32.mxu1 %vm247_vm1, %v6325_v41  ;;  %v7194_v46 = vld [vmem:[#allocation29_spill] sm:$0xff] }
  0xce   : > { %5311 = vmatprep.mubr.msk.f32.mxu0 %vm247_vm1, %v5940_v6  ;;  %v7184_v6 = vld [vmem:[#allocation24_spill] sm:$0xff] }
  0xd0   : > { %5089 = vmatmul.mubr.msk.f32.gmra.mrb[20].mxu1 %vm247_vm1, %v6339_v44  ;;  %5312 = vmatmul.mubr.msk.f32.gmra.mrb[2].mxu0 %vm247_vm1, %v5957_v14  ;;  %v7185_v14 = vld [vmem:[#allocation6_spill] sm:$0xff] }
  0xd1   : > { %5091 = vmatprep.mubr.msk.f32.mxu1 %vm247_vm1, %v6343_v21  ;;  %5314 = vmatprep.mubr.msk.f32.mxu0 %vm247_vm1, %v5964_v18  ;;  %v7186_v18 = vld [vmem:[#allocation25_spill] sm:$0xff] }
  0xd4   : > { %5092 = vmatmul.mubr.msk.f32.gmra.mrb[22].mxu1 %vm247_vm1, %v6355_v63  ;;  %5315 = vmatmul.mubr.msk.f32.gmra.mrb[4].mxu0 %vm247_vm1, %v5990_v29  ;;  %v7187_v29 = vld [vmem:[#allocation9_spill] sm:$0xff] }
  0xd5   : > { %5094 = vmatprep.mubr.msk.f32.mxu1 %vm247_vm1, %v6359_v31  ;;  %5317 = vmatprep.mubr.msk.f32.mxu0 %vm247_vm1, %v6004_v36  ;;  %v7188_v36 = vld [vmem:[#allocation26_spill] sm:$0xff] }
  0xd8   : > { %5095 = vmatmul.mubr.msk.f32.gmra.mrb[24].mxu1 %vm247_vm1, %v6371_v56  ;;  %5318 = vmatmul.mubr.msk.f32.gmra.mrb[6].mxu0 %vm247_vm1, %v6039_v55  ;;  %v7189_v55 = vld [vmem:[#allocation10_spill] sm:$0xff] }
  0xd9   : > { %5097 = vmatprep.mubr.msk.f32.mxu1 %vm247_vm1, %v6375_v49  ;;  %5320 = vmatprep.mubr.msk.f32.mxu0 %vm247_vm1, %v6048_v59  ;;  %v5673_v59 = vld [vmem:[%s7096_s1 + $0x10] sm:$0xf] }
  0xdc   : > { %5098 = vmatmul.mubr.msk.f32.gmra.mrb[26].mxu1 %vm247_vm1, %v6387_v43  ;;  %5321 = vmatmul.mubr.msk.f32.gmra.mrb[8].mxu0 %vm247_vm1, %v6063_v7  ;;  %v7190_v7 = vld [vmem:[#allocation27_spill] sm:$0xff] }
  0xdd   : > { %5100 = vmatprep.mubr.msk.f32.mxu1 %vm247_vm1, %v6391_v26  ;;  %5323 = vmatprep.mubr.msk.f32.mxu0 %vm247_vm1, %v6070_v10  ;;  %v7191_v10 = vld [vmem:[#allocation11_spill] sm:$0xff] }
  0xe0   : > { %5101 = vmatmul.mubr.msk.f32.gmra.mrb[28].mxu1 %vm247_vm1, %v6403_v12  ;;  %5324 = vmatmul.mubr.msk.f32.gmra.mrb[10].mxu0 %vm247_vm1, %v6085_v19  ;;  %v7192_v19 = vld [vmem:[#allocation28_spill] sm:$0xff] }
  0xe1   : > { %5103 = vmatprep.mubr.msk.f32.mxu1 %vm247_vm1, %v6407_v54  ;;  %5326 = vmatprep.mubr.msk.f32.mxu0 %vm247_vm1, %v6092_v22  ;;  %v7193_v22 = vld [vmem:[#allocation12_spill] sm:$0xff] }
  0xe4   : > { %5104 = vmatmul.mubr.msk.f32.gmra.mrb[30].mxu1 %vm247_vm1, %v6419_v23  ;;  %5327 = vmatmul.mubr.msk.f32.gmra.mrb[12].mxu0 %vm247_vm1, %v7183_v0  ;;  %v7199_v0 = vld [vmem:[#allocation15_spill] sm:$0xff] }
  0xe5   : > { %5108 = vmatprep.mubr.msk.f32.mxu1 %vm247_vm1, %v7184_v6  ;;  %5329 = vmatprep.mubr.msk.f32.mxu0 %vm247_vm1, %v7185_v14  ;;  %v7200_v6 = vld [vmem:[#allocation32_spill] sm:$0xff] }
  0xe6   : > { %v7201_v14 = vld [vmem:[#allocation16_spill] sm:$0xff] }
  0xe8   : > { %5109 = vmatmul.mubr.msk.f32.vlgmr.msra.gmra.mrb[0].mxu1 %vm247_vm1, %v7186_v18  ;;  %5330 = vmatmul.mubr.msk.f32.gmra.mrb[14].mxu0 %vm247_vm1, %v7187_v29  ;;  %v7202_v18 = vld [vmem:[#allocation33_spill] sm:$0xff] }
  0xe9   : > { %5111 = vmatprep.mubr.msk.f32.mxu1 %vm247_vm1, %v7188_v36  ;;  %5332 = vmatprep.mubr.msk.f32.mxu0 %vm247_vm1, %v7189_v55  ;;  %v7203_v29 = vld [vmem:[#allocation17_spill] sm:$0xff]  ;;  %v7204_v36 = vld [vmem:[#allocation34_spill] sm:$0xff] }
  0xea   : > { %5407 = vmatpush3.msk.msra.mxu1 %vm694_vm0, %v5673_v59  ;;  %v7205_v55 = vld [vmem:[#allocation18_spill] sm:$0xff]  ;;  %v7206_v59 = vld [vmem:[#allocation35_spill] sm:$0xff] }
  0xec   : > { %5112 = vmatmul.mubr.msk.f32.gmra.mrb[2].mxu1 %vm247_vm1, %v7190_v7  ;;  %5333 = vmatmul.mubr.msk.f32.gmra.mrb[16].mxu0 %vm247_vm1, %v7191_v10  ;;  %v7207_v7 = vld [vmem:[#allocation21_spill] sm:$0xff]  ;;  %v7208_v10 = vld [vmem:[#allocation22_spill] sm:$0xff] }
  0xed   : > { %5114 = vmatprep.mubr.msk.f32.mxu1 %vm247_vm1, %v7192_v19  ;;  %5335 = vmatprep.mubr.msk.f32.mxu0 %vm247_vm1, %v7193_v22  ;;  %v6723_v19 = vld [vmem:[#allocation2 + $0x181] sm:$0xff]  ;;  %v7209_v22 = vld [vmem:[#allocation36_spill] sm:$0xff] }
  0xf0   : > { %5115 = vmatmul.mubr.msk.f32.gmra.mrb[4].mxu1 %vm247_vm1, %v7194_v46  ;;  %5336 = vmatmul.mubr.msk.f32.gmra.mrb[18].mxu0 %vm247_vm1, %v7195_v9  ;;  %v7210_v46 = vld [vmem:[#allocation23_spill] sm:$0xff] }
  0xf1   : > { %5117 = vmatprep.mubr.msk.f32.mxu1 %vm247_vm1, %v7196_v1  ;;  %5338 = vmatprep.mubr.msk.f32.mxu0 %vm247_vm1, %v7197_v38  ;;  %v6733_v1 = vld [vmem:[#allocation2 + $0x189] sm:$0xff] }
  0xf4   : > { %5118 = vmatmul.mubr.msk.f32.gmra.mrb[6].mxu1 %vm247_vm1, %v7198_v45  ;;  %5339 = vmatmul.mubr.msk.f32.gmra.mrb[20].mxu0 %vm247_vm1, %v7199_v0  ;;  %v3229_v45 = vld [vmem:[#allocation2 + $0x1a1] sm:$0xff] }
  0xf5   : > { %5120 = vmatprep.mubr.msk.f32.mxu1 %vm247_vm1, %v7200_v6  ;;  %5341 = vmatprep.mubr.msk.f32.mxu0 %vm247_vm1, %v7201_v14 }
  0xf8   : > { %5121 = vmatmul.mubr.msk.f32.gmra.mrb[8].mxu1 %vm247_vm1, %v7202_v18  ;;  %5342 = vmatmul.mubr.msk.f32.gmra.mrb[22].mxu0 %vm247_vm1, %v7203_v29 }
  0xf9   : > { %5123 = vmatprep.mubr.msk.f32.mxu1 %vm247_vm1, %v7204_v36  ;;  %5344 = vmatprep.mubr.msk.f32.mxu0 %vm247_vm1, %v7205_v55 }
  0xfc   : > { %5124 = vmatmul.mubr.msk.f32.gmra.mrb[10].mxu1 %vm247_vm1, %v7206_v59  ;;  %5345 = vmatmul.mubr.msk.f32.gmra.mrb[24].mxu0 %vm247_vm1, %v7207_v7 }
  0xfd   : > { %5126 = vmatprep.mubr.msk.f32.mxu1 %vm247_vm1, %v6405_v5  ;;  %5347 = vmatprep.mubr.msk.f32.mxu0 %vm247_vm1, %v7208_v10  ;;  %v3228_v5 = vld [vmem:[#allocation2 + $0x199] sm:$0xff] }
 0x100   : > { %5127 = vmatmul.mubr.msk.f32.gmra.mrb[12].mxu1 %vm247_vm1, %v7209_v22  ;;  %5348 = vmatmul.mubr.msk.f32.gmra.mrb[26].mxu0 %vm247_vm1, %v7210_v46 }
 0x101   : > { %5129 = vmatprep.mubr.msk.f32.mxu1 %vm247_vm1, %v6421_v24  ;;  %5350 = vmatprep.mubr.msk.f32.mxu0 %vm247_vm1, %v6723_v19  ;;  %v3619_v24 = vld [vmem:[#allocation2 + $0x1a2] sm:$0xff] }
 0x104   : > { %5130 = vmatmul.mubr.msk.f32.gmra.mrb[14].mxu1 %vm247_vm1, %v6433_v51  ;;  %5351 = vmatmul.mubr.msk.f32.gmra.mrb[28].mxu0 %vm247_vm1, %v6733_v1  ;;  %v2046_v51 = vld [vmem:[#allocation2 + $0xf9] sm:$0xff] }
 0x105   : > { %5132 = vmatprep.mubr.msk.f32.mxu1 %vm247_vm1, %v6437_v48  ;;  %5353 = vmatprep.mubr.msk.f32.mxu0 %vm247_vm1, %v3228_v5  ;;  %v2043_v48 = vld [vmem:[#allocation2 + $0xd9] sm:$0xff] }
 0x108   : > { %5133 = vmatmul.mubr.msk.f32.gmra.mrb[16].mxu1 %vm247_vm1, %v6447_v33  ;;  %5354 = vmatmul.mubr.msk.f32.gmra.mrb[30].mxu0 %vm247_vm1, %v3229_v45  ;;  %v6910_v45 = vld [vmem:[%s7097_s2] ss:$0 sm:$0xff] }
 0x109   : > { %5135 = vmatprep.mubr.msk.f32.mxu1 %vm247_vm1, %v6449_v40  ;;  %5358 = vmatprep.mubr.msk.f32.mxu0 %vm247_vm1, %v6152_v11  ;;  %v2047_v40 = vld [vmem:[#allocation2 + $0x109] sm:$0xff] }
 0x10a   : > { %v7212_v11 = vld [vmem:[#allocation38_spill] sm:$0xff] }
 0x10c   : > { %5136 = vmatmul.mubr.msk.f32.gmra.mrb[18].mxu1 %vm247_vm1, %v6464_v4  ;;  %5359 = vmatmul.mubr.msk.f32.vlgmr.msra.gmra.mrb[0].mxu0 %vm247_vm1, %v6174_v17  ;;  %v7213_v17 = vld [vmem:[#allocation3_spill] sm:$0xff] }
 0x10d   : > { %5138 = vmatprep.mubr.msk.f32.mxu1 %vm247_vm1, %v6468_v16  ;;  %5361 = vmatprep.mubr.msk.f32.mxu0 %vm247_vm1, %v6185_v61 }
 0x110   : > { %5139 = vmatmul.mubr.msk.f32.gmra.mrb[20].mxu1 %vm247_vm1, %v6480_v52  ;;  %5362 = vmatmul.mubr.msk.f32.gmra.mrb[2].mxu0 %vm247_vm1, %v6204_v28  ;;  %v7214_v28 = vld [vmem:[#allocation4_spill] sm:$0xff] }
 0x111   : > { %5141 = vmatprep.mubr.msk.f32.mxu1 %vm247_vm1, %v6482_v20  ;;  %5364 = vmatprep.mubr.msk.f32.mxu0 %vm247_vm1, %v6213_v58  ;;  %v415_v58 = vsel %vm247_vm1, %v7214_v28, 0.0 }
 0x114   : > { %5142 = vmatmul.mubr.msk.f32.gmra.mrb[22].mxu1 %vm247_vm1, %v6492_v62  ;;  %5365 = vmatmul.mubr.msk.f32.gmra.mrb[4].mxu0 %vm247_vm1, %v6230_v34  ;;  %v7215_v34 = vld [vmem:[#allocation7_spill] sm:$0xff] }
 0x115   : > { %5144 = vmatprep.mubr.msk.f32.mxu1 %vm247_vm1, %v6494_v8  ;;  %5367 = vmatprep.mubr.msk.f32.mxu0 %vm247_vm1, %v6237_v13  ;;  %v7216_v13 = vld [vmem:[#allocation19_spill] sm:$0xff] }
 0x118   : > { %5145 = vmatmul.mubr.msk.f32.gmra.mrb[24].mxu1 %vm247_vm1, %v6504_v27  ;;  %5368 = vmatmul.mubr.msk.f32.gmra.mrb[6].mxu0 %vm247_vm1, %v6252_v25  ;;  %v417_v27 = vsel %vm247_vm1, %v7215_v34, 0.0 }
 0x119   : > { %5147 = vmatprep.mubr.msk.f32.mxu1 %vm247_vm1, %v6506_v57  ;;  %5370 = vmatprep.mubr.msk.f32.mxu0 %vm247_vm1, %v6256_v30  ;;  %v2045_v57 = vld [vmem:[#allocation2 + $0xf1] sm:$0xff] }
 0x11c   : > { %5148 = vmatmul.mubr.msk.f32.gmra.mrb[26].mxu1 %vm247_vm1, %v6516_v53  ;;  %5371 = vmatmul.mubr.msk.f32.gmra.mrb[8].mxu0 %vm247_vm1, %v6272_v32 }
 0x11d   : > { %5150 = vmatprep.mubr.msk.f32.mxu1 %vm247_vm1, %v6518_v35  ;;  %5373 = vmatprep.mubr.msk.f32.mxu0 %vm247_vm1, %v6276_v47  ;;  %v2044_v35 = vld [vmem:[#allocation2 + $0xe1] sm:$0xff] }
 0x120   : > { %5151 = vmatmul.mubr.msk.f32.gmra.mrb[28].mxu1 %vm247_vm1, %v6528_v42  ;;  %5374 = vmatmul.mubr.msk.f32.gmra.mrb[10].mxu0 %vm247_vm1, %v6288_v60 }
 0x121   : > { %5153 = vmatprep.mubr.msk.f32.mxu1 %vm247_vm1, %v6588_v2  ;;  %5376 = vmatprep.mubr.msk.f32.mxu0 %vm247_vm1, %v6290_v50 }
 0x124   : > { %5154 = vmatmul.mubr.msk.f32.gmra.mrb[30].mxu1 %vm247_vm1, %v6598_v37  ;;  %5377 = vmatmul.mubr.msk.f32.gmra.mrb[12].mxu0 %vm247_vm1, %v6299_v3 }
 0x125   : > { %5182 = vmatprep.mubr.msk.f32.mxu1 %vm247_vm1, %v2043_v48  ;;  %5379 = vmatprep.mubr.msk.f32.mxu0 %vm247_vm1, %v6303_v39 }
 0x128   : > { %5183 = vmatmul.mubr.msk.f32.vlgmr.msra.gmra.mrb[16].mxu1 %vm247_vm1, %v2044_v35  ;;  %5380 = vmatmul.mubr.msk.f32.gmra.mrb[14].mxu0 %vm247_vm1, %v6319_v15 }
 0x129   : > { %5185 = vmatprep.mubr.msk.f32.mxu1 %vm247_vm1, %v2045_v57  ;;  %5382 = vmatprep.mubr.msk.f32.mxu0 %vm247_vm1, %v6325_v41 }
 0x12c   : > { %5186 = vmatmul.mubr.msk.f32.gmra.mrb[18].mxu1 %vm247_vm1, %v2046_v51  ;;  %5383 = vmatmul.mubr.msk.f32.gmra.mrb[16].mxu0 %vm247_vm1, %v6339_v44 }
 0x12d   : > { %5188 = vmatprep.mubr.msk.f32.mxu1 %vm247_vm1, %v2047_v40  ;;  %5385 = vmatprep.mubr.msk.f32.mxu0 %vm247_vm1, %v6343_v21 }
 0x130   : > { %5189 = vmatmul.mubr.msk.f32.gmra.mrb[20].mxu1 %vm247_vm1, %v7195_v9  ;;  %5386 = vmatmul.mubr.msk.f32.gmra.mrb[18].mxu0 %vm247_vm1, %v6355_v63 }
 0x131   : > { %5191 = vmatprep.mubr.msk.f32.mxu1 %vm247_vm1, %v7197_v38  ;;  %5388 = vmatprep.mubr.msk.f32.mxu0 %vm247_vm1, %v6359_v31  ;;  %v7218_v31 = vld [vmem:[#allocation8_spill] sm:$0xff] }
 0x132   : > { %v458_v32 = vmul.f32 %v7218_v31, %v7218_v31 }
 0x134   : > { %5192 = vmatmul.mubr.msk.f32.gmra.mrb[22].mxu1 %vm247_vm1, %v7199_v0  ;;  %5389 = vmatmul.mubr.msk.f32.gmra.mrb[20].mxu0 %vm247_vm1, %v6371_v56  ;;  %v3618_v56 = vld [vmem:[#allocation2 + $0x19a] sm:$0xff]  ;;  %v520_v50 = vsel %vm247_vm1, %v458_v32, 0.0 }
 0x135   : > { %5194 = vmatprep.mubr.msk.f32.mxu1 %vm247_vm1, %v7201_v14  ;;  %5391 = vmatprep.mubr.msk.f32.mxu0 %vm247_vm1, %v6375_v49  ;;  %v7211_v49 = vld [vmem:[#allocation37_spill] sm:$0xff] }
 0x138   : > { %5195 = vmatmul.mubr.msk.f32.gmra.mrb[24].mxu1 %vm247_vm1, %v7203_v29  ;;  %5392 = vmatmul.mubr.msk.f32.gmra.mrb[22].mxu0 %vm247_vm1, %v6387_v43  ;;  %v419_v43 = vsel %vm247_vm1, %v7218_v31, 0.0 }
 0x139   : > { %5197 = vmatprep.mubr.msk.f32.mxu1 %vm247_vm1, %v7205_v55  ;;  %5394 = vmatprep.mubr.msk.f32.mxu0 %vm247_vm1, %v6391_v26  ;;  %v7217_v26 = vld [vmem:[#allocation20_spill] sm:$0xff] }
 0x13a   : > { %v416_v30 = vadd.f32 %v415_v58, %v7217_v26 }
 0x13c   : > { %5198 = vmatmul.mubr.msk.f32.gmra.mrb[26].mxu1 %vm247_vm1, %v7207_v7  ;;  %5395 = vmatmul.mubr.msk.f32.gmra.mrb[24].mxu0 %vm247_vm1, %v6403_v12  ;;  %v457_v12 = vmul.f32 %v7215_v34, %v7215_v34  ;;  %v418_v60 = vadd.f32 %v417_v27, %v416_v30 }
 0x13d   : > { %5200 = vmatprep.mubr.msk.f32.mxu1 %vm247_vm1, %v7208_v10  ;;  %5397 = vmatprep.mubr.msk.f32.mxu0 %vm247_vm1, %v6407_v54  ;;  %v456_v54 = vmul.f32 %v7214_v28, %v7214_v28 }
 0x13e   : > { %v518_v53 = vsel %vm247_vm1, %v457_v12, 0.0  ;;  %v420_v33 = vadd.f32 %v419_v43, %v418_v60 }
 0x13f   : > { %v516_v25 = vsel %vm247_vm1, %v456_v54, 0.0 }
 0x140   : > { %5201 = vmatmul.mubr.msk.f32.gmra.mrb[28].mxu1 %vm247_vm1, %v7210_v46  ;;  %5398 = vmatmul.mubr.msk.f32.gmra.mrb[26].mxu0 %vm247_vm1, %v6419_v23  ;;  %v455_v23 = vmul.f32 %v7213_v17, %v7213_v17  ;;  %v421_v4 = vrot.slane %v420_v33, 4 }
 0x141   : > { %5203 = vmatprep.mubr.msk.f32.mxu1 %vm247_vm1, %v6723_v19  ;;  %5400 = vmatprep.mubr.msk.f32.mxu0 %vm247_vm1, %v7211_v49 }
 0x142   : > { %v514_v61 = vsel %vm247_vm1, %v455_v23, 0.0  ;;  %v422_v16 = vadd.f32 %v421_v4, %v420_v33 }
 0x143   : > { %v515_v42 = vadd.f32 %v514_v61, %v7216_v13 }
 0x144   : > { %5204 = vmatmul.mubr.msk.f32.gmra.mrb[30].mxu1 %vm247_vm1, %v6733_v1  ;;  %5401 = vmatmul.mubr.msk.f32.gmra.mrb[28].mxu0 %vm247_vm1, %v7212_v11  ;;  %v423_v8 = vrot.slane %v422_v16, 2 }
 0x145   : > { %5403 = vmatprep.mubr.msk.f32.mxu0 %vm247_vm1, %v3618_v56  ;;  %v517_v47 = vadd.f32 %v516_v25, %v515_v42 }
 0x146   : > { %v424_v20 = vadd.f32 %v423_v8, %v422_v16 }
 0x147   : > { %v519_v3 = vadd.f32 %v518_v53, %v517_v47 }
 0x148   : > { %5404 = vmatmul.mubr.msk.f32.gmra.mrb[30].mxu0 %vm247_vm1, %v3619_v24  ;;  %v425_v62 = vrot.slane %v424_v20, 1 }
 0x149   : > { %v521_v39 = vadd.f32 %v520_v50, %v519_v3 }
 0x14a   : > { %v426_v52 = vadd.f32 %v425_v62, %v424_v20 }
 0x14b   : > { %v522_v15 = vrot.slane %v521_v39, 4 }
 0x14d   : > { %v523_v41 = vadd.f32 %v522_v15, %v521_v39 }
 0x14f   : > { %v524_v44 = vrot.slane %v523_v41, 2 }
 0x151   : > { %v525_v21 = vadd.f32 %v524_v44, %v523_v41 }
 0x153   : > { %v526_v63 = vrot.slane %v525_v21, 1 }
 0x155   : > { %v527_v2 = vadd.f32 %v526_v63, %v525_v21 }
 0x157   : > { %v529_v37 = vsel %vm528_vm4, %v426_v52, %v527_v2 }
 0x158   : > { %530 = vst.msk [vmem:[%s246_s25] sm:$0x3] %vm250_vm2, %v529_v37 }
 0x1bb   : > { %v5110_v9 = vpop.f32.mrb[0].mxu1 }
 0x1bc   : > { %v1836_v38 = vpop.f32.mrb[1].mxu1 }
 0x1bf   : > { %v5113_v0 = vpop.f32.mrb[2].mxu1 }
 0x1c0   : > { %v1846_v6 = vpop.f32.mrb[3].mxu1 }
 0x1c3   : > { %v5116_v14 = vpop.f32.mrb[4].mxu1 }
 0x1c4   : > { %v1856_v18 = vpop.f32.mrb[5].mxu1 }
 0x1c7   : > { %v5119_v29 = vpop.f32.mrb[6].mxu1 }
 0x1c8   : > { %v1866_v36 = vpop.f32.mrb[7].mxu1 }
 0x1cb   : > { %v6890_v55 = vpop.f32.mrb[8].mxu1 }
 0x1cc   : > { %v6892_v59 = vpop.f32.mrb[9].mxu1 }
 0x1cf   : > { %v6894_v7 = vpop.f32.mrb[10].mxu1 }
 0x1d0   : > { %v6896_v10 = vpop.f32.mrb[11].mxu1 }
 0x1d3   : > { %v6898_v19 = vpop.f32.mrb[12].mxu1 }
 0x1d4   : > { %v6901_v22 = vpop.f32.mrb[13].mxu1 }
 0x1d7   : > { %v6903_v46 = vpop.f32.mrb[14].mxu1 }
 0x1d8   : > { %v6905_v1 = vpop.f32.mrb[15].mxu1 }
 0x1df   : > { %v5360_v5 = vpop.f32.mrb[0].mxu0 }
 0x1e0   : > { %v5408_v48 = vadd.f32 %v5360_v5, %v5110_v9  ;;  %v3787_v35 = vpop.f32.mrb[1].mxu0 }
 0x1e1   : > { %v5409_v57 = vadd.f32 %v3787_v35, %v1836_v38 }
 0x1e2   : > { %v3986_v51 = vadd.f32 %v5408_v48, %v6910_v45 }
 0x1e3   : > { %v3985_v40 = vadd.f32 %v5409_v57, %v6910_v45  ;;  %v5363_v49 = vpop.f32.mrb[2].mxu0 }
 0x1e4   : > { %4018 = vst.msk [vmem:[%s6915_s19 + $0x8] sm:$0xff] %vm247_vm1, %v3986_v51  ;;  %v4050_v56 = vsel %vm247_vm1, %v3986_v51, 0.0  ;;  %v4119_v11 = vmul.f32 %v3986_v51, %v3986_v51  ;;  %v5410_v24 = vadd.f32 %v5363_v49, %v5113_v0  ;;  %v3797_v17 = vpop.f32.mrb[3].mxu0 }
 0x1e5   : > { %4017 = vst.msk [vmem:[%s6915_s19] sm:$0xff] %vm247_vm1, %v3985_v40  ;;  %v4049_v23 = vsel %vm247_vm1, %v3985_v40, 0.0  ;;  %v4118_v61 = vmul.f32 %v3985_v40, %v3985_v40  ;;  %v5411_v28 = vadd.f32 %v3797_v17, %v1846_v6 }
 0x1e6   : > { %v4151_v54 = vsel %vm247_vm1, %v4119_v11, 0.0  ;;  %v4051_v58 = vadd.f32 %v4050_v56, %v4049_v23  ;;  %v3988_v34 = vadd.f32 %v5410_v24, %v6910_v45 }
 0x1e7   : > { %v4150_v12 = vsel %vm247_vm1, %v4118_v61, 0.0  ;;  %v3987_v13 = vadd.f32 %v5411_v28, %v6910_v45  ;;  %v5366_v42 = vpop.f32.mrb[4].mxu0 }
 0x1e8   : > { %v4152_v25 = vadd.f32 %v4151_v54, %v4150_v12  ;;  %4020 = vst.msk [vmem:[%s6915_s19 + $0x18] sm:$0xff] %vm247_vm1, %v3988_v34  ;;  %v4121_v26 = vmul.f32 %v3988_v34, %v3988_v34  ;;  %v5412_v30 = vadd.f32 %v5366_v42, %v5116_v14  ;;  %v3807_v27 = vpop.f32.mrb[5].mxu0  ;;  %v4054_v60 = vsel %vm247_vm1, %v3988_v34, 0.0 }
 0x1e9   : > { %4019 = vst.msk [vmem:[%s6915_s19 + $0x10] sm:$0xff] %vm247_vm1, %v3987_v13  ;;  %v4052_v31 = vsel %vm247_vm1, %v3987_v13, 0.0  ;;  %v4120_v32 = vmul.f32 %v3987_v13, %v3987_v13  ;;  %v5413_v43 = vadd.f32 %v3807_v27, %v1856_v18 }
 0x1ea   : > { %v4053_v47 = vadd.f32 %v4052_v31, %v4051_v58  ;;  %v3990_v53 = vadd.f32 %v5412_v30, %v6910_v45  ;;  %v4155_v39 = vsel %vm247_vm1, %v4121_v26, 0.0 }
 0x1eb   : > { %v4153_v50 = vsel %vm247_vm1, %v4120_v32, 0.0  ;;  %v3989_v3 = vadd.f32 %v5413_v43, %v6910_v45  ;;  %v5369_v33 = vpop.f32.mrb[6].mxu0 }
 0x1ec   : > { %v4154_v4 = vadd.f32 %v4153_v50, %v4152_v25  ;;  %4022 = vst.msk [vmem:[%s6915_s19 + $0x28] sm:$0xff] %vm247_vm1, %v3990_v53  ;;  %v4123_v15 = vmul.f32 %v3990_v53, %v3990_v53  ;;  %v4055_v16 = vadd.f32 %v4054_v60, %v4053_v47  ;;  %v3817_v41 = vpop.f32.mrb[7].mxu0  ;;  %v5414_v20 = vadd.f32 %v5369_v33, %v5119_v29 }
 0x1ed   : > { %4021 = vst.msk [vmem:[%s6915_s19 + $0x20] sm:$0xff] %vm247_vm1, %v3989_v3  ;;  %v4056_v8 = vsel %vm247_vm1, %v3989_v3, 0.0  ;;  %v4122_v44 = vmul.f32 %v3989_v3, %v3989_v3  ;;  %v5415_v21 = vadd.f32 %v3817_v41, %v1866_v36  ;;  %v4058_v52 = vsel %vm247_vm1, %v3990_v53, 0.0 }
 0x1ee   : > { %v4057_v62 = vadd.f32 %v4056_v8, %v4055_v16  ;;  %v4156_v63 = vadd.f32 %v4155_v39, %v4154_v4  ;;  %v3992_v37 = vadd.f32 %v5414_v20, %v6910_v45  ;;  %v4159_v29 = vsel %vm247_vm1, %v4123_v15, 0.0 }
 0x1ef   : > { %v4157_v2 = vsel %vm247_vm1, %v4122_v44, 0.0  ;;  %v3991_v9 = vadd.f32 %v5415_v21, %v6910_v45  ;;  %v5372_v38 = vpop.f32.mrb[8].mxu0 }
 0x1f0   : > { %v4158_v0 = vadd.f32 %v4157_v2, %v4156_v63  ;;  %v4059_v6 = vadd.f32 %v4058_v52, %v4057_v62  ;;  %v5416_v14 = vadd.f32 %v5372_v38, %v6890_v55  ;;  %v3827_v18 = vpop.f32.mrb[9].mxu0  ;;  %4024 = vst.msk [vmem:[%s6915_s19 + $0x38] sm:$0xff] %vm247_vm1, %v3992_v37  ;;  %v4125_v36 = vmul.f32 %v3992_v37, %v3992_v37 }
 0x1f1   : > { %4023 = vst.msk [vmem:[%s6915_s19 + $0x30] sm:$0xff] %vm247_vm1, %v3991_v9  ;;  %v4060_v5 = vsel %vm247_vm1, %v3991_v9, 0.0  ;;  %v4124_v48 = vmul.f32 %v3991_v9, %v3991_v9  ;;  %v5417_v40 = vadd.f32 %v3827_v18, %v6892_v59  ;;  %v4062_v56 = vsel %vm247_vm1, %v3992_v37, 0.0 }
 0x1f2   : > { %v4061_v35 = vadd.f32 %v4060_v5, %v4059_v6  ;;  %v4160_v57 = vadd.f32 %v4159_v29, %v4158_v0  ;;  %v3994_v51 = vadd.f32 %v5416_v14, %v6910_v45  ;;  %v4163_v11 = vsel %vm247_vm1, %v4125_v36, 0.0 }
 0x1f3   : > { %v4161_v55 = vsel %vm247_vm1, %v4124_v48, 0.0  ;;  %v5375_v49 = vpop.f32.mrb[10].mxu0  ;;  %v3993_v17 = vadd.f32 %v5417_v40, %v6910_v45 }
 0x1f4   : > { %v4162_v24 = vadd.f32 %v4161_v55, %v4160_v57  ;;  %4026 = vst.msk [vmem:[%s6915_s19 + $0x48] sm:$0xff] %vm247_vm1, %v3994_v51  ;;  %v3837_v23 = vpop.f32.mrb[11].mxu0  ;;  %v4127_v61 = vmul.f32 %v3994_v51, %v3994_v51  ;;  %v4063_v28 = vadd.f32 %v4062_v56, %v4061_v35  ;;  %v5418_v54 = vadd.f32 %v5375_v49, %v6894_v7 }
 0x1f5   : > { %v5419_v59 = vadd.f32 %v3837_v23, %v6896_v10  ;;  %4025 = vst.msk [vmem:[%s6915_s19 + $0x40] sm:$0xff] %vm247_vm1, %v3993_v17  ;;  %v4064_v58 = vsel %vm247_vm1, %v3993_v17, 0.0  ;;  %v4126_v34 = vmul.f32 %v3993_v17, %v3993_v17  ;;  %v4066_v30 = vsel %vm247_vm1, %v3994_v51, 0.0 }
 0x1f6   : > { %v4164_v12 = vadd.f32 %v4163_v11, %v4162_v24  ;;  %v4065_v13 = vadd.f32 %v4064_v58, %v4063_v28  ;;  %v3996_v42 = vadd.f32 %v5418_v54, %v6910_v45  ;;  %v4167_v31 = vsel %vm247_vm1, %v4127_v61, 0.0 }
 0x1f7   : > { %v3995_v25 = vadd.f32 %v5419_v59, %v6910_v45  ;;  %v5378_v26 = vpop.f32.mrb[12].mxu0  ;;  %v4165_v7 = vsel %vm247_vm1, %v4126_v34, 0.0 }
 0x1f8   : > { %v5420_v27 = vadd.f32 %v5378_v26, %v6898_v19  ;;  %v3847_v10 = vpop.f32.mrb[13].mxu0  ;;  %v4166_v32 = vadd.f32 %v4165_v7, %v4164_v12  ;;  %4028 = vst.msk [vmem:[%s6915_s19 + $0x58] sm:$0xff] %vm247_vm1, %v3996_v42  ;;  %v4129_v43 = vmul.f32 %v3996_v42, %v3996_v42  ;;  %v4067_v47 = vadd.f32 %v4066_v30, %v4065_v13 }
 0x1f9   : > { %4027 = vst.msk [vmem:[%s6915_s19 + $0x50] sm:$0xff] %vm247_vm1, %v3995_v25  ;;  %v4068_v53 = vsel %vm247_vm1, %v3995_v25, 0.0  ;;  %v4128_v60 = vmul.f32 %v3995_v25, %v3995_v25  ;;  %v5421_v3 = vadd.f32 %v3847_v10, %v6901_v22  ;;  %v4070_v15 = vsel %vm247_vm1, %v3996_v42, 0.0 }
 0x1fa   : > { %v3998_v50 = vadd.f32 %v5420_v27, %v6910_v45  ;;  %v4069_v33 = vadd.f32 %v4068_v53, %v4067_v47  ;;  %v4168_v19 = vadd.f32 %v4167_v31, %v4166_v32  ;;  %v4171_v52 = vsel %vm247_vm1, %v4129_v43, 0.0 }
 0x1fb   : > { %v5184_v39 = vpop.f32.mrb[16].mxu1  ;;  %v5381_v4 = vpop.f32.mrb[14].mxu0  ;;  %v4169_v16 = vsel %vm247_vm1, %v4128_v60, 0.0  ;;  %v3997_v8 = vadd.f32 %v5421_v3, %v6910_v45 }
 0x1fc   : > { %4030 = vst.msk [vmem:[%s6915_s19 + $0x68] sm:$0xff] %vm247_vm1, %v3998_v50  ;;  %v4131_v41 = vmul.f32 %v3998_v50, %v3998_v50  ;;  %v2306_v44 = vpop.f32.mrb[17].mxu1  ;;  %v3857_v20 = vpop.f32.mrb[15].mxu0  ;;  %v4170_v21 = vadd.f32 %v4169_v16, %v4168_v19  ;;  %v4071_v62 = vadd.f32 %v4070_v15, %v4069_v33  ;;  %v5422_v22 = vadd.f32 %v5381_v4, %v6903_v46 }
 0x1fd   : > { %v5423_v63 = vadd.f32 %v3857_v20, %v6905_v1  ;;  %4029 = vst.msk [vmem:[%s6915_s19 + $0x60] sm:$0xff] %vm247_vm1, %v3997_v8  ;;  %v4072_v2 = vsel %vm247_vm1, %v3997_v8, 0.0  ;;  %v4130_v37 = vmul.f32 %v3997_v8, %v3997_v8  ;;  %v4074_v46 = vsel %vm247_vm1, %v3998_v50, 0.0 }
 0x1fe   : > { %v4073_v9 = vadd.f32 %v4072_v2, %v4071_v62  ;;  %v4172_v38 = vadd.f32 %v4171_v52, %v4170_v21  ;;  %v4000_v0 = vadd.f32 %v5422_v22, %v6910_v45  ;;  %v4175_v48 = vsel %vm247_vm1, %v4131_v41, 0.0 }
 0x1ff   : > { %v3999_v6 = vadd.f32 %v5423_v63, %v6910_v45  ;;  %v5187_v14 = vpop.f32.mrb[18].mxu1  ;;  %v5384_v18 = vpop.f32.mrb[16].mxu0  ;;  %v4173_v1 = vsel %vm247_vm1, %v4130_v37, 0.0 }
 0x200   : > { %v5424_v29 = vadd.f32 %v5384_v18, %v5184_v39  ;;  %v2316_v36 = vpop.f32.mrb[19].mxu1  ;;  %v3867_v5 = vpop.f32.mrb[17].mxu0  ;;  %v4174_v35 = vadd.f32 %v4173_v1, %v4172_v38  ;;  %4032 = vst.msk [vmem:[%s6915_s19 + $0x78] sm:$0xff] %vm247_vm1, %v4000_v0  ;;  %v4133_v57 = vmul.f32 %v4000_v0, %v4000_v0  ;;  %v4075_v51 = vadd.f32 %v4074_v46, %v4073_v9 }
 0x201   : > { %4031 = vst.msk [vmem:[%s6915_s19 + $0x70] sm:$0xff] %vm247_vm1, %v3999_v6  ;;  %v4076_v40 = vsel %vm247_vm1, %v3999_v6, 0.0  ;;  %v4132_v55 = vmul.f32 %v3999_v6, %v3999_v6  ;;  %v5425_v56 = vadd.f32 %v3867_v5, %v2306_v44  ;;  %v4078_v61 = vsel %vm247_vm1, %v4000_v0, 0.0 }
 0x202   : > { %v4002_v49 = vadd.f32 %v5424_v29, %v6910_v45  ;;  %v4077_v11 = vadd.f32 %v4076_v40, %v4075_v51  ;;  %v4176_v24 = vadd.f32 %v4175_v48, %v4174_v35  ;;  %v4179_v26 = vsel %vm247_vm1, %v4133_v57, 0.0 }
 0x203   : > { %v5190_v17 = vpop.f32.mrb[20].mxu1  ;;  %v5387_v23 = vpop.f32.mrb[18].mxu0  ;;  %v4177_v28 = vsel %vm247_vm1, %v4132_v55, 0.0  ;;  %v4001_v59 = vadd.f32 %v5425_v56, %v6910_v45 }
 0x204   : > { %4034 = vst.msk [vmem:[%s6915_s19 + $0x88] sm:$0xff] %vm247_vm1, %v4002_v49  ;;  %v4135_v54 = vmul.f32 %v4002_v49, %v4002_v49  ;;  %v2326_v58 = vpop.f32.mrb[21].mxu1  ;;  %v3877_v34 = vpop.f32.mrb[19].mxu0  ;;  %v4178_v12 = vadd.f32 %v4177_v28, %v4176_v24  ;;  %v4079_v13 = vadd.f32 %v4078_v61, %v4077_v11  ;;  %v5426_v42 = vadd.f32 %v5387_v23, %v5187_v14 }
 0x205   : > { %v5427_v25 = vadd.f32 %v3877_v34, %v2316_v36  ;;  %4033 = vst.msk [vmem:[%s6915_s19 + $0x80] sm:$0xff] %vm247_vm1, %v4001_v59  ;;  %v4080_v30 = vsel %vm247_vm1, %v4001_v59, 0.0  ;;  %v4134_v7 = vmul.f32 %v4001_v59, %v4001_v59  ;;  %v4082_v53 = vsel %vm247_vm1, %v4002_v49, 0.0 }
 0x206   : > { %v4081_v27 = vadd.f32 %v4080_v30, %v4079_v13  ;;  %v4180_v10 = vadd.f32 %v4179_v26, %v4178_v12  ;;  %v4004_v31 = vadd.f32 %v5426_v42, %v6910_v45  ;;  %v4183_v19 = vsel %vm247_vm1, %v4135_v54, 0.0 }
 0x207   : > { %v4003_v32 = vadd.f32 %v5427_v25, %v6910_v45  ;;  %v5193_v43 = vpop.f32.mrb[22].mxu1  ;;  %v5390_v47 = vpop.f32.mrb[20].mxu0  ;;  %v4181_v60 = vsel %vm247_vm1, %v4134_v7, 0.0 }
 0x208   : > { %v5428_v50 = vadd.f32 %v5390_v47, %v5190_v17  ;;  %v2336_v3 = vpop.f32.mrb[23].mxu1  ;;  %v3887_v33 = vpop.f32.mrb[21].mxu0  ;;  %v4182_v39 = vadd.f32 %v4181_v60, %v4180_v10  ;;  %4036 = vst.msk [vmem:[%s6915_s19 + $0x98] sm:$0xff] %vm247_vm1, %v4004_v31  ;;  %v4137_v4 = vmul.f32 %v4004_v31, %v4004_v31  ;;  %v4083_v15 = vadd.f32 %v4082_v53, %v4081_v27 }
 0x209   : > { %4035 = vst.msk [vmem:[%s6915_s19 + $0x90] sm:$0xff] %vm247_vm1, %v4003_v32  ;;  %v4084_v16 = vsel %vm247_vm1, %v4003_v32, 0.0  ;;  %v4136_v41 = vmul.f32 %v4003_v32, %v4003_v32  ;;  %v5429_v44 = vadd.f32 %v3887_v33, %v2326_v58  ;;  %v4086_v63 = vsel %vm247_vm1, %v4004_v31, 0.0 }
 0x20a   : > { %v4006_v8 = vadd.f32 %v5428_v50, %v6910_v45  ;;  %v4085_v20 = vadd.f32 %v4084_v16, %v4083_v15  ;;  %v4184_v21 = vadd.f32 %v4183_v19, %v4182_v39  ;;  %v4187_v46 = vsel %vm247_vm1, %v4137_v4, 0.0 }
 0x20b   : > { %v5196_v62 = vpop.f32.mrb[24].mxu1  ;;  %v5393_v22 = vpop.f32.mrb[22].mxu0  ;;  %v4185_v52 = vsel %vm247_vm1, %v4136_v41, 0.0  ;;  %v4005_v37 = vadd.f32 %v5429_v44, %v6910_v45 }
 0x20c   : > { %4038 = vst.msk [vmem:[%s6915_s19 + $0xa8] sm:$0xff] %vm247_vm1, %v4006_v8  ;;  %v4139_v2 = vmul.f32 %v4006_v8, %v4006_v8  ;;  %v2346_v9 = vpop.f32.mrb[25].mxu1  ;;  %v3897_v38 = vpop.f32.mrb[23].mxu0  ;;  %v4186_v0 = vadd.f32 %v4185_v52, %v4184_v21  ;;  %v4087_v6 = vadd.f32 %v4086_v63, %v4085_v20  ;;  %v5430_v14 = vadd.f32 %v5393_v22, %v5193_v43 }
 0x20d   : > { %v5431_v18 = vadd.f32 %v3897_v38, %v2336_v3  ;;  %4037 = vst.msk [vmem:[%s6915_s19 + $0xa0] sm:$0xff] %vm247_vm1, %v4005_v37  ;;  %v4088_v1 = vsel %vm247_vm1, %v4005_v37, 0.0  ;;  %v4138_v29 = vmul.f32 %v4005_v37, %v4005_v37  ;;  %v4090_v40 = vsel %vm247_vm1, %v4006_v8, 0.0 }
 0x20e   : > { %v4089_v36 = vadd.f32 %v4088_v1, %v4087_v6  ;;  %v4188_v5 = vadd.f32 %v4187_v46, %v4186_v0  ;;  %v4008_v48 = vadd.f32 %v5430_v14, %v6910_v45  ;;  %v4191_v24 = vsel %vm247_vm1, %v4139_v2, 0.0 }
 0x20f   : > { %v4007_v35 = vadd.f32 %v5431_v18, %v6910_v45  ;;  %v5199_v57 = vpop.f32.mrb[26].mxu1  ;;  %v5396_v51 = vpop.f32.mrb[24].mxu0  ;;  %v4189_v55 = vsel %vm247_vm1, %v4138_v29, 0.0 }
 0x210   : > { %v5432_v49 = vadd.f32 %v5396_v51, %v5196_v62  ;;  %v2356_v56 = vpop.f32.mrb[27].mxu1  ;;  %v3907_v11 = vpop.f32.mrb[25].mxu0  ;;  %v4190_v17 = vadd.f32 %v4189_v55, %v4188_v5  ;;  %4040 = vst.msk [vmem:[%s6915_s19 + $0xb8] sm:$0xff] %vm247_vm1, %v4008_v48  ;;  %v4141_v23 = vmul.f32 %v4008_v48, %v4008_v48  ;;  %v4091_v61 = vadd.f32 %v4090_v40, %v4089_v36 }
 0x211   : > { %4039 = vst.msk [vmem:[%s6915_s19 + $0xb0] sm:$0xff] %vm247_vm1, %v4007_v35  ;;  %v4092_v28 = vsel %vm247_vm1, %v4007_v35, 0.0  ;;  %v4140_v54 = vmul.f32 %v4007_v35, %v4007_v35  ;;  %v5433_v58 = vadd.f32 %v3907_v11, %v2346_v9  ;;  %v4094_v25 = vsel %vm247_vm1, %v4008_v48, 0.0 }
 0x212   : > { %v4010_v59 = vadd.f32 %v5432_v49, %v6910_v45  ;;  %v4093_v34 = vadd.f32 %v4092_v28, %v4091_v61  ;;  %v4192_v12 = vadd.f32 %v4191_v24, %v4190_v17  ;;  %v4195_v53 = vsel %vm247_vm1, %v4141_v23, 0.0 }
 0x213   : > { %v5202_v13 = vpop.f32.mrb[28].mxu1  ;;  %v5399_v42 = vpop.f32.mrb[26].mxu0  ;;  %v4193_v26 = vsel %vm247_vm1, %v4140_v54, 0.0  ;;  %v4009_v7 = vadd.f32 %v5433_v58, %v6910_v45 }
 0x214   : > { %4042 = vst.msk [vmem:[%s6915_s19 + $0xc8] sm:$0xff] %vm247_vm1, %v4010_v59  ;;  %v4143_v30 = vmul.f32 %v4010_v59, %v4010_v59  ;;  %v2366_v27 = vpop.f32.mrb[29].mxu1  ;;  %v3917_v10 = vpop.f32.mrb[27].mxu0  ;;  %v4194_v31 = vadd.f32 %v4193_v26, %v4192_v12  ;;  %v4095_v32 = vadd.f32 %v4094_v25, %v4093_v34  ;;  %v5434_v43 = vadd.f32 %v5399_v42, %v5199_v57 }
 0x215   : > { %v5435_v47 = vadd.f32 %v3917_v10, %v2356_v56  ;;  %4041 = vst.msk [vmem:[%s6915_s19 + $0xc0] sm:$0xff] %vm247_vm1, %v4009_v7  ;;  %v4096_v60 = vsel %vm247_vm1, %v4009_v7, 0.0  ;;  %v4142_v50 = vmul.f32 %v4009_v7, %v4009_v7  ;;  %v4098_v16 = vsel %vm247_vm1, %v4010_v59, 0.0 }
 0x216   : > { %v4097_v3 = vadd.f32 %v4096_v60, %v4095_v32  ;;  %v4196_v33 = vadd.f32 %v4195_v53, %v4194_v31  ;;  %v4012_v19 = vadd.f32 %v5434_v43, %v6910_v45  ;;  %v4199_v21 = vsel %vm247_vm1, %v4143_v30, 0.0 }
 0x217   : > { %v4011_v39 = vadd.f32 %v5435_v47, %v6910_v45  ;;  %v5205_v4 = vpop.f32.mrb[30].mxu1  ;;  %v5402_v15 = vpop.f32.mrb[28].mxu0  ;;  %v4197_v41 = vsel %vm247_vm1, %v4142_v50, 0.0 }
 0x218   : > { %v5436_v8 = vadd.f32 %v5402_v15, %v5202_v13  ;;  %v2376_v44 = vpop.f32.mrb[31].mxu1  ;;  %v3927_v20 = vpop.f32.mrb[29].mxu0  ;;  %v4198_v62 = vadd.f32 %v4197_v41, %v4196_v33  ;;  %4044 = vst.msk [vmem:[%s6915_s19 + $0xd8] sm:$0xff] %vm247_vm1, %v4012_v19  ;;  %v4145_v22 = vmul.f32 %v4012_v19, %v4012_v19  ;;  %v4099_v63 = vadd.f32 %v4098_v16, %v4097_v3 }
 0x219   : > { %4043 = vst.msk [vmem:[%s6915_s19 + $0xd0] sm:$0xff] %vm247_vm1, %v4011_v39  ;;  %v4100_v52 = vsel %vm247_vm1, %v4011_v39, 0.0  ;;  %v4144_v2 = vmul.f32 %v4011_v39, %v4011_v39  ;;  %v5437_v9 = vadd.f32 %v3927_v20, %v2366_v27  ;;  %v4102_v14 = vsel %vm247_vm1, %v4012_v19, 0.0 }
 0x21a   : > { %v4014_v37 = vadd.f32 %v5436_v8, %v6910_v45  ;;  %v4101_v38 = vadd.f32 %v4100_v52, %v4099_v63  ;;  %v4200_v0 = vadd.f32 %v4199_v21, %v4198_v62  ;;  %v4203_v35 = vsel %vm247_vm1, %v4145_v22, 0.0 }
 0x21b   : > { %v5405_v6 = vpop.f32.mrb[30].mxu0  ;;  %v4201_v18 = vsel %vm247_vm1, %v4144_v2, 0.0  ;;  %v4013_v46 = vadd.f32 %v5437_v9, %v6910_v45 }
 0x21c   : > { %4046 = vst.msk [vmem:[%s6915_s19 + $0xe8] sm:$0xff] %vm247_vm1, %v4014_v37  ;;  %v3937_v1 = vpop.f32.mrb[31].mxu0  ;;  %v4202_v29 = vadd.f32 %v4201_v18, %v4200_v0  ;;  %v4103_v36 = vadd.f32 %v4102_v14, %v4101_v38  ;;  %v5438_v5 = vadd.f32 %v5405_v6, %v5205_v4  ;;  %v4147_v57 = vmul.f32 %v4014_v37, %v4014_v37 }
 0x21d   : > { %v5439_v48 = vadd.f32 %v3937_v1, %v2376_v44  ;;  %4045 = vst.msk [vmem:[%s6915_s19 + $0xe0] sm:$0xff] %vm247_vm1, %v4013_v46  ;;  %v4104_v51 = vsel %vm247_vm1, %v4013_v46, 0.0  ;;  %v4146_v40 = vmul.f32 %v4013_v46, %v4013_v46  ;;  %v4106_v24 = vsel %vm247_vm1, %v4014_v37, 0.0 }
 0x21e   : > { %v4105_v55 = vadd.f32 %v4104_v51, %v4103_v36  ;;  %v4204_v49 = vadd.f32 %v4203_v35, %v4202_v29  ;;  %v4016_v56 = vadd.f32 %v5438_v5, %v6910_v45  ;;  %v4207_v28 = vsel %vm247_vm1, %v4147_v57, 0.0 }
 0x21f   : > { %v4015_v11 = vadd.f32 %v5439_v48, %v6910_v45  ;;  %v4205_v17 = vsel %vm247_vm1, %v4146_v40, 0.0 }
 0x220   : > { %v4206_v23 = vadd.f32 %v4205_v17, %v4204_v49  ;;  %4048 = vst.msk [vmem:[%s6915_s19 + $0xf8] sm:$0xff] %vm247_vm1, %v4016_v56  ;;  %v4107_v61 = vadd.f32 %v4106_v24, %v4105_v55  ;;  %v4149_v54 = vmul.f32 %v4016_v56, %v4016_v56  ;;  %v4110_v45 = vsel %vm247_vm1, %v4016_v56, 0.0 }
 0x221   : > { %4047 = vst.msk [vmem:[%s6915_s19 + $0xf0] sm:$0xff] %vm247_vm1, %v4015_v11  ;;  %v4108_v59 = vsel %vm247_vm1, %v4015_v11, 0.0  ;;  %v4148_v58 = vmul.f32 %v4015_v11, %v4015_v11 }
 0x222   : > { %v4109_v34 = vadd.f32 %v4108_v59, %v4107_v61  ;;  %v4208_v12 = vadd.f32 %v4207_v28, %v4206_v23  ;;  %v4211_v26 = vsel %vm247_vm1, %v4149_v54, 0.0 }
 0x223   : > { %v4209_v13 = vsel %vm247_vm1, %v4148_v58, 0.0 }
 0x224   : > { %v4111_v42 = vadd.f32 %v4110_v45, %v4109_v34  ;;  %v4210_v25 = vadd.f32 %v4209_v13, %v4208_v12 }
 0x226   : > { %v4112_v30 = vrot.slane %v4111_v42, 4  ;;  %v4212_v7 = vadd.f32 %v4211_v26, %v4210_v25 }
 0x228   : > { %v4113_v27 = vadd.f32 %v4112_v30, %v4111_v42  ;;  %v4213_v10 = vrot.slane %v4212_v7, 4 }
 0x22a   : > { %v4114_v31 = vrot.slane %v4113_v27, 2  ;;  %v4214_v32 = vadd.f32 %v4213_v10, %v4212_v7 }
 0x22c   : > { %v4115_v43 = vadd.f32 %v4114_v31, %v4113_v27  ;;  %v4215_v47 = vrot.slane %v4214_v32, 2 }
 0x22e   : > { %v4116_v53 = vrot.slane %v4115_v43, 1  ;;  %v4216_v60 = vadd.f32 %v4215_v47, %v4214_v32 }
 0x230   : > { %v4217_v50 = vrot.slane %v4216_v60, 1  ;;  %v4117_v3 = vadd.f32 %v4116_v53, %v4115_v43 }
 0x232   : > { %v4218_v33 = vadd.f32 %v4217_v50, %v4216_v60 }
 0x234   : > { %v4219_v19 = vsel %vm528_vm4, %v4117_v3, %v4218_v33 }
 0x235   : > { %4220 = vst.msk [vmem:[%s242_s10] sm:$0x3] %vm250_vm2, %v4219_v19 }
 0x236 PF: > { %s16_s18 = sadd.s32 1, %s5680_s18  }
 0x237   : > { %p13_p5 = scmp.ge.s32.totalorder %s16_s18, 10  }
 0x239   :  { %15 = sbr.rel (!%p13_p5) target bundleno = 1 (0x1), region = 97 }

// kernel: basic_block_forward.7
= control target key start
LH: loop header
LB: loop body
LE: loop exit
PB: predicated region body
PF: predicated region fallthrough
CT: control target
= control target key end

     0   :  { %13 = vsyncpa [#allocation3], 0  ;;  %s1762_s0 = inlined_call_operand.vmem [shape: f32[4], index: 0, kind: input, shape index: {}]   ;;  %s1763_s1 = inlined_call_operand.vmem [shape: f32[4], index: 1, kind: input, shape index: {}]   ;;  %s1764_s2 = inlined_call_operand.vmem [shape: f32[2,4,1024], index: 2, kind: input, shape index: {}]   ;;  %s1765_s3 = inlined_call_operand.vmem [shape: f32[2,4,1024], index: 3, kind: input, shape index: {}]   ;;  %s1766_s4 = inlined_call_operand.vmem [shape: f32[1,1,1024], index: 4, kind: input, shape index: {}]   ;;  %s1767_s5 = inlined_call_operand.vmem [shape: f32[1,1,1024], index: 5, kind: input, shape index: {}]   ;;  %s1768_s6 = inlined_call_operand.vmem [shape: f32[1,1,1024], index: 6, kind: input, shape index: {}]   ;;  %s1769_s7 = inlined_call_operand.vmem [shape: f32[1,1,1024], index: 7, kind: input, shape index: {}]   ;;  %s1770_s8 = inlined_call_operand.vmem [shape: f32[2,4,1024], index: 8, kind: output, shape index: {}]  }
   0x1   :  { %14 = vsyncpa [#allocation5], 0  ;;  %s1464_s27 = smov 0   ;;  %s1466_s28 = smov 0  }
   0x2   :  { %s1468_s29 = smov 0  }
   0x3 LB: > { %s1242_s30 = sadd.s32 4294967295, %s1410_s29   ;;  %s29_s9 = sadd.s32 1, %s1406_s28  ;;  %s1410_s29 = sphi %s1468_s29, %s20_s29   ;;  %s1406_s28 = sphi %s1466_s28, %s1780_s28   ;;  %s1402_s27 = sphi %s1464_s27, %s1779_s27  }
   0x4   : > { %p30_p0 = scmp.ge.s32.totalorder %s29_s9, 2  ;;  %p1244_p1 = scmp.ge.s32.totalorder %s1410_s29, 1 }
   0x5   : > { %p267_p2 = scmp.lt.s32.totalorder %s1410_s29, 3  ;;  %p1489_p4 = scmp.eq.s32.totalorder %s1242_s30, 0 }
   0x6   : > { %s1782_s9 = smov (%p30_p0, %s29_s9), 0  ;;  %s280_s14 = sshll.u32 %s1762_s0, 4  ;;  %s281_s14 = int_to_ptr.vmem [resolvable:$true] %s280_s14 }
   0x7   : > { %p1485_p3 = pnand %p1244_p1, %p267_p2  ;;  %s291_s17 = sshll.u32 %s1763_s1, 4  ;;  %s292_s17 = int_to_ptr.vmem [resolvable:$true] %s291_s17 }
   0x8   : > { %s1775_s11 = scalar_select %p1489_p4, 1, 0 }
   0x9   : > { %s1774_s10 = scalar_select %p1485_p3, 1, 0 }
   0xa   : > { %p1308_p5 = pneg %p1485_p3  ;;  %s1350_s19 = scalar_lea.vmem %s281_s14, 16 }
   0xb   : > { %p1351_p7 = scmp.ne.s32.totalorder %s281_s14, %s1350_s19  ;;  %p1358_p11 = scmp.lt.s32.totalorder %s281_s14, %s281_s14 }
   0xc   : > { %p1503_p6 = pnand %p1489_p4, %p1308_p5  ;;  %p1359_p12 = scmp.lt.s32.totalorder %s1350_s19, %s1350_s19 }
   0xe   : > { %p1352_p8 = pneg %p1503_p6  ;;  %p1360_p13 = por %p1359_p12, %p1358_p11 }
  0x10   : > { %p1353_p9 = pnand %p1352_p8, %p1351_p7 }
  0x12   : > { %p1354_p10 = pneg %p1353_p9 }
  0x14   : > { %p1361_p0 = pnand %p1360_p13, %p1354_p10 }
  0x16   : > { %1364 = shalt.err (!%p1361_p0)
}
  0x17   : > { %s1412_s20 = smov [#allocation2]   ;;  %s1365_s21 = scalar_lea.vmem %s292_s17, 16 }
  0x18   : > { %1311 = dma.vmem_to_smem (!%p1503_p6), %s281_s14, 16, %s1412_s20, [#allocation3]  }
  0x19   : > { %p1366_p1 = scmp.ne.s32.totalorder %s292_s17, %s1365_s21  ;;  %p1373_p4 = scmp.lt.s32.totalorder %s292_s17, %s292_s17 }
  0x1a   : > { %p1374_p3 = scmp.lt.s32.totalorder %s1365_s21, %s1365_s21 }
  0x1b   : > { %p1368_p2 = pnand %p1366_p1, %p1352_p8 }
  0x1c   : > { %p1375_p7 = por %p1374_p3, %p1373_p4 }
  0x1d   : > { %p1369_p5 = pneg %p1368_p2 }
  0x1f   : > { %p1376_p9 = pnand %p1375_p7, %p1369_p5 }
  0x21   : > { %1379 = shalt.err (!%p1376_p9)
}
  0x22   : > { %s1413_s22 = smov [#allocation4]   ;;  %p1777_p10 = scmp.ne.s32.totalorder %s1774_s10, 0 }
  0x23   : > { %1314 = dma.vmem_to_smem (!%p1503_p6), %s292_s17, 16, %s1413_s22, [#allocation5]  }
  0x24   : > { %362 = sbr.rel (%p1777_p10) target bundleno = 115 (0x73), region = 52  ;;  %p1778_p11 = scmp.ne.s32.totalorder (!%p1777_p10), %s1775_s11, 0 }
  0x2b   : > { %1393 = dma.done.wait (%p1778_p11), [#allocation3], 16  }
  0x2c   : > { %1395 = vsyncadd (%p1778_p11), [#allocation3], 4294967280 }
  0x2d   : > { %1397 = dma.done.wait (%p1778_p11), [#allocation5], 16  }
  0x2e   : > { %1399 = vsyncadd (%p1778_p11), [#allocation5], 4294967280 }
  0x2f   : > { %372 = sfence }
  0x30   : > { %p435_p3 = scmp.lt.s32.totalorder %s1402_s27, 1  ;;  %v500_v0 = vlaneseq  ;;  %v1414_v1 = vmov 286326784   ;;  %v1415_v4 = vmov 858989090   ;;  %v1416_v6 = vmov 1431651396  }
  0x31   : > { %v498_v2 = vunpack.c.l.s4 %v1414_v1  ;;  %v505_v5 = vunpack.c.l.s4 %v1415_v4  ;;  %v512_v7 = vunpack.c.l.s4 %v1416_v6  ;;  %v1417_v9 = vmov 2004313702   ;;  %s1525_s23 = sld [smem:[#allocation2]]  ;;  %v484_v11 = vld [vmem:[%s1766_s4] sm:$0xff]  ;;  %s1555_s19 = sld [smem:[#allocation2 + $0x1]] }
  0x32   : > { %s1784_s27 = smov (!%p435_p3, %s1402_s27), 1  ;;  %v501_v3 = vshrl.u32 %v500_v0, 7  ;;  %v519_v10 = vunpack.c.l.s4 %v1417_v9  ;;  %v485_v12 = vld [vmem:[%s1767_s5] sm:$0xff]  ;;  %s1552_s18 = sld [smem:[#allocation4]]  ;;  %vm1020_vm12 = vcmask 1040384   ;;  %vm1029_vm13 = vcmask 1041408  }
  0x33   : > { %v499_v8 = vunpack.c.0.s8 %v498_v2  ;;  %s1527_s24 = sshll.u32 %s1784_s27, 5  ;;  %v486_v13 = vld [vmem:[%s1768_s6] sm:$0xff]  ;;  %v506_v14 = vunpack.c.0.s8 %v505_v5  ;;  %v513_v15 = vunpack.c.0.s8 %v512_v7  ;;  %s1557_s20 = sld [smem:[#allocation4 + $0x1]] }
  0x34   : > { %s442_s27 = scalar_lea.vmem %s1764_s2, %s1527_s24  ;;  %s1546_s17 = scalar_lea.vmem %s1765_s3, %s1527_s24  ;;  %v520_v17 = vunpack.c.0.s8 %v519_v10  ;;  %v1548_v21 = vsub.s32 0, %v501_v3  ;;  %v1550_v22 = vsub.s32 4, %v501_v3  ;;  %v487_v41 = vld [vmem:[%s1769_s7] sm:$0xff] }
  0x35   : > { %v502_v16 = vsub.s32 %v499_v8, %v501_v3  ;;  %v488_v18 = vld [vmem:[%s442_s27] sm:$0xff]  ;;  %v509_v19 = vsub.s32 %v506_v14, %v501_v3  ;;  %v516_v20 = vsub.s32 %v513_v15, %v501_v3  ;;  %v489_v23 = vld [vmem:[%s442_s27 + $0x8] sm:$0xff]  ;;  %v490_v24 = vld [vmem:[%s442_s27 + $0x10] sm:$0xff]  ;;  %s1603_s25 = sld [smem:[#allocation4 + $0x2]]  ;;  %s1605_s26 = sld [smem:[#allocation2 + $0x3]] }
  0x36   : > { %v523_v26 = vsub.s32 %v520_v17, %v501_v3  ;;  %v491_v29 = vld [vmem:[%s442_s27 + $0x18] sm:$0xff]  ;;  %v492_v30 = vld [vmem:[%s1546_s17] sm:$0xff]  ;;  %v493_v35 = vld [vmem:[%s1546_s17 + $0x8] sm:$0xff]  ;;  %s1607_s30 = sld [smem:[#allocation4 + $0x3]]  ;;  %s482_s12 = scalar_lea.vmem %s1770_s8, %s1527_s24 }
  0x37   : > { %v503_v25 = vrot.slane %v484_v11, %v502_v16  ;;  %v540_v27 = vrot.slane %v485_v12, %v502_v16  ;;  %v583_v28 = vrot.slane %v486_v13, %v502_v16  ;;  %v510_v31 = vrot.slane %v484_v11, %v509_v19  ;;  %v494_v36 = vld [vmem:[%s1546_s17 + $0x10] sm:$0xff]  ;;  %v495_v42 = vld [vmem:[%s1546_s17 + $0x18] sm:$0xff] }
  0x38   : > { %v517_v32 = vrot.slane %v484_v11, %v516_v20  ;;  %v547_v33 = vrot.slane %v485_v12, %v509_v19  ;;  %v554_v34 = vrot.slane %v485_v12, %v516_v20  ;;  %v524_v37 = vrot.slane %v484_v11, %v523_v26 }
  0x39   : > { %v529_v38 = vmul.f32 %v503_v25, %v488_v18  ;;  %v561_v39 = vrot.slane %v485_v12, %v523_v26  ;;  %v571_v40 = vstv %s1525_s23  ;;  %v530_v43 = vmul.f32 %v510_v31, %v489_v23  ;;  %s1596_s23 = sld [smem:[#allocation2 + $0x2]] }
  0x3a   : > { %v531_v44 = vmul.f32 %v517_v32, %v490_v24  ;;  %v590_v45 = vrot.slane %v486_v13, %v509_v19  ;;  %v597_v46 = vrot.slane %v486_v13, %v516_v20  ;;  %v532_v47 = vmul.f32 %v524_v37, %v491_v29 }
  0x3b   : > { %v1566_v48 = vadd.f32 %v540_v27, %v529_v38  ;;  %v604_v49 = vrot.slane %v486_v13, %v523_v26  ;;  %v609_v50 = vmul.f32 %v583_v28, %v492_v30  ;;  %v1568_v51 = vadd.f32 %v547_v33, %v530_v43 }
  0x3c   : > { %v1570_v52 = vadd.f32 %v554_v34, %v531_v44  ;;  %v610_v53 = vmul.f32 %v590_v45, %v493_v35  ;;  %v611_v54 = vmul.f32 %v597_v46, %v494_v36  ;;  %v1572_v55 = vadd.f32 %v561_v39, %v532_v47 }
  0x3d   : > { %v572_v56 = vmul.f32 %v571_v40, %v1566_v48  ;;  %v612_v57 = vmul.f32 %v604_v49, %v495_v42  ;;  %v620_v58 = vrot.slane %v487_v41, %v502_v16  ;;  %v573_v59 = vmul.f32 %v571_v40, %v1568_v51 }
  0x3e   : > { %v574_v60 = vmul.f32 %v571_v40, %v1570_v52  ;;  %v627_v61 = vrot.slane %v487_v41, %v509_v19  ;;  %v634_v62 = vrot.slane %v487_v41, %v516_v20  ;;  %v575_v63 = vmul.f32 %v571_v40, %v1572_v55 }
  0x3f   : > { %v641_v0 = vrot.slane %v487_v41, %v523_v26  ;;  %v1578_v1 = vadd.f32 %v620_v58, %v609_v50  ;;  %v651_v2 = vstv %s1552_s18  ;;  %v681_v5 = vstv %s1555_s19 }
  0x40   : > { %v1581_v3 = vadd.f32 %v627_v61, %v610_v53  ;;  %v1583_v4 = vadd.f32 %v634_v62, %v611_v54  ;;  %v687_v6 = vstv %s1557_s20  ;;  %v682_v9 = vmul.f32 %v681_v5, %v1566_v48 }
  0x41   : > { %v1587_v7 = vadd.f32 %v641_v0, %v612_v57  ;;  %v652_v8 = vmul.f32 %v651_v2, %v1578_v1  ;;  %v683_v10 = vmul.f32 %v681_v5, %v1568_v51  ;;  %v684_v13 = vmul.f32 %v681_v5, %v1570_v52 }
  0x42   : > { %v653_v11 = vmul.f32 %v651_v2, %v1581_v3  ;;  %v654_v12 = vmul.f32 %v651_v2, %v1583_v4  ;;  %v685_v14 = vmul.f32 %v681_v5, %v1572_v55  ;;  %v688_v17 = vmul.f32 %v687_v6, %v1578_v1 }
  0x43   : > { %v655_v15 = vmul.f32 %v651_v2, %v1587_v7  ;;  %v656_v16 = vadd.f32 %v652_v8, %v572_v56  ;;  %v689_v18 = vmul.f32 %v687_v6, %v1581_v3  ;;  %v690_v23 = vmul.f32 %v687_v6, %v1583_v4 }
  0x44   : > { %v657_v19 = vadd.f32 %v653_v11, %v573_v59  ;;  %v658_v20 = vadd.f32 %v654_v12, %v574_v60  ;;  %v691_v24 = vmul.f32 %v687_v6, %v1587_v7  ;;  %v696_v26 = vadd.f32 %v688_v17, %v682_v9 }
  0x45   : > { %v659_v25 = vadd.f32 %v655_v15, %v575_v63  ;;  %vm664_vm0 = vcmp.ge.f32.partialorder %v656_v16, 1.0  ;;  %v697_v27 = vadd.f32 %v689_v18, %v683_v10  ;;  %v1418_v28 = vmov 0.0  }
  0x46   : > { %vm665_vm1 = vcmp.ge.f32.partialorder %v657_v19, 1.0  ;;  %vm666_vm2 = vcmp.ge.f32.partialorder %v658_v20, 1.0  ;;  %v1610_v29 = vsel %vm664_vm0, 1.0, %v1418_v28  ;;  %v676_v30 = vsel %vm664_vm0, 0.0, %v656_v16 }
  0x47   : > { %vm667_vm3 = vcmp.ge.f32.partialorder %v659_v25, 1.0  ;;  %v1613_v31 = vsel %vm665_vm1, 1.0, %v1418_v28  ;;  %v1616_v32 = vsel %vm666_vm2, 1.0, %v1418_v28  ;;  %v677_v33 = vsel %vm665_vm1, 0.0, %v657_v19 }
  0x48   : > { %v1619_v34 = vsel %vm667_vm3, 1.0, %v1418_v28  ;;  %v678_v35 = vsel %vm666_vm2, 0.0, %v658_v20  ;;  %v679_v36 = vsel %vm667_vm3, 0.0, %v659_v25  ;;  %v692_v37 = vmul.f32 0.25, %v676_v30 }
  0x49   : > { %v693_v38 = vmul.f32 0.25, %v677_v33  ;;  %v694_v39 = vmul.f32 0.25, %v678_v35  ;;  %v695_v40 = vmul.f32 0.25, %v679_v36  ;;  %v698_v41 = vadd.f32 %v690_v23, %v684_v13 }
  0x4a   : > { %v699_v42 = vadd.f32 %v691_v24, %v685_v14  ;;  %v1267_v43 = vrot.slane %v696_v26, 9  ;;  %v1268_v44 = vrot.slane %v697_v27, 9  ;;  %v737_v45 = vstv %s1596_s23 }
  0x4b   : > { %v1269_v46 = vrot.slane %v698_v41, 9  ;;  %v738_v47 = vmul.f32 %v737_v45, %v1566_v48  ;;  %v739_v49 = vmul.f32 %v737_v45, %v1568_v51  ;;  %v740_v50 = vmul.f32 %v737_v45, %v1570_v52 }
  0x4c   : > { %v1270_v53 = vrot.slane %v699_v42, 9  ;;  %v716_v54 = vadd.f32 %v1267_v43, %v692_v37  ;;  %v717_v56 = vadd.f32 %v1268_v44, %v693_v38  ;;  %v741_v57 = vmul.f32 %v737_v45, %v1572_v55 }
  0x4d   : > { %v718_v58 = vadd.f32 %v1269_v46, %v694_v39  ;;  %v743_v59 = vstv %s1603_s25  ;;  %v793_v60 = vstv %s1605_s26  ;;  %v799_v61 = vstv %s1607_s30 }
  0x4e   : > { %v719_v62 = vadd.f32 %v1270_v53, %v695_v40  ;;  %vm720_vm4 = vcmp.ge.f32.partialorder %v716_v54, 1.0  ;;  %vm721_vm5 = vcmp.ge.f32.partialorder %v717_v56, 1.0  ;;  %v744_v63 = vmul.f32 %v743_v59, %v1578_v1 }
  0x4f   : > { %vm722_vm6 = vcmp.ge.f32.partialorder %v718_v58, 1.0  ;;  %v1631_v0 = vsel %vm720_vm4, 1.0, %v1418_v28  ;;  %v1634_v2 = vsel %vm721_vm5, 1.0, %v1418_v28  ;;  %v732_v5 = vsel %vm720_vm4, 0.0, %v716_v54 }
  0x50   : > { %vm723_vm7 = vcmp.ge.f32.partialorder %v719_v62, 1.0  ;;  %v1637_v6 = vsel %vm722_vm6, 1.0, %v1418_v28  ;;  %v733_v8 = vsel %vm721_vm5, 0.0, %v717_v56  ;;  %v734_v9 = vsel %vm722_vm6, 0.0, %v718_v58 }
  0x51   : > { %v1640_v10 = vsel %vm723_vm7, 1.0, %v1418_v28  ;;  %v735_v11 = vsel %vm723_vm7, 0.0, %v719_v62  ;;  %v745_v12 = vmul.f32 %v743_v59, %v1581_v3  ;;  %v746_v13 = vmul.f32 %v743_v59, %v1583_v4 }
  0x52   : > { %v747_v14 = vmul.f32 %v743_v59, %v1587_v7  ;;  %v748_v15 = vmul.f32 0.25, %v732_v5  ;;  %v749_v16 = vmul.f32 0.25, %v733_v8  ;;  %v750_v17 = vmul.f32 0.25, %v734_v9 }
  0x53   : > { %v751_v18 = vmul.f32 0.25, %v735_v11  ;;  %v752_v19 = vadd.f32 %v744_v63, %v738_v47  ;;  %v753_v20 = vadd.f32 %v745_v12, %v739_v49  ;;  %v754_v23 = vadd.f32 %v746_v13, %v740_v50 }
  0x54   : > { %v755_v24 = vadd.f32 %v747_v14, %v741_v57  ;;  %v794_v25 = vmul.f32 %v793_v60, %v1566_v48  ;;  %v795_v26 = vmul.f32 %v793_v60, %v1568_v51  ;;  %v796_v27 = vmul.f32 %v793_v60, %v1570_v52 }
  0x55   : > { %v1277_v30 = vrot.slane %v752_v19, 10  ;;  %v1278_v33 = vrot.slane %v753_v20, 10  ;;  %v1279_v35 = vrot.slane %v754_v23, 10  ;;  %v797_v36 = vmul.f32 %v793_v60, %v1572_v55 }
  0x56   : > { %v1280_v37 = vrot.slane %v755_v24, 10  ;;  %v800_v38 = vmul.f32 %v799_v61, %v1578_v1  ;;  %v801_v39 = vmul.f32 %v799_v61, %v1581_v3  ;;  %v802_v40 = vmul.f32 %v799_v61, %v1583_v4 }
  0x57   : > { %v772_v41 = vadd.f32 %v1277_v30, %v748_v15  ;;  %v773_v42 = vadd.f32 %v1278_v33, %v749_v16  ;;  %v774_v43 = vadd.f32 %v1279_v35, %v750_v17  ;;  %v803_v48 = vmul.f32 %v799_v61, %v1587_v7 }
  0x58   : > { %v775_v51 = vadd.f32 %v1280_v37, %v751_v18  ;;  %v808_v44 = vadd.f32 %v800_v38, %v794_v25  ;;  %v809_v52 = vadd.f32 %v801_v39, %v795_v26  ;;  %v810_v45 = vadd.f32 %v802_v40, %v796_v27 }
  0x59   : > { %vm776_vm8 = vcmp.ge.f32.partialorder %v772_v41, 1.0  ;;  %vm777_vm9 = vcmp.ge.f32.partialorder %v773_v42, 1.0  ;;  %vm778_vm10 = vcmp.ge.f32.partialorder %v774_v43, 1.0  ;;  %v811_v55 = vadd.f32 %v803_v48, %v797_v36 }
  0x5a   : > { %vm779_vm11 = vcmp.ge.f32.partialorder %v775_v51, 1.0  ;;  %v1654_v1 = vsel %vm776_vm8, 1.0, %v1418_v28  ;;  %v1657_v3 = vsel %vm777_vm9, 1.0, %v1418_v28  ;;  %v1660_v4 = vsel %vm778_vm10, 1.0, %v1418_v28 }
  0x5b   : > { %v1663_v7 = vsel %vm779_vm11, 1.0, %v1418_v28  ;;  %v788_v46 = vsel %vm776_vm8, 0.0, %v772_v41  ;;  %v789_v47 = vsel %vm777_vm9, 0.0, %v773_v42  ;;  %v790_v49 = vsel %vm778_vm10, 0.0, %v774_v43 }
  0x5c   : > { %v791_v50 = vsel %vm779_vm11, 0.0, %v775_v51  ;;  %v804_v53 = vmul.f32 0.25, %v788_v46  ;;  %v805_v54 = vmul.f32 0.25, %v789_v47  ;;  %v806_v56 = vmul.f32 0.25, %v790_v49 }
  0x5d   : > { %v807_v57 = vmul.f32 0.25, %v791_v50  ;;  %v1287_v58 = vrot.slane %v808_v44, 11  ;;  %v1288_v59 = vrot.slane %v809_v52, 11  ;;  %v1289_v60 = vrot.slane %v810_v45, 11 }
  0x5e   : > { %v1290_v61 = vrot.slane %v811_v55, 11  ;;  %v851_v62 = vrot.slane %v1610_v29, %v1548_v21  ;;  %v855_v63 = vrot.slane %v1610_v29, %v1550_v22  ;;  %v859_v5 = vrot.slane %v1613_v31, %v1548_v21 }
  0x5f   : > { %v828_v8 = vadd.f32 %v1287_v58, %v804_v53  ;;  %v829_v9 = vadd.f32 %v1288_v59, %v805_v54  ;;  %v830_v11 = vadd.f32 %v1289_v60, %v806_v56  ;;  %v863_v12 = vrot.slane %v1613_v31, %v1550_v22 }
  0x60   : > { %v831_v13 = vadd.f32 %v1290_v61, %v807_v57  ;;  %v867_v14 = vrot.slane %v1616_v32, %v1548_v21  ;;  %v871_v15 = vrot.slane %v1616_v32, %v1550_v22  ;;  %v875_v29 = vrot.slane %v1619_v34, %v1548_v21 }
  0x61   : > { %vm832_vm14 = vcmp.ge.f32.partialorder %v828_v8, 1.0  ;;  %vm833_vm15 = vcmp.ge.f32.partialorder %v829_v9, 1.0  ;;  %vm834_vm0 = vcmp.ge.f32.partialorder %v830_v11, 1.0  ;;  %v879_v16 = vrot.slane %v1619_v34, %v1550_v22 }
  0x62   : > { %vm835_vm1 = vcmp.ge.f32.partialorder %v831_v13, 1.0  ;;  %v1291_v31 = vsel %vm832_vm14, 1.0, %v1418_v28  ;;  %v1292_v17 = vsel %vm833_vm15, 1.0, %v1418_v28  ;;  %v1293_v18 = vsel %vm834_vm0, 1.0, %v1418_v28 }
  0x63   : > { %vm1038_vm2 = vcmask 1042432   ;;  %v1294_v32 = vsel %vm835_vm1, 1.0, %v1418_v28  ;;  %v895_v19 = vrot.slane %v1631_v0, %v1548_v21  ;;  %v899_v20 = vrot.slane %v1631_v0, %v1550_v22 }
  0x64   : > { %v903_v23 = vrot.slane %v1634_v2, %v1548_v21  ;;  %v907_v34 = vrot.slane %v1634_v2, %v1550_v22  ;;  %v911_v24 = vrot.slane %v1637_v6, %v1548_v21  ;;  %v915_v25 = vrot.slane %v1637_v6, %v1550_v22 }
  0x65   : > { %v919_v28 = vrot.slane %v1640_v10, %v1548_v21  ;;  %v923_v26 = vrot.slane %v1640_v10, %v1550_v22  ;;  %v939_v0 = vrot.slane %v1654_v1, %v1548_v21  ;;  %v943_v27 = vrot.slane %v1654_v1, %v1550_v22 }
  0x66   : > { %v947_v2 = vrot.slane %v1657_v3, %v1548_v21  ;;  %v951_v30 = vrot.slane %v1657_v3, %v1550_v22  ;;  %v955_v6 = vrot.slane %v1660_v4, %v1548_v21  ;;  %v959_v33 = vrot.slane %v1660_v4, %v1550_v22 }
  0x67   : > { %v963_v10 = vrot.slane %v1663_v7, %v1548_v21  ;;  %v967_v35 = vrot.slane %v1663_v7, %v1550_v22  ;;  %v983_v36 = vrot.slane %v1291_v31, %v1548_v21  ;;  %v987_v37 = vrot.slane %v1291_v31, %v1550_v22 }
  0x68   : > { %v991_v38 = vrot.slane %v1292_v17, %v1548_v21  ;;  %v995_v39 = vrot.slane %v1292_v17, %v1550_v22  ;;  %v999_v40 = vrot.slane %v1293_v18, %v1548_v21  ;;  %v1003_v41 = vrot.slane %v1293_v18, %v1550_v22 }
  0x69   : > { %v1007_v42 = vrot.slane %v1294_v32, %v1548_v21  ;;  %v1011_v43 = vrot.slane %v1294_v32, %v1550_v22  ;;  %v1021_v48 = vsel %vm1020_vm12, %v851_v62, %v895_v19  ;;  %v1022_v51 = vsel %vm1020_vm12, %v855_v63, %v899_v20 }
  0x6a   : > { %v1023_v44 = vsel %vm1020_vm12, %v859_v5, %v903_v23  ;;  %v1024_v52 = vsel %vm1020_vm12, %v863_v12, %v907_v34  ;;  %v1025_v45 = vsel %vm1020_vm12, %v867_v14, %v911_v24  ;;  %v1026_v55 = vsel %vm1020_vm12, %v871_v15, %v915_v25 }
  0x6b   : > { %v1027_v1 = vsel %vm1020_vm12, %v875_v29, %v919_v28  ;;  %v1028_v3 = vsel %vm1020_vm12, %v879_v16, %v923_v26  ;;  %v1030_v21 = vsel %vm1029_vm13, %v1021_v48, %v939_v0  ;;  %v1031_v22 = vsel %vm1029_vm13, %v1022_v51, %v943_v27 }
  0x6c   : > { %v1032_v4 = vsel %vm1029_vm13, %v1023_v44, %v947_v2  ;;  %v1033_v7 = vsel %vm1029_vm13, %v1024_v52, %v951_v30  ;;  %v1034_v46 = vsel %vm1029_vm13, %v1025_v45, %v955_v6  ;;  %v1035_v47 = vsel %vm1029_vm13, %v1026_v55, %v959_v33 }
  0x6d   : > { %v1036_v49 = vsel %vm1029_vm13, %v1027_v1, %v963_v10  ;;  %v1037_v50 = vsel %vm1029_vm13, %v1028_v3, %v967_v35  ;;  %v1039_v53 = vsel %vm1038_vm2, %v1030_v21, %v983_v36  ;;  %v1040_v54 = vsel %vm1038_vm2, %v1031_v22, %v987_v37 }
  0x6e   : > { %v1041_v56 = vsel %vm1038_vm2, %v1032_v4, %v991_v38  ;;  %v1042_v57 = vsel %vm1038_vm2, %v1033_v7, %v995_v39  ;;  %v1043_v58 = vsel %vm1038_vm2, %v1034_v46, %v999_v40  ;;  %v1044_v59 = vsel %vm1038_vm2, %v1035_v47, %v1003_v41 }
  0x6f   : > { %v1045_v60 = vsel %vm1038_vm2, %v1036_v49, %v1007_v42  ;;  %v1046_v61 = vsel %vm1038_vm2, %v1037_v50, %v1011_v43  ;;  %v1055_v62 = vcombine.low %v1039_v53, %v1040_v54  ;;  %v1056_v63 = vcombine.low %v1041_v56, %v1042_v57 }
  0x70   : > { %v1057_v5 = vcombine.low %v1043_v58, %v1044_v59  ;;  %v1058_v8 = vcombine.low %v1045_v60, %v1046_v61 }
  0x71   : > { %1063 = vst [vmem:[%s482_s12] sm:$0xff] %v1055_v62  ;;  %1064 = vst [vmem:[%s482_s12 + $0x8] sm:$0xff] %v1056_v63 }
  0x72   : > { %1065 = vst [vmem:[%s482_s12 + $0x10] sm:$0xff] %v1057_v5  ;;  %1066 = vst [vmem:[%s482_s12 + $0x18] sm:$0xff] %v1058_v8 }
  0x73 PF: > { %s20_s29 = sadd.s32 1, %s1410_s29   ;;  %s1779_s27 = smov %s1406_s28 }
  0x74   : > { %p17_p4 = scmp.ge.s32.totalorder %s20_s29, 4   ;;  %s1780_s28 = smov %s1782_s9 }
  0x76   :  { %19 = sbr.rel (!%p17_p4) target bundleno = 3 (0x3), region = 106 }
  0x7d   :  { %1097 = vsyncpa [#allocation3], 1 }
  0x7e   :  { %1099 = vsyncpa [#allocation3 + $0x1], 1 }
  0x7f   :  { %1100 = vsyncpa [#allocation5], 1 }

// kernel: basic_block_forward.6
= control target key start
LH: loop header
LB: loop body
LE: loop exit
PB: predicated region body
PF: predicated region fallthrough
CT: control target
= control target key end

     0   :  { %s6908_s15 = smov 0   ;;  %s8898_s0 = inlined_call_operand.vmem [shape: bf16[8,16,16,4], index: 0, kind: input, shape index: {}]   ;;  %s8899_s1 = inlined_call_operand.vmem [shape: bf16[9,4,4], index: 1, kind: input, shape index: {}]   ;;  %s8900_s2 = inlined_call_operand.vmem [shape: f32[1,4], index: 2, kind: input, shape index: {}]   ;;  %s8901_s3 = inlined_call_operand.vmem [shape: f32[2048,4], index: 3, kind: output, shape index: {0}]   ;;  %s8902_s4 = inlined_call_operand.vmem [shape: f32[8,2,4], index: 4, kind: output, shape index: {1}]  }
   0x1 LB: > { %s6914_s16 = sadd.s32 4294967295, %s6880_s15   ;;  %p5696_p0 = scmp.ge.s32.totalorder %s6880_s15, 1  ;;  %s6880_s15 = sphi %s6908_s15, %s15_s15  }
   0x2   : > { %p165_p1 = scmp.lt.s32.totalorder %s6880_s15, 9 }
   0x4   : > { %p166_p2 = pnand %p5696_p0, %p165_p1 }
   0x6   : > { %169 = sbr.rel (%p166_p2) target bundleno = 685 (0x2ad), region = 32 }
   0xd   : > { %v5702_v0 = vld [vmem:[%s8899_s1 + $0x2] sm:$0x3]  ;;  %vm1337_vm0 = vcmask 1041408   ;;  %v5849_v1 = vld [vmem:[%s8899_s1 + $0x8] sm:$0x3]  ;;  %vm211_vm1 = vcmask 27648  }
   0xe   : > { %6767 = vmatprep.subr.msk.bf16.mxu1 %vm1337_vm0, %v5702_v0  ;;  %6771 = vmatprep.subr.msk.bf16.mxu0 %vm1337_vm0, %v5849_v1  ;;  %v1339_v2 = vsel %vm1337_vm0, %v5702_v0, 0  ;;  %v6928_v3 = vsel %vm1337_vm0, %v5849_v1, 0  ;;  %vm214_vm2 = vcmask 24576   ;;  %p195_p3 = scmp.lt.s32.totalorder %s6914_s16, 7  ;;  %v6882_v4 = vmov 0   ;;  %s5699_s20 = sshll.u32 %s6914_s16, 5 }
   0xf   : > { %8922 = vst [vmem:[#allocation3_spill] sm:$0xff] %v6928_v3  ;;  %6204 = vmatpush3.bf16.msra.mxu1 %v1339_v2  ;;  %6340 = vmatpush3.bf16.msra.mxu0 %v6928_v3  ;;  %212 = vst.msk [vmem:[#allocation2] sm:$0xf] %vm211_vm1, %v6882_v4  ;;  %vm221_vm3 = vsmask.f32 256  ;;  %v8925_v7 = vmov 0 }
  0x10   : > { %213 = vst.msk [vmem:[#allocation2 + $0x4] sm:$0xf] %vm211_vm1, %v6882_v4  ;;  %vm277_vm4 = vsmask.f32 7938  ;;  %217 = vst.msk [vmem:[#allocation2 + $0xcc] sm:$0xf] %vm211_vm1, %v6882_v4 }
  0x11   : > { %215 = vst.msk [vmem:[#allocation2 + $0x8] sm:$0x1] %vm214_vm2, %v6882_v4  ;;  %219 = vst.msk [vmem:[#allocation2 + $0xd4] sm:$0x1] %vm214_vm2, %v6882_v4  ;;  %s6945_s21 = scalar_select %p195_p3, %s6914_s16, 7  ;;  %vm1288_vm12 = vcmask 31744  }
  0x12   : > { %218 = vst.msk [vmem:[#allocation2 + $0xd0] sm:$0xf] %vm211_vm1, %v6882_v4  ;;  %vm6940_vm5 = vmand %vm214_vm2, %vm221_vm3  ;;  %v226_v6 = vld [vmem:[#allocation2 + $0xc] sm:$0x1]  ;;  %v282_v9 = vld [vmem:[#allocation2 + $0x14] sm:$0x1] }
  0x13   : > { %vm6949_vm6 = vmand %vm214_vm2, %vm277_vm4  ;;  %v227_v8 = vsel %vm6940_vm5, 0, %v226_v6  ;;  %s6049_s22 = sshll.u32 %s6945_s21, 7  ;;  %v6961_v11 = vld [vmem:[%s8899_s1] sm:$0x3]  ;;  %v6966_v12 = vld [vmem:[%s8899_s1 + $0xa] sm:$0x3] }
  0x14   : > { %v8926_v7 = vsel %vm6949_vm6, 4294967295, %v8925_v7  ;;  %228 = vst [vmem:[#allocation2 + $0xc] sm:$0x1] %v227_v8  ;;  %v283_v10 = vsel %vm6949_vm6, 0, %v282_v9  ;;  %s6971_s29 = scalar_lea.vmem %s8898_s0, %s6049_s22  ;;  %vm365_vm7 = vsmask.f32 4368  ;;  %6768 = vmatprep.subr.msk.bf16.mxu1 %vm1337_vm0, %v6961_v11  ;;  %6773 = vmatprep.subr.msk.bf16.mxu0 %vm1337_vm0, %v6966_v12  ;;  %vm6991_vm8 = vmand %vm211_vm1, %vm277_vm4 }
  0x15   : > { %8927 = vst [vmem:[#allocation4_spill] sm:$0xff] %v8926_v7  ;;  %284 = vst [vmem:[#allocation2 + $0x14] sm:$0x1] %v283_v10  ;;  %v229_v13 = vld [vmem:[#allocation2 + $0x18] sm:$0x1]  ;;  %vm1842_vm14 = vcmask 1042432  }
  0x16   : > { %v285_v14 = vld [vmem:[#allocation2 + $0x20] sm:$0x1]  ;;  %v334_v16 = vld [vmem:[%s6971_s29 + $0x4] sm:$0xf]  ;;  %v230_v17 = vsel %vm6940_vm5, 0, %v229_v13  ;;  %vm6999_vm11 = vmor %vm221_vm3, %vm365_vm7  ;;  %vm1843_vm15 = vcmask 1046532  }
  0x17   : > { %v333_v15 = vld [vmem:[%s6971_s29] sm:$0xf]  ;;  %v286_v18 = vsel %vm6949_vm6, 0, %v285_v14  ;;  %v376_v21 = vshrl.u32 %v334_v16, 16  ;;  %v379_v22 = vshll.u32 %v334_v16, 16  ;;  %vm7316_vm2 = vmor %vm1842_vm14, %vm1843_vm15  ;;  %p201_p4 = scmp.lt.s32.totalorder %s5699_s20, 255 }
  0x18   : > { %v368_v19 = vshrl.u32 %v333_v15, 16  ;;  %v371_v20 = vshll.u32 %v333_v15, 16  ;;  %231 = vst [vmem:[#allocation2 + $0x18] sm:$0x1] %v230_v17  ;;  %287 = vst [vmem:[#allocation2 + $0x20] sm:$0x1] %v286_v18 }
  0x19   : > { %v335_v23 = vld [vmem:[%s6971_s29 + $0x8] sm:$0xf]  ;;  %v223_v24 = vld [vmem:[#allocation2] sm:$0x1]  ;;  %v803_v26 = vld [vmem:[#allocation2 + $0x4] sm:$0xf] }
  0x1a   : > { %v279_v25 = vld [vmem:[#allocation2 + $0x8] sm:$0x1]  ;;  %v224_v27 = vsel %vm6940_vm5, 0, %v223_v24  ;;  %v864_v29 = vshll.u32 %v803_v26, 16  ;;  %v868_v30 = vshrl.u32 %v803_v26, 16  ;;  %v370_v33 = vrot.slane %v368_v19, 7 }
  0x1b   : > { %v280_v28 = vsel %vm6949_vm6, 0, %v279_v25  ;;  %v336_v31 = vld [vmem:[%s6971_s29 + $0xc] sm:$0xf]  ;;  %225 = vst [vmem:[#allocation2] sm:$0x1] %v224_v27  ;;  %v378_v34 = vrot.slane %v376_v21, 7 }
  0x1c   : > { %281 = vst [vmem:[#allocation2 + $0x8] sm:$0x1] %v280_v28  ;;  %vm851_vm9 = vsmask.f32 3328  ;;  %vm852_vm10 = vsmask.f32 7440  ;;  %v373_v44 = vor.u32 %v371_v20, %v370_v33 }
  0x1d   : > { %v385_v35 = vshrl.u32 %v335_v23, 16  ;;  %v388_v36 = vshll.u32 %v335_v23, 16  ;;  %v232_v37 = vld [vmem:[#allocation2 + $0x24] sm:$0x1]  ;;  %v6995_v38 = vrot.slane %v864_v29, 5  ;;  %v870_v39 = vrot.slane %v868_v30, 4  ;;  %vm7042_vm13 = vmor %vm851_vm9, %vm852_vm10 }
  0x1e   : > { %v690_v41 = vld [vmem:[#allocation2 + $0xc] sm:$0xf]  ;;  %v393_v42 = vshrl.u32 %v336_v31, 16  ;;  %v396_v43 = vshll.u32 %v336_v31, 16  ;;  %v374_v45 = vrot.slane %v370_v33, 4  ;;  %v381_v46 = vor.u32 %v379_v22, %v378_v34  ;;  %s9004_s20 = smov (!%p201_p4, %s5699_s20), 255 }
  0x1f   : > { %v383_v47 = vrot.slane %v378_v34, 4  ;;  %v694_v48 = vld [vmem:[#allocation2 + $0x14] sm:$0x1]  ;;  %v288_v49 = vld [vmem:[#allocation2 + $0x2c] sm:$0x1]  ;;  %v387_v50 = vrot.slane %v385_v35, 7  ;;  %v691_v55 = vsel %vm6991_vm8, %v373_v44, %v690_v41  ;;  %v871_v0 = vor.u32 %v870_v39, %v6995_v38 }
  0x20   : > { %v395_v51 = vrot.slane %v393_v42, 7  ;;  %v233_v52 = vsel %vm6940_vm5, 0, %v232_v37  ;;  %v337_v53 = vld [vmem:[%s6971_s29 + $0x10] sm:$0xf]  ;;  %v382_v54 = vsel %vm6999_vm11, %v374_v45, %v381_v46  ;;  %v697_v57 = vld [vmem:[#allocation2 + $0x18] sm:$0xf] }
  0x21   : > { %v695_v56 = vsel %vm6940_vm5, %v383_v47, %v694_v48  ;;  %234 = vst [vmem:[#allocation2 + $0x24] sm:$0x1] %v233_v52  ;;  %v289_v58 = vsel %vm6949_vm6, 0, %v288_v49  ;;  %692 = vst [vmem:[#allocation2 + $0xc] sm:$0xf] %v691_v55  ;;  %v390_v59 = vor.u32 %v388_v36, %v387_v50  ;;  %v391_v60 = vrot.slane %v387_v50, 4 }
  0x22   : > { %693 = vst.msk [vmem:[#allocation2 + $0x10] sm:$0xf] %vm211_vm1, %v382_v54  ;;  %696 = vst [vmem:[#allocation2 + $0x14] sm:$0x1] %v695_v56  ;;  %v398_v61 = vor.u32 %v396_v43, %v395_v51  ;;  %v7016_v62 = vld [vmem:[%s6971_s29 + $0x14] sm:$0xf] }
  0x23   : > { %290 = vst [vmem:[#allocation2 + $0x2c] sm:$0x1] %v289_v58  ;;  %v235_v63 = vld [vmem:[#allocation2 + $0x30] sm:$0x1]  ;;  %v400_v1 = vrot.slane %v395_v51, 4  ;;  %v402_v4 = vshrl.u32 %v337_v53, 16  ;;  %v698_v13 = vsel %vm6991_vm8, %v390_v59, %v697_v57 }
  0x24   : > { %v701_v2 = vld [vmem:[#allocation2 + $0x20] sm:$0x1]  ;;  %v291_v6 = vld [vmem:[#allocation2 + $0x38] sm:$0x1]  ;;  %v835_v9 = vld [vmem:[#allocation2 + $0x8] sm:$0x1]  ;;  %v399_v10 = vsel %vm6999_vm11, %v391_v60, %v398_v61 }
  0x25   : > { %v802_v8 = vld [vmem:[#allocation2] sm:$0xf]  ;;  %v410_v14 = vshrl.u32 %v7016_v62, 16  ;;  %v236_v15 = vsel %vm6940_vm5, 0, %v235_v63  ;;  %v874_v18 = vshll.u32 %v835_v9, 16  ;;  %v405_v19 = vshll.u32 %v337_v53, 16 }
  0x26   : > { %v855_v16 = vshrl.u32 %v802_v8, 16  ;;  %v858_v17 = vshll.u32 %v802_v8, 16  ;;  %699 = vst [vmem:[#allocation2 + $0x18] sm:$0xf] %v698_v13  ;;  %700 = vst.msk [vmem:[#allocation2 + $0x1c] sm:$0xf] %vm211_vm1, %v399_v10  ;;  %v702_v22 = vsel %vm6940_vm5, %v400_v1, %v701_v2 }
  0x27   : > { %237 = vst [vmem:[#allocation2 + $0x30] sm:$0x1] %v236_v15  ;;  %v7028_v20 = vld [vmem:[%s6971_s29 + $0x18] sm:$0xf]  ;;  %v7032_v21 = vsel %vm1337_vm0, %v6961_v11, 0  ;;  %v7036_v23 = vrot.slane %v402_v4, 7 }
  0x28   : > { %v292_v24 = vsel %vm6949_vm6, 0, %v291_v6  ;;  %v857_v25 = vrot.slane %v855_v16, 4  ;;  %v860_v26 = vrot.slane %v858_v17, 5  ;;  %v872_v27 = vrot.slane %v871_v0, 4  ;;  %703 = vst [vmem:[#allocation2 + $0x20] sm:$0x1] %v702_v22 }
  0x29   : > { %v876_v28 = vrot.slane %v874_v18, 5  ;;  %293 = vst [vmem:[#allocation2 + $0x38] sm:$0x1] %v292_v24  ;;  %v7048_v11 = vsel %vm1337_vm0, %v6966_v12, 0  ;;  %v7050_v30 = vrot.slane %v410_v14, 7  ;;  %v413_v31 = vshll.u32 %v7016_v62, 16 }
  0x2a   : > { %v419_v33 = vshrl.u32 %v7028_v20, 16  ;;  %v861_v34 = vor.u32 %v860_v26, %v857_v25  ;;  %v7054_v35 = vld [vmem:[#allocation2 + $0xc] sm:$0xf]  ;;  %v7056_v36 = vld [vmem:[#allocation2 + $0x10] sm:$0xf]  ;;  %v7059_v39 = vor.u32 %v405_v19, %v7036_v23  ;;  %v408_v49 = vrot.slane %v7036_v23, 4 }
  0x2b   : > { %v836_v37 = vld [vmem:[#allocation2 + $0x14] sm:$0x1]  ;;  %v879_v41 = vshrl.u32 %v7054_v35, 16  ;;  %v882_v12 = vshll.u32 %v7054_v35, 16  ;;  %v888_v42 = vshll.u32 %v7056_v36, 16  ;;  %v892_v43 = vshrl.u32 %v7056_v36, 16 }
  0x2c   : > { %v2609_v44 = vld [vmem:[#allocation2 + $0xc] sm:$0xf]  ;;  %v862_v45 = vrot.slane %v861_v34, 4  ;;  %v877_v46 = vsel %vm7042_vm13, %v872_v27, %v876_v28  ;;  %v898_v47 = vshll.u32 %v836_v37, 16  ;;  %v7067_v48 = vld [vmem:[#allocation2 + $0x10] sm:$0xf]  ;;  %v415_v10 = vor.u32 %v413_v31, %v7050_v30 }
  0x2d   : > { %v881_v50 = vrot.slane %v879_v41, 4  ;;  %v884_v51 = vrot.slane %v882_v12, 5  ;;  %v890_v52 = vrot.slane %v888_v42, 5  ;;  %v894_v53 = vrot.slane %v892_v43, 4  ;;  %v7070_v54 = vld [vmem:[#allocation2 + $0x14] sm:$0x1] }
  0x2e   : > { %v867_v55 = vsel %vm7042_vm13, %v862_v45, %v6995_v38  ;;  %v900_v56 = vrot.slane %v898_v47, 5  ;;  %v2658_v57 = vshrl.u32 %v2609_v44, 16  ;;  %v2661_v58 = vshll.u32 %v2609_v44, 16  ;;  %v2612_v4 = vld [vmem:[#allocation2 + $0x18] sm:$0xf]  ;;  %s5700_s22 = sshll.u32 %s9004_s20, 3 }
  0x2f   : > { %v5703_v59 = vcombine.low %v867_v55, %v877_v46  ;;  %v885_v60 = vor.u32 %v884_v51, %v881_v50  ;;  %v895_v61 = vor.u32 %v894_v53, %v890_v52  ;;  %v2667_v62 = vshll.u32 %v7067_v48, 16  ;;  %v7079_v9 = vld [vmem:[#allocation2 + $0x1c] sm:$0xf]  ;;  %v7082_v16 = vld [vmem:[#allocation2 + $0x20] sm:$0x1]  ;;  %s8721_s26 = scalar_lea.vmem %s8901_s3, %s5700_s22  ;;  %s5701_s27 = sshll.u32 %s6945_s21, 1 }
  0x30   : > { %v2660_v63 = vrot.slane %v2658_v57, 4  ;;  %v2663_v0 = vrot.slane %v2661_v58, 5  ;;  %v2671_v1 = vshrl.u32 %v7067_v48, 16  ;;  %v2677_v2 = vshll.u32 %v7070_v54, 16  ;;  %v807_v45 = vld [vmem:[#allocation2 + $0x1c] sm:$0xf]  ;;  %s209_s30 = scalar_lea.vmem %s8902_s4, %s5701_s27 }
  0x31   : > { %6205 = vmatprep.mubr.msk.bf16.mxu1 %vm1288_vm12, %v5703_v59  ;;  %v886_v6 = vrot.slane %v885_v60, 4  ;;  %v896_v8 = vrot.slane %v895_v61, 4  ;;  %v2669_v38 = vrot.slane %v2667_v62, 5  ;;  %v417_v17 = vrot.slane %v7050_v30, 4  ;;  %v806_v30 = vld [vmem:[#allocation2 + $0x18] sm:$0xf] }
  0x32   : > { %v2664_v13 = vor.u32 %v2663_v0, %v2660_v63  ;;  %v2673_v14 = vrot.slane %v2671_v1, 4  ;;  %v2679_v15 = vrot.slane %v2677_v2, 5  ;;  %v2682_v22 = vshrl.u32 %v2612_v4, 16  ;;  %v704_v62 = vld [vmem:[#allocation2 + $0x24] sm:$0xf] }
  0x33   : > { %v891_v18 = vsel %vm7042_vm13, %v886_v6, %v890_v52  ;;  %v901_v19 = vsel %vm7042_vm13, %v896_v8, %v900_v56  ;;  %v2685_v24 = vshll.u32 %v2612_v4, 16  ;;  %v2691_v28 = vshll.u32 %v7079_v9, 16  ;;  %v837_v52 = vld [vmem:[#allocation2 + $0x20] sm:$0x1]  ;;  %v708_v2 = vld [vmem:[#allocation2 + $0x2c] sm:$0x1] }
  0x34   : > { %v5704_v25 = vcombine.low %v891_v18, %v901_v19  ;;  %v2665_v26 = vrot.slane %v2664_v13, 4  ;;  %v2674_v27 = vor.u32 %v2673_v14, %v2669_v38  ;;  %v2684_v31 = vrot.slane %v2682_v22, 4  ;;  %v340_v13 = vld [vmem:[%s6971_s29 + $0x1c] sm:$0xf] }
  0x35   : > { %v2687_v34 = vrot.slane %v2685_v24, 5  ;;  %v2695_v37 = vshrl.u32 %v7079_v9, 16  ;;  %v2701_v41 = vshll.u32 %v7082_v16, 16  ;;  %v3401_v43 = vrot.slane %v7067_v48, 5  ;;  %v238_v22 = vld [vmem:[#allocation2 + $0x3c] sm:$0x1] }
  0x36   : > { %6206 = vmatmul.mubr.msk.bf16.vlgmr.msra.gmra.mrb[0].mxu1 %vm1288_vm12, %v5704_v25  ;;  %v2670_v12 = vsel %vm7042_vm13, %v2665_v26, %v2669_v38  ;;  %v2675_v42 = vrot.slane %v2674_v27, 4  ;;  %v2693_v44 = vrot.slane %v2691_v28, 5  ;;  %v3404_v46 = vrot.slane %v7070_v54, 5  ;;  %v711_v25 = vld [vmem:[#allocation2 + $0x30] sm:$0xf] }
  0x37   : > { %6238 = vmatpush3.bf16.msra.mxu1 %v7032_v21  ;;  %v2688_v47 = vor.u32 %v2687_v34, %v2684_v31  ;;  %v2697_v50 = vrot.slane %v2695_v37, 4  ;;  %v3408_v51 = vrot.slane %v7079_v9, 5  ;;  %v2703_v55 = vrot.slane %v2701_v41, 5  ;;  %v294_v26 = vld [vmem:[#allocation2 + $0x44] sm:$0x1] }
  0x38   : > { %v2680_v53 = vsel %vm7042_vm13, %v2675_v42, %v2679_v15  ;;  %v903_v56 = vshrl.u32 %v806_v30, 16  ;;  %v906_v57 = vshll.u32 %v806_v30, 16  ;;  %v912_v61 = vshll.u32 %v807_v45, 16  ;;  %v341_v34 = vld [vmem:[%s6971_s29 + $0x20] sm:$0xf] }
  0x39   : > { %v5850_v58 = vcombine.low %v2670_v12, %v2680_v53  ;;  %v2689_v59 = vrot.slane %v2688_v47, 4  ;;  %v2698_v60 = vor.u32 %v2697_v50, %v2693_v44  ;;  %v916_v21 = vshrl.u32 %v807_v45, 16  ;;  %v342_v37 = vld [vmem:[%s6971_s29 + $0x24] sm:$0xf]  ;;  %v715_v47 = vld [vmem:[#allocation2 + $0x38] sm:$0x1] }
  0x3a   : > { %v905_v63 = vrot.slane %v903_v56, 4  ;;  %v908_v0 = vrot.slane %v906_v57, 5  ;;  %v922_v1 = vshll.u32 %v837_v52, 16  ;;  %v914_v8 = vrot.slane %v912_v61, 5 }
  0x3b   : > { %6341 = vmatprep.mubr.msk.bf16.mxu0 %vm1288_vm12, %v5850_v58  ;;  %v2694_v4 = vsel %vm7042_vm13, %v2689_v59, %v2693_v44  ;;  %v2699_v6 = vrot.slane %v2698_v60, 4  ;;  %v416_v38 = vsel %vm6999_vm11, %v408_v49, %v415_v10  ;;  %v918_v15 = vrot.slane %v916_v21, 4  ;;  %v7137_v59 = vld [vmem:[%s8899_s1 + $0xc] sm:$0x3] }
  0x3c   : > { %v909_v14 = vor.u32 %v908_v0, %v905_v63  ;;  %v924_v18 = vrot.slane %v922_v1, 5  ;;  %v705_v19 = vsel %vm6991_vm8, %v7059_v39, %v704_v62  ;;  %707 = vst.msk [vmem:[#allocation2 + $0x28] sm:$0xf] %vm211_vm1, %v416_v38  ;;  %v709_v23 = vsel %vm6940_vm5, %v417_v17, %v708_v2 }
  0x3d   : > { %v2704_v24 = vsel %vm7042_vm13, %v2699_v6, %v2703_v55  ;;  %706 = vst [vmem:[#allocation2 + $0x24] sm:$0xf] %v705_v19  ;;  %v421_v49 = vrot.slane %v419_v33, 7  ;;  %v422_v10 = vshll.u32 %v7028_v20, 16  ;;  %v919_v28 = vor.u32 %v918_v15, %v914_v8  ;;  %710 = vst [vmem:[#allocation2 + $0x2c] sm:$0x1] %v709_v23 }
  0x3e   : > { %v5851_v27 = vcombine.low %v2694_v4, %v2704_v24  ;;  %v910_v39 = vrot.slane %v909_v14, 4  ;;  %v427_v31 = vshrl.u32 %v340_v13, 16  ;;  %v430_v12 = vshll.u32 %v340_v13, 16 }
  0x3f   : > { %v424_v41 = vor.u32 %v422_v10, %v421_v49  ;;  %v425_v30 = vrot.slane %v421_v49, 4  ;;  %v239_v17 = vsel %vm6940_vm5, 0, %v238_v22  ;;  %v920_v33 = vrot.slane %v919_v28, 4 }
  0x40   : > { %6342 = vmatmul.mubr.msk.bf16.vlgmr.msra.gmra.mrb[0].mxu0 %vm1288_vm12, %v5851_v27  ;;  %v915_v20 = vsel %vm7042_vm13, %v910_v39, %v914_v8  ;;  %v429_v42 = vrot.slane %v427_v31, 7  ;;  %240 = vst [vmem:[#allocation2 + $0x3c] sm:$0x1] %v239_v17  ;;  %v295_v44 = vsel %vm6949_vm6, 0, %v294_v26  ;;  %v436_v50 = vshrl.u32 %v341_v34, 16 }
  0x41   : > { %6374 = vmatpush3.bf16.msra.mxu0 %v7048_v11  ;;  %v712_v45 = vsel %vm6991_vm8, %v424_v41, %v711_v25  ;;  %296 = vst [vmem:[#allocation2 + $0x44] sm:$0x1] %v295_v44  ;;  %v439_v52 = vshll.u32 %v341_v34, 16  ;;  %v444_v53 = vshrl.u32 %v342_v37, 16  ;;  %v925_v55 = vsel %vm7042_vm13, %v920_v33, %v924_v18 }
  0x42   : > { %v432_v56 = vor.u32 %v430_v12, %v429_v42  ;;  %v434_v57 = vrot.slane %v429_v42, 4  ;;  %713 = vst [vmem:[#allocation2 + $0x30] sm:$0xf] %v712_v45  ;;  %v447_v58 = vshll.u32 %v342_v37, 16  ;;  %v5705_v11 = vcombine.low %v915_v20, %v925_v55  ;;  %6774 = vmatprep.subr.msk.bf16.mxu0 %vm1337_vm0, %v7137_v59 }
  0x43   : > { %v809_v60 = vld [vmem:[#allocation2 + $0x28] sm:$0xf]  ;;  %v7141_v62 = vrot.slane %v436_v50, 7  ;;  %v7143_v63 = vrot.slane %v444_v53, 7 }
  0x44   : > { %v7139_v61 = vld [vmem:[#allocation2 + $0x28] sm:$0xf]  ;;  %v808_v0 = vld [vmem:[#allocation2 + $0x24] sm:$0xf]  ;;  %v936_v21 = vshll.u32 %v809_v60, 16  ;;  %v940_v1 = vshrl.u32 %v809_v60, 16  ;;  %v433_v4 = vsel %vm6999_vm11, %v425_v30, %v432_v56  ;;  %v716_v6 = vsel %vm6940_vm5, %v434_v57, %v715_v47  ;;  %6209 = vmatprep.mubr.msk.bf16.mxu1 %vm1288_vm12, %v5705_v11 }
  0x45   : > { %v2615_v2 = vld [vmem:[#allocation2 + $0x24] sm:$0xf]  ;;  %v838_v8 = vld [vmem:[#allocation2 + $0x2c] sm:$0x1]  ;;  %v927_v38 = vshrl.u32 %v808_v0, 16  ;;  %v930_v13 = vshll.u32 %v808_v0, 16  ;;  %v7154_v14 = vor.u32 %v439_v52, %v7141_v62  ;;  %v7157_v15 = vor.u32 %v447_v58, %v7143_v63 }
  0x46   : > { %714 = vst.msk [vmem:[#allocation2 + $0x34] sm:$0xf] %vm211_vm1, %v433_v4  ;;  %717 = vst [vmem:[#allocation2 + $0x38] sm:$0x1] %v716_v6  ;;  %v938_v18 = vrot.slane %v936_v21, 5  ;;  %v942_v19 = vrot.slane %v940_v1, 4 }
  0x47   : > { %v946_v22 = vshll.u32 %v838_v8, 16  ;;  %v7159_v24 = vld [vmem:[#allocation2 + $0x2c] sm:$0x1]  ;;  %v2706_v23 = vshrl.u32 %v2615_v2, 16  ;;  %v929_v49 = vrot.slane %v927_v38, 4  ;;  %v932_v10 = vrot.slane %v930_v13, 5 }
  0x48   : > { %v2709_v25 = vshll.u32 %v2615_v2, 16  ;;  %v2715_v26 = vshll.u32 %v7139_v61, 16  ;;  %v943_v27 = vor.u32 %v942_v19, %v938_v18  ;;  %v2719_v31 = vshrl.u32 %v7139_v61, 16 }
  0x49   : > { %v948_v39 = vrot.slane %v946_v22, 5  ;;  %v2708_v28 = vrot.slane %v2706_v23, 4  ;;  %v933_v34 = vor.u32 %v932_v10, %v929_v49  ;;  %v2725_v30 = vshll.u32 %v7159_v24, 16  ;;  %v2618_v12 = vld [vmem:[#allocation2 + $0x30] sm:$0xf] }
  0x4a   : > { %v2711_v37 = vrot.slane %v2709_v25, 5  ;;  %v2717_v41 = vrot.slane %v2715_v26, 5  ;;  %v944_v17 = vrot.slane %v943_v27, 4  ;;  %v2721_v20 = vrot.slane %v2719_v31, 4  ;;  %v810_v44 = vld [vmem:[#allocation2 + $0x30] sm:$0xf] }
  0x4b   : > { %v2730_v33 = vshrl.u32 %v2618_v12, 16  ;;  %v2733_v42 = vshll.u32 %v2618_v12, 16  ;;  %v934_v45 = vrot.slane %v933_v34, 4  ;;  %v2727_v50 = vrot.slane %v2725_v30, 5  ;;  %v241_v27 = vld [vmem:[#allocation2 + $0x48] sm:$0x1] }
  0x4c   : > { %v2712_v47 = vor.u32 %v2711_v37, %v2708_v28  ;;  %v951_v52 = vshrl.u32 %v810_v44, 16  ;;  %v949_v53 = vsel %vm7042_vm13, %v944_v17, %v948_v39  ;;  %v2722_v55 = vor.u32 %v2721_v20, %v2717_v41  ;;  %v718_v37 = vld [vmem:[#allocation2 + $0x3c] sm:$0xf] }
  0x4d   : > { %v7166_v56 = vld [vmem:[#allocation2 + $0x34] sm:$0xf]  ;;  %v7168_v57 = vld [vmem:[#allocation2 + $0x38] sm:$0x1]  ;;  %v2732_v58 = vrot.slane %v2730_v33, 4  ;;  %v2735_v11 = vrot.slane %v2733_v42, 5  ;;  %v939_v60 = vsel %vm7042_vm13, %v934_v45, %v938_v18 }
  0x4e   : > { %v2713_v0 = vrot.slane %v2712_v47, 4  ;;  %v2739_v21 = vshll.u32 %v7166_v56, 16  ;;  %v2743_v1 = vshrl.u32 %v7166_v56, 16  ;;  %v5706_v2 = vcombine.low %v939_v60, %v949_v53  ;;  %v811_v38 = vld [vmem:[#allocation2 + $0x34] sm:$0xf] }
  0x4f   : > { %v2723_v4 = vrot.slane %v2722_v55, 4  ;;  %v2736_v6 = vor.u32 %v2735_v11, %v2732_v58  ;;  %v2749_v8 = vshll.u32 %v7168_v57, 16  ;;  %v839_v23 = vld [vmem:[#allocation2 + $0x38] sm:$0x1]  ;;  %v953_v49 = vrot.slane %v951_v52, 4 }
  0x50   : > { %v2718_v13 = vsel %vm7042_vm13, %v2713_v0, %v2717_v41  ;;  %v2741_v19 = vrot.slane %v2739_v21, 5  ;;  %v2745_v22 = vrot.slane %v2743_v1, 4  ;;  %6210 = vmatmul.mubr.msk.bf16.gmra.mrb[4].mxu1 %vm1288_vm12, %v5706_v2  ;;  %v954_v26 = vshll.u32 %v810_v44, 16  ;;  %v297_v41 = vld [vmem:[#allocation2 + $0x50] sm:$0x1] }
  0x51   : > { %v2728_v18 = vsel %vm7042_vm13, %v2723_v4, %v2727_v50  ;;  %v2737_v10 = vrot.slane %v2736_v6, 4  ;;  %v2751_v25 = vrot.slane %v2749_v8, 5  ;;  %v960_v31 = vshll.u32 %v811_v38, 16  ;;  %v722_v33 = vld [vmem:[#allocation2 + $0x44] sm:$0x1] }
  0x52   : > { %v5852_v39 = vcombine.low %v2718_v13, %v2728_v18  ;;  %v2746_v28 = vor.u32 %v2745_v22, %v2741_v19  ;;  %v964_v34 = vshrl.u32 %v811_v38, 16  ;;  %v956_v12 = vrot.slane %v954_v26, 5  ;;  %v343_v50 = vld [vmem:[%s6971_s29 + $0x28] sm:$0xf]  ;;  %v244_v0 = vld [vmem:[#allocation2 + $0x54] sm:$0x1] }
  0x53   : > { %v2742_v30 = vsel %vm7042_vm13, %v2737_v10, %v2741_v19  ;;  %v970_v17 = vshll.u32 %v839_v23, 16  ;;  %v442_v20 = vrot.slane %v7141_v62, 4  ;;  %v962_v44 = vrot.slane %v960_v31, 5  ;;  %v344_v62 = vld [vmem:[%s6971_s29 + $0x2c] sm:$0xf] }
  0x54   : > { %6345 = vmatprep.mubr.msk.bf16.mxu0 %vm1288_vm12, %v5852_v39  ;;  %v2747_v42 = vrot.slane %v2746_v28, 4  ;;  %v966_v45 = vrot.slane %v964_v34, 4  ;;  %v451_v47 = vrot.slane %v7143_v63, 4  ;;  %v957_v52 = vor.u32 %v956_v12, %v953_v49  ;;  %v300_v21 = vld [vmem:[#allocation2 + $0x5c] sm:$0x1] }
  0x55   : > { %v972_v53 = vrot.slane %v970_v17, 5  ;;  %v450_v55 = vsel %vm6999_vm11, %v442_v20, %v7157_v15  ;;  %v719_v58 = vsel %vm6991_vm8, %v7154_v14, %v718_v37  ;;  %v242_v15 = vsel %vm6940_vm5, 0, %v241_v27  ;;  %v345_v6 = vld [vmem:[%s6971_s29 + $0x30] sm:$0xf]  ;;  %v7204_v22 = vld [vmem:[%s6971_s29 + $0x34] sm:$0xf] }
  0x56   : > { %v2752_v11 = vsel %vm7042_vm13, %v2747_v42, %v2751_v25  ;;  %v967_v60 = vor.u32 %v966_v45, %v962_v44  ;;  %720 = vst [vmem:[#allocation2 + $0x3c] sm:$0xf] %v719_v58  ;;  %721 = vst.msk [vmem:[#allocation2 + $0x40] sm:$0xf] %vm211_vm1, %v450_v55  ;;  %v723_v63 = vsel %vm6940_vm5, %v451_v47, %v722_v33  ;;  %v958_v14 = vrot.slane %v957_v52, 4 }
  0x57   : > { %v5853_v1 = vcombine.low %v2742_v30, %v2752_v11  ;;  %724 = vst [vmem:[#allocation2 + $0x44] sm:$0x1] %v723_v63  ;;  %243 = vst [vmem:[#allocation2 + $0x48] sm:$0x1] %v242_v15  ;;  %v298_v2 = vsel %vm6949_vm6, 0, %v297_v41  ;;  %v453_v4 = vshrl.u32 %v343_v50, 16  ;;  %v5736_v45 = vcombine.low %v7054_v35, %v7056_v36 }
  0x58   : > { %v968_v8 = vrot.slane %v967_v60, 4  ;;  %299 = vst [vmem:[#allocation2 + $0x50] sm:$0x1] %v298_v2  ;;  %v456_v38 = vshll.u32 %v343_v50, 16  ;;  %v461_v13 = vshrl.u32 %v344_v62, 16  ;;  %v464_v19 = vshll.u32 %v344_v62, 16 }
  0x59   : > { %6346 = vmatmul.mubr.msk.bf16.gmra.mrb[4].mxu0 %vm1288_vm12, %v5853_v1  ;;  %v963_v23 = vsel %vm7042_vm13, %v958_v14, %v962_v44  ;;  %v455_v49 = vrot.slane %v453_v4, 7  ;;  %v245_v18 = vsel %vm6940_vm5, 0, %v244_v0  ;;  %v301_v10 = vsel %vm6949_vm6, 0, %v300_v21 }
  0x5a   : > { %v3411_v25 = vrot.slane %v7082_v16, 5  ;;  %v973_v26 = vsel %vm7042_vm13, %v968_v8, %v972_v53  ;;  %v463_v27 = vrot.slane %v461_v13, 7  ;;  %246 = vst [vmem:[#allocation2 + $0x54] sm:$0x1] %v245_v18  ;;  %302 = vst [vmem:[#allocation2 + $0x5c] sm:$0x1] %v301_v10 }
  0x5b   : > { %v470_v39 = vshrl.u32 %v345_v6, 16  ;;  %v5707_v28 = vcombine.low %v963_v23, %v973_v26  ;;  %v459_v31 = vrot.slane %v455_v49, 4  ;;  %v473_v34 = vshll.u32 %v345_v6, 16 }
  0x5c   : > { %v478_v37 = vshrl.u32 %v7204_v22, 16  ;;  %v466_v41 = vor.u32 %v464_v19, %v463_v27  ;;  %v468_v30 = vrot.slane %v463_v27, 4  ;;  %v481_v17 = vshll.u32 %v7204_v22, 16 }
  0x5d   : > { %v7217_v12 = vrot.slane %v470_v39, 7  ;;  %6213 = vmatprep.mubr.msk.bf16.mxu1 %vm1288_vm12, %v5707_v28  ;;  %v812_v20 = vld [vmem:[#allocation2 + $0x3c] sm:$0xf]  ;;  %v813_v33 = vld [vmem:[#allocation2 + $0x40] sm:$0xf]  ;;  %v458_v44 = vor.u32 %v456_v38, %v455_v49 }
  0x5e   : > { %v2621_v42 = vld [vmem:[#allocation2 + $0x3c] sm:$0xf]  ;;  %v840_v47 = vld [vmem:[#allocation2 + $0x44] sm:$0x1]  ;;  %v975_v50 = vshrl.u32 %v812_v20, 16  ;;  %v978_v52 = vshll.u32 %v812_v20, 16  ;;  %v467_v63 = vsel %vm6999_vm11, %v459_v31, %v466_v41 }
  0x5f   : > { %v984_v53 = vshll.u32 %v813_v33, 16  ;;  %v988_v55 = vshrl.u32 %v813_v33, 16  ;;  %v994_v58 = vshll.u32 %v840_v47, 16  ;;  %v7223_v62 = vld [vmem:[#allocation2 + $0x40] sm:$0xf]  ;;  %v2754_v60 = vshrl.u32 %v2621_v42, 16 }
  0x60   : > { %v7225_v11 = vld [vmem:[#allocation2 + $0x44] sm:$0x1]  ;;  %v475_v15 = vor.u32 %v473_v34, %v7217_v12  ;;  %v977_v0 = vrot.slane %v975_v50, 4  ;;  %v980_v21 = vrot.slane %v978_v52, 5  ;;  %v725_v2 = vld [vmem:[#allocation2 + $0x48] sm:$0xf] }
  0x61   : > { %v986_v1 = vrot.slane %v984_v53, 5  ;;  %v990_v14 = vrot.slane %v988_v55, 4  ;;  %728 = vst.msk [vmem:[#allocation2 + $0x4c] sm:$0xf] %vm211_vm1, %v467_v63  ;;  %v996_v4 = vrot.slane %v994_v58, 5  ;;  %v2756_v6 = vrot.slane %v2754_v60, 4 }
  0x62   : > { %v2757_v8 = vshll.u32 %v2621_v42, 16  ;;  %v2763_v38 = vshll.u32 %v7223_v62, 16  ;;  %v729_v13 = vld [vmem:[#allocation2 + $0x50] sm:$0x1]  ;;  %v981_v19 = vor.u32 %v980_v21, %v977_v0  ;;  %v2767_v23 = vshrl.u32 %v7223_v62, 16 }
  0x63   : > { %v991_v22 = vor.u32 %v990_v14, %v986_v1  ;;  %v2773_v49 = vshll.u32 %v7225_v11, 16  ;;  %v732_v18 = vld [vmem:[#allocation2 + $0x54] sm:$0xf]  ;;  %v726_v27 = vsel %vm6991_vm8, %v458_v44, %v725_v2  ;;  %v730_v39 = vsel %vm6940_vm5, %v468_v30, %v729_v13  ;;  %v247_v28 = vld [vmem:[#allocation2 + $0x60] sm:$0x1] }
  0x64   : > { %v2759_v10 = vrot.slane %v2757_v8, 5  ;;  %v2765_v26 = vrot.slane %v2763_v38, 5  ;;  %v982_v31 = vrot.slane %v981_v19, 4  ;;  %v2769_v41 = vrot.slane %v2767_v23, 4  ;;  %727 = vst [vmem:[#allocation2 + $0x48] sm:$0xf] %v726_v27 }
  0x65   : > { %v992_v34 = vrot.slane %v991_v22, 4  ;;  %v2775_v20 = vrot.slane %v2773_v49, 5  ;;  %731 = vst [vmem:[#allocation2 + $0x50] sm:$0x1] %v730_v39  ;;  %v476_v42 = vrot.slane %v7217_v12, 4  ;;  %v480_v47 = vrot.slane %v478_v37, 7 }
  0x66   : > { %v2760_v33 = vor.u32 %v2759_v10, %v2756_v6  ;;  %v733_v50 = vsel %vm6991_vm8, %v475_v15, %v732_v18  ;;  %v987_v44 = vsel %vm7042_vm13, %v982_v31, %v986_v1  ;;  %v2770_v52 = vor.u32 %v2769_v41, %v2765_v26  ;;  %v736_v53 = vld [vmem:[#allocation2 + $0x5c] sm:$0x1]  ;;  %v5783_v2 = vld [vmem:[%s8899_s1 + $0x4] sm:$0x3] }
  0x67   : > { %v997_v30 = vsel %vm7042_vm13, %v992_v34, %v996_v4  ;;  %734 = vst [vmem:[#allocation2 + $0x54] sm:$0xf] %v733_v50  ;;  %v248_v55 = vsel %vm6940_vm5, 0, %v247_v28  ;;  %v483_v12 = vor.u32 %v481_v17, %v480_v47  ;;  %v485_v0 = vrot.slane %v480_v47, 4  ;;  %6769 = vmatprep.subr.msk.bf16.mxu1 %vm1337_vm0, %v5783_v2 }
  0x68   : > { %v5708_v58 = vcombine.low %v987_v44, %v997_v30  ;;  %v2761_v60 = vrot.slane %v2760_v33, 4  ;;  %v7247_v63 = vld [vmem:[#allocation2 + $0x4c] sm:$0xf]  ;;  %249 = vst [vmem:[#allocation2 + $0x60] sm:$0x1] %v248_v55  ;;  %v2771_v15 = vrot.slane %v2770_v52, 4 }
  0x69   : > { %v815_v37 = vld [vmem:[#allocation2 + $0x4c] sm:$0xf]  ;;  %v2787_v21 = vshll.u32 %v7247_v63, 16  ;;  %v2791_v1 = vshrl.u32 %v7247_v63, 16  ;;  %v484_v17 = vsel %vm6999_vm11, %v476_v42, %v483_v12  ;;  %v737_v8 = vsel %vm6940_vm5, %v485_v0, %v736_v53 }
  0x6a   : > { %v1008_v14 = vshll.u32 %v815_v37, 16  ;;  %6214 = vmatmul.mubr.msk.bf16.gmra.mrb[8].mxu1 %vm1288_vm12, %v5708_v58  ;;  %v2766_v4 = vsel %vm7042_vm13, %v2761_v60, %v2765_v26  ;;  %v1012_v6 = vshrl.u32 %v815_v37, 16  ;;  %v2776_v38 = vsel %vm7042_vm13, %v2771_v15, %v2775_v20  ;;  %735 = vst.msk [vmem:[#allocation2 + $0x58] sm:$0xf] %vm211_vm1, %v484_v17  ;;  %738 = vst [vmem:[#allocation2 + $0x5c] sm:$0x1] %v737_v8 }
  0x6b   : > { %v2789_v13 = vrot.slane %v2787_v21, 5  ;;  %v2793_v19 = vrot.slane %v2791_v1, 4  ;;  %v5854_v23 = vcombine.low %v2766_v4, %v2776_v38  ;;  %v2624_v49 = vld [vmem:[#allocation2 + $0x48] sm:$0xf]  ;;  %v7271_v37 = vrot.slane %v3408_v51, 4 }
  0x6c   : > { %v1010_v22 = vrot.slane %v1008_v14, 5  ;;  %v7265_v18 = vld [vmem:[#allocation2 + $0x50] sm:$0x1]  ;;  %v814_v10 = vld [vmem:[#allocation2 + $0x48] sm:$0xf]  ;;  %v2778_v26 = vshrl.u32 %v2624_v49, 16 }
  0x6d   : > { %v2781_v27 = vshll.u32 %v2624_v49, 16  ;;  %v2794_v39 = vor.u32 %v2793_v19, %v2789_v13  ;;  %v2797_v28 = vshll.u32 %v7265_v18, 16  ;;  %v841_v31 = vld [vmem:[#allocation2 + $0x50] sm:$0x1]  ;;  %6349 = vmatprep.mubr.msk.bf16.mxu0 %vm1288_vm12, %v5854_v23  ;;  %v999_v34 = vshrl.u32 %v814_v10, 16 }
  0x6e   : > { %v1002_v41 = vshll.u32 %v814_v10, 16  ;;  %v1014_v20 = vrot.slane %v1012_v6, 4  ;;  %v1018_v33 = vshll.u32 %v841_v31, 16  ;;  %v816_v42 = vld [vmem:[#allocation2 + $0x54] sm:$0xf]  ;;  %v2780_v47 = vrot.slane %v2778_v26, 4 }
  0x6f   : > { %v2783_v50 = vrot.slane %v2781_v27, 5  ;;  %v2795_v44 = vrot.slane %v2794_v39, 4  ;;  %v2799_v30 = vrot.slane %v2797_v28, 5  ;;  %v2627_v52 = vld [vmem:[#allocation2 + $0x54] sm:$0xf]  ;;  %v1001_v53 = vrot.slane %v999_v34, 4 }
  0x70   : > { %v1004_v55 = vrot.slane %v1002_v41, 5  ;;  %v1015_v58 = vor.u32 %v1014_v20, %v1010_v22  ;;  %v1020_v60 = vrot.slane %v1018_v33, 5  ;;  %v1023_v0 = vshrl.u32 %v816_v42, 16  ;;  %v303_v23 = vld [vmem:[#allocation2 + $0x68] sm:$0x1] }
  0x71   : > { %v2784_v12 = vor.u32 %v2783_v50, %v2780_v47  ;;  %v1026_v15 = vshll.u32 %v816_v42, 16  ;;  %v2800_v21 = vsel %vm7042_vm13, %v2795_v44, %v2799_v30  ;;  %v817_v2 = vld [vmem:[#allocation2 + $0x58] sm:$0xf]  ;;  %v842_v4 = vld [vmem:[#allocation2 + $0x5c] sm:$0x1]  ;;  %v2802_v6 = vshrl.u32 %v2627_v52, 16 }
  0x72   : > { %v1005_v1 = vor.u32 %v1004_v55, %v1001_v53  ;;  %v1016_v14 = vrot.slane %v1015_v58, 4  ;;  %v1025_v8 = vrot.slane %v1023_v0, 4  ;;  %v1032_v19 = vshll.u32 %v817_v2, 16  ;;  %v7277_v39 = vld [vmem:[#allocation2 + $0x58] sm:$0xf] }
  0x73   : > { %v2785_v17 = vrot.slane %v2784_v12, 4  ;;  %v1028_v38 = vrot.slane %v1026_v15, 5  ;;  %v1036_v26 = vshrl.u32 %v817_v2, 16  ;;  %v1042_v27 = vshll.u32 %v842_v4, 16  ;;  %v347_v28 = vld [vmem:[%s6971_s29 + $0x38] sm:$0xf] }
  0x74   : > { %v1006_v49 = vrot.slane %v1005_v1, 4  ;;  %v1021_v10 = vsel %vm7042_vm13, %v1016_v14, %v1020_v60  ;;  %v1034_v41 = vrot.slane %v1032_v19, 5  ;;  %v7282_v20 = vld [vmem:[#allocation2 + $0x5c] sm:$0x1]  ;;  %v2804_v33 = vrot.slane %v2802_v6, 4 }
  0x75   : > { %v2790_v31 = vsel %vm7042_vm13, %v2785_v17, %v2789_v13  ;;  %v1029_v34 = vor.u32 %v1028_v38, %v1025_v8  ;;  %v1038_v50 = vrot.slane %v1036_v26, 4  ;;  %v1044_v44 = vrot.slane %v1042_v27, 5  ;;  %v348_v30 = vld [vmem:[%s6971_s29 + $0x3c] sm:$0xf]  ;;  %v250_v12 = vld [vmem:[#allocation2 + $0x6c] sm:$0x1] }
  0x76   : > { %v5855_v42 = vcombine.low %v2790_v31, %v2800_v21  ;;  %v1011_v47 = vsel %vm7042_vm13, %v1006_v49, %v1010_v22  ;;  %v2805_v58 = vshll.u32 %v2627_v52, 16  ;;  %v2811_v60 = vshll.u32 %v7277_v39, 16  ;;  %v306_v13 = vld [vmem:[#allocation2 + $0x74] sm:$0x1]  ;;  %v349_v4 = vld [vmem:[%s6971_s29 + $0x40] sm:$0xf] }
  0x77   : > { %v5709_v53 = vcombine.low %v1011_v47, %v1021_v10  ;;  %v1030_v55 = vrot.slane %v1029_v34, 4  ;;  %v1039_v0 = vor.u32 %v1038_v50, %v1034_v41  ;;  %v2815_v15 = vshrl.u32 %v7277_v39, 16  ;;  %v739_v19 = vld [vmem:[#allocation2 + $0x60] sm:$0xf]  ;;  %v350_v49 = vld [vmem:[%s6971_s29 + $0x44] sm:$0xf] }
  0x78   : > { %6350 = vmatmul.mubr.msk.bf16.gmra.mrb[8].mxu0 %vm1288_vm12, %v5855_v42  ;;  %v2821_v22 = vshll.u32 %v7282_v20, 16  ;;  %v304_v21 = vsel %vm6949_vm6, 0, %v303_v23  ;;  %v2807_v1 = vrot.slane %v2805_v58, 5  ;;  %v2813_v14 = vrot.slane %v2811_v60, 5  ;;  %v3335_v47 = vld [vmem:[#allocation2 + $0xc] sm:$0xe] }
  0x79   : > { %6217 = vmatprep.mubr.msk.bf16.mxu1 %vm1288_vm12, %v5709_v53  ;;  %v1035_v52 = vsel %vm7042_vm13, %v1030_v55, %v1034_v41  ;;  %305 = vst [vmem:[#allocation2 + $0x68] sm:$0x1] %v304_v21  ;;  %v487_v2 = vshrl.u32 %v347_v28, 16  ;;  %v1040_v6 = vrot.slane %v1039_v0, 4  ;;  %v2817_v17 = vrot.slane %v2815_v15, 4 }
  0x7a   : > { %v2823_v8 = vrot.slane %v2821_v22, 5  ;;  %v490_v38 = vshll.u32 %v347_v28, 16  ;;  %v2808_v10 = vor.u32 %v2807_v1, %v2804_v33  ;;  %v495_v27 = vshrl.u32 %v348_v30, 16 }
  0x7b   : > { %v489_v26 = vrot.slane %v487_v2, 7  ;;  %v498_v23 = vshll.u32 %v348_v30, 16  ;;  %v1045_v31 = vsel %vm7042_vm13, %v1040_v6, %v1044_v44  ;;  %v2818_v34 = vor.u32 %v2817_v17, %v2813_v14  ;;  %v3336_v2 = vld [vmem:[#allocation2 + $0x18] sm:$0xe] }
  0x7c   : > { %v251_v41 = vsel %vm6940_vm5, 0, %v250_v12  ;;  %v307_v42 = vsel %vm6949_vm6, 0, %v306_v13  ;;  %v5710_v50 = vcombine.low %v1035_v52, %v1045_v31  ;;  %v2809_v53 = vrot.slane %v2808_v10, 4 }
  0x7d   : > { %v492_v28 = vor.u32 %v490_v38, %v489_v26  ;;  %v493_v55 = vrot.slane %v489_v26, 4  ;;  %252 = vst [vmem:[#allocation2 + $0x6c] sm:$0x1] %v251_v41  ;;  %308 = vst [vmem:[#allocation2 + $0x74] sm:$0x1] %v307_v42  ;;  %v2819_v33 = vrot.slane %v2818_v34, 4 }
  0x7e   : > { %v497_v58 = vrot.slane %v495_v27, 7  ;;  %v504_v30 = vshrl.u32 %v349_v4, 16  ;;  %v507_v60 = vshll.u32 %v349_v4, 16  ;;  %6218 = vmatmul.mubr.msk.bf16.gmra.mrb[12].mxu1 %vm1288_vm12, %v5710_v50  ;;  %v2814_v44 = vsel %vm7042_vm13, %v2809_v53, %v2813_v14  ;;  %v253_v14 = vld [vmem:[#allocation2 + $0x78] sm:$0x1] }
  0x7f   : > { %v740_v12 = vsel %vm6991_vm8, %v492_v28, %v739_v19  ;;  %v512_v13 = vshrl.u32 %v350_v49, 16  ;;  %v515_v0 = vshll.u32 %v350_v49, 16  ;;  %v2824_v15 = vsel %vm7042_vm13, %v2819_v33, %v2823_v8  ;;  %v309_v38 = vld [vmem:[#allocation2 + $0x80] sm:$0x1]  ;;  %v7321_v27 = vld [vmem:[%s6971_s29 + $0x48] sm:$0xf] }
  0x80   : > { %v500_v22 = vor.u32 %v498_v23, %v497_v58  ;;  %v502_v21 = vrot.slane %v497_v58, 4  ;;  %741 = vst [vmem:[#allocation2 + $0x60] sm:$0xf] %v740_v12  ;;  %v743_v52 = vld [vmem:[#allocation2 + $0x68] sm:$0x1]  ;;  %v506_v1 = vrot.slane %v504_v30, 7  ;;  %v5856_v4 = vcombine.low %v2814_v44, %v2824_v15 }
  0x81   : > { %v514_v6 = vrot.slane %v512_v13, 7  ;;  %v5882_v17 = vrot.slane %v3335_v47, 9  ;;  %v3403_v41 = vrot.slane %v3401_v43, 4  ;;  %v5883_v50 = vrot.slane %v3336_v2, 9  ;;  %v256_v33 = vld [vmem:[#allocation2 + $0x84] sm:$0x1] }
  0x82   : > { %v501_v19 = vsel %vm6999_vm11, %v493_v55, %v500_v22  ;;  %v744_v49 = vsel %vm6940_vm5, %v502_v21, %v743_v52  ;;  %v509_v8 = vor.u32 %v507_v60, %v506_v1  ;;  %v510_v10 = vrot.slane %v506_v1, 4  ;;  %6353 = vmatprep.mubr.msk.bf16.mxu0 %vm1288_vm12, %v5856_v4  ;;  %v7345_v55 = vld [vmem:[%s6971_s29 + $0x4c] sm:$0xf] }
  0x83   : > { %742 = vst.msk [vmem:[#allocation2 + $0x64] sm:$0xf] %vm211_vm1, %v501_v19  ;;  %745 = vst [vmem:[#allocation2 + $0x68] sm:$0x1] %v744_v49  ;;  %v517_v23 = vor.u32 %v515_v0, %v514_v6  ;;  %v519_v31 = vrot.slane %v514_v6, 4  ;;  %v7329_v34 = vsel %vm7316_vm2, %v5882_v17, %v3401_v43  ;;  %v7338_v53 = vsel %vm7316_vm2, %v7271_v37, %v3411_v25 }
  0x84   : > { %v746_v42 = vld [vmem:[#allocation2 + $0x6c] sm:$0xf]  ;;  %v750_v47 = vld [vmem:[#allocation2 + $0x74] sm:$0x1]  ;;  %v7342_v28 = vsel %vm1337_vm0, %v7137_v59, 0  ;;  %v7357_v25 = vsel %vm7316_vm2, %v3403_v41, %v3404_v46  ;;  %v7366_v37 = vsel %vm7316_vm2, %v5883_v50, %v3408_v51  ;;  %v254_v54 = vsel %vm6940_vm5, 0, %v253_v14 }
  0x85   : > { %v518_v48 = vsel %vm6999_vm11, %v510_v10, %v517_v23  ;;  %v747_v43 = vsel %vm6991_vm8, %v509_v8, %v746_v42  ;;  %v751_v16 = vsel %vm6940_vm5, %v519_v31, %v750_v47  ;;  %v5899_v59 = vcombine.low %v7329_v34, %v7357_v25  ;;  %255 = vst [vmem:[#allocation2 + $0x78] sm:$0x1] %v254_v54 }
  0x86   : > { %748 = vst [vmem:[#allocation2 + $0x6c] sm:$0xf] %v747_v43  ;;  %749 = vst.msk [vmem:[#allocation2 + $0x70] sm:$0xf] %vm211_vm1, %v518_v48  ;;  %v310_v46 = vsel %vm6949_vm6, 0, %v309_v38  ;;  %v5900_v60 = vcombine.low %v7366_v37, %v7338_v53  ;;  %v521_v44 = vshrl.u32 %v7321_v27, 16 }
  0x87   : > { %752 = vst [vmem:[#allocation2 + $0x74] sm:$0x1] %v751_v16  ;;  %v2630_v58 = vld [vmem:[#allocation2 + $0x60] sm:$0xf]  ;;  %311 = vst [vmem:[#allocation2 + $0x80] sm:$0x1] %v310_v46 }
  0x88   : > { %v818_v30 = vld [vmem:[#allocation2 + $0x60] sm:$0xf]  ;;  %v524_v9 = vshll.u32 %v7321_v27, 16  ;;  %v2826_v12 = vshrl.u32 %v2630_v58, 16  ;;  %v2829_v51 = vshll.u32 %v2630_v58, 16  ;;  %v7376_v15 = vrot.slane %v521_v44, 7 }
  0x89   : > { %v1047_v13 = vshrl.u32 %v818_v30, 16  ;;  %v1050_v0 = vshll.u32 %v818_v30, 16  ;;  %v529_v22 = vshrl.u32 %v7345_v55, 16  ;;  %v532_v21 = vshll.u32 %v7345_v55, 16 }
  0x8a   : > { %v257_v52 = vsel %vm6940_vm5, 0, %v256_v33  ;;  %v7382_v1 = vld [vmem:[#allocation2 + $0x64] sm:$0xf]  ;;  %v7384_v2 = vld [vmem:[#allocation2 + $0x68] sm:$0x1]  ;;  %v2828_v4 = vrot.slane %v2826_v12, 4 }
  0x8b   : > { %v2831_v6 = vrot.slane %v2829_v51, 5  ;;  %258 = vst [vmem:[#allocation2 + $0x84] sm:$0x1] %v257_v52  ;;  %v2835_v17 = vshll.u32 %v7382_v1, 16  ;;  %v2839_v14 = vshrl.u32 %v7382_v1, 16  ;;  %v2845_v38 = vshll.u32 %v7384_v2, 16 }
  0x8c   : > { %v819_v19 = vld [vmem:[#allocation2 + $0x64] sm:$0xf]  ;;  %v1049_v49 = vrot.slane %v1047_v13, 4  ;;  %v843_v10 = vld [vmem:[#allocation2 + $0x68] sm:$0x1]  ;;  %v1052_v27 = vrot.slane %v1050_v0, 5 }
  0x8d   : > { %v2832_v8 = vor.u32 %v2831_v6, %v2828_v4  ;;  %v1056_v23 = vshll.u32 %v819_v19, 16  ;;  %v1060_v31 = vshrl.u32 %v819_v19, 16  ;;  %v2837_v41 = vrot.slane %v2835_v17, 5  ;;  %v820_v33 = vld [vmem:[#allocation2 + $0x6c] sm:$0xf] }
  0x8e   : > { %v2841_v42 = vrot.slane %v2839_v14, 4  ;;  %v2847_v47 = vrot.slane %v2845_v38, 5  ;;  %v1066_v50 = vshll.u32 %v843_v10, 16  ;;  %v1053_v43 = vor.u32 %v1052_v27, %v1049_v49  ;;  %v821_v46 = vld [vmem:[#allocation2 + $0x70] sm:$0xf] }
  0x8f   : > { %v2833_v48 = vrot.slane %v2832_v8, 4  ;;  %v1058_v16 = vrot.slane %v1056_v23, 5  ;;  %v1062_v54 = vrot.slane %v1060_v31, 4  ;;  %v844_v44 = vld [vmem:[#allocation2 + $0x74] sm:$0x1]  ;;  %v1071_v12 = vshrl.u32 %v820_v33, 16 }
  0x90   : > { %v2842_v58 = vor.u32 %v2841_v42, %v2837_v41  ;;  %v1068_v30 = vrot.slane %v1066_v50, 5  ;;  %v1074_v51 = vshll.u32 %v820_v33, 16  ;;  %v1054_v0 = vrot.slane %v1053_v43, 4  ;;  %v312_v19 = vld [vmem:[#allocation2 + $0x8c] sm:$0x1] }
  0x91   : > { %v2838_v13 = vsel %vm7042_vm13, %v2833_v48, %v2837_v41  ;;  %v1063_v52 = vor.u32 %v1062_v54, %v1058_v16  ;;  %v1080_v4 = vshll.u32 %v821_v46, 16  ;;  %v1073_v17 = vrot.slane %v1071_v12, 4  ;;  %v353_v23 = vld [vmem:[%s6971_s29 + $0x50] sm:$0xf]  ;;  %v753_v33 = vld [vmem:[#allocation2 + $0x78] sm:$0xf] }
  0x92   : > { %v2843_v6 = vrot.slane %v2842_v58, 4  ;;  %v1076_v14 = vrot.slane %v1074_v51, 5  ;;  %v1084_v38 = vshrl.u32 %v821_v46, 16  ;;  %v1059_v49 = vsel %vm7042_vm13, %v1054_v0, %v1058_v16  ;;  %v354_v48 = vld [vmem:[%s6971_s29 + $0x54] sm:$0xf] }
  0x93   : > { %v1064_v8 = vrot.slane %v1063_v52, 4  ;;  %v1082_v10 = vrot.slane %v1080_v4, 5  ;;  %v1090_v27 = vshll.u32 %v844_v44, 16  ;;  %v526_v50 = vor.u32 %v524_v9, %v7376_v15  ;;  %v3337_v43 = vld [vmem:[#allocation2 + $0x24] sm:$0xe] }
  0x94   : > { %v2848_v31 = vsel %vm7042_vm13, %v2843_v6, %v2847_v47  ;;  %v1077_v41 = vor.u32 %v1076_v14, %v1073_v17  ;;  %v1086_v42 = vrot.slane %v1084_v38, 4  ;;  %v527_v16 = vrot.slane %v7376_v15, 4  ;;  %v757_v12 = vld [vmem:[#allocation2 + $0x80] sm:$0x1]  ;;  %v3338_v17 = vld [vmem:[#allocation2 + $0x30] sm:$0xe] }
  0x95   : > { %v5857_v54 = vcombine.low %v2838_v13, %v2848_v31  ;;  %v1069_v46 = vsel %vm7042_vm13, %v1064_v8, %v1068_v30  ;;  %v1092_v58 = vrot.slane %v1090_v27, 5  ;;  %v531_v52 = vrot.slane %v529_v22, 7  ;;  %v259_v8 = vld [vmem:[#allocation2 + $0x90] sm:$0x1]  ;;  %v760_v25 = vld [vmem:[#allocation2 + $0x84] sm:$0xf] }
  0x96   : > { %v5711_v44 = vcombine.low %v1059_v49, %v1069_v46  ;;  %v1078_v51 = vrot.slane %v1077_v41, 4  ;;  %v1087_v0 = vor.u32 %v1086_v42, %v1082_v10  ;;  %v754_v9 = vsel %vm6991_vm8, %v526_v50, %v753_v33  ;;  %v355_v42 = vld [vmem:[%s6971_s29 + $0x58] sm:$0xf] }
  0x97   : > { %6354 = vmatmul.mubr.msk.bf16.gmra.mrb[12].mxu0 %vm1288_vm12, %v5857_v54  ;;  %v313_v47 = vsel %vm6949_vm6, 0, %v312_v19  ;;  %v538_v13 = vshrl.u32 %v353_v23, 16  ;;  %v541_v4 = vshll.u32 %v353_v23, 16  ;;  %v534_v22 = vor.u32 %v532_v21, %v531_v52  ;;  %755 = vst [vmem:[#allocation2 + $0x78] sm:$0xf] %v754_v9 }
  0x98   : > { %6221 = vmatprep.mubr.msk.bf16.mxu1 %vm1288_vm12, %v5711_v44  ;;  %v1083_v15 = vsel %vm7042_vm13, %v1078_v51, %v1082_v10  ;;  %v1088_v30 = vrot.slane %v1087_v0, 4  ;;  %6375 = vmatprep.mubr.msk.bf16.mxu0 %vm1288_vm12, %v5899_v59  ;;  %v536_v6 = vrot.slane %v531_v52, 4  ;;  %314 = vst [vmem:[#allocation2 + $0x8c] sm:$0x1] %v313_v47  ;;  %v546_v38 = vshrl.u32 %v354_v48, 16 }
  0x99   : > { %v540_v14 = vrot.slane %v538_v13, 7  ;;  %v549_v19 = vshll.u32 %v354_v48, 16  ;;  %v5884_v49 = vrot.slane %v3337_v43, 9  ;;  %v315_v10 = vld [vmem:[#allocation2 + $0x98] sm:$0x1]  ;;  %v535_v34 = vsel %vm6999_vm11, %v527_v16, %v534_v22 }
  0x9a   : > { %v1093_v27 = vsel %vm7042_vm13, %v1088_v30, %v1092_v58  ;;  %v758_v55 = vsel %vm6940_vm5, %v536_v6, %v757_v12  ;;  %v3415_v59 = vrot.slane %v7139_v61, 5  ;;  %756 = vst.msk [vmem:[#allocation2 + $0x7c] sm:$0xf] %vm211_vm1, %v535_v34  ;;  %v548_v41 = vrot.slane %v546_v38, 7  ;;  %v7428_v54 = vld [vmem:[%s6971_s29 + $0x5c] sm:$0xf] }
  0x9b   : > { %v5712_v21 = vcombine.low %v1083_v15, %v1093_v27  ;;  %759 = vst [vmem:[#allocation2 + $0x80] sm:$0x1] %v758_v55  ;;  %v543_v23 = vor.u32 %v541_v4, %v540_v14  ;;  %v544_v31 = vrot.slane %v540_v14, 4  ;;  %v3418_v48 = vrot.slane %v7159_v24, 5  ;;  %v7433_v61 = vld [vmem:[%s8899_s1 + $0xe] sm:$0x3] }
  0x9c   : > { %v3416_v50 = vsel %vm7316_vm2, %v5884_v49, %v3415_v59  ;;  %v3417_v33 = vrot.slane %v3415_v59, 4  ;;  %v5885_v43 = vrot.slane %v3338_v17, 9  ;;  %v551_v46 = vor.u32 %v549_v19, %v548_v41  ;;  %v262_v4 = vld [vmem:[#allocation2 + $0x9c] sm:$0x1]  ;;  %v318_v30 = vld [vmem:[#allocation2 + $0xa4] sm:$0x1] }
  0x9d   : > { %6222 = vmatmul.mubr.msk.bf16.gmra.mrb[16].mxu1 %vm1288_vm12, %v5712_v21  ;;  %v553_v58 = vrot.slane %v548_v41, 4  ;;  %v761_v16 = vsel %vm6991_vm8, %v543_v23, %v760_v25  ;;  %v3422_v12 = vrot.slane %v7166_v56, 5  ;;  %v3425_v44 = vrot.slane %v7168_v57, 5 }
  0x9e   : > { %762 = vst [vmem:[#allocation2 + $0x84] sm:$0xf] %v761_v16  ;;  %v3419_v24 = vsel %vm7316_vm2, %v3417_v33, %v3418_v48  ;;  %v260_v51 = vsel %vm6940_vm5, 0, %v259_v8  ;;  %v316_v0 = vsel %vm6949_vm6, 0, %v315_v10  ;;  %v7450_v52 = vld [vmem:[#allocation2 + $0x78] sm:$0xf]  ;;  %v552_v56 = vsel %vm6999_vm11, %v544_v31, %v551_v46 }
  0x9f   : > { %6376 = vmatmul.mubr.msk.bf16.vlgmr.msra.gmra.mrb[0].mxu0 %vm1288_vm12, %v5900_v60  ;;  %v764_v9 = vld [vmem:[#allocation2 + $0x8c] sm:$0x1]  ;;  %v5901_v47 = vcombine.low %v3416_v50, %v3419_v24  ;;  %v3423_v57 = vsel %vm7316_vm2, %v5885_v43, %v3422_v12  ;;  %v3424_v13 = vrot.slane %v3422_v12, 4  ;;  %261 = vst [vmem:[#allocation2 + $0x90] sm:$0x1] %v260_v51  ;;  %v1095_v53 = vshrl.u32 %v7450_v52, 16 }
  0xa0   : > { %317 = vst [vmem:[#allocation2 + $0x98] sm:$0x1] %v316_v0  ;;  %6408 = vmatpush3.bf16.msra.mxu0 %v7342_v28  ;;  %v1098_v37 = vshll.u32 %v7450_v52, 16  ;;  %763 = vst.msk [vmem:[#allocation2 + $0x88] sm:$0xf] %vm211_vm1, %v552_v56  ;;  %v765_v60 = vsel %vm6940_vm5, %v553_v58, %v764_v9  ;;  %v555_v15 = vshrl.u32 %v355_v42, 16 }
  0xa1   : > { %766 = vst [vmem:[#allocation2 + $0x8c] sm:$0x1] %v765_v60  ;;  %6379 = vmatprep.mubr.msk.bf16.mxu0 %vm1288_vm12, %v5901_v47  ;;  %v3426_v22 = vsel %vm7316_vm2, %v3424_v13, %v3425_v44  ;;  %v558_v6 = vshll.u32 %v355_v42, 16  ;;  %v563_v28 = vshrl.u32 %v7428_v54, 16  ;;  %v566_v17 = vshll.u32 %v7428_v54, 16  ;;  %6775 = vmatprep.subr.msk.bf16.mxu0 %vm1337_vm0, %v7433_v61 }
  0xa2   : > { %v7469_v14 = vld [vmem:[#allocation2 + $0x7c] sm:$0xf]  ;;  %v845_v38 = vld [vmem:[#allocation2 + $0x80] sm:$0x1]  ;;  %v1097_v19 = vrot.slane %v1095_v53, 4  ;;  %v1100_v49 = vrot.slane %v1098_v37, 5  ;;  %v5902_v8 = vcombine.low %v3423_v57, %v3426_v22 }
  0xa3   : > { %v1104_v10 = vshll.u32 %v7469_v14, 16  ;;  %v1108_v27 = vshrl.u32 %v7469_v14, 16  ;;  %v1114_v34 = vshll.u32 %v845_v38, 16  ;;  %v557_v55 = vrot.slane %v555_v15, 7  ;;  %v357_v48 = vld [vmem:[%s6971_s29 + $0x60] sm:$0xf] }
  0xa4   : > { %v1101_v25 = vor.u32 %v1100_v49, %v1097_v19  ;;  %v565_v59 = vrot.slane %v563_v28, 7  ;;  %v263_v21 = vsel %vm6940_vm5, 0, %v262_v4  ;;  %v319_v23 = vsel %vm6949_vm6, 0, %v318_v30  ;;  %v358_v30 = vld [vmem:[%s6971_s29 + $0x64] sm:$0xf] }
  0xa5   : > { %v1106_v31 = vrot.slane %v1104_v10, 5  ;;  %v1110_v41 = vrot.slane %v1108_v27, 4  ;;  %v1116_v42 = vrot.slane %v1114_v34, 5  ;;  %v7477_v50 = vld [vmem:[#allocation2 + $0x84] sm:$0xf]  ;;  %v560_v33 = vor.u32 %v558_v6, %v557_v55 }
  0xa6   : > { %264 = vst [vmem:[#allocation2 + $0x9c] sm:$0x1] %v263_v21  ;;  %320 = vst [vmem:[#allocation2 + $0xa4] sm:$0x1] %v319_v23  ;;  %v1102_v43 = vrot.slane %v1101_v25, 4  ;;  %v1119_v54 = vshrl.u32 %v7477_v50, 16  ;;  %v568_v44 = vor.u32 %v566_v17, %v565_v59 }
  0xa7   : > { %v1122_v46 = vshll.u32 %v7477_v50, 16  ;;  %v561_v58 = vrot.slane %v557_v55, 4  ;;  %v767_v16 = vld [vmem:[#allocation2 + $0x90] sm:$0xf]  ;;  %v1111_v12 = vor.u32 %v1110_v41, %v1106_v31  ;;  %v7482_v24 = vld [vmem:[#allocation2 + $0x88] sm:$0xf]  ;;  %6380 = vmatmul.mubr.msk.bf16.gmra.mrb[4].mxu0 %vm1288_vm12, %v5902_v8 }
  0xa8   : > { %v570_v51 = vrot.slane %v565_v59, 4  ;;  %v768_v0 = vsel %vm6991_vm8, %v560_v33, %v767_v16  ;;  %v771_v56 = vld [vmem:[#allocation2 + $0x98] sm:$0x1]  ;;  %v1107_v9 = vsel %vm7042_vm13, %v1102_v43, %v1106_v31  ;;  %v846_v47 = vld [vmem:[#allocation2 + $0x8c] sm:$0x1]  ;;  %v1121_v57 = vrot.slane %v1119_v54, 4 }
  0xa9   : > { %v1124_v13 = vrot.slane %v1122_v46, 5  ;;  %v1128_v4 = vshll.u32 %v7482_v24, 16  ;;  %769 = vst [vmem:[#allocation2 + $0x90] sm:$0xf] %v768_v0  ;;  %v1112_v53 = vrot.slane %v1111_v12, 4  ;;  %v1132_v37 = vshrl.u32 %v7482_v24, 16 }
  0xaa   : > { %v1138_v60 = vshll.u32 %v846_v47, 16  ;;  %v569_v15 = vsel %vm6999_vm11, %v561_v58, %v568_v44  ;;  %v772_v28 = vsel %vm6940_vm5, %v570_v51, %v771_v56  ;;  %v572_v17 = vshrl.u32 %v357_v48, 16  ;;  %v3339_v38 = vld [vmem:[#allocation2 + $0x3c] sm:$0xe]  ;;  %v3340_v59 = vld [vmem:[#allocation2 + $0x48] sm:$0xe] }
  0xab   : > { %v1125_v22 = vor.u32 %v1124_v13, %v1121_v57  ;;  %v1130_v6 = vrot.slane %v1128_v4, 5  ;;  %770 = vst.msk [vmem:[#allocation2 + $0x94] sm:$0xf] %vm211_vm1, %v569_v15  ;;  %v1117_v19 = vsel %vm7042_vm13, %v1112_v53, %v1116_v42  ;;  %v1134_v49 = vrot.slane %v1132_v37, 4  ;;  %773 = vst [vmem:[#allocation2 + $0x98] sm:$0x1] %v772_v28 }
  0xac   : > { %v1140_v8 = vrot.slane %v1138_v60, 5  ;;  %v575_v10 = vshll.u32 %v357_v48, 16  ;;  %v5713_v27 = vcombine.low %v1107_v9, %v1117_v19  ;;  %v574_v55 = vrot.slane %v572_v17, 7  ;;  %v265_v47 = vld [vmem:[#allocation2 + $0xa8] sm:$0x1] }
  0xad   : > { %v1126_v34 = vrot.slane %v1125_v22, 4  ;;  %v580_v25 = vshrl.u32 %v358_v30, 16  ;;  %v1135_v21 = vor.u32 %v1134_v49, %v1130_v6  ;;  %v583_v23 = vshll.u32 %v358_v30, 16  ;;  %v774_v31 = vld [vmem:[#allocation2 + $0x9c] sm:$0xf] }
  0xae   : > { %v5886_v41 = vrot.slane %v3339_v38, 9  ;;  %v3429_v33 = vrot.slane %v7223_v62, 5  ;;  %6225 = vmatprep.mubr.msk.bf16.mxu1 %vm1288_vm12, %v5713_v27  ;;  %v577_v43 = vor.u32 %v575_v10, %v574_v55  ;;  %v578_v54 = vrot.slane %v574_v55, 4  ;;  %v778_v9 = vld [vmem:[#allocation2 + $0xa4] sm:$0x1] }
  0xaf   : > { %v1131_v42 = vsel %vm7042_vm13, %v1126_v34, %v1130_v6  ;;  %v582_v46 = vrot.slane %v580_v25, 7  ;;  %v1136_v48 = vrot.slane %v1135_v21, 4  ;;  %v3432_v44 = vrot.slane %v7225_v11, 5  ;;  %v321_v37 = vld [vmem:[#allocation2 + $0xb0] sm:$0x1] }
  0xb0   : > { %v7503_v58 = vld [vmem:[#allocation2 + $0x90] sm:$0xf]  ;;  %v3430_v16 = vsel %vm7316_vm2, %v5886_v41, %v3429_v33  ;;  %v3431_v12 = vrot.slane %v3429_v33, 4  ;;  %v775_v4 = vsel %vm6991_vm8, %v577_v43, %v774_v31  ;;  %v5887_v53 = vrot.slane %v3340_v59, 9  ;;  %v359_v49 = vld [vmem:[%s6971_s29 + $0x68] sm:$0xf] }
  0xb1   : > { %v1143_v51 = vshrl.u32 %v7503_v58, 16  ;;  %v1146_v62 = vshll.u32 %v7503_v58, 16  ;;  %v585_v0 = vor.u32 %v583_v23, %v582_v46  ;;  %v587_v56 = vrot.slane %v582_v46, 4  ;;  %776 = vst [vmem:[#allocation2 + $0x9c] sm:$0xf] %v775_v4 }
  0xb2   : > { %v1141_v57 = vsel %vm7042_vm13, %v1136_v48, %v1140_v8  ;;  %v7512_v13 = vld [vmem:[#allocation2 + $0x94] sm:$0xf]  ;;  %v3433_v11 = vsel %vm7316_vm2, %v3431_v12, %v3432_v44  ;;  %v847_v15 = vld [vmem:[#allocation2 + $0x98] sm:$0x1]  ;;  %v3436_v34 = vrot.slane %v7247_v63, 5  ;;  %v3439_v23 = vrot.slane %v7265_v18, 5 }
  0xb3   : > { %v5714_v60 = vcombine.low %v1131_v42, %v1141_v57  ;;  %v1145_v30 = vrot.slane %v1143_v51, 4  ;;  %v1148_v22 = vrot.slane %v1146_v62, 5  ;;  %v1152_v6 = vshll.u32 %v7512_v13, 16  ;;  %v360_v55 = vld [vmem:[%s6971_s29 + $0x6c] sm:$0xf] }
  0xb4   : > { %v1156_v28 = vshrl.u32 %v7512_v13, 16  ;;  %v1162_v17 = vshll.u32 %v847_v15, 16  ;;  %v586_v38 = vsel %vm6999_vm11, %v578_v54, %v585_v0  ;;  %v779_v19 = vsel %vm6940_vm5, %v587_v56, %v778_v9  ;;  %v268_v25 = vld [vmem:[#allocation2 + $0xb4] sm:$0x1]  ;;  %v324_v41 = vld [vmem:[#allocation2 + $0xbc] sm:$0x1] }
  0xb5   : > { %6226 = vmatmul.mubr.msk.bf16.gmra.mrb[20].mxu1 %vm1288_vm12, %v5714_v60  ;;  %v1149_v8 = vor.u32 %v1148_v22, %v1145_v30  ;;  %v1154_v10 = vrot.slane %v1152_v6, 5  ;;  %777 = vst.msk [vmem:[#allocation2 + $0xa0] sm:$0xf] %vm211_vm1, %v586_v38  ;;  %780 = vst [vmem:[#allocation2 + $0xa4] sm:$0x1] %v779_v19  ;;  %v5903_v27 = vcombine.low %v3430_v16, %v3433_v11  ;;  %v266_v31 = vsel %vm6940_vm5, 0, %v265_v47 }
  0xb6   : > { %v1158_v59 = vrot.slane %v1156_v28, 4  ;;  %v1164_v21 = vrot.slane %v1162_v17, 5  ;;  %v3437_v42 = vsel %vm7316_vm2, %v5887_v53, %v3436_v34  ;;  %v3438_v43 = vrot.slane %v3436_v34, 4  ;;  %267 = vst [vmem:[#allocation2 + $0xa8] sm:$0x1] %v266_v31 }
  0xb7   : > { %v1150_v33 = vrot.slane %v1149_v8, 4  ;;  %6383 = vmatprep.mubr.msk.bf16.mxu0 %vm1288_vm12, %v5903_v27  ;;  %v322_v63 = vsel %vm6949_vm6, 0, %v321_v37  ;;  %v589_v46 = vshrl.u32 %v359_v49, 16  ;;  %v592_v48 = vshll.u32 %v359_v49, 16  ;;  %v361_v16 = vld [vmem:[%s6971_s29 + $0x70] sm:$0xf] }
  0xb8   : > { %v1159_v54 = vor.u32 %v1158_v59, %v1154_v10  ;;  %323 = vst [vmem:[#allocation2 + $0xb0] sm:$0x1] %v322_v63  ;;  %v597_v18 = vshrl.u32 %v360_v55, 16  ;;  %v3440_v44 = vsel %vm7316_vm2, %v3438_v43, %v3439_v23  ;;  %v600_v51 = vshll.u32 %v360_v55, 16  ;;  %v7544_v56 = vld [vmem:[#allocation2 + $0x9c] sm:$0xf] }
  0xb9   : > { %v1155_v12 = vsel %vm7042_vm13, %v1150_v33, %v1154_v10  ;;  %v269_v62 = vsel %vm6940_vm5, 0, %v268_v25  ;;  %v5904_v9 = vcombine.low %v3437_v42, %v3440_v44  ;;  %v591_v47 = vrot.slane %v589_v46, 7  ;;  %v362_v17 = vld [vmem:[%s6971_s29 + $0x74] sm:$0xf]  ;;  %v3342_v42 = vld [vmem:[#allocation2 + $0x60] sm:$0xe] }
  0xba   : > { %v1160_v0 = vrot.slane %v1159_v54, 4  ;;  %v599_v57 = vrot.slane %v597_v18, 7  ;;  %270 = vst [vmem:[#allocation2 + $0xb4] sm:$0x1] %v269_v62  ;;  %v1167_v4 = vshrl.u32 %v7544_v56, 16  ;;  %v1170_v11 = vshll.u32 %v7544_v56, 16 }
  0xbb   : > { %v325_v53 = vsel %vm6949_vm6, 0, %v324_v41  ;;  %v606_v37 = vshrl.u32 %v361_v16, 16  ;;  %6384 = vmatmul.mubr.msk.bf16.gmra.mrb[8].mxu0 %vm1288_vm12, %v5904_v9  ;;  %v594_v22 = vor.u32 %v592_v48, %v591_v47  ;;  %v595_v6 = vrot.slane %v591_v47, 4  ;;  %v3341_v10 = vld [vmem:[#allocation2 + $0x54] sm:$0xe] }
  0xbc   : > { %v1165_v60 = vsel %vm7042_vm13, %v1160_v0, %v1164_v21  ;;  %v7552_v15 = vld [vmem:[#allocation2 + $0xa0] sm:$0xf]  ;;  %v848_v30 = vld [vmem:[#allocation2 + $0xa4] sm:$0x1]  ;;  %v602_v28 = vor.u32 %v600_v51, %v599_v57  ;;  %326 = vst [vmem:[#allocation2 + $0xbc] sm:$0x1] %v325_v53 }
  0xbd   : > { %v5715_v38 = vcombine.low %v1155_v12, %v1165_v60  ;;  %v1169_v19 = vrot.slane %v1167_v4, 4  ;;  %v1172_v49 = vrot.slane %v1170_v11, 5  ;;  %v1176_v8 = vshll.u32 %v7552_v15, 16  ;;  %v781_v59 = vld [vmem:[#allocation2 + $0xa8] sm:$0xf] }
  0xbe   : > { %v1180_v27 = vshrl.u32 %v7552_v15, 16  ;;  %v1186_v34 = vshll.u32 %v848_v30, 16  ;;  %v603_v55 = vsel %vm6999_vm11, %v595_v6, %v602_v28  ;;  %v604_v25 = vrot.slane %v599_v57, 4  ;;  %v2634_v57 = vld [vmem:[#allocation2 + $0x70] sm:$0xf] }
  0xbf   : > { %6229 = vmatprep.mubr.msk.bf16.mxu1 %vm1288_vm12, %v5715_v38  ;;  %v1173_v21 = vor.u32 %v1172_v49, %v1169_v19  ;;  %v1178_v23 = vrot.slane %v1176_v8, 5  ;;  %v782_v31 = vsel %vm6991_vm8, %v594_v22, %v781_v59  ;;  %784 = vst.msk [vmem:[#allocation2 + $0xac] sm:$0xf] %vm211_vm1, %v603_v55  ;;  %v785_v41 = vld [vmem:[#allocation2 + $0xb0] sm:$0x1]  ;;  %v608_v33 = vrot.slane %v606_v37, 7 }
  0xc0   : > { %v1182_v43 = vrot.slane %v1180_v27, 4  ;;  %v1188_v63 = vrot.slane %v1186_v34, 5  ;;  %783 = vst [vmem:[#allocation2 + $0xa8] sm:$0xf] %v782_v31  ;;  %v786_v54 = vsel %vm6940_vm5, %v604_v25, %v785_v41  ;;  %v609_v46 = vshll.u32 %v361_v16, 16 }
  0xc1   : > { %v1174_v48 = vrot.slane %v1173_v21, 4  ;;  %787 = vst [vmem:[#allocation2 + $0xb0] sm:$0x1] %v786_v54  ;;  %v612_v18 = vrot.slane %v608_v33, 4  ;;  %v614_v12 = vshrl.u32 %v362_v17, 16  ;;  %v617_v44 = vshll.u32 %v362_v17, 16 }
  0xc2   : > { %v788_v51 = vld [vmem:[#allocation2 + $0xb4] sm:$0xf]  ;;  %v1183_v62 = vor.u32 %v1182_v43, %v1178_v23  ;;  %v611_v0 = vor.u32 %v609_v46, %v608_v33  ;;  %v5888_v9 = vrot.slane %v3341_v10, 9  ;;  %v3443_v47 = vrot.slane %v7277_v39, 5  ;;  %v3343_v16 = vld [vmem:[#allocation2 + $0x6c] sm:$0xe] }
  0xc3   : > { %v1179_v4 = vsel %vm7042_vm13, %v1174_v48, %v1178_v23  ;;  %v616_v11 = vrot.slane %v614_v12, 7  ;;  %v3446_v53 = vrot.slane %v7282_v20, 5  ;;  %v5889_v37 = vrot.slane %v3342_v42, 9  ;;  %v792_v39 = vld [vmem:[#allocation2 + $0xbc] sm:$0x1] }
  0xc4   : > { %v1184_v60 = vrot.slane %v1183_v62, 4  ;;  %v789_v30 = vsel %vm6991_vm8, %v611_v0, %v788_v51  ;;  %v3444_v22 = vsel %vm7316_vm2, %v5888_v9, %v3443_v47  ;;  %v3445_v6 = vrot.slane %v3443_v47, 4  ;;  %v2635_v33 = vld [vmem:[#allocation2 + $0x74] sm:$0x1] }
  0xc5   : > { %v619_v28 = vor.u32 %v617_v44, %v616_v11  ;;  %v621_v17 = vrot.slane %v616_v11, 4  ;;  %790 = vst [vmem:[#allocation2 + $0xb4] sm:$0xf] %v789_v30  ;;  %v3450_v38 = vrot.slane %v7382_v1, 5  ;;  %v3453_v19 = vrot.slane %v7384_v2, 5 }
  0xc6   : > { %v1189_v20 = vsel %vm7042_vm13, %v1184_v60, %v1188_v63  ;;  %v7578_v49 = vld [vmem:[#allocation2 + $0xac] sm:$0xf]  ;;  %v3447_v8 = vsel %vm7316_vm2, %v3445_v6, %v3446_v53  ;;  %v5890_v10 = vrot.slane %v3343_v16, 9  ;;  %v3457_v27 = vrot.slane %v2634_v57, 5  ;;  %v7610_v30 = vld [vmem:[#allocation2 + $0x7c] sm:$0xf] }
  0xc7   : > { %v5716_v34 = vcombine.low %v1179_v4, %v1189_v20  ;;  %v7582_v55 = vld [vmem:[#allocation2 + $0xa8] sm:$0xf]  ;;  %v1200_v25 = vshll.u32 %v7578_v49, 16  ;;  %v1204_v59 = vshrl.u32 %v7578_v49, 16  ;;  %v620_v1 = vsel %vm6999_vm11, %v612_v18, %v619_v28 }
  0xc8   : > { %v7588_v2 = vld [vmem:[#allocation2 + $0xb0] sm:$0x1]  ;;  %v1191_v21 = vshrl.u32 %v7582_v55, 16  ;;  %v1194_v23 = vshll.u32 %v7582_v55, 16  ;;  %791 = vst.msk [vmem:[#allocation2 + $0xb8] sm:$0xf] %vm211_vm1, %v620_v1  ;;  %v793_v31 = vsel %vm6940_vm5, %v621_v17, %v792_v39  ;;  %v5905_v41 = vcombine.low %v3444_v22, %v3447_v8 }
  0xc9   : > { %6230 = vmatmul.mubr.msk.bf16.gmra.mrb[24].mxu1 %vm1288_vm12, %v5716_v34  ;;  %v1202_v42 = vrot.slane %v1200_v25, 5  ;;  %v1206_v43 = vrot.slane %v1204_v59, 4  ;;  %v1210_v63 = vshll.u32 %v7588_v2, 16  ;;  %794 = vst [vmem:[#allocation2 + $0xbc] sm:$0x1] %v793_v31  ;;  %v3451_v48 = vsel %vm7316_vm2, %v5889_v37, %v3450_v38 }
  0xca   : > { %v1193_v54 = vrot.slane %v1191_v21, 4  ;;  %v1196_v46 = vrot.slane %v1194_v23, 5  ;;  %6387 = vmatprep.mubr.msk.bf16.mxu0 %vm1288_vm12, %v5905_v41  ;;  %v3452_v18 = vrot.slane %v3450_v38, 4  ;;  %v3459_v51 = vrot.slane %v3457_v27, 4  ;;  %v3344_v22 = vld [vmem:[#allocation2 + $0x78] sm:$0xe] }
  0xcb   : > { %v1207_v12 = vor.u32 %v1206_v43, %v1202_v42  ;;  %v1212_v44 = vrot.slane %v1210_v63, 5  ;;  %v3460_v62 = vrot.slane %v2635_v33, 5  ;;  %v3458_v57 = vsel %vm7316_vm2, %v5890_v10, %v3457_v27  ;;  %v2640_v34 = vld [vmem:[#allocation2 + $0x88] sm:$0xf]  ;;  %v3345_v21 = vld [vmem:[#allocation2 + $0x84] sm:$0xe] }
  0xcc   : > { %v1197_v0 = vor.u32 %v1196_v46, %v1193_v54  ;;  %v7600_v9 = vld [vmem:[#allocation2 + $0xb4] sm:$0xf]  ;;  %v3454_v47 = vsel %vm7316_vm2, %v3452_v18, %v3453_v19  ;;  %v7617_v19 = vld [vmem:[#allocation2 + $0x80] sm:$0x1]  ;;  %v5891_v41 = vrot.slane %v3344_v22, 9  ;;  %v3464_v43 = vrot.slane %v7610_v30, 5 }
  0xcd   : > { %v1208_v4 = vrot.slane %v1207_v12, 4  ;;  %v1215_v11 = vshrl.u32 %v7600_v9, 16  ;;  %v1218_v53 = vshll.u32 %v7600_v9, 16  ;;  %v5906_v37 = vcombine.low %v3451_v48, %v3454_v47  ;;  %v2641_v33 = vld [vmem:[#allocation2 + $0x8c] sm:$0x1] }
  0xce   : > { %v1198_v16 = vrot.slane %v1197_v0, 4  ;;  %v3461_v60 = vsel %vm7316_vm2, %v3459_v51, %v3460_v62  ;;  %v2643_v63 = vld [vmem:[#allocation2 + $0x94] sm:$0xf]  ;;  %v3346_v54 = vld [vmem:[#allocation2 + $0x90] sm:$0xe]  ;;  %v3467_v18 = vrot.slane %v7617_v19, 5  ;;  %v3465_v62 = vsel %vm7316_vm2, %v5891_v41, %v3464_v43 }
  0xcf   : > { %v1213_v6 = vsel %vm7042_vm13, %v1208_v4, %v1212_v44  ;;  %v7614_v28 = vld [vmem:[#allocation2 + $0xb8] sm:$0xf]  ;;  %v1217_v17 = vrot.slane %v1215_v11, 4  ;;  %v1220_v39 = vrot.slane %v1218_v53, 5  ;;  %6388 = vmatmul.mubr.msk.bf16.gmra.mrb[12].mxu0 %vm1288_vm12, %v5906_v37  ;;  %v5907_v38 = vcombine.low %v3458_v57, %v3461_v60  ;;  %v3347_v57 = vld [vmem:[#allocation2 + $0x9c] sm:$0xe] }
  0xd0   : > { %v1203_v20 = vsel %vm7042_vm13, %v1198_v16, %v1202_v42  ;;  %v7621_v8 = vld [vmem:[#allocation2 + $0xbc] sm:$0x1]  ;;  %v1224_v10 = vshll.u32 %v7614_v28, 16  ;;  %v1228_v27 = vshrl.u32 %v7614_v28, 16  ;;  %v5892_v12 = vrot.slane %v3345_v21, 9 }
  0xd1   : > { %v5717_v25 = vcombine.low %v1203_v20, %v1213_v6  ;;  %v1221_v59 = vor.u32 %v1220_v39, %v1217_v17  ;;  %v1234_v1 = vshll.u32 %v7621_v8, 16  ;;  %6391 = vmatprep.mubr.msk.bf16.mxu0 %vm1288_vm12, %v5907_v38  ;;  %v2644_v44 = vld [vmem:[#allocation2 + $0x98] sm:$0x1]  ;;  %v3466_v0 = vrot.slane %v3464_v43, 4  ;;  %v2646_v16 = vld [vmem:[#allocation2 + $0xa0] sm:$0xf] }
  0xd2   : > { %v1226_v23 = vrot.slane %v1224_v10, 5  ;;  %v1230_v31 = vrot.slane %v1228_v27, 4  ;;  %v3471_v47 = vrot.slane %v2640_v34, 5  ;;  %v3474_v11 = vrot.slane %v2641_v33, 5  ;;  %v2647_v39 = vld [vmem:[#allocation2 + $0xa4] sm:$0x1] }
  0xd3   : > { %6233 = vmatprep.mubr.msk.bf16.mxu1 %vm1288_vm12, %v5717_v25  ;;  %v1222_v42 = vrot.slane %v1221_v59, 4  ;;  %v1236_v48 = vrot.slane %v1234_v1, 5  ;;  %v5893_v53 = vrot.slane %v3346_v54, 9  ;;  %v3478_v37 = vrot.slane %v2643_v63, 5  ;;  %v7640_v20 = vld [vmem:[#allocation2 + $0x4] sm:$0xf] }
  0xd4   : > { %v1231_v46 = vor.u32 %v1230_v31, %v1226_v23  ;;  %v3468_v60 = vsel %vm7316_vm2, %v3466_v0, %v3467_v18  ;;  %v3472_v22 = vsel %vm7316_vm2, %v5892_v12, %v3471_v47  ;;  %v3473_v6 = vrot.slane %v3471_v47, 4  ;;  %v6819_v10 = vld [vmem:[#allocation2] sm:$0xf]  ;;  %v2649_v59 = vld [vmem:[#allocation2 + $0xac] sm:$0xf] }
  0xd5   : > { %v1227_v51 = vsel %vm7042_vm13, %v1222_v42, %v1226_v23  ;;  %v3481_v17 = vrot.slane %v2644_v44, 5  ;;  %v5735_v27 = vcombine.low %v6819_v10, %v7640_v20  ;;  %v5908_v34 = vcombine.low %v3465_v62, %v3468_v60  ;;  %v7645_v41 = vld [vmem:[#allocation2 + $0xb8] sm:$0xf]  ;;  %v3348_v43 = vld [vmem:[#allocation2 + $0xa8] sm:$0xe] }
  0xd6   : > { %v1232_v4 = vrot.slane %v1231_v46, 4  ;;  %v3480_v25 = vrot.slane %v3478_v37, 4  ;;  %v3475_v21 = vsel %vm7316_vm2, %v3473_v6, %v3474_v11  ;;  %v5894_v23 = vrot.slane %v3347_v57, 9  ;;  %v271_v63 = vld [vmem:[#allocation2 + $0xc0] sm:$0x1] }
  0xd7   : > { %v3485_v31 = vrot.slane %v2646_v16, 5  ;;  %6392 = vmatmul.mubr.msk.bf16.gmra.mrb[16].mxu0 %vm1288_vm12, %v5908_v34  ;;  %v5909_v33 = vcombine.low %v3472_v22, %v3475_v21  ;;  %v3488_v42 = vrot.slane %v2647_v39, 5  ;;  %v3479_v54 = vsel %vm7316_vm2, %v5893_v53, %v3478_v37  ;;  %v2650_v18 = vld [vmem:[#allocation2 + $0xb0] sm:$0x1]  ;;  %v327_v44 = vld [vmem:[#allocation2 + $0xc8] sm:$0x1] }
  0xd8   : > { %v1237_v38 = vsel %vm7042_vm13, %v1232_v4, %v1236_v48  ;;  %v3482_v46 = vsel %vm7316_vm2, %v3480_v25, %v3481_v17  ;;  %v3492_v12 = vrot.slane %v2649_v59, 5  ;;  %v3499_v62 = vrot.slane %v7645_v41, 5  ;;  %v363_v0 = vld [vmem:[%s6971_s29 + $0x78] sm:$0xf]  ;;  %v364_v47 = vld [vmem:[%s6971_s29 + $0x7c] sm:$0xf] }
  0xd9   : > { %v5718_v1 = vcombine.low %v1227_v51, %v1237_v38  ;;  %v3487_v48 = vrot.slane %v3485_v31, 4  ;;  %6395 = vmatprep.mubr.msk.bf16.mxu0 %vm1288_vm12, %v5909_v33  ;;  %v3486_v51 = vsel %vm7316_vm2, %v5894_v23, %v3485_v31  ;;  %v6820_v57 = vld [vmem:[#allocation2 + $0x18] sm:$0xf]  ;;  %v7660_v4 = vld [vmem:[#allocation2 + $0x1c] sm:$0xf]  ;;  %v5895_v37 = vrot.slane %v3348_v43, 9 }
  0xda   : > { %v5737_v11 = vcombine.low %v6820_v57, %v7660_v4  ;;  %v2653_v16 = vld [vmem:[#allocation2 + $0xbc] sm:$0x1]  ;;  %v3349_v60 = vld [vmem:[#allocation2 + $0xb4] sm:$0xe]  ;;  %v272_v22 = vsel %vm6940_vm5, 0, %v271_v63  ;;  %v5910_v6 = vcombine.low %v3479_v54, %v3482_v46  ;;  %v3494_v17 = vrot.slane %v3492_v12, 4 }
  0xdb   : > { %6234 = vmatmul.mubr.msk.bf16.gmra.mrb[28].mxu1 %vm1288_vm12, %v5718_v1  ;;  %v3489_v53 = vsel %vm7316_vm2, %v3487_v48, %v3488_v42  ;;  %v3495_v39 = vrot.slane %v2650_v18, 5  ;;  %273 = vst [vmem:[#allocation2 + $0xc0] sm:$0x1] %v272_v22  ;;  %v328_v38 = vsel %vm6949_vm6, 0, %v327_v44  ;;  %v626_v34 = vshll.u32 %v363_v0, 16 }
  0xdc   : > { %6239 = vmatprep.mubr.msk.bf16.mxu1 %vm1288_vm12, %v5735_v27  ;;  %v5911_v10 = vcombine.low %v3486_v51, %v3489_v53  ;;  %329 = vst [vmem:[#allocation2 + $0xc8] sm:$0x1] %v328_v38  ;;  %v623_v27 = vshrl.u32 %v363_v0, 16  ;;  %v631_v25 = vshrl.u32 %v364_v47, 16  ;;  %v5896_v59 = vrot.slane %v3349_v60, 9 }
  0xdd   : > { %v3501_v1 = vrot.slane %v3499_v62, 4  ;;  %v3502_v21 = vrot.slane %v2653_v16, 5  ;;  %v634_v23 = vshll.u32 %v364_v47, 16  ;;  %v6822_v31 = vld [vmem:[#allocation2 + $0x10] sm:$0xf]  ;;  %v3493_v48 = vsel %vm7316_vm2, %v5895_v37, %v3492_v12 }
  0xde   : > { %v1854_v41 = vrot.slane %v6822_v31, 5  ;;  %v6823_v33 = vld [vmem:[%s8899_s1 + $0x4] sm:$0x3]  ;;  %v625_v43 = vrot.slane %v623_v27, 7  ;;  %v633_v63 = vrot.slane %v631_v25, 7  ;;  %v3496_v18 = vsel %vm7316_vm2, %v3494_v17, %v3495_v39 }
  0xdf   : > { %v2056_v42 = vsel %vm1337_vm0, %v6823_v33, 0  ;;  %v6824_v54 = vld [vmem:[#allocation2 + $0x14] sm:$0x1]  ;;  %6396 = vmatmul.mubr.msk.bf16.gmra.mrb[20].mxu0 %vm1288_vm12, %v5910_v6  ;;  %v1795_v44 = vld [vmem:[#allocation2 + $0xc] sm:$0xe]  ;;  %v3500_v53 = vsel %vm7316_vm2, %v5896_v59, %v3499_v62  ;;  %v3503_v37 = vsel %vm7316_vm2, %v3501_v1, %v3502_v21  ;;  %v5912_v6 = vcombine.low %v3493_v48, %v3496_v18 }
  0xe0   : > { %v1857_v46 = vrot.slane %v6824_v54, 5  ;;  %v7681_v51 = vld [vmem:[%s8899_s1 + $0x6] sm:$0x3]  ;;  %6399 = vmatprep.mubr.msk.bf16.mxu0 %vm1288_vm12, %v5911_v10  ;;  %v628_v0 = vor.u32 %v626_v34, %v625_v43  ;;  %v629_v47 = vrot.slane %v625_v43, 4  ;;  %v636_v57 = vor.u32 %v634_v23, %v633_v63  ;;  %v7697_v60 = vld [vmem:[#allocation2 + $0x28] sm:$0xf] }
  0xe1   : > { %v638_v12 = vrot.slane %v633_v63, 4  ;;  %v1856_v16 = vrot.slane %v1854_v41, 4  ;;  %v6826_v22 = vld [vmem:[#allocation2 + $0x24] sm:$0xf]  ;;  %v5913_v40 = vcombine.low %v3500_v53, %v3503_v37  ;;  %v6827_v27 = vld [vmem:[#allocation2 + $0x30] sm:$0xf] }
  0xe2   : > { %v637_v35 = vsel %vm6999_vm11, %v629_v47, %v636_v57  ;;  %v795_v36 = vld [vmem:[#allocation2 + $0xc0] sm:$0xf]  ;;  %v7713_v34 = vld [vmem:[#allocation2 + $0x34] sm:$0xf]  ;;  %v2883_v1 = vshll.u32 %v7610_v30, 16  ;;  %v2887_v31 = vshrl.u32 %v7610_v30, 16 }
  0xe3   : > { %6240 = vmatmul.mubr.msk.bf16.vlgmr.msra.gmra.mrb[0].mxu1 %vm1288_vm12, %v5736_v45  ;;  %v5768_v45 = vrot.slane %v1795_v44, 9  ;;  %v796_v62 = vsel %vm6991_vm8, %v628_v0, %v795_v36  ;;  %798 = vst.msk [vmem:[#allocation2 + $0xc4] sm:$0xf] %vm211_vm1, %v637_v35  ;;  %v799_v17 = vld [vmem:[#allocation2 + $0xc8] sm:$0x1]  ;;  %v7711_v10 = vsel %vm7316_vm2, %v1856_v16, %v1857_v46  ;;  %v5739_v32 = vcombine.low %v6827_v27, %v7713_v34  ;;  %v6786_v57 = vld [vmem:[#allocation2 + $0x18] sm:$0xff]  }
  0xe4   : > { %6272 = vmatpush3.bf16.msra.mxu1 %v2056_v42  ;;  %6243 = vmatprep.mubr.msk.bf16.mxu1 %vm1288_vm12, %v5737_v11  ;;  %v5738_v11 = vcombine.low %v6826_v22, %v7697_v60  ;;  %797 = vst [vmem:[#allocation2 + $0xc0] sm:$0xf] %v796_v62  ;;  %v800_v39 = vsel %vm6940_vm5, %v638_v12, %v799_v17  ;;  %v7724_v33 = vld [vmem:[#allocation2 + $0x40] sm:$0xf]  ;;  %v7727_v54 = vld [vmem:[#allocation2 + $0x4c] sm:$0xf] }
  0xe5   : > { %6770 = vmatprep.subr.msk.bf16.mxu1 %vm1337_vm0, %v7681_v51  ;;  %v7707_v38 = vsel %vm7316_vm2, %v5768_v45, %v1854_v41  ;;  %801 = vst [vmem:[#allocation2 + $0xc8] sm:$0x1] %v800_v39  ;;  %v6829_v41 = vld [vmem:[#allocation2 + $0x3c] sm:$0xf]  ;;  %v6832_v46 = vld [vmem:[#allocation2 + $0x48] sm:$0xf] }
  0xe6   : > { %v5740_v42 = vcombine.low %v6829_v41, %v7724_v33  ;;  %v5741_v48 = vcombine.low %v6832_v46, %v7727_v54  ;;  %v274_v47 = vld [vmem:[#allocation2 + $0xcc] sm:$0x1]  ;;  %v7734_v12 = vrot.slane %v2883_v1, 5  ;;  %v2889_v53 = vrot.slane %v2887_v31, 4  ;;  %v1794_v16 = vld [vmem:[#allocation2] sm:$0xe] }
  0xe7   : > { %6400 = vmatmul.mubr.msk.bf16.gmra.mrb[24].mxu0 %vm1288_vm12, %v5912_v6  ;;  %v1847_v35 = vrot.slane %v7640_v20, 5  ;;  %v275_v36 = vsel %vm6940_vm5, 0, %v274_v47  ;;  %v2893_v45 = vshll.u32 %v7617_v19, 16  ;;  %v1796_v22 = vld [vmem:[#allocation2 + $0x18] sm:$0xe]  ;;  %v6787_v39 = vld [vmem:[#allocation2 + $0x24] sm:$0xff]  }
  0xe8   : > { %6403 = vmatprep.mubr.msk.bf16.mxu0 %vm1288_vm12, %v5913_v40  ;;  %8936 = vst [vmem:[#allocation5_spill] sm:$0xff] %v7734_v12  ;;  %276 = vst [vmem:[#allocation2 + $0xcc] sm:$0x1] %v275_v36  ;;  %v6833_v6 = vld [vmem:[#allocation2 + $0x8] sm:$0x1]  ;;  %v2890_v17 = vor.u32 %v2889_v53, %v7734_v12  ;;  %v5767_v1 = vrot.slane %v1794_v16, 9 }
  0xe9   : > { %v1850_v62 = vrot.slane %v6833_v6, 5  ;;  %v6834_v40 = vld [vmem:[#allocation2 + $0x54] sm:$0xf]  ;;  %v7746_v20 = vld [vmem:[#allocation2 + $0x58] sm:$0xf]  ;;  %v7752_v31 = vrot.slane %v2893_v45, 5 }
  0xea   : > { %v2655_v59 = vld [vmem:[#allocation2 + $0xc4] sm:$0xf]  ;;  %v5742_v5 = vcombine.low %v6834_v40, %v7746_v20  ;;  %v6836_v19 = vld [vmem:[#allocation2 + $0x60] sm:$0xf]  ;;  %v5769_v41 = vrot.slane %v1796_v22, 9  ;;  %v1868_v46 = vrot.slane %v7697_v60, 5  ;;  %v5745_v60 = vcombine.low %v7450_v52, %v7469_v14 }
  0xeb   : > { %6244 = vmatmul.mubr.msk.bf16.gmra.mrb[4].mxu1 %vm1288_vm12, %v5738_v11  ;;  %v3350_v21 = vld [vmem:[#allocation2 + $0xc0] sm:$0xe]  ;;  %v3506_v23 = vrot.slane %v2655_v59, 5  ;;  %v1861_v11 = vrot.slane %v7660_v4, 5  ;;  %v7749_v27 = vld [vmem:[#allocation2 + $0x64] sm:$0xf]  ;;  %v7772_v53 = vsel %vm7316_vm2, %v5767_v1, %v1847_v35 }
  0xec   : > { %6247 = vmatprep.mubr.msk.bf16.mxu1 %vm1288_vm12, %v5739_v32  ;;  %v2656_v43 = vld [vmem:[#allocation2 + $0xc8] sm:$0x1]  ;;  %v5897_v63 = vrot.slane %v3350_v21, 9  ;;  %v5743_v32 = vcombine.low %v6836_v19, %v7749_v27  ;;  %v6788_v59 = vld [vmem:[#allocation2 + $0x30] sm:$0xff]   ;;  %v1849_v21 = vrot.slane %v1847_v35, 4  ;;  %8937 = vst [vmem:[#allocation6_spill] sm:$0xff] %v7752_v31 }
  0xed   : > { %v3508_v18 = vrot.slane %v3506_v23, 4  ;;  %v3509_v44 = vrot.slane %v2656_v43, 5  ;;  %v1798_v4 = vld [vmem:[#allocation2 + $0x30] sm:$0xe]  ;;  %v6838_v43 = vld [vmem:[#allocation2 + $0x20] sm:$0x1]  ;;  %v7786_v52 = vsel %vm7316_vm2, %v5769_v41, %v1861_v11 }
  0xee   : > { %v3507_v0 = vsel %vm7316_vm2, %v5897_v63, %v3506_v23  ;;  %v1797_v23 = vld [vmem:[#allocation2 + $0x24] sm:$0xe]  ;;  %v1864_v63 = vrot.slane %v6838_v43, 5  ;;  %v1799_v36 = vld [vmem:[#allocation2 + $0x3c] sm:$0xe]  ;;  %v5771_v45 = vrot.slane %v1798_v4, 9 }
  0xef   : > { %v3510_v30 = vsel %vm7316_vm2, %v3508_v18, %v3509_v44  ;;  %v7756_v18 = vrot.slane %v2890_v17, 4  ;;  %v6839_v44 = vld [vmem:[#allocation2 + $0x6c] sm:$0xf]  ;;  %v5770_v14 = vrot.slane %v1797_v23, 9  ;;  %v1870_v22 = vrot.slane %v1868_v46, 4  ;;  %v6794_v31 = vld [vmem:[#allocation2 + $0x78] sm:$0xff]  }
  0xf0   : > { %v5914_v37 = vcombine.low %v3507_v0, %v3510_v30  ;;  %v7759_v0 = vld [vmem:[#allocation2 + $0x70] sm:$0xf]  ;;  %v4695_v30 = vsel %vm1337_vm0, %v7433_v61, 0  ;;  %v1800_v40 = vld [vmem:[#allocation2 + $0x48] sm:$0xe]  ;;  %v1889_v1 = vrot.slane %v7727_v54, 5 }
  0xf1   : > { %8938 = vst [vmem:[#allocation7_spill] sm:$0xff] %v7756_v18  ;;  %v5744_v47 = vcombine.low %v6839_v44, %v7759_v0  ;;  %v7781_v61 = vld [vmem:[%s8899_s1 + $0x10] sm:$0x3]  ;;  %v6843_v19 = vld [vmem:[#allocation2 + $0x44] sm:$0x1]  ;;  %v6790_v23 = vld [vmem:[#allocation2 + $0x48] sm:$0xff]  }
  0xf2   : > { %6404 = vmatmul.mubr.msk.bf16.gmra.mrb[28].mxu0 %vm1288_vm12, %v5914_v37  ;;  %v7776_v37 = vsel %vm7316_vm2, %v1849_v21, %v1850_v62  ;;  %v6842_v62 = vld [vmem:[#allocation2 + $0x38] sm:$0x1]  ;;  %v7808_v43 = vsel %vm1337_vm0, %v7681_v51, 0  ;;  %v5773_v44 = vrot.slane %v1800_v40, 9  ;;  %v4169_v12 = vld [vmem:[#allocation2 + $0x2c] sm:$0x1] }
  0xf3   : > { %6248 = vmatmul.mubr.msk.bf16.gmra.mrb[8].mxu1 %vm1288_vm12, %v5740_v42  ;;  %6409 = vmatprep.mubr.msk.bf16.mxu0 %vm1288_vm12, %v6786_v57  ;;  %v1863_v42 = vrot.slane %v1861_v11, 4  ;;  %v1882_v57 = vrot.slane %v7724_v33, 5  ;;  %v6841_v33 = vld [vmem:[#allocation2 + $0x2c] sm:$0x1]  ;;  %v1878_v17 = vrot.slane %v6842_v62, 5  ;;  %vm5603_vm1 = vcmask 25600  }
  0xf4   : > { %6251 = vmatprep.mubr.msk.bf16.mxu1 %vm1288_vm12, %v5741_v48  ;;  %v1875_v48 = vrot.slane %v7713_v34, 5  ;;  %v1871_v35 = vrot.slane %v6841_v33, 5  ;;  %v4173_v18 = vld [vmem:[#allocation2 + $0x3c] sm:$0xf] }
  0xf5   : > { %v7791_v16 = vsel %vm7316_vm2, %v1863_v42, %v1864_v63  ;;  %v1884_v11 = vrot.slane %v1882_v57, 4  ;;  %v4164_v42 = vld [vmem:[#allocation2 + $0x18] sm:$0xf]  ;;  %v7812_v63 = vsel %vm7316_vm2, %v5770_v14, %v1868_v46  ;;  %v4167_v46 = vld [vmem:[#allocation2 + $0x24] sm:$0xf] }
  0xf6   : > { %v1877_v6 = vrot.slane %v1875_v48, 4  ;;  %v7818_v33 = vsel %vm7316_vm2, %v1870_v22, %v1871_v35  ;;  %v7822_v62 = vsel %vm7316_vm2, %v5771_v45, %v1875_v48  ;;  %v4168_v14 = vld [vmem:[#allocation2 + $0x28] sm:$0xf]  ;;  %v1891_v22 = vrot.slane %v1889_v1, 4  ;;  %v6844_v48 = vld [vmem:[#allocation2 + $0x50] sm:$0x1] }
  0xf7   : > { %v1892_v45 = vrot.slane %v6844_v48, 5  ;;  %v4246_v48 = vshll.u32 %v4168_v14, 16 }
  0xf8   : > { %v7826_v51 = vsel %vm7316_vm2, %v1877_v6, %v1878_v17  ;;  %v4213_v6 = vshrl.u32 %v4164_v42, 16  ;;  %v4216_v17 = vshll.u32 %v4164_v42, 16  ;;  %v4237_v42 = vshrl.u32 %v4167_v46, 16 }
  0xfa   : > { %6410 = vmatmul.mubr.msk.bf16.vlgmr.msra.gmra.mrb[0].mxu0 %vm1288_vm12, %v6787_v39  ;;  %v5772_v39 = vrot.slane %v1799_v36, 9  ;;  %v4215_v41 = vrot.slane %v4213_v6, 4  ;;  %v4218_v4 = vrot.slane %v4216_v17, 5  ;;  %v8941_v6 = vcombine.low %v7477_v50, %v7482_v24 }
  0xfb   : > { %6252 = vmatmul.mubr.msk.bf16.gmra.mrb[12].mxu1 %vm1288_vm12, %v5742_v5  ;;  %6442 = vmatpush3.bf16.msra.mxu0 %v4695_v30  ;;  %v6789_v5 = vld [vmem:[#allocation2 + $0x3c] sm:$0xff]  }
  0xfc   : > { %6255 = vmatprep.mubr.msk.bf16.mxu1 %vm1288_vm12, %v5743_v32  ;;  %6413 = vmatprep.mubr.msk.bf16.mxu0 %vm1288_vm12, %v6788_v59  ;;  %v1885_v32 = vrot.slane %v6843_v19, 5  ;;  %v4165_v30 = vld [vmem:[#allocation2 + $0x1c] sm:$0xf]  ;;  %v1801_v19 = vld [vmem:[#allocation2 + $0x54] sm:$0xe]  ;;  %v7831_v40 = vsel %vm7316_vm2, %v5772_v39, %v1882_v57  ;;  %v7845_v39 = vsel %vm7316_vm2, %v5773_v44, %v1889_v1  ;;  %v7853_v57 = vsel %vm7316_vm2, %v1891_v22, %v1892_v45 }
  0xfd   : > { %6776 = vmatprep.subr.msk.bf16.mxu0 %vm1337_vm0, %v7781_v61  ;;  %v4222_v36 = vshll.u32 %v4165_v30, 16  ;;  %v4226_v25 = vshrl.u32 %v4165_v30, 16  ;;  %v4240_v30 = vshll.u32 %v4167_v46, 16  ;;  %8939 = vst [vmem:[#allocation8_spill] sm:$0xff] %v7853_v57  ;;  %v5774_v54 = vrot.slane %v1801_v19, 9  ;;  %v6791_v44 = vld [vmem:[#allocation2 + $0x54] sm:$0xff]  }
  0xfe   : > { %v7835_v35 = vsel %vm7316_vm2, %v1884_v11, %v1885_v32  ;;  %v1896_v11 = vrot.slane %v7746_v20, 5  ;;  %v1802_v32 = vld [vmem:[#allocation2 + $0x60] sm:$0xe]  ;;  %v1903_v1 = vrot.slane %v7749_v27, 5  ;;  %v6845_v59 = vld [vmem:[#allocation2 + $0x5c] sm:$0x1]  ;;  %v4219_v50 = vor.u32 %v4218_v4, %v4215_v41 }
  0xff   : > { %v6792_v20 = vld [vmem:[#allocation2 + $0x60] sm:$0xff]   ;;  %v7856_v21 = vrot.slane %v4222_v36, 5  ;;  %v5775_v34 = vrot.slane %v1802_v32, 9  ;;  %v4239_v22 = vrot.slane %v4237_v42, 4  ;;  %v4242_v45 = vrot.slane %v4240_v30, 5 }
 0x100   : > { %v1898_v46 = vrot.slane %v1896_v11, 4  ;;  %v7860_v19 = vrot.slane %v4246_v48, 5  ;;  %v1905_v36 = vrot.slane %v1903_v1, 4  ;;  %v1910_v32 = vrot.slane %v7759_v0, 5  ;;  %v4170_v48 = vld [vmem:[#allocation2 + $0x30] sm:$0xf] }
 0x101   : > { %v7875_v42 = vsel %vm7316_vm2, %v5774_v54, %v1896_v11  ;;  %v4256_v54 = vshll.u32 %v4169_v12, 16  ;;  %v4243_v41 = vor.u32 %v4242_v45, %v4239_v22  ;;  %v6849_v22 = vld [vmem:[#allocation2 + $0x88] sm:$0xf] }
 0x102   : > { %6414 = vmatmul.mubr.msk.bf16.gmra.mrb[4].mxu0 %vm1288_vm12, %v6789_v5  ;;  %v4250_v5 = vshrl.u32 %v4168_v14, 16  ;;  %v1899_v14 = vrot.slane %v6845_v59, 5  ;;  %v6846_v59 = vld [vmem:[#allocation2 + $0x68] sm:$0x1]  ;;  %v1912_v12 = vrot.slane %v1910_v32, 4  ;;  %v1924_v45 = vrot.slane %v6849_v22, 5 }
 0x103   : > { %6256 = vmatmul.mubr.msk.bf16.gmra.mrb[16].mxu1 %vm1288_vm12, %v5744_v47  ;;  %6417 = vmatprep.mubr.msk.bf16.mxu0 %vm1288_vm12, %v6790_v23  ;;  %v4228_v23 = vrot.slane %v4226_v25, 4  ;;  %v7858_v47 = vld [vmem:[#allocation2 + $0x20] sm:$0x1]  ;;  %v1906_v17 = vrot.slane %v6846_v59, 5  ;;  %v4220_v59 = vrot.slane %v4219_v50, 4  ;;  %v4244_v7 = vrot.slane %v4243_v41, 4 }
 0x104   : > { %6259 = vmatprep.mubr.msk.bf16.mxu1 %vm1288_vm12, %v5745_v60  ;;  %v1803_v60 = vld [vmem:[#allocation2 + $0x6c] sm:$0xe]  ;;  %8940 = vst [vmem:[#allocation9_spill] sm:$0xff] %v7858_v47  ;;  %v4252_v27 = vrot.slane %v4250_v5, 4  ;;  %v4232_v30 = vshll.u32 %v7858_v47, 16  ;;  %v7882_v0 = vsel %vm7316_vm2, %v1898_v46, %v1899_v14  ;;  %v8944_v50 = vcombine.low %v7544_v56, %v7552_v15 }
 0x105   : > { %v5776_v3 = vrot.slane %v1803_v60, 9  ;;  %v8942_v60 = vcombine.low %v7503_v58, %v7512_v13  ;;  %v4229_v24 = vor.u32 %v4228_v23, %v7856_v21  ;;  %v7886_v58 = vsel %vm7316_vm2, %v5775_v34, %v1903_v1  ;;  %v6847_v13 = vld [vmem:[#allocation2 + $0x74] sm:$0x1]  ;;  %v6848_v23 = vld [vmem:[#allocation2 + $0x7c] sm:$0xf] }
 0x106   : > { %v1913_v5 = vrot.slane %v6847_v13, 5  ;;  %v4253_v11 = vor.u32 %v4252_v27, %v7860_v19  ;;  %v1917_v46 = vrot.slane %v6848_v23, 5  ;;  %v7894_v14 = vld [vmem:[#allocation2 + $0x34] sm:$0xf]  ;;  %v7898_v34 = vsel %vm7316_vm2, %v1905_v36, %v1906_v17  ;;  %v1805_v13 = vld [vmem:[#allocation2 + $0x84] sm:$0xe] }
 0x107   : > { %v7891_v4 = vsel %vm7316_vm2, %v5776_v3, %v1910_v32  ;;  %8943 = vst [vmem:[#allocation10_spill] sm:$0xff] %v7894_v14  ;;  %v4261_v1 = vshrl.u32 %v4170_v48, 16  ;;  %v4234_v3 = vrot.slane %v4232_v30, 5  ;;  %v4258_v27 = vrot.slane %v4256_v54, 5  ;;  %v6850_v32 = vld [vmem:[#allocation2 + $0x80] sm:$0x1] }
 0x108   : > { %v4270_v23 = vshll.u32 %v7894_v14, 16  ;;  %v4274_v47 = vshrl.u32 %v7894_v14, 16  ;;  %v4254_v36 = vrot.slane %v4253_v11, 4  ;;  %v1919_v17 = vrot.slane %v1917_v46, 4  ;;  %v6851_v22 = vld [vmem:[#allocation2 + $0x8c] sm:$0x1] }
 0x109   : > { %v1920_v57 = vrot.slane %v6850_v32, 5  ;;  %v5778_v30 = vrot.slane %v1805_v13, 9  ;;  %v4263_v54 = vrot.slane %v4261_v1, 4  ;;  %v8946_v41 = vcombine.low %v7582_v55, %v7578_v49  ;;  %v7916_v56 = vld [vmem:[#allocation2 + $0x40] sm:$0xf] }
 0x10a   : > { %6418 = vmatmul.mubr.msk.bf16.gmra.mrb[8].mxu0 %vm1288_vm12, %v6791_v44  ;;  %v1804_v44 = vld [vmem:[#allocation2 + $0x78] sm:$0xe]  ;;  %v1926_v11 = vrot.slane %v1924_v45, 4  ;;  %v1927_v32 = vrot.slane %v6851_v22, 5  ;;  %8947 = vst [vmem:[#allocation12_spill] sm:$0xff] %v7916_v56  ;;  %v4285_v15 = vshrl.u32 %v4173_v18, 16 }
 0x10b   : > { %6260 = vmatmul.mubr.msk.bf16.gmra.mrb[20].mxu1 %vm1288_vm12, %v8941_v6  ;;  %6421 = vmatprep.mubr.msk.bf16.mxu0 %vm1288_vm12, %v6792_v20  ;;  %v6793_v6 = vld [vmem:[#allocation2 + $0x6c] sm:$0xff]   ;;  %v4264_v20 = vshll.u32 %v4170_v48, 16  ;;  %v5777_v25 = vrot.slane %v1804_v44, 9  ;;  %v7910_v48 = vld [vmem:[#allocation2 + $0x38] sm:$0x1]  ;;  %v7924_v1 = vrot.slane %v4270_v23, 5 }
 0x10c   : > { %6263 = vmatprep.mubr.msk.bf16.mxu1 %vm1288_vm12, %v8942_v60  ;;  %v4230_v60 = vrot.slane %v4229_v24, 4  ;;  %v7908_v24 = vsel %vm7316_vm2, %v1912_v12, %v1913_v5  ;;  %8945 = vst [vmem:[#allocation11_spill] sm:$0xff] %v7910_v48  ;;  %v4225_v5 = vsel %vm7042_vm13, %v4220_v59, %v7856_v21  ;;  %v4276_v55 = vrot.slane %v4274_v47, 4  ;;  %v7958_v23 = vld [vmem:[#allocation2 + $0x44] sm:$0x1] }
 0x10d   : > { %v4266_v44 = vrot.slane %v4264_v20, 5  ;;  %v4249_v20 = vsel %vm7042_vm13, %v4244_v7, %v7860_v19  ;;  %v7938_v21 = vsel %vm7316_vm2, %v1919_v17, %v1920_v57  ;;  %v7942_v47 = vsel %vm7316_vm2, %v5778_v30, %v1924_v45  ;;  %8949 = vst [vmem:[#allocation14_spill] sm:$0xff] %v7958_v23  ;;  %v6796_v17 = vld [vmem:[#allocation2 + $0x90] sm:$0xff]   ;;  %v7970_v22 = vld [vmem:[#allocation2 + $0x4c] sm:$0xf] }
 0x10e   : > { %v4235_v12 = vsel %vm7042_vm13, %v4230_v60, %v4234_v3  ;;  %v4280_v59 = vshll.u32 %v7910_v48, 16  ;;  %v4294_v7 = vshll.u32 %v7916_v56, 16  ;;  %v7948_v19 = vsel %vm7316_vm2, %v1926_v11, %v1927_v32  ;;  %v6795_v3 = vld [vmem:[#allocation2 + $0x84] sm:$0xff]   ;;  %8950 = vst [vmem:[#allocation15_spill] sm:$0xff] %v7970_v22  ;;  %v7985_v45 = vld [vmem:[#allocation2 + $0x58] sm:$0xf] }
 0x10f   : > { %8948 = vst [vmem:[#allocation13_spill] sm:$0xff] %v7948_v19  ;;  %v4287_v60 = vrot.slane %v4285_v15, 4  ;;  %v7960_v30 = vcombine.low %v4225_v5, %v4235_v12  ;;  %v4176_v11 = vld [vmem:[#allocation2 + $0x48] sm:$0xf]  ;;  %v8951_v32 = vcombine.low %v7600_v9, %v7614_v28  ;;  %8953 = vst [vmem:[#allocation16_spill] sm:$0xff] %v7985_v45 }
 0x110   : > { %v4282_v5 = vrot.slane %v4280_v59, 5  ;;  %v7978_v12 = vrot.slane %v4294_v7, 5  ;;  %v1807_v7 = vld [vmem:[#allocation2 + $0x9c] sm:$0xe]  ;;  %v4309_v15 = vshrl.u32 %v4176_v11, 16  ;;  %v4312_v13 = vshll.u32 %v4176_v11, 16 }
 0x112   : > { %6422 = vmatmul.mubr.msk.bf16.gmra.mrb[12].mxu0 %vm1288_vm12, %v6793_v6  ;;  %v7934_v6 = vsel %vm7316_vm2, %v5777_v25, %v1917_v46  ;;  %v4298_v46 = vshrl.u32 %v7916_v56, 16  ;;  %v6798_v56 = vld [vmem:[#allocation2 + $0xa8] sm:$0xff]  }
 0x113   : > { %6264 = vmatmul.mubr.msk.bf16.gmra.mrb[24].mxu1 %vm1288_vm12, %v8944_v50  ;;  %v4288_v50 = vshll.u32 %v4173_v18, 16  ;;  %6425 = vmatprep.mubr.msk.bf16.mxu0 %vm1288_vm12, %v6794_v31  ;;  %v4259_v18 = vsel %vm7042_vm13, %v4254_v36, %v4258_v27  ;;  %v4267_v31 = vor.u32 %v4266_v44, %v4263_v54  ;;  %v4277_v27 = vor.u32 %v4276_v55, %v7924_v1  ;;  %v1806_v36 = vld [vmem:[#allocation2 + $0x90] sm:$0xe] }
 0x114   : > { %6267 = vmatprep.mubr.msk.bf16.mxu1 %vm1288_vm12, %v8946_v41  ;;  %v7962_v54 = vcombine.low %v4249_v20, %v4259_v18  ;;  %v7966_v44 = vsel %vm1337_vm0, %v7781_v61, 0  ;;  %v4179_v61 = vld [vmem:[#allocation2 + $0x54] sm:$0xf]  ;;  %v8952_v55 = vcombine.low %v7772_v53, %v7776_v37  ;;  %v4300_v18 = vrot.slane %v4298_v46, 4 }
 0x115   : > { %v4290_v25 = vrot.slane %v4288_v50, 5  ;;  %v4268_v50 = vrot.slane %v4267_v31, 4  ;;  %v4304_v41 = vshll.u32 %v7958_v23, 16  ;;  %v5779_v9 = vrot.slane %v1806_v36, 9  ;;  %v6852_v31 = vld [vmem:[#allocation2 + $0x94] sm:$0xf] }
 0x116   : > { %v1931_v59 = vrot.slane %v6852_v31, 5  ;;  %v4318_v53 = vshll.u32 %v7970_v22, 16  ;;  %v4322_v37 = vshrl.u32 %v7970_v22, 16  ;;  %v6853_v36 = vld [vmem:[#allocation2 + $0x98] sm:$0x1]  ;;  %v6797_v31 = vld [vmem:[#allocation2 + $0x9c] sm:$0xff]  }
 0x117   : > { %v4291_v20 = vor.u32 %v4290_v25, %v4287_v60  ;;  %v4333_v60 = vshrl.u32 %v4179_v61, 16  ;;  %v4336_v25 = vshll.u32 %v4179_v61, 16  ;;  %v4273_v46 = vsel %vm7042_vm13, %v4268_v50, %v7924_v1  ;;  %v8003_v1 = vld [vmem:[#allocation2 + $0x50] sm:$0x1]  ;;  %v8007_v22 = vld [vmem:[#allocation2 + $0x5c] sm:$0x1] }
 0x118   : > { %v7999_v57 = vrot.slane %v4304_v41, 5  ;;  %v5780_v23 = vrot.slane %v1807_v7, 9  ;;  %v1933_v48 = vrot.slane %v1931_v59, 4  ;;  %8954 = vst [vmem:[#allocation17_spill] sm:$0xff] %v8003_v1  ;;  %v4311_v50 = vrot.slane %v4309_v15, 4  ;;  %8955 = vst [vmem:[#allocation18_spill] sm:$0xff] %v8007_v22 }
 0x119   : > { %v7996_v11 = vrot.slane %v4291_v20, 4  ;;  %v8005_v14 = vrot.slane %v4318_v53, 5  ;;  %v4335_v20 = vrot.slane %v4333_v60, 4  ;;  %v4338_v19 = vrot.slane %v4336_v25, 5  ;;  %v8039_v25 = vld [vmem:[#allocation2 + $0x64] sm:$0xf] }
 0x11a   : > { %6426 = vmatmul.mubr.msk.bf16.gmra.mrb[16].mxu0 %vm1288_vm12, %v6795_v3  ;;  %v1934_v3 = vrot.slane %v6853_v36, 5  ;;  %v4314_v36 = vrot.slane %v4312_v13, 5  ;;  %v8956_v41 = vcombine.low %v7707_v38, %v7711_v10  ;;  %v8957_v7 = vcombine.low %v7786_v52, %v7791_v16  ;;  %8958 = vst [vmem:[#allocation19_spill] sm:$0xff] %v8039_v25 }
 0x11b   : > { %6268 = vmatmul.mubr.msk.bf16.gmra.mrb[28].mxu1 %vm1288_vm12, %v8951_v32  ;;  %v4278_v32 = vrot.slane %v4277_v27, 4  ;;  %6429 = vmatprep.mubr.msk.bf16.mxu0 %vm1288_vm12, %v6796_v17  ;;  %v4342_v27 = vshll.u32 %v7985_v45, 16  ;;  %v4301_v17 = vor.u32 %v4300_v18, %v7978_v12  ;;  %v6854_v18 = vld [vmem:[#allocation2 + $0xa0] sm:$0xf]  ;;  %v4328_v16 = vshll.u32 %v8003_v1, 16 }
 0x11c   : > { %6273 = vmatprep.mubr.msk.bf16.mxu1 %vm1288_vm12, %v8952_v55  ;;  %v4346_v55 = vshrl.u32 %v7985_v45, 16  ;;  %v4324_v45 = vrot.slane %v4322_v37, 4  ;;  %v4182_v37 = vld [vmem:[#allocation2 + $0x60] sm:$0xf]  ;;  %v4315_v52 = vor.u32 %v4314_v36, %v4311_v50  ;;  %v4352_v60 = vshll.u32 %v8007_v22, 16 }
 0x11d   : > { %v4283_v61 = vsel %vm7042_vm13, %v4278_v32, %v4282_v5  ;;  %v8015_v5 = vsel %vm7316_vm2, %v5779_v9, %v1931_v59  ;;  %v1938_v32 = vrot.slane %v6854_v18, 5  ;;  %v8017_v15 = vrot.slane %v4342_v27, 5  ;;  %v6855_v9 = vld [vmem:[#allocation2 + $0xa4] sm:$0x1]  ;;  %v1809_v18 = vld [vmem:[#allocation2 + $0xb4] sm:$0xe] }
 0x11e   : > { %v4348_v13 = vrot.slane %v4346_v55, 4  ;;  %v8024_v53 = vcombine.low %v4273_v46, %v4283_v61  ;;  %v8030_v10 = vrot.slane %v4301_v17, 4  ;;  %v1941_v59 = vrot.slane %v6855_v9, 5  ;;  %v6856_v46 = vld [vmem:[%s8899_s1 + $0x8] sm:$0x3]  ;;  %v6800_v9 = vld [vmem:[#allocation2 + $0xc0] sm:$0xff]  }
 0x11f   : > { %v8048_v27 = vsel %vm7316_vm2, %v5780_v23, %v1938_v32  ;;  %v1808_v55 = vld [vmem:[#allocation2 + $0xa8] sm:$0xe]  ;;  %v1940_v17 = vrot.slane %v1938_v32, 4  ;;  %v4357_v50 = vshrl.u32 %v4182_v37, 16  ;;  %v4360_v36 = vshll.u32 %v4182_v37, 16 }
 0x120   : > { %v4349_v61 = vor.u32 %v4348_v13, %v8017_v15  ;;  %v1952_v23 = vrot.slane %v7614_v28, 5  ;;  %v4354_v32 = vrot.slane %v4352_v60, 5  ;;  %v4185_v13 = vld [vmem:[#allocation2 + $0x6c] sm:$0xf]  ;;  %v1948_v22 = vrot.slane %v7588_v2, 5 }
 0x121   : > { %v4359_v1 = vrot.slane %v4357_v50, 4  ;;  %v1955_v60 = vrot.slane %v7621_v8, 5 }
 0x122   : > { %6430 = vmatmul.mubr.msk.bf16.gmra.mrb[20].mxu0 %vm1288_vm12, %v6797_v31  ;;  %v1945_v31 = vrot.slane %v7578_v49, 5  ;;  %v4330_v49 = vrot.slane %v4328_v16, 5  ;;  %v4350_v28 = vrot.slane %v4349_v61, 4  ;;  %v1954_v16 = vrot.slane %v1952_v23, 4 }
 0x123   : > { %6274 = vmatmul.mubr.msk.bf16.vlgmr.msra.gmra.mrb[0].mxu1 %vm1288_vm12, %v8956_v41  ;;  %6433 = vmatprep.mubr.msk.bf16.mxu0 %vm1288_vm12, %v6798_v56  ;;  %v6799_v41 = vld [vmem:[#allocation2 + $0xb4] sm:$0xff]   ;;  %v4307_v56 = vsel %vm7042_vm13, %v8030_v10, %v7999_v57  ;;  %v8959_v57 = vcombine.low %v7812_v63, %v7818_v33  ;;  %v5782_v10 = vrot.slane %v1809_v18, 9  ;;  %v8077_v63 = vsel %vm7316_vm2, %v1940_v17, %v1941_v59 }
 0x124   : > { %6306 = vmatpush3.bf16.msra.mxu1 %v7808_v43  ;;  %6277 = vmatprep.mubr.msk.bf16.mxu1 %vm1288_vm12, %v8957_v7  ;;  %v8035_v43 = vsel %vm7316_vm2, %v1933_v48, %v1934_v3  ;;  %v4325_v48 = vor.u32 %v4324_v45, %v8005_v14  ;;  %v4339_v3 = vor.u32 %v4338_v19, %v4335_v20  ;;  %v4366_v45 = vshll.u32 %v8039_v25, 16  ;;  %v8110_v18 = vld [vmem:[#allocation2 + $0x74] sm:$0x1] }
 0x125   : > { %6772 = vmatprep.subr.msk.bf16.mxu1 %vm1337_vm0, %v6856_v46  ;;  %v4370_v19 = vshrl.u32 %v8039_v25, 16  ;;  %v4316_v20 = vrot.slane %v4315_v52, 4  ;;  %v5781_v7 = vrot.slane %v1808_v55, 9  ;;  %v1947_v38 = vrot.slane %v1945_v31, 4 }
 0x126   : > { %v4326_v37 = vrot.slane %v4325_v48, 4  ;;  %v4340_v46 = vrot.slane %v4339_v3, 4  ;;  %v4362_v25 = vrot.slane %v4360_v36, 5  ;;  %v8960_v52 = vcombine.low %v7822_v62, %v7826_v51  ;;  %v8070_v48 = vld [vmem:[#allocation2 + $0x68] sm:$0x1] }
 0x127   : > { %v8072_v2 = vrot.slane %v4366_v45, 5  ;;  %v4372_v3 = vrot.slane %v4370_v19, 4  ;;  %v8081_v33 = vsel %vm7316_vm2, %v5781_v7, %v1945_v31  ;;  %v8083_v62 = vld [vmem:[#allocation2 + $0x70] sm:$0xf]  ;;  %v4381_v51 = vshrl.u32 %v4185_v13, 16 }
 0x128   : > { %v4384_v55 = vshll.u32 %v4185_v13, 16  ;;  %v4321_v8 = vsel %vm7042_vm13, %v4316_v20, %v8005_v14  ;;  %v4331_v61 = vsel %vm7042_vm13, %v4326_v37, %v4330_v49  ;;  %v4345_v59 = vsel %vm7042_vm13, %v4340_v46, %v8017_v15  ;;  %v6801_v45 = vld [vmem:[#allocation2 + $0xcc] sm:$0xff]   ;;  %v4188_v49 = vld [vmem:[#allocation2 + $0x78] sm:$0xf]  ;;  %v8131_v37 = vld [vmem:[#allocation2 + $0x7c] sm:$0xf] }
 0x129   : > { %v8096_v31 = vsel %vm7316_vm2, %v1947_v38, %v1948_v22  ;;  %v4355_v17 = vsel %vm7042_vm13, %v4350_v28, %v4354_v32  ;;  %v8102_v50 = vsel %vm7316_vm2, %v5782_v10, %v1952_v23  ;;  %v4363_v36 = vor.u32 %v4362_v25, %v4359_v1  ;;  %v4197_v46 = vld [vmem:[#allocation2 + $0x9c] sm:$0xf] }
 0x12a   : > { %6434 = vmatmul.mubr.msk.bf16.gmra.mrb[24].mxu0 %vm1288_vm12, %v6799_v41  ;;  %v4376_v14 = vshll.u32 %v8070_v48, 16  ;;  %v8107_v41 = vsel %vm7316_vm2, %v1954_v16, %v1955_v60  ;;  %v4373_v15 = vor.u32 %v4372_v3, %v8072_v2  ;;  %v4390_v22 = vshll.u32 %v8083_v62, 16  ;;  %v8964_v16 = vld [vmem:[#allocation8_spill] sm:$0xff] }
 0x12b   : > { %6278 = vmatmul.mubr.msk.bf16.gmra.mrb[4].mxu1 %vm1288_vm12, %v8959_v57  ;;  %6437 = vmatprep.mubr.msk.bf16.mxu0 %vm1288_vm12, %v6800_v9  ;;  %8961 = vst [vmem:[#allocation20_spill] sm:$0xff] %v8107_v41  ;;  %v4394_v38 = vshrl.u32 %v8083_v62, 16  ;;  %v8962_v1 = vsel %vm7042_vm13, %v7996_v11, %v7978_v12  ;;  %v4383_v19 = vrot.slane %v4381_v51, 4  ;;  %v4386_v20 = vrot.slane %v4384_v55, 5  ;;  %v4191_v12 = vld [vmem:[#allocation2 + $0x84] sm:$0xf] }
 0x12c   : > { %6281 = vmatprep.mubr.msk.bf16.mxu1 %vm1288_vm12, %v8960_v52  ;;  %v8119_v25 = vcombine.low %v8962_v1, %v4307_v56  ;;  %v8125_v7 = vcombine.low %v4321_v8, %v4331_v61  ;;  %v8127_v13 = vcombine.low %v4345_v59, %v4355_v17  ;;  %v8133_v11 = vld [vmem:[#allocation2 + $0x88] sm:$0xf]  ;;  %v8963_v56 = vcombine.low %v7831_v40, %v7835_v35  ;;  %v4194_v52 = vld [vmem:[#allocation2 + $0x90] sm:$0xf]  ;;  %v8154_v55 = vld [vmem:[#allocation2 + $0x94] sm:$0xf] }
 0x12d   : > { %v8141_v57 = vrot.slane %v4363_v36, 4  ;;  %v8143_v28 = vrot.slane %v4376_v14, 5  ;;  %v4400_v10 = vshll.u32 %v8110_v18, 16  ;;  %v8965_v60 = vcombine.low %v7845_v39, %v8964_v16  ;;  %8966 = vst [vmem:[#allocation8_spill] sm:$0xff] %v8154_v55 }
 0x12e   : > { %v8150_v3 = vrot.slane %v4373_v15, 4  ;;  %v8152_v40 = vrot.slane %v4390_v22, 5  ;;  %v4396_v35 = vrot.slane %v4394_v38, 4  ;;  %v4405_v51 = vshrl.u32 %v4188_v49, 16 }
 0x12f   : > { %v4387_v8 = vor.u32 %v4386_v20, %v4383_v19  ;;  %v4408_v61 = vshll.u32 %v4188_v49, 16  ;;  %v4414_v59 = vshll.u32 %v8131_v37, 16  ;;  %v4418_v17 = vshrl.u32 %v8131_v37, 16  ;;  %v8172_v49 = vld [vmem:[#allocation2 + $0x80] sm:$0x1] }
 0x130   : > { %v4429_v39 = vshrl.u32 %v4191_v12, 16  ;;  %v4432_v36 = vshll.u32 %v4191_v12, 16  ;;  %v4438_v14 = vshll.u32 %v8133_v11, 16  ;;  %v4442_v15 = vshrl.u32 %v8133_v11, 16  ;;  %v8180_v19 = vld [vmem:[#allocation2 + $0xa0] sm:$0xf] }
 0x131   : > { %v4453_v22 = vshrl.u32 %v4194_v52, 16  ;;  %v4456_v38 = vshll.u32 %v4194_v52, 16  ;;  %v4462_v1 = vshll.u32 %v8154_v55, 16  ;;  %v4397_v20 = vor.u32 %v4396_v35, %v8152_v40  ;;  %8967 = vst [vmem:[#allocation21_spill] sm:$0xff] %v8180_v19  ;;  %v8186_v35 = vld [vmem:[#allocation2 + $0x8c] sm:$0x1] }
 0x132   : > { %6438 = vmatmul.mubr.msk.bf16.gmra.mrb[28].mxu0 %vm1288_vm12, %v6801_v45  ;;  %v4466_v45 = vshrl.u32 %v8154_v55, 16  ;;  %v4407_v12 = vrot.slane %v4405_v51, 4  ;;  %v4410_v16 = vrot.slane %v4408_v61, 5  ;;  %v8176_v52 = vrot.slane %v4414_v59, 5 }
 0x133   : > { %6282 = vmatmul.mubr.msk.bf16.gmra.mrb[8].mxu1 %vm1288_vm12, %v8963_v56  ;;  %6443 = vmatprep.mubr.msk.bf16.mxu0 %vm1288_vm12, %v7960_v30  ;;  %v8170_v30 = vrot.slane %v4400_v10, 5  ;;  %v8174_v56 = vrot.slane %v4387_v8, 4  ;;  %v4431_v9 = vrot.slane %v4429_v39, 4  ;;  %v4434_v32 = vrot.slane %v4432_v36, 5 }
 0x134   : > { %6285 = vmatprep.mubr.msk.bf16.mxu1 %vm1288_vm12, %v8965_v60  ;;  %v4420_v60 = vrot.slane %v4418_v17, 4  ;;  %v8178_v23 = vrot.slane %v4438_v14, 5  ;;  %v4444_v55 = vrot.slane %v4442_v15, 4  ;;  %v8968_v10 = vcombine.low %v7875_v42, %v7882_v0  ;;  %v8199_v0 = vld [vmem:[#allocation2 + $0x98] sm:$0x1] }
 0x135   : > { %v4455_v51 = vrot.slane %v4453_v22, 4  ;;  %v4458_v8 = vrot.slane %v4456_v38, 5  ;;  %v8188_v61 = vrot.slane %v4462_v1, 5  ;;  %v4468_v59 = vrot.slane %v4466_v45, 4  ;;  %8970 = vst [vmem:[#allocation22_spill] sm:$0xff] %v8199_v0 }
 0x136   : > { %v8969_v17 = vcombine.low %v7886_v58, %v7898_v34  ;;  %v4424_v42 = vshll.u32 %v8172_v49, 16  ;;  %v4477_v36 = vshrl.u32 %v4197_v46, 16  ;;  %v4480_v14 = vshll.u32 %v4197_v46, 16  ;;  %v330_v38 = vld [vmem:[#allocation2 + $0xd4] sm:$0x1] }
 0x137   : > { %v8203_v15 = vrot.slane %v4397_v20, 4  ;;  %v4411_v22 = vor.u32 %v4410_v16, %v4407_v12  ;;  %v4486_v58 = vshll.u32 %v8180_v19, 16  ;;  %v4490_v34 = vshrl.u32 %v8180_v19, 16  ;;  %v4200_v20 = vld [vmem:[#allocation2 + $0xa8] sm:$0xf] }
 0x138   : > { %v4393_v46 = vsel %vm7042_vm13, %v8174_v56, %v8152_v40  ;;  %v4435_v1 = vor.u32 %v4434_v32, %v4431_v9  ;;  %v4448_v45 = vshll.u32 %v8186_v35, 16  ;;  %v4445_v12 = vor.u32 %v4444_v55, %v8178_v23  ;;  %v8225_v9 = vld [vmem:[#allocation2 + $0xac] sm:$0xf] }
 0x139   : > { %v4459_v16 = vor.u32 %v4458_v8, %v4455_v51  ;;  %v4479_v39 = vrot.slane %v4477_v36, 4  ;;  %v4482_v19 = vrot.slane %v4480_v14, 5  ;;  %v331_v40 = vsel %vm6949_vm6, 0, %v330_v38  ;;  %v4203_v38 = vld [vmem:[#allocation2 + $0xb4] sm:$0xf] }
 0x13a   : > { %6444 = vmatmul.mubr.msk.bf16.vlgmr.msra.gmra.mrb[0].mxu0 %vm1288_vm12, %v7962_v54  ;;  %v4421_v54 = vor.u32 %v4420_v60, %v8176_v52  ;;  %v8223_v56 = vrot.slane %v4486_v58, 5  ;;  %v4492_v32 = vrot.slane %v4490_v34, 4  ;;  %v4501_v60 = vshrl.u32 %v4200_v20, 16  ;;  %332 = vst [vmem:[#allocation2 + $0xd4] sm:$0x1] %v331_v40 }
 0x13b   : > { %6286 = vmatmul.mubr.msk.bf16.gmra.mrb[12].mxu1 %vm1288_vm12, %v8968_v10  ;;  %6476 = vmatpush3.bf16.msra.mxu0 %v7966_v44  ;;  %v4469_v10 = vor.u32 %v4468_v59, %v8188_v61  ;;  %v4472_v44 = vshll.u32 %v8199_v0, 16  ;;  %v4504_v55 = vshll.u32 %v4200_v20, 16  ;;  %v4412_v51 = vrot.slane %v4411_v22, 4 }
 0x13c   : > { %6289 = vmatprep.mubr.msk.bf16.mxu1 %vm1288_vm12, %v8969_v17  ;;  %6447 = vmatprep.mubr.msk.bf16.mxu0 %vm1288_vm12, %v8024_v53  ;;  %v4426_v17 = vrot.slane %v4424_v42, 5  ;;  %v8219_v53 = vld [vmem:[#allocation2 + $0xa4] sm:$0x1]  ;;  %v4422_v8 = vrot.slane %v4421_v54, 4  ;;  %v4436_v59 = vrot.slane %v4435_v1, 4  ;;  %v4450_v0 = vrot.slane %v4448_v45, 5 }
 0x13d   : > { %v8972_v42 = vcombine.low %v7891_v4, %v7908_v24  ;;  %v4446_v36 = vrot.slane %v4445_v12, 4  ;;  %v4460_v41 = vrot.slane %v4459_v16, 4  ;;  %v4470_v14 = vrot.slane %v4469_v10, 4  ;;  %v8244_v45 = vld [vmem:[#allocation2 + $0xb0] sm:$0x1] }
 0x13e   : > { %v4474_v58 = vrot.slane %v4472_v44, 5  ;;  %v8973_v34 = vcombine.low %v7934_v6, %v7938_v21  ;;  %v4403_v22 = vsel %vm7042_vm13, %v8203_v15, %v8170_v30  ;;  %v4483_v54 = vor.u32 %v4482_v19, %v4479_v39  ;;  %v8254_v39 = vld [vmem:[#allocation2 + $0xb8] sm:$0xf] }
 0x13f   : > { %v4496_v4 = vshll.u32 %v8219_v53, 16  ;;  %v4510_v24 = vshll.u32 %v8225_v9, 16  ;;  %v4493_v1 = vor.u32 %v4492_v32, %v8223_v56  ;;  %v4503_v6 = vrot.slane %v4501_v60, 4 }
 0x140   : > { %v4506_v21 = vrot.slane %v4504_v55, 5  ;;  %v4514_v20 = vshrl.u32 %v8225_v9, 16  ;;  %v4417_v19 = vsel %vm7042_vm13, %v4412_v51, %v8176_v52  ;;  %v4427_v30 = vsel %vm7042_vm13, %v4422_v8, %v4426_v17  ;;  %v4894_v55 = vld [vmem:[#allocation2 + $0x48] sm:$0xe] }
 0x141   : > { %v4528_v15 = vshll.u32 %v4203_v38, 16  ;;  %v4441_v12 = vsel %vm7042_vm13, %v4436_v59, %v8178_v23  ;;  %v4451_v16 = vsel %vm7042_vm13, %v4446_v36, %v4450_v0  ;;  %v4475_v52 = vsel %vm7042_vm13, %v4470_v14, %v4474_v58 }
 0x142   : > { %6448 = vmatmul.mubr.msk.bf16.gmra.mrb[4].mxu0 %vm1288_vm12, %v8119_v25  ;;  %v4525_v25 = vshrl.u32 %v4203_v38, 16  ;;  %v8266_v10 = vrot.slane %v4483_v54, 4  ;;  %v8268_v44 = vrot.slane %v4496_v4, 5  ;;  %v8270_v17 = vrot.slane %v4510_v24, 5  ;;  %v4895_v54 = vld [vmem:[#allocation2 + $0x54] sm:$0xe] }
 0x143   : > { %6290 = vmatmul.mubr.msk.bf16.gmra.mrb[16].mxu1 %vm1288_vm12, %v8972_v42  ;;  %6451 = vmatprep.mubr.msk.bf16.mxu0 %vm1288_vm12, %v8125_v7  ;;  %v4465_v7 = vsel %vm7042_vm13, %v4460_v41, %v8188_v61  ;;  %v4520_v40 = vshll.u32 %v8244_v45, 16  ;;  %v8273_v32 = vrot.slane %v4493_v1, 4  ;;  %v4507_v23 = vor.u32 %v4506_v21, %v4503_v6  ;;  %v8976_v41 = vld [vmem:[#allocation13_spill] sm:$0xff]  ;;  %v4206_v1 = vld [vmem:[#allocation2 + $0xc0] sm:$0xf] }
 0x144   : > { %6293 = vmatprep.mubr.msk.bf16.mxu1 %vm1288_vm12, %v8973_v34  ;;  %v8275_v60 = vrot.slane %v4514_v20, 4  ;;  %v4534_v0 = vshll.u32 %v8254_v39, 16  ;;  %v8974_v61 = vsel %vm7042_vm13, %v8150_v3, %v8143_v28  ;;  %v8975_v51 = vsel %vm7042_vm13, %v8141_v57, %v8072_v2  ;;  %v4896_v6 = vld [vmem:[#allocation2 + $0x60] sm:$0xe] }
 0x145   : > { %v5971_v8 = vcombine.low %v8975_v51, %v8974_v61  ;;  %v5972_v59 = vcombine.low %v4393_v46, %v4403_v22  ;;  %v4527_v42 = vrot.slane %v4525_v25, 4  ;;  %v4530_v36 = vrot.slane %v4528_v15, 5  ;;  %v8979_v46 = vld [vmem:[#allocation15_spill] sm:$0xff] }
 0x146   : > { %v8977_v14 = vcombine.low %v7942_v47, %v8976_v41  ;;  %v5973_v58 = vcombine.low %v4417_v19, %v4427_v30  ;;  %v8292_v38 = vcombine.low %v4441_v12, %v4451_v16  ;;  %v8294_v34 = vcombine.low %v4465_v7, %v4475_v52  ;;  %v8980_v19 = vld [vmem:[#allocation17_spill] sm:$0xff]  ;;  %v8981_v12 = vld [vmem:[#allocation16_spill] sm:$0xff]  ;;  %v8982_v7 = vld [vmem:[#allocation18_spill] sm:$0xff] }
 0x147   : > { %v4538_v28 = vshrl.u32 %v8254_v39, 16  ;;  %v8978_v3 = vcombine.low %v8015_v5, %v8035_v43  ;;  %v4489_v2 = vsel %vm7042_vm13, %v8266_v10, %v8223_v56  ;;  %v8305_v47 = vrot.slane %v4520_v40, 5  ;;  %v4897_v40 = vld [vmem:[#allocation2 + $0x6c] sm:$0xe]  ;;  %v8983_v61 = vld [vmem:[#allocation19_spill] sm:$0xff] }
 0x148   : > { %v6001_v57 = vrot.slane %v4894_v55, 9  ;;  %v4984_v22 = vrot.slane %v8979_v46, 5  ;;  %v4499_v5 = vsel %vm7042_vm13, %v8273_v32, %v8268_v44  ;;  %v8314_v43 = vrot.slane %v4507_v23, 4  ;;  %v8330_v23 = vld [vmem:[#allocation2 + $0xc4] sm:$0xf]  ;;  %v8991_v56 = vld [vmem:[#allocation3_spill] sm:$0xff] }
 0x149   : > { %v4517_v4 = vor.u32 %v8275_v60, %v8270_v17  ;;  %v8318_v24 = vrot.slane %v4534_v0, 5  ;;  %v4531_v21 = vor.u32 %v4530_v36, %v4527_v42  ;;  %v4987_v30 = vrot.slane %v8980_v19, 5  ;;  %v2636_v19 = vld [vmem:[#allocation2 + $0x78] sm:$0xf]  ;;  %v8471_v44 = vld [vmem:[#allocation2 + $0xd4] sm:$0x1] }
 0x14a   : > { %6452 = vmatmul.mubr.msk.bf16.gmra.mrb[8].mxu0 %vm1288_vm12, %v8127_v13  ;;  %v8323_v13 = vsel %vm7316_vm2, %v6001_v57, %v4984_v22  ;;  %v4986_v20 = vrot.slane %v4984_v22, 4  ;;  %v8326_v25 = vrot.slane %v4538_v28, 4  ;;  %v6002_v15 = vrot.slane %v4895_v54, 9  ;;  %v4901_v32 = vld [vmem:[#allocation2 + $0x9c] sm:$0xe] }
 0x14b   : > { %6294 = vmatmul.mubr.msk.bf16.gmra.mrb[20].mxu1 %vm1288_vm12, %v8977_v14  ;;  %6455 = vmatprep.mubr.msk.bf16.mxu0 %vm1288_vm12, %v5971_v8  ;;  %v4991_v16 = vrot.slane %v8981_v12, 5  ;;  %v4994_v52 = vrot.slane %v8982_v7, 5  ;;  %v4549_v60 = vshrl.u32 %v4206_v1, 16  ;;  %v6003_v55 = vrot.slane %v4896_v6, 9  ;;  %v8344_v14 = vld [vmem:[#allocation2 + $0xbc] sm:$0x1] }
 0x14c   : > { %6297 = vmatprep.mubr.msk.bf16.mxu1 %vm1288_vm12, %v8978_v3  ;;  %v8334_v0 = vsel %vm7316_vm2, %v4986_v20, %v4987_v30  ;;  %v4998_v51 = vrot.slane %v8983_v61, 5  ;;  %v5001_v41 = vrot.slane %v8070_v48, 5  ;;  %v6004_v57 = vrot.slane %v4897_v40, 9 }
 0x14d   : > { %v6018_v8 = vcombine.low %v8323_v13, %v8334_v0  ;;  %v8341_v42 = vsel %vm7316_vm2, %v6002_v15, %v4991_v16  ;;  %v4993_v36 = vrot.slane %v4991_v16, 4  ;;  %v5005_v46 = vrot.slane %v8083_v62, 5  ;;  %v8383_v15 = vld [vmem:[#allocation2 + $0xc8] sm:$0x1]  ;;  %v2642_v0 = vld [vmem:[#allocation2 + $0x90] sm:$0xf] }
 0x14e   : > { %v8348_v28 = vsel %vm7316_vm2, %v6003_v55, %v4998_v51  ;;  %v5000_v3 = vrot.slane %v4998_v51, 4  ;;  %v8984_v22 = vcombine.low %v8048_v27, %v8077_v63  ;;  %v4552_v54 = vshll.u32 %v4206_v1, 16 }
 0x14f   : > { %v4558_v6 = vshll.u32 %v8330_v23, 16  ;;  %v8358_v48 = vsel %vm7316_vm2, %v4993_v36, %v4994_v52  ;;  %v5008_v20 = vrot.slane %v8110_v18, 5  ;;  %v8985_v30 = vcombine.low %v8081_v33, %v8096_v31  ;;  %v4899_v36 = vld [vmem:[#allocation2 + $0x84] sm:$0xe] }
 0x150   : > { %v8369_v63 = vsel %vm7316_vm2, %v5000_v3, %v5001_v41  ;;  %v8373_v62 = vsel %vm7316_vm2, %v6004_v57, %v5005_v46  ;;  %v5007_v1 = vrot.slane %v5005_v46, 4  ;;  %v4513_v33 = vsel %vm7042_vm13, %v8314_v43, %v8270_v17  ;;  %v4209_v3 = vld [vmem:[#allocation2 + $0xcc] sm:$0xf]  ;;  %v8986_v46 = vld [vmem:[#allocation6_spill] sm:$0xff] }
 0x151   : > { %v8380_v31 = vrot.slane %v4517_v4, 4  ;;  %v4544_v18 = vshll.u32 %v8344_v14, 16  ;;  %v8388_v16 = vrot.slane %v4531_v21, 4  ;;  %v2874_v52 = vshrl.u32 %v2636_v19, 16  ;;  %v4898_v4 = vld [vmem:[#allocation2 + $0x78] sm:$0xe] }
 0x152   : > { %6456 = vmatmul.mubr.msk.bf16.gmra.mrb[12].mxu0 %vm1288_vm12, %v5972_v59  ;;  %v4562_v59 = vshrl.u32 %v8330_v23, 16  ;;  %v8393_v7 = vsel %vm7316_vm2, %v5007_v1, %v5008_v20  ;;  %v4541_v40 = vor.u32 %v8326_v25, %v8318_v24  ;;  %v4551_v55 = vrot.slane %v4549_v60, 4 }
 0x153   : > { %6298 = vmatmul.mubr.msk.bf16.gmra.mrb[24].mxu1 %vm1288_vm12, %v8984_v22  ;;  %6459 = vmatprep.mubr.msk.bf16.mxu0 %vm1288_vm12, %v5973_v58  ;;  %v2877_v51 = vshll.u32 %v2636_v19, 16  ;;  %v6802_v58 = vld [vmem:[#allocation2 + $0xc] sm:$0xff]   ;;  %v4554_v21 = vrot.slane %v4552_v54, 5  ;;  %v8399_v41 = vrot.slane %v4558_v6, 5  ;;  %v2876_v57 = vrot.slane %v2874_v52, 4  ;;  %v8987_v22 = vld [vmem:[#allocation7_spill] sm:$0xff] }
 0x154   : > { %6301 = vmatprep.mubr.msk.bf16.mxu1 %vm1288_vm12, %v8985_v30  ;;  %v2896_v20 = vsel %vm7042_vm13, %v8987_v22, %v8986_v46  ;;  %v4568_v30 = vshll.u32 %v8383_v15, 16  ;;  %v6005_v60 = vrot.slane %v4898_v4, 9  ;;  %v5012_v1 = vrot.slane %v8131_v37, 5  ;;  %v8407_v19 = vld [vmem:[#allocation2 + $0xd0] sm:$0xf]  ;;  %v8988_v52 = vld [vmem:[#allocation20_spill] sm:$0xff] }
 0x155   : > { %v2879_v25 = vrot.slane %v2877_v51, 5  ;;  %v4564_v61 = vrot.slane %v4562_v59, 4  ;;  %v5015_v54 = vrot.slane %v8172_v49, 5  ;;  %v6006_v6 = vrot.slane %v4899_v36, 9 }
 0x156   : > { %v5019_v12 = vrot.slane %v8133_v11, 5  ;;  %v8989_v27 = vcombine.low %v8102_v50, %v8988_v52  ;;  %v4573_v46 = vshrl.u32 %v4209_v3, 16  ;;  %v8417_v4 = vsel %vm7316_vm2, %v6005_v60, %v5012_v1 }
 0x157   : > { %v2880_v22 = vor.u32 %v2879_v25, %v2876_v57  ;;  %v5014_v37 = vrot.slane %v5012_v1, 4  ;;  %v4576_v59 = vshll.u32 %v4209_v3, 16  ;;  %v5022_v51 = vrot.slane %v8186_v35, 5  ;;  %v6803_v3 = vld [vmem:[#allocation2 + $0x18] sm:$0xff]   ;;  %v8990_v1 = vld [vmem:[#allocation5_spill] sm:$0xff] }
 0x158   : > { %v8422_v49 = vsel %vm7316_vm2, %v6006_v6, %v5019_v12  ;;  %v5021_v11 = vrot.slane %v5019_v12, 4  ;;  %v4582_v50 = vshll.u32 %v8407_v19, 16  ;;  %v4565_v12 = vor.u32 %v4564_v61, %v8399_v41  ;;  %v6804_v61 = vld [vmem:[#allocation2 + $0x24] sm:$0xff]  }
 0x159   : > { %v2881_v36 = vrot.slane %v2880_v22, 4  ;;  %v8431_v57 = vsel %vm7316_vm2, %v5014_v37, %v5015_v54  ;;  %v4523_v25 = vsel %vm7042_vm13, %v8380_v31, %v8305_v47  ;;  %v4546_v60 = vrot.slane %v4544_v18, 5  ;;  %v4900_v37 = vld [vmem:[#allocation2 + $0x90] sm:$0xe] }
 0x15a   : > { %6460 = vmatmul.mubr.msk.bf16.gmra.mrb[16].mxu0 %vm1288_vm12, %v8292_v38  ;;  %v6022_v35 = vcombine.low %v8417_v4, %v8431_v57  ;;  %v8440_v38 = vsel %vm7316_vm2, %v5021_v11, %v5022_v51  ;;  %v4575_v54 = vrot.slane %v4573_v46, 4  ;;  %v4578_v6 = vrot.slane %v4576_v59, 5  ;;  %v8993_v59 = vld [vmem:[#allocation22_spill] sm:$0xff] }
 0x15b   : > { %6302 = vmatmul.mubr.msk.bf16.gmra.mrb[28].mxu1 %vm1288_vm12, %v8989_v27  ;;  %v4586_v27 = vshrl.u32 %v8407_v19, 16  ;;  %6463 = vmatprep.mubr.msk.bf16.mxu0 %vm1288_vm12, %v8294_v34  ;;  %v2886_v34 = vsel %vm7042_vm13, %v2881_v36, %v8990_v1  ;;  %v5976_v47 = vcombine.low %v4489_v2, %v4499_v5  ;;  %v8463_v31 = vrot.slane %v4582_v50, 5  ;;  %v6857_v36 = vld [vmem:[#allocation2 + $0x1c] sm:$0xf] }
 0x15c   : > { %6307 = vmatprep.mubr.msk.bf16.mxu1 %vm1288_vm12, %v6802_v58  ;;  %v4555_v58 = vor.u32 %v4554_v21, %v4551_v55  ;;  %v6023_v55 = vcombine.low %v8422_v49, %v8440_v38  ;;  %v4542_v21 = vrot.slane %v4541_v40, 4  ;;  %v8451_v52 = vcombine.low %v2886_v34, %v2896_v20  ;;  %v6806_v1 = vld [vmem:[#allocation2 + $0x3c] sm:$0xff]  }
 0x15d   : > { %v4588_v18 = vrot.slane %v4586_v27, 4  ;;  %v5977_v40 = vcombine.low %v4513_v33, %v4523_v25  ;;  %v4566_v46 = vrot.slane %v4565_v12, 4  ;;  %v4570_v22 = vrot.slane %v4568_v30, 5  ;;  %v8992_v33 = vld [vmem:[#allocation8_spill] sm:$0xff]  ;;  %v6805_v27 = vld [vmem:[#allocation2 + $0x30] sm:$0xff]   ;;  %v8994_v25 = vld [vmem:[#allocation21_spill] sm:$0xff] }
 0x15e   : > { %v4556_v20 = vrot.slane %v4555_v58, 4  ;;  %v4537_v10 = vsel %vm7042_vm13, %v8388_v16, %v8318_v24  ;;  %v4547_v17 = vsel %vm7042_vm13, %v4542_v21, %v4546_v60  ;;  %v4579_v2 = vor.u32 %v4578_v6, %v4575_v54 }
 0x15f   : > { %v4589_v5 = vor.u32 %v4588_v18, %v8463_v31  ;;  %v6007_v43 = vrot.slane %v4900_v37, 9  ;;  %v5026_v30 = vrot.slane %v8992_v33, 5  ;;  %v5029_v11 = vrot.slane %v8993_v59, 5  ;;  %v8995_v37 = vld [vmem:[#allocation9_spill] sm:$0xff] }
 0x160   : > { %v4561_v51 = vsel %vm7042_vm13, %v4556_v20, %v8399_v41  ;;  %v4571_v24 = vsel %vm7042_vm13, %v4566_v46, %v4570_v22  ;;  %v4592_v16 = vshll.u32 %v8471_v44, 16  ;;  %v6008_v50 = vrot.slane %v4901_v32, 9  ;;  %v6807_v59 = vld [vmem:[#allocation2 + $0x48] sm:$0xff]  }
 0x161   : > { %v4956_v58 = vrot.slane %v6857_v36, 5  ;;  %v8494_v12 = vsel %vm7316_vm2, %v6007_v43, %v5026_v30  ;;  %v5033_v60 = vrot.slane %v8994_v25, 5  ;;  %v5978_v34 = vcombine.low %v4537_v10, %v4547_v17  ;;  %v4891_v10 = vld [vmem:[#allocation2 + $0x24] sm:$0xe]  ;;  %v6858_v17 = vld [vmem:[#allocation2 + $0x28] sm:$0xf] }
 0x162   : > { %6464 = vmatmul.mubr.msk.bf16.gmra.mrb[20].mxu0 %vm1288_vm12, %v5976_v47  ;;  %v5036_v41 = vrot.slane %v8219_v53, 5  ;;  %v5979_v21 = vcombine.low %v4561_v51, %v4571_v24  ;;  %v4580_v54 = vrot.slane %v4579_v2, 4  ;;  %v4590_v6 = vrot.slane %v4589_v5, 4  ;;  %v4902_v43 = vld [vmem:[#allocation2 + $0xa8] sm:$0xe] }
 0x163   : > { %6308 = vmatmul.mubr.msk.bf16.vlgmr.msra.gmra.mrb[0].mxu1 %vm1288_vm12, %v6803_v3  ;;  %6467 = vmatprep.mubr.msk.bf16.mxu0 %vm1288_vm12, %v5977_v40  ;;  %v5028_v3 = vrot.slane %v5026_v30, 4  ;;  %v4594_v18 = vrot.slane %v4592_v16, 5  ;;  %v8506_v20 = vsel %vm7316_vm2, %v6008_v50, %v5033_v60  ;;  %v5035_v46 = vrot.slane %v5033_v60, 4  ;;  %v4892_v24 = vld [vmem:[#allocation2 + $0x30] sm:$0xe] }
 0x164   : > { %6510 = vmatpush3.bf16.msra.mxu1 %v8991_v56  ;;  %6311 = vmatprep.mubr.msk.bf16.mxu1 %vm1288_vm12, %v6804_v61  ;;  %v4890_v61 = vld [vmem:[#allocation2 + $0x18] sm:$0xe]  ;;  %v4958_v53 = vrot.slane %v4956_v58, 4  ;;  %v4959_v32 = vrot.slane %v8995_v37, 5  ;;  %v4963_v2 = vrot.slane %v6858_v17, 5  ;;  %v4585_v33 = vsel %vm7042_vm13, %v4580_v54, %v8463_v31  ;;  %v8996_v16 = vld [vmem:[#allocation10_spill] sm:$0xff] }
 0x165   : > { %v8500_v47 = vsel %vm7316_vm2, %v5028_v3, %v5029_v11  ;;  %v5997_v22 = vrot.slane %v4890_v61, 9  ;;  %v8513_v56 = vsel %vm7316_vm2, %v5035_v46, %v5036_v41  ;;  %v4595_v30 = vsel %vm7042_vm13, %v4590_v6, %v4594_v18  ;;  %v4903_v60 = vld [vmem:[#allocation2 + $0xb4] sm:$0xe]  ;;  %v8997_v46 = vld [vmem:[#allocation11_spill] sm:$0xff] }
 0x166   : > { %v6024_v40 = vcombine.low %v8494_v12, %v8500_v47  ;;  %v6025_v5 = vcombine.low %v8506_v20, %v8513_v56  ;;  %v4960_v51 = vsel %vm7316_vm2, %v4958_v53, %v4959_v32  ;;  %v4970_v50 = vrot.slane %v8996_v16, 5 }
 0x167   : > { %v4957_v11 = vsel %vm7316_vm2, %v5997_v22, %v4956_v58  ;;  %v5998_v36 = vrot.slane %v4891_v10, 9  ;;  %v6009_v3 = vrot.slane %v4902_v43, 9  ;;  %v5040_v25 = vrot.slane %v8225_v9, 5  ;;  %v8998_v10 = vld [vmem:[#allocation12_spill] sm:$0xff] }
 0x168   : > { %v5980_v31 = vcombine.low %v4585_v33, %v4595_v30  ;;  %v6014_v41 = vcombine.low %v4957_v11, %v4960_v51  ;;  %v5043_v54 = vrot.slane %v8244_v45, 5  ;;  %v5999_v6 = vrot.slane %v4892_v24, 9  ;;  %v6810_v24 = vld [vmem:[#allocation2 + $0x6c] sm:$0xff]  }
 0x169   : > { %v8532_v58 = vsel %vm7316_vm2, %v6009_v3, %v5040_v25  ;;  %v4972_v18 = vrot.slane %v4970_v50, 4  ;;  %v4973_v22 = vrot.slane %v8997_v46, 5  ;;  %v6010_v9 = vrot.slane %v4903_v60, 9  ;;  %v8999_v3 = vld [vmem:[#allocation14_spill] sm:$0xff] }
 0x16a   : > { %6468 = vmatmul.mubr.msk.bf16.gmra.mrb[24].mxu0 %vm1288_vm12, %v5978_v34  ;;  %v6859_v34 = vld [vmem:[#allocation2 + $0x2c] sm:$0x1]  ;;  %v4964_v53 = vsel %vm7316_vm2, %v5998_v36, %v4963_v2  ;;  %v5047_v32 = vrot.slane %v8254_v39, 5  ;;  %v4977_v17 = vrot.slane %v8998_v10, 5  ;;  %v5050_v33 = vrot.slane %v8344_v14, 5 }
 0x16b   : > { %6312 = vmatmul.mubr.msk.bf16.gmra.mrb[4].mxu1 %vm1288_vm12, %v6805_v27  ;;  %6471 = vmatprep.mubr.msk.bf16.mxu0 %vm1288_vm12, %v5979_v21  ;;  %v6808_v27 = vld [vmem:[#allocation2 + $0x54] sm:$0xff]   ;;  %v4966_v61 = vrot.slane %v6859_v34, 5  ;;  %v5042_v21 = vrot.slane %v5040_v25, 4  ;;  %v4971_v11 = vsel %vm7316_vm2, %v5999_v6, %v4970_v50  ;;  %v4974_v51 = vsel %vm7316_vm2, %v4972_v18, %v4973_v22  ;;  %v4905_v50 = vld [vmem:[#allocation2 + $0xcc] sm:$0xe]  ;;  %v6812_v6 = vld [vmem:[#allocation2 + $0x84] sm:$0xff]  }
 0x16c   : > { %6315 = vmatprep.mubr.msk.bf16.mxu1 %vm1288_vm12, %v6806_v1  ;;  %v4965_v1 = vrot.slane %v4963_v2, 4  ;;  %v4893_v2 = vld [vmem:[#allocation2 + $0x3c] sm:$0xe]  ;;  %v8555_v30 = vsel %vm7316_vm2, %v6010_v9, %v5047_v32  ;;  %v5049_v39 = vrot.slane %v5047_v32, 4  ;;  %v4979_v36 = vrot.slane %v4977_v17, 4 }
 0x16d   : > { %v8542_v37 = vsel %vm7316_vm2, %v5042_v21, %v5043_v54  ;;  %v4980_v25 = vrot.slane %v8999_v3, 5  ;;  %v6811_v21 = vld [vmem:[#allocation2 + $0x78] sm:$0xff]   ;;  %v5061_v54 = vrot.slane %v8407_v19, 5  ;;  %v5064_v46 = vrot.slane %v8471_v44, 5 }
 0x16e   : > { %v4967_v45 = vsel %vm7316_vm2, %v4965_v1, %v4966_v61  ;;  %v6026_v43 = vcombine.low %v8532_v58, %v8542_v37  ;;  %v8563_v14 = vsel %vm7316_vm2, %v5049_v39, %v5050_v33  ;;  %v2633_v61 = vld [vmem:[#allocation2 + $0x6c] sm:$0xf]  ;;  %v5054_v49 = vrot.slane %v8330_v23, 5 }
 0x16f   : > { %v6015_v16 = vcombine.low %v4964_v53, %v4967_v45  ;;  %v6027_v60 = vcombine.low %v8555_v30, %v8563_v14  ;;  %v4981_v34 = vsel %vm7316_vm2, %v4979_v36, %v4980_v25  ;;  %v2850_v22 = vshrl.u32 %v2633_v61, 16  ;;  %v6860_v45 = vld [vmem:[#allocation2 + $0x70] sm:$0xf]  ;;  %v6861_v36 = vld [vmem:[#allocation2 + $0x74] sm:$0x1] }
 0x170   : > { %v2853_v9 = vshll.u32 %v2633_v61, 16  ;;  %v5063_v32 = vrot.slane %v5061_v54, 4  ;;  %v2859_v10 = vshll.u32 %v6860_v45, 16  ;;  %v2869_v3 = vshll.u32 %v6861_v36, 16  ;;  %v6815_v61 = vld [vmem:[#allocation2 + $0xa8] sm:$0xff]  }
 0x171   : > { %v2852_v44 = vrot.slane %v2850_v22, 4  ;;  %v2922_v22 = vshrl.u32 %v2642_v0, 16  ;;  %vm5601_vm0 = vcmask 1040384  }
 0x172   : > { %6472 = vmatmul.mubr.msk.bf16.gmra.mrb[28].mxu0 %vm1288_vm12, %v5980_v31  ;;  %v6016_v31 = vcombine.low %v4971_v11, %v4974_v51  ;;  %v8585_v33 = vsel %vm7316_vm2, %v5063_v32, %v5064_v46  ;;  %v2861_v39 = vrot.slane %v2859_v10, 5  ;;  %v6813_v11 = vld [vmem:[#allocation2 + $0x90] sm:$0xff]   ;;  %v6814_v51 = vld [vmem:[#allocation2 + $0x9c] sm:$0xff]  }
 0x173   : > { %6316 = vmatmul.mubr.msk.bf16.gmra.mrb[8].mxu1 %vm1288_vm12, %v6807_v59  ;;  %6477 = vmatprep.mubr.msk.bf16.mxu0 %vm1288_vm12, %v6014_v41  ;;  %v6809_v59 = vld [vmem:[#allocation2 + $0x60] sm:$0xff]   ;;  %v6012_v41 = vrot.slane %v4905_v50, 9  ;;  %v6862_v50 = vld [vmem:[#allocation2 + $0x88] sm:$0xf]  ;;  %v6816_v32 = vld [vmem:[#allocation2 + $0xb4] sm:$0xff]   ;;  %v2924_v36 = vrot.slane %v2922_v22, 4 }
 0x174   : > { %6319 = vmatprep.mubr.msk.bf16.mxu1 %vm1288_vm12, %v6808_v27  ;;  %v6000_v27 = vrot.slane %v4893_v2, 9  ;;  %v2855_v2 = vrot.slane %v2853_v9, 5  ;;  %v2911_v13 = vshrl.u32 %v6862_v50, 16  ;;  %v2645_v9 = vld [vmem:[#allocation2 + $0x9c] sm:$0xf] }
 0x175   : > { %v8580_v53 = vsel %vm7316_vm2, %v6012_v41, %v5061_v54  ;;  %v9001_v41 = vcombine.low %v8348_v28, %v8369_v63  ;;  %v2871_v54 = vrot.slane %v2869_v3, 5  ;;  %v2946_v28 = vshrl.u32 %v2645_v9, 16 }
 0x176   : > { %v4978_v1 = vsel %vm7316_vm2, %v6000_v27, %v4977_v17  ;;  %v2863_v17 = vshrl.u32 %v6860_v45, 16  ;;  %v6029_v19 = vcombine.low %v8580_v53, %v8585_v33  ;;  %v2913_v45 = vrot.slane %v2911_v13, 4 }
 0x177   : > { %v6017_v18 = vcombine.low %v4978_v1, %v4981_v34  ;;  %v2907_v1 = vshll.u32 %v6862_v50, 16  ;;  %v2949_v63 = vshll.u32 %v2645_v9, 16  ;;  %v9002_v50 = vcombine.low %v8373_v62, %v8393_v7  ;;  %v6867_v9 = vld [vmem:[#allocation2 + $0xa4] sm:$0x1] }
 0x178   : > { %v2965_v4 = vshll.u32 %v6867_v9, 16 }
 0x179   : > { %v8605_v46 = vrot.slane %v2907_v1, 5  ;;  %v2948_v1 = vrot.slane %v2946_v28, 4  ;;  %v2951_v13 = vrot.slane %v2949_v63, 5 }
 0x17a   : > { %6478 = vmatmul.mubr.msk.bf16.vlgmr.msra.gmra.mrb[0].mxu0 %vm1288_vm12, %v6015_v16  ;;  %v2856_v16 = vor.u32 %v2855_v2, %v2852_v44  ;;  %v6864_v2 = vld [vmem:[#allocation2 + $0xa0] sm:$0xf] }
 0x17b   : > { %6320 = vmatmul.mubr.msk.bf16.gmra.mrb[12].mxu1 %vm1288_vm12, %v6809_v59  ;;  %6481 = vmatprep.mubr.msk.bf16.mxu0 %vm1288_vm12, %v6016_v31  ;;  %v2865_v59 = vrot.slane %v2863_v17, 4  ;;  %v2914_v3 = vor.u32 %v2913_v45, %v8605_v46  ;;  %v2952_v57 = vor.u32 %v2951_v13, %v2948_v1 }
 0x17c   : > { %6323 = vmatprep.mubr.msk.bf16.mxu1 %vm1288_vm12, %v6810_v24  ;;  %v2639_v24 = vld [vmem:[#allocation2 + $0x84] sm:$0xf]  ;;  %v2857_v34 = vrot.slane %v2856_v16, 4  ;;  %v6865_v16 = vld [vmem:[#allocation2 + $0x8c] sm:$0x1] }
 0x17d   : > { %v2866_v27 = vor.u32 %v2865_v59, %v2861_v39  ;;  %v2898_v25 = vshrl.u32 %v2639_v24, 16  ;;  %v2901_v31 = vshll.u32 %v2639_v24, 16  ;;  %v2955_v59 = vshll.u32 %v6864_v2, 16 }
 0x17e   : > { %v2862_v44 = vsel %vm7042_vm13, %v2857_v34, %v2861_v39  ;;  %v6817_v34 = vld [vmem:[#allocation2 + $0xc0] sm:$0xff]   ;;  %v2915_v62 = vrot.slane %v2914_v3, 4 }
 0x182   : > { %6482 = vmatmul.mubr.msk.bf16.gmra.mrb[4].mxu0 %vm1288_vm12, %v6017_v18  ;;  %v2903_v18 = vrot.slane %v2901_v31, 5 }
 0x183   : > { %6324 = vmatmul.mubr.msk.bf16.gmra.mrb[16].mxu1 %vm1288_vm12, %v6811_v21  ;;  %6485 = vmatprep.mubr.msk.bf16.mxu0 %vm1288_vm12, %v6018_v8  ;;  %v9000_v8 = vcombine.low %v8341_v42, %v8358_v48  ;;  %v2867_v21 = vrot.slane %v2866_v27, 4  ;;  %v2925_v42 = vshll.u32 %v2642_v0, 16  ;;  %v6863_v48 = vld [vmem:[#allocation2 + $0x94] sm:$0xf]  ;;  %v2917_v27 = vshll.u32 %v6865_v16, 16 }
 0x184   : > { %6327 = vmatprep.mubr.msk.bf16.mxu1 %vm1288_vm12, %v6812_v6  ;;  %v2900_v6 = vrot.slane %v2898_v25, 4  ;;  %v2931_v10 = vshll.u32 %v6863_v48, 16  ;;  %v2935_v17 = vshrl.u32 %v6863_v48, 16  ;;  %v8624_v0 = vrot.slane %v2955_v59, 5 }
 0x185   : > { %v2927_v25 = vrot.slane %v2925_v42, 5  ;;  %v2651_v42 = vld [vmem:[#allocation2 + $0xb4] sm:$0xf] }
 0x186   : > { %v2904_v24 = vor.u32 %v2903_v18, %v2900_v6  ;;  %v8614_v39 = vrot.slane %v2931_v10, 5  ;;  %v2937_v31 = vrot.slane %v2935_v17, 4  ;;  %v2648_v18 = vld [vmem:[#allocation2 + $0xa8] sm:$0xf]  ;;  %v6868_v17 = vld [vmem:[#allocation2 + $0xac] sm:$0xf] }
 0x187   : > { %v2928_v7 = vor.u32 %v2927_v25, %v2924_v36  ;;  %v2973_v45 = vshll.u32 %v2648_v18, 16  ;;  %v2983_v28 = vshrl.u32 %v6868_v17, 16  ;;  %v2953_v36 = vrot.slane %v2952_v57, 4 }
 0x188   : > { %v2938_v22 = vor.u32 %v2937_v31, %v8614_v39 }
 0x189   : > { %v2975_v31 = vrot.slane %v2973_v45, 5  ;;  %v2985_v1 = vrot.slane %v2983_v28, 4 }
 0x18a   : > { %6486 = vmatmul.mubr.msk.bf16.gmra.mrb[8].mxu0 %vm1288_vm12, %v9000_v8  ;;  %v2939_v59 = vrot.slane %v2938_v22, 4 }
 0x18b   : > { %6328 = vmatmul.mubr.msk.bf16.gmra.mrb[20].mxu1 %vm1288_vm12, %v6813_v11  ;;  %6489 = vmatprep.mubr.msk.bf16.mxu0 %vm1288_vm12, %v9001_v41  ;;  %v2959_v11 = vshrl.u32 %v6864_v2, 16  ;;  %v2905_v41 = vrot.slane %v2904_v24, 4  ;;  %v2929_v2 = vrot.slane %v2928_v7, 4  ;;  %v2997_v24 = vshll.u32 %v2651_v42, 16 }
 0x18c   : > { %6331 = vmatprep.mubr.msk.bf16.mxu1 %vm1288_vm12, %v6814_v51  ;;  %v2872_v51 = vsel %vm7042_vm13, %v2867_v21, %v2871_v54  ;;  %v2919_v21 = vrot.slane %v2917_v27, 5  ;;  %v6866_v54 = vld [vmem:[#allocation2 + $0x98] sm:$0x1]  ;;  %v5057_v7 = vrot.slane %v8383_v15, 5 }
 0x18d   : > { %v2961_v8 = vrot.slane %v2959_v11, 4  ;;  %v2941_v6 = vshll.u32 %v6866_v54, 16  ;;  %v2910_v48 = vsel %vm7042_vm13, %v2905_v41, %v8605_v46  ;;  %v2967_v11 = vrot.slane %v2965_v4, 5  ;;  %v6869_v46 = vld [vmem:[#allocation2 + $0xb8] sm:$0xf] }
 0x18e   : > { %v2920_v63 = vsel %vm7042_vm13, %v2915_v62, %v2919_v21  ;;  %v3003_v16 = vshll.u32 %v6869_v46, 16  ;;  %v3007_v27 = vshrl.u32 %v6869_v46, 16  ;;  %v2999_v47 = vrot.slane %v2997_v24, 5  ;;  %v6870_v54 = vld [vmem:[#allocation2 + $0xb0] sm:$0x1] }
 0x18f   : > { %v2943_v10 = vrot.slane %v2941_v6, 5  ;;  %v5860_v38 = vcombine.low %v2910_v48, %v2920_v63  ;;  %v2958_v41 = vsel %vm7042_vm13, %v2953_v36, %v8624_v0  ;;  %v2989_v6 = vshll.u32 %v6870_v54, 16  ;;  %v6871_v4 = vld [vmem:[#allocation2 + $0xc4] sm:$0xf]  ;;  %v6873_v24 = vld [vmem:[#allocation2 + $0xc8] sm:$0x1] }
 0x190   : > { %v5056_v62 = vrot.slane %v5054_v49, 4  ;;  %v3031_v57 = vshrl.u32 %v6871_v4, 16  ;;  %v3037_v46 = vshll.u32 %v6873_v24, 16 }
 0x191   : > { %v2944_v13 = vsel %vm7042_vm13, %v2939_v59, %v2943_v10  ;;  %v2991_v10 = vrot.slane %v2989_v6, 5 }
 0x192   : > { %6490 = vmatmul.mubr.msk.bf16.gmra.mrb[12].mxu0 %vm1288_vm12, %v9002_v50  ;;  %v5058_v20 = vsel %vm7316_vm2, %v5056_v62, %v5057_v7  ;;  %v3033_v63 = vrot.slane %v3031_v57, 4 }
 0x193   : > { %6332 = vmatmul.mubr.msk.bf16.gmra.mrb[24].mxu1 %vm1288_vm12, %v6815_v61  ;;  %6493 = vmatprep.mubr.msk.bf16.mxu0 %vm1288_vm12, %v6022_v35  ;;  %v5858_v61 = vcombine.low %v2862_v44, %v2872_v51  ;;  %v2962_v35 = vor.u32 %v2961_v8, %v8624_v0  ;;  %v2979_v44 = vshll.u32 %v6868_v17, 16  ;;  %v2994_v51 = vshrl.u32 %v2651_v42, 16  ;;  %v4904_v8 = vld [vmem:[#allocation2 + $0xc0] sm:$0xe] }
 0x194   : > { %6335 = vmatprep.mubr.msk.bf16.mxu1 %vm1288_vm12, %v6816_v32  ;;  %v2970_v32 = vshrl.u32 %v2648_v18, 16  ;;  %v6011_v18 = vrot.slane %v4904_v8, 9  ;;  %v3027_v0 = vshll.u32 %v6871_v4, 16 }
 0x195   : > { %v2963_v3 = vrot.slane %v2962_v35, 4  ;;  %v2981_v50 = vrot.slane %v2979_v44, 5  ;;  %v2996_v12 = vrot.slane %v2994_v51, 4 }
 0x196   : > { %v2972_v25 = vrot.slane %v2970_v32, 4  ;;  %v5055_v44 = vsel %vm7316_vm2, %v6011_v18, %v5054_v49  ;;  %v3029_v28 = vrot.slane %v3027_v0, 5 }
 0x197   : > { %v2968_v23 = vsel %vm7042_vm13, %v2963_v3, %v2967_v11  ;;  %v3000_v35 = vor.u32 %v2999_v47, %v2996_v12  ;;  %v6028_v51 = vcombine.low %v5055_v44, %v5058_v20 }
 0x198   : > { %v2976_v21 = vor.u32 %v2975_v31, %v2972_v25  ;;  %v5862_v15 = vcombine.low %v2958_v41, %v2968_v23  ;;  %v8714_v23 = vld [vmem:[%s8900_s2] ss:$0 sm:$0xff] }
 0x19a   : > { %6494 = vmatmul.mubr.msk.bf16.gmra.mrb[16].mxu0 %vm1288_vm12, %v6023_v55  ;;  %v2934_v55 = vsel %vm7042_vm13, %v2929_v2, %v8614_v39  ;;  %v2986_v39 = vor.u32 %v2985_v1, %v2981_v50  ;;  %v2977_v48 = vrot.slane %v2976_v21, 4  ;;  %v3001_v2 = vrot.slane %v3000_v35, 4 }
 0x19b   : > { %6336 = vmatmul.mubr.msk.bf16.gmra.mrb[28].mxu1 %vm1288_vm12, %v6817_v34  ;;  %6497 = vmatprep.mubr.msk.bf16.mxu0 %vm1288_vm12, %v6024_v40  ;;  %v3005_v40 = vrot.slane %v3003_v16, 5  ;;  %v3009_v34 = vrot.slane %v3007_v27, 4  ;;  %v5861_v42 = vcombine.low %v2934_v55, %v2944_v13 }
 0x19c   : > { %6357 = vmatprep.mubr.msk.bf16.mxu1 %vm1288_vm12, %v5858_v61  ;;  %v2654_v61 = vld [vmem:[#allocation2 + $0xc0] sm:$0xf]  ;;  %v2987_v17 = vrot.slane %v2986_v39, 4  ;;  %v2982_v58 = vsel %vm7042_vm13, %v2977_v48, %v2981_v50  ;;  %v3039_v50 = vrot.slane %v3037_v46, 5 }
 0x19d   : > { %v3018_v22 = vshrl.u32 %v2654_v61, 16  ;;  %v3021_v9 = vshll.u32 %v2654_v61, 16  ;;  %v3010_v32 = vor.u32 %v3009_v34, %v3005_v40  ;;  %v3006_v16 = vsel %vm7042_vm13, %v3001_v2, %v3005_v40 }
 0x19e   : > { %v2992_v37 = vsel %vm7042_vm13, %v2987_v17, %v2991_v10 }
 0x19f   : > { %v3020_v56 = vrot.slane %v3018_v22, 4  ;;  %v3011_v59 = vrot.slane %v3010_v32, 4  ;;  %v5863_v36 = vcombine.low %v2982_v58, %v2992_v37 }
 0x1a2   : > { %6498 = vmatmul.mubr.msk.bf16.gmra.mrb[20].mxu0 %vm1288_vm12, %v6025_v5  ;;  %v3023_v5 = vrot.slane %v3021_v9, 5 }
 0x1a3   : > { %6358 = vmatmul.mubr.msk.bf16.vlgmr.msra.gmra.mrb[16].mxu1 %vm1288_vm12, %v8451_v52  ;;  %v6872_v52 = vld [vmem:[#allocation2 + $0xbc] sm:$0x1]  ;;  %6501 = vmatprep.mubr.msk.bf16.mxu0 %vm1288_vm12, %v6026_v43  ;;  %v3034_v43 = vor.u32 %v3033_v63, %v3029_v28 }
 0x1a4   : > { %6361 = vmatprep.mubr.msk.bf16.mxu1 %vm1288_vm12, %v5860_v38  ;;  %v3013_v45 = vshll.u32 %v6872_v52, 16  ;;  %v3024_v26 = vor.u32 %v3023_v5, %v3020_v56 }
 0x1a5   : > { %v3035_v31 = vrot.slane %v3034_v43, 4 }
 0x1a6   : > { %v3015_v11 = vrot.slane %v3013_v45, 5  ;;  %v3025_v25 = vrot.slane %v3024_v26, 4 }
 0x1a7   : > { %v3040_v14 = vsel %vm7042_vm13, %v3035_v31, %v3039_v50 }
 0x1a8   : > { %v3016_v27 = vsel %vm7042_vm13, %v3011_v59, %v3015_v11  ;;  %v3030_v30 = vsel %vm7042_vm13, %v3025_v25, %v3029_v28 }
 0x1a9   : > { %v5864_v3 = vcombine.low %v3006_v16, %v3016_v27 }
 0x1aa   : > { %6502 = vmatmul.mubr.msk.bf16.gmra.mrb[24].mxu0 %vm1288_vm12, %v6027_v60  ;;  %v5865_v60 = vcombine.low %v3030_v30, %v3040_v14 }
 0x1ab   : > { %6362 = vmatmul.mubr.msk.bf16.gmra.mrb[20].mxu1 %vm1288_vm12, %v5861_v42  ;;  %6505 = vmatprep.mubr.msk.bf16.mxu0 %vm1288_vm12, %v6028_v51 }
 0x1ac   : > { %6365 = vmatprep.mubr.msk.bf16.mxu1 %vm1288_vm12, %v5862_v15 }
 0x1b2   : > { %6506 = vmatmul.mubr.msk.bf16.gmra.mrb[28].mxu0 %vm1288_vm12, %v6029_v19 }
 0x1b3   : > { %6366 = vmatmul.mubr.msk.bf16.gmra.mrb[24].mxu1 %vm1288_vm12, %v5863_v36 }
 0x1b4   : > { %6369 = vmatprep.mubr.msk.bf16.mxu1 %vm1288_vm12, %v5864_v3 }
 0x1bb   : > { %6370 = vmatmul.mubr.msk.bf16.gmra.mrb[28].mxu1 %vm1288_vm12, %v5865_v60 }
 0x236   : > { %v6309_v1 = vpop.f32.mrb[0].mxu1 }
 0x237   : > { %v2450_v49 = vpop.f32.mrb[1].mxu1 }
 0x238   : > { %v6310_v38 = vpop.f32.mrb[2].mxu1 }
 0x239   : > { %v2453_v55 = vpop.f32.mrb[3].mxu1 }
 0x23e   : > { %v6313_v13 = vpop.f32.mrb[4].mxu1 }
 0x23f   : > { %v2466_v8 = vpop.f32.mrb[5].mxu1 }
 0x240   : > { %v6314_v12 = vpop.f32.mrb[6].mxu1 }
 0x241   : > { %v2469_v47 = vpop.f32.mrb[7].mxu1 }
 0x246   : > { %v8697_v40 = vpop.f32.mrb[8].mxu1 }
 0x247   : > { %v8699_v29 = vpop.f32.mrb[9].mxu1 }
 0x248   : > { %v8701_v53 = vpop.f32.mrb[10].mxu1 }
 0x249   : > { %v8703_v33 = vpop.f32.mrb[11].mxu1 }
 0x24d   : > { %v6479_v41 = vpop.f32.mrb[0].mxu0 }
 0x24e   : > { %v8705_v19 = vpop.f32.mrb[12].mxu1  ;;  %v6511_v54 = vadd.f32 %v6479_v41, %v6309_v1  ;;  %v5201_v6 = vpop.f32.mrb[1].mxu0 }
 0x24f   : > { %v8707_v34 = vpop.f32.mrb[13].mxu1  ;;  %v6512_v39 = vadd.f32 %v5201_v6, %v2450_v49  ;;  %v6480_v18 = vpop.f32.mrb[2].mxu0 }
 0x250   : > { %v8709_v61 = vpop.f32.mrb[14].mxu1  ;;  %v5369_v62 = vadd.f32 %v6511_v54, %v8714_v23  ;;  %v6513_v7 = vadd.f32 %v6480_v18, %v6310_v38  ;;  %v5204_v22 = vpop.f32.mrb[3].mxu0 }
 0x251   : > { %v8716_v21 = vpop.f32.mrb[15].mxu1  ;;  %v5367_v9 = vadd.f32 %v6512_v39, %v8714_v23  ;;  %v6514_v4 = vadd.f32 %v5204_v22, %v2453_v55 }
 0x252   : > { %5401 = vst.msk [vmem:[%s8721_s26 + $0x10] sm:$0xff] %vm1288_vm12, %v5369_v62  ;;  %v5370_v0 = vadd.f32 %v6513_v7, %v8714_v23  ;;  %v5502_v32 = vmul.f32 %v5369_v62, %v5369_v62  ;;  %v5434_v20 = vsel %vm1288_vm12, %v5369_v62, 0.0 }
 0x253   : > { %5399 = vst.msk [vmem:[%s8721_s26] sm:$0xff] %vm1288_vm12, %v5367_v9  ;;  %v5500_v57 = vmul.f32 %v5367_v9, %v5367_v9  ;;  %v5368_v35 = vadd.f32 %v6514_v4, %v8714_v23  ;;  %v5431_v52 = vsel %vm1288_vm12, %v5367_v9, 0.0 }
 0x254   : > { %5402 = vst.msk [vmem:[%s8721_s26 + $0x18] sm:$0xff] %vm1288_vm12, %v5370_v0  ;;  %v5503_v10 = vmul.f32 %v5370_v0, %v5370_v0  ;;  %v5535_v37 = vsel %vm1288_vm12, %v5502_v32, 0.0  ;;  %v5436_v26 = vsel %vm1288_vm12, %v5370_v0, 0.0 }
 0x255   : > { %5400 = vst.msk [vmem:[%s8721_s26 + $0x8] sm:$0xff] %vm1288_vm12, %v5368_v35  ;;  %v5432_v45 = vsel %vm1288_vm12, %v5368_v35, 0.0  ;;  %v5501_v42 = vmul.f32 %v5368_v35, %v5368_v35  ;;  %v6483_v48 = vpop.f32.mrb[4].mxu0  ;;  %v5532_v56 = vsel %vm1288_vm12, %v5500_v57, 0.0 }
 0x256   : > { %v5433_v15 = vadd.f32 %v5432_v45, %v5431_v52  ;;  %v6515_v17 = vadd.f32 %v6483_v48, %v6313_v13  ;;  %v5217_v44 = vpop.f32.mrb[5].mxu0  ;;  %v5537_v46 = vsel %vm1288_vm12, %v5503_v10, 0.0 }
 0x257   : > { %v5533_v5 = vsel %vm1288_vm12, %v5501_v42, 0.0  ;;  %v6516_v28 = vadd.f32 %v5217_v44, %v2466_v8  ;;  %v6484_v63 = vpop.f32.mrb[6].mxu0 }
 0x258   : > { %v5435_v2 = vadd.f32 %v5434_v20, %v5433_v15  ;;  %v5534_v59 = vadd.f32 %v5533_v5, %v5532_v56  ;;  %v5373_v11 = vadd.f32 %v6515_v17, %v8714_v23  ;;  %v6517_v51 = vadd.f32 %v6484_v63, %v6314_v12  ;;  %v5220_v58 = vpop.f32.mrb[7].mxu0 }
 0x259   : > { %v5371_v43 = vadd.f32 %v6516_v28, %v8714_v23  ;;  %v6518_v24 = vadd.f32 %v5220_v58, %v2469_v47 }
 0x25a   : > { %v5536_v16 = vadd.f32 %v5535_v37, %v5534_v59  ;;  %5405 = vst.msk [vmem:[%s8721_s26 + $0x30] sm:$0xff] %vm1288_vm12, %v5373_v11  ;;  %v5437_v27 = vadd.f32 %v5436_v26, %v5435_v2  ;;  %v5374_v25 = vadd.f32 %v6517_v51, %v8714_v23  ;;  %v5506_v14 = vmul.f32 %v5373_v11, %v5373_v11 }
 0x25b   : > { %5403 = vst.msk [vmem:[%s8721_s26 + $0x20] sm:$0xff] %vm1288_vm12, %v5371_v43  ;;  %v5438_v36 = vsel %vm1288_vm12, %v5371_v43, 0.0  ;;  %v5504_v3 = vmul.f32 %v5371_v43, %v5371_v43  ;;  %v5372_v31 = vadd.f32 %v6518_v24, %v8714_v23  ;;  %v5442_v47 = vsel %vm1288_vm12, %v5373_v11, 0.0 }
 0x25c   : > { %v5439_v50 = vadd.f32 %v5438_v36, %v5437_v27  ;;  %v5538_v30 = vadd.f32 %v5537_v46, %v5536_v16  ;;  %5406 = vst.msk [vmem:[%s8721_s26 + $0x38] sm:$0xff] %vm1288_vm12, %v5374_v25  ;;  %v5507_v41 = vmul.f32 %v5374_v25, %v5374_v25 }
 0x25d   : > { %v5539_v60 = vsel %vm1288_vm12, %v5504_v3, 0.0  ;;  %5404 = vst.msk [vmem:[%s8721_s26 + $0x28] sm:$0xff] %vm1288_vm12, %v5372_v31  ;;  %v5440_v1 = vsel %vm1288_vm12, %v5372_v31, 0.0  ;;  %v6487_v49 = vpop.f32.mrb[8].mxu0  ;;  %v5505_v13 = vmul.f32 %v5372_v31, %v5372_v31 }
 0x25e   : > { %v5540_v38 = vadd.f32 %v5539_v60, %v5538_v30  ;;  %v5441_v55 = vadd.f32 %v5440_v1, %v5439_v50  ;;  %v6519_v8 = vadd.f32 %v6487_v49, %v8697_v40  ;;  %v5233_v12 = vpop.f32.mrb[9].mxu0  ;;  %v5444_v40 = vsel %vm1288_vm12, %v5374_v25, 0.0 }
 0x25f   : > { %v6520_v54 = vadd.f32 %v5233_v12, %v8699_v29  ;;  %v6488_v6 = vpop.f32.mrb[10].mxu0  ;;  %v5541_v18 = vsel %vm1288_vm12, %v5505_v13, 0.0  ;;  %v5543_v29 = vsel %vm1288_vm12, %v5506_v14, 0.0  ;;  %v5545_v42 = vsel %vm1288_vm12, %v5507_v41, 0.0 }
 0x260   : > { %v5443_v39 = vadd.f32 %v5442_v47, %v5441_v55  ;;  %v5377_v62 = vadd.f32 %v6519_v8, %v8714_v23  ;;  %v6521_v7 = vadd.f32 %v6488_v6, %v8701_v53  ;;  %v5236_v22 = vpop.f32.mrb[11].mxu0  ;;  %v5542_v9 = vadd.f32 %v5541_v18, %v5540_v38 }
 0x261   : > { %v5375_v4 = vadd.f32 %v6520_v54, %v8714_v23  ;;  %v6522_v0 = vadd.f32 %v5236_v22, %v8703_v33 }
 0x262   : > { %5409 = vst.msk [vmem:[%s8721_s26 + $0x50] sm:$0xff] %vm1288_vm12, %v5377_v62  ;;  %v5445_v57 = vadd.f32 %v5444_v40, %v5443_v39  ;;  %v5378_v35 = vadd.f32 %v6521_v7, %v8714_v23  ;;  %v5544_v32 = vadd.f32 %v5543_v29, %v5542_v9  ;;  %v5510_v20 = vmul.f32 %v5377_v62, %v5377_v62 }
 0x263   : > { %5407 = vst.msk [vmem:[%s8721_s26 + $0x40] sm:$0xff] %vm1288_vm12, %v5375_v4  ;;  %v5446_v53 = vsel %vm1288_vm12, %v5375_v4, 0.0  ;;  %v5508_v52 = vmul.f32 %v5375_v4, %v5375_v4  ;;  %v5376_v45 = vadd.f32 %v6522_v0, %v8714_v23  ;;  %v5450_v63 = vsel %vm1288_vm12, %v5377_v62, 0.0 }
 0x264   : > { %v5447_v48 = vadd.f32 %v5446_v53, %v5445_v57  ;;  %5410 = vst.msk [vmem:[%s8721_s26 + $0x58] sm:$0xff] %vm1288_vm12, %v5378_v35  ;;  %v5546_v33 = vadd.f32 %v5545_v42, %v5544_v32  ;;  %v5511_v58 = vmul.f32 %v5378_v35, %v5378_v35 }
 0x265   : > { %v5547_v10 = vsel %vm1288_vm12, %v5508_v52, 0.0  ;;  %5408 = vst.msk [vmem:[%s8721_s26 + $0x48] sm:$0xff] %vm1288_vm12, %v5376_v45  ;;  %v5448_v15 = vsel %vm1288_vm12, %v5376_v45, 0.0  ;;  %v5509_v17 = vmul.f32 %v5376_v45, %v5376_v45  ;;  %v6491_v44 = vpop.f32.mrb[12].mxu0 }
 0x266   : > { %v5449_v56 = vadd.f32 %v5448_v15, %v5447_v48  ;;  %v6523_v5 = vadd.f32 %v6491_v44, %v8705_v19  ;;  %v5249_v28 = vpop.f32.mrb[13].mxu0  ;;  %v5548_v2 = vadd.f32 %v5547_v10, %v5546_v33  ;;  %v5452_v19 = vsel %vm1288_vm12, %v5378_v35, 0.0 }
 0x267   : > { %v5549_v59 = vsel %vm1288_vm12, %v5509_v17, 0.0  ;;  %v6524_v11 = vadd.f32 %v5249_v28, %v8707_v34  ;;  %v6492_v51 = vpop.f32.mrb[14].mxu0  ;;  %v5551_v34 = vsel %vm1288_vm12, %v5510_v20, 0.0  ;;  %v5553_v30 = vsel %vm1288_vm12, %v5511_v58, 0.0 }
 0x268   : > { %v5451_v37 = vadd.f32 %v5450_v63, %v5449_v56  ;;  %v5381_v26 = vadd.f32 %v6523_v5, %v8714_v23  ;;  %v6525_v43 = vadd.f32 %v6492_v51, %v8709_v61  ;;  %v5252_v24 = vpop.f32.mrb[15].mxu0  ;;  %v5550_v46 = vadd.f32 %v5549_v59, %v5548_v2 }
 0x269   : > { %v5379_v16 = vadd.f32 %v6524_v11, %v8714_v23  ;;  %v6526_v27 = vadd.f32 %v5252_v24, %v8716_v21 }
 0x26a   : > { %5413 = vst.msk [vmem:[%s8721_s26 + $0x70] sm:$0xff] %vm1288_vm12, %v5381_v26  ;;  %v5453_v36 = vadd.f32 %v5452_v19, %v5451_v37  ;;  %v5382_v3 = vadd.f32 %v6525_v43, %v8714_v23  ;;  %v5552_v25 = vadd.f32 %v5551_v34, %v5550_v46  ;;  %v5514_v55 = vmul.f32 %v5381_v26, %v5381_v26 }
 0x26b   : > { %5411 = vst.msk [vmem:[%s8721_s26 + $0x60] sm:$0xff] %vm1288_vm12, %v5379_v16  ;;  %v5454_v61 = vsel %vm1288_vm12, %v5379_v16, 0.0  ;;  %v5512_v31 = vmul.f32 %v5379_v16, %v5379_v16  ;;  %v5380_v50 = vadd.f32 %v6526_v27, %v8714_v23  ;;  %v5458_v12 = vsel %vm1288_vm12, %v5381_v26, 0.0 }
 0x26c   : > { %v5455_v14 = vadd.f32 %v5454_v61, %v5453_v36  ;;  %5414 = vst.msk [vmem:[%s8721_s26 + $0x78] sm:$0xff] %vm1288_vm12, %v5382_v3  ;;  %v5554_v21 = vadd.f32 %v5553_v30, %v5552_v25  ;;  %v5515_v6 = vmul.f32 %v5382_v3, %v5382_v3  ;;  %v5460_v62 = vsel %vm1288_vm12, %v5382_v3, 0.0 }
 0x26d   : > { %v5555_v60 = vsel %vm1288_vm12, %v5512_v31, 0.0  ;;  %5412 = vst.msk [vmem:[%s8721_s26 + $0x68] sm:$0xff] %vm1288_vm12, %v5380_v50  ;;  %v5456_v1 = vsel %vm1288_vm12, %v5380_v50, 0.0  ;;  %v5513_v49 = vmul.f32 %v5380_v50, %v5380_v50  ;;  %v6495_v38 = vpop.f32.mrb[16].mxu0  ;;  %v5559_v22 = vsel %vm1288_vm12, %v5514_v55, 0.0 }
 0x26e   : > { %v5457_v13 = vadd.f32 %v5456_v1, %v5455_v14  ;;  %v5265_v8 = vpop.f32.mrb[17].mxu0  ;;  %v5556_v47 = vadd.f32 %v5555_v60, %v5554_v21  ;;  %v5561_v0 = vsel %vm1288_vm12, %v5515_v6, 0.0 }
 0x26f   : > { %v5557_v41 = vsel %vm1288_vm12, %v5513_v49, 0.0  ;;  %v6496_v54 = vpop.f32.mrb[18].mxu0 }
 0x270   : > { %v5459_v39 = vadd.f32 %v5458_v12, %v5457_v13  ;;  %v5268_v18 = vpop.f32.mrb[19].mxu0  ;;  %v5558_v7 = vadd.f32 %v5557_v41, %v5556_v47 }
 0x272   : > { %v5461_v40 = vadd.f32 %v5460_v62, %v5459_v39  ;;  %v5560_v9 = vadd.f32 %v5559_v22, %v5558_v7 }
 0x274   : > { %v5562_v53 = vadd.f32 %v5561_v0, %v5560_v9 }
 0x275   : > { %v6499_v52 = vpop.f32.mrb[20].mxu0 }
 0x276   : > { %v6359_v4 = vpop.f32.mrb[16].mxu1  ;;  %v5281_v33 = vpop.f32.mrb[21].mxu0 }
 0x277   : > { %v3240_v29 = vpop.f32.mrb[17].mxu1  ;;  %v6527_v57 = vadd.f32 %v6495_v38, %v6359_v4  ;;  %v6500_v17 = vpop.f32.mrb[22].mxu0 }
 0x278   : > { %v6360_v35 = vpop.f32.mrb[18].mxu1  ;;  %v6528_v32 = vadd.f32 %v5265_v8, %v3240_v29  ;;  %v5284_v20 = vpop.f32.mrb[23].mxu0 }
 0x279   : > { %v5385_v45 = vadd.f32 %v6527_v57, %v8714_v23  ;;  %v3243_v42 = vpop.f32.mrb[19].mxu1  ;;  %v6529_v48 = vadd.f32 %v6496_v54, %v6360_v35 }
 0x27a   : > { %v5383_v10 = vadd.f32 %v6528_v32, %v8714_v23  ;;  %v6530_v15 = vadd.f32 %v5268_v18, %v3243_v42 }
 0x27b   : > { %5417 = vst.msk [vmem:[%s8721_s26 + $0x90] sm:$0xff] %vm1288_vm12, %v5385_v45  ;;  %v5386_v44 = vadd.f32 %v6529_v48, %v8714_v23  ;;  %v5518_v2 = vmul.f32 %v5385_v45, %v5385_v45  ;;  %v5466_v46 = vsel %vm1288_vm12, %v5385_v45, 0.0 }
 0x27c   : > { %5415 = vst.msk [vmem:[%s8721_s26 + $0x80] sm:$0xff] %vm1288_vm12, %v5383_v10  ;;  %v5462_v56 = vsel %vm1288_vm12, %v5383_v10, 0.0  ;;  %v5516_v5 = vmul.f32 %v5383_v10, %v5383_v10  ;;  %v5384_v28 = vadd.f32 %v6530_v15, %v8714_v23 }
 0x27d   : > { %v5463_v63 = vadd.f32 %v5462_v56, %v5461_v40  ;;  %5418 = vst.msk [vmem:[%s8721_s26 + $0x98] sm:$0xff] %vm1288_vm12, %v5386_v44  ;;  %v5519_v26 = vmul.f32 %v5386_v44, %v5386_v44  ;;  %v6503_v36 = vpop.f32.mrb[24].mxu0  ;;  %v5567_v14 = vsel %vm1288_vm12, %v5518_v2, 0.0  ;;  %v5468_v21 = vsel %vm1288_vm12, %v5386_v44, 0.0 }
 0x27e   : > { %v5563_v59 = vsel %vm1288_vm12, %v5516_v5, 0.0  ;;  %5416 = vst.msk [vmem:[%s8721_s26 + $0x88] sm:$0xff] %vm1288_vm12, %v5384_v28  ;;  %v5464_v11 = vsel %vm1288_vm12, %v5384_v28, 0.0  ;;  %v5517_v51 = vmul.f32 %v5384_v28, %v5384_v28  ;;  %v6363_v58 = vpop.f32.mrb[20].mxu1  ;;  %v5297_v30 = vpop.f32.mrb[25].mxu0 }
 0x27f   : > { %v5564_v37 = vadd.f32 %v5563_v59, %v5562_v53  ;;  %v5465_v43 = vadd.f32 %v5464_v11, %v5463_v63  ;;  %v3256_v24 = vpop.f32.mrb[21].mxu1  ;;  %v6531_v19 = vadd.f32 %v6499_v52, %v6363_v58  ;;  %v6504_v49 = vpop.f32.mrb[26].mxu0  ;;  %v5569_v38 = vsel %vm1288_vm12, %v5519_v26, 0.0 }
 0x280   : > { %v5565_v16 = vsel %vm1288_vm12, %v5517_v51, 0.0  ;;  %v6364_v27 = vpop.f32.mrb[22].mxu1  ;;  %v6532_v34 = vadd.f32 %v5281_v33, %v3256_v24  ;;  %v5300_v8 = vpop.f32.mrb[27].mxu0 }
 0x281   : > { %v5467_v3 = vadd.f32 %v5466_v46, %v5465_v43  ;;  %v5566_v25 = vadd.f32 %v5565_v16, %v5564_v37  ;;  %v5389_v61 = vadd.f32 %v6531_v19, %v8714_v23  ;;  %v3259_v31 = vpop.f32.mrb[23].mxu1  ;;  %v6533_v50 = vadd.f32 %v6500_v17, %v6364_v27 }
 0x282   : > { %v5387_v60 = vadd.f32 %v6532_v34, %v8714_v23  ;;  %v6534_v1 = vadd.f32 %v5284_v20, %v3259_v31 }
 0x283   : > { %v5568_v55 = vadd.f32 %v5567_v14, %v5566_v25  ;;  %5421 = vst.msk [vmem:[%s8721_s26 + $0xb0] sm:$0xff] %vm1288_vm12, %v5389_v61  ;;  %v5469_v13 = vadd.f32 %v5468_v21, %v5467_v3  ;;  %v5390_v41 = vadd.f32 %v6533_v50, %v8714_v23  ;;  %v5522_v18 = vmul.f32 %v5389_v61, %v5389_v61 }
 0x284   : > { %5419 = vst.msk [vmem:[%s8721_s26 + $0xa0] sm:$0xff] %vm1288_vm12, %v5387_v60  ;;  %v5470_v12 = vsel %vm1288_vm12, %v5387_v60, 0.0  ;;  %v5520_v47 = vmul.f32 %v5387_v60, %v5387_v60  ;;  %v5388_v54 = vadd.f32 %v6534_v1, %v8714_v23  ;;  %v5474_v57 = vsel %vm1288_vm12, %v5389_v61, 0.0 }
 0x285   : > { %v5471_v6 = vadd.f32 %v5470_v12, %v5469_v13  ;;  %v5570_v39 = vadd.f32 %v5569_v38, %v5568_v55  ;;  %5422 = vst.msk [vmem:[%s8721_s26 + $0xb8] sm:$0xff] %vm1288_vm12, %v5390_v41  ;;  %v5523_v35 = vmul.f32 %v5390_v41, %v5390_v41  ;;  %v6507_v52 = vpop.f32.mrb[28].mxu0  ;;  %v5476_v17 = vsel %vm1288_vm12, %v5390_v41, 0.0 }
 0x286   : > { %v5571_v62 = vsel %vm1288_vm12, %v5520_v47, 0.0  ;;  %5420 = vst.msk [vmem:[%s8721_s26 + $0xa8] sm:$0xff] %vm1288_vm12, %v5388_v54  ;;  %v5472_v7 = vsel %vm1288_vm12, %v5388_v54, 0.0  ;;  %v6367_v22 = vpop.f32.mrb[24].mxu1  ;;  %v5521_v4 = vmul.f32 %v5388_v54, %v5388_v54  ;;  %v5313_v15 = vpop.f32.mrb[29].mxu0  ;;  %v5575_v28 = vsel %vm1288_vm12, %v5522_v18, 0.0 }
 0x287   : > { %v5572_v40 = vadd.f32 %v5571_v62, %v5570_v39  ;;  %v5473_v9 = vadd.f32 %v5472_v7, %v5471_v6  ;;  %v3272_v0 = vpop.f32.mrb[25].mxu1  ;;  %v6535_v29 = vadd.f32 %v6503_v36, %v6367_v22  ;;  %v6508_v5 = vpop.f32.mrb[30].mxu0  ;;  %v5577_v26 = vsel %vm1288_vm12, %v5523_v35, 0.0 }
 0x288   : > { %v6368_v32 = vpop.f32.mrb[26].mxu1  ;;  %v6536_v53 = vadd.f32 %v5297_v30, %v3272_v0  ;;  %v5573_v42 = vsel %vm1288_vm12, %v5521_v4, 0.0  ;;  %v5316_v59 = vpop.f32.mrb[31].mxu0 }
 0x289   : > { %v5475_v45 = vadd.f32 %v5474_v57, %v5473_v9  ;;  %v5393_v48 = vadd.f32 %v6535_v29, %v8714_v23  ;;  %v3275_v33 = vpop.f32.mrb[27].mxu1  ;;  %v6537_v10 = vadd.f32 %v6504_v49, %v6368_v32  ;;  %v5574_v44 = vadd.f32 %v5573_v42, %v5572_v40 }
 0x28a   : > { %v5391_v20 = vadd.f32 %v6536_v53, %v8714_v23  ;;  %v6538_v56 = vadd.f32 %v5300_v8, %v3275_v33 }
 0x28b   : > { %5425 = vst.msk [vmem:[%s8721_s26 + $0xd0] sm:$0xff] %vm1288_vm12, %v5393_v48  ;;  %v5477_v63 = vadd.f32 %v5476_v17, %v5475_v45  ;;  %v5394_v2 = vadd.f32 %v6537_v10, %v8714_v23  ;;  %v5576_v11 = vadd.f32 %v5575_v28, %v5574_v44  ;;  %v5526_v34 = vmul.f32 %v5393_v48, %v5393_v48 }
 0x28c   : > { %5423 = vst.msk [vmem:[%s8721_s26 + $0xc0] sm:$0xff] %vm1288_vm12, %v5391_v20  ;;  %v5478_v51 = vsel %vm1288_vm12, %v5391_v20, 0.0  ;;  %v5524_v58 = vmul.f32 %v5391_v20, %v5391_v20  ;;  %v5392_v37 = vadd.f32 %v6538_v56, %v8714_v23  ;;  %v5482_v61 = vsel %vm1288_vm12, %v5393_v48, 0.0 }
 0x28d   : > { %v5479_v43 = vadd.f32 %v5478_v51, %v5477_v63  ;;  %5426 = vst.msk [vmem:[%s8721_s26 + $0xd8] sm:$0xff] %vm1288_vm12, %v5394_v2  ;;  %v5578_v24 = vadd.f32 %v5577_v26, %v5576_v11  ;;  %v5527_v21 = vmul.f32 %v5394_v2, %v5394_v2  ;;  %v5484_v55 = vsel %vm1288_vm12, %v5394_v2, 0.0 }
 0x28e   : > { %v5579_v19 = vsel %vm1288_vm12, %v5524_v58, 0.0  ;;  %5424 = vst.msk [vmem:[%s8721_s26 + $0xc8] sm:$0xff] %vm1288_vm12, %v5392_v37  ;;  %v5480_v46 = vsel %vm1288_vm12, %v5392_v37, 0.0  ;;  %v5525_v16 = vmul.f32 %v5392_v37, %v5392_v37  ;;  %v6371_v27 = vpop.f32.mrb[28].mxu1  ;;  %v5583_v47 = vsel %vm1288_vm12, %v5526_v34, 0.0 }
 0x28f   : > { %v5481_v36 = vadd.f32 %v5480_v46, %v5479_v43  ;;  %v3288_v3 = vpop.f32.mrb[29].mxu1  ;;  %v6539_v25 = vadd.f32 %v6507_v52, %v6371_v27  ;;  %v5580_v31 = vadd.f32 %v5579_v19, %v5578_v24  ;;  %v5585_v7 = vsel %vm1288_vm12, %v5527_v21, 0.0 }
 0x290   : > { %v5581_v50 = vsel %vm1288_vm12, %v5525_v16, 0.0  ;;  %v6372_v30 = vpop.f32.mrb[30].mxu1  ;;  %v6540_v14 = vadd.f32 %v5313_v15, %v3288_v3 }
 0x291   : > { %v5483_v60 = vadd.f32 %v5482_v61, %v5481_v36  ;;  %v5397_v1 = vadd.f32 %v6539_v25, %v8714_v23  ;;  %v3291_v49 = vpop.f32.mrb[31].mxu1  ;;  %v6541_v38 = vadd.f32 %v6508_v5, %v6372_v30  ;;  %v5582_v13 = vadd.f32 %v5581_v50, %v5580_v31 }
 0x292   : > { %v5395_v8 = vadd.f32 %v6540_v14, %v8714_v23  ;;  %v6542_v12 = vadd.f32 %v5316_v59, %v3291_v49 }
 0x293   : > { %5429 = vst.msk [vmem:[%s8721_s26 + $0xf0] sm:$0xff] %vm1288_vm12, %v5397_v1  ;;  %v5485_v41 = vadd.f32 %v5484_v55, %v5483_v60  ;;  %v5398_v54 = vadd.f32 %v6541_v38, %v8714_v23  ;;  %v5584_v6 = vadd.f32 %v5583_v47, %v5582_v13  ;;  %v5530_v29 = vmul.f32 %v5397_v1, %v5397_v1 }
 0x294   : > { %5427 = vst.msk [vmem:[%s8721_s26 + $0xe0] sm:$0xff] %vm1288_vm12, %v5395_v8  ;;  %v5486_v39 = vsel %vm1288_vm12, %v5395_v8, 0.0  ;;  %v5528_v18 = vmul.f32 %v5395_v8, %v5395_v8  ;;  %v5396_v62 = vadd.f32 %v6542_v12, %v8714_v23  ;;  %v5490_v35 = vsel %vm1288_vm12, %v5397_v1, 0.0 }
 0x295   : > { %v5487_v22 = vadd.f32 %v5486_v39, %v5485_v41  ;;  %5430 = vst.msk [vmem:[%s8721_s26 + $0xf8] sm:$0xff] %vm1288_vm12, %v5398_v54  ;;  %v5586_v40 = vadd.f32 %v5585_v7, %v5584_v6  ;;  %v5531_v53 = vmul.f32 %v5398_v54, %v5398_v54  ;;  %v5492_v45 = vsel %vm1288_vm12, %v5398_v54, 0.0 }
 0x296   : > { %v5587_v9 = vsel %vm1288_vm12, %v5528_v18, 0.0  ;;  %5428 = vst.msk [vmem:[%s8721_s26 + $0xe8] sm:$0xff] %vm1288_vm12, %v5396_v62  ;;  %v5488_v4 = vsel %vm1288_vm12, %v5396_v62, 0.0  ;;  %v5529_v0 = vmul.f32 %v5396_v62, %v5396_v62  ;;  %v5591_v48 = vsel %vm1288_vm12, %v5530_v29, 0.0 }
 0x297   : > { %v5489_v57 = vadd.f32 %v5488_v4, %v5487_v22  ;;  %v5588_v32 = vadd.f32 %v5587_v9, %v5586_v40  ;;  %v5593_v15 = vsel %vm1288_vm12, %v5531_v53, 0.0 }
 0x298   : > { %v5589_v23 = vsel %vm1288_vm12, %v5529_v0, 0.0 }
 0x299   : > { %v5491_v52 = vadd.f32 %v5490_v35, %v5489_v57  ;;  %v5590_v42 = vadd.f32 %v5589_v23, %v5588_v32 }
 0x29b   : > { %v5493_v33 = vadd.f32 %v5492_v45, %v5491_v52  ;;  %v5592_v10 = vadd.f32 %v5591_v48, %v5590_v42 }
 0x29d   : > { %v5494_v17 = vrot.slane %v5493_v33, 4  ;;  %v5594_v44 = vadd.f32 %v5593_v15, %v5592_v10 }
 0x29f   : > { %v5495_v20 = vadd.f32 %v5494_v17, %v5493_v33  ;;  %v5595_v56 = vrot.slane %v5594_v44, 4 }
 0x2a1   : > { %v5496_v5 = vrot.slane %v5495_v20, 2  ;;  %v5596_v28 = vadd.f32 %v5595_v56, %v5594_v44 }
 0x2a3   : > { %v5497_v63 = vadd.f32 %v5496_v5, %v5495_v20  ;;  %v5597_v2 = vrot.slane %v5596_v28, 2 }
 0x2a5   : > { %v5498_v59 = vrot.slane %v5497_v63, 1  ;;  %v5598_v11 = vadd.f32 %v5597_v2, %v5596_v28 }
 0x2a7   : > { %v5599_v51 = vrot.slane %v5598_v11, 1  ;;  %v5499_v58 = vadd.f32 %v5498_v59, %v5497_v63 }
 0x2a9   : > { %v5600_v37 = vadd.f32 %v5599_v51, %v5598_v11 }
 0x2ab   : > { %v5602_v26 = vsel %vm5601_vm0, %v5499_v58, %v5600_v37 }
 0x2ac   : > { %5604 = vst.msk [vmem:[%s209_s30] sm:$0x3] %vm5603_vm1, %v5602_v26 }
 0x2ad PF: > { %s15_s15 = sadd.s32 1, %s6880_s15  }
 0x2ae   : > { %p12_p5 = scmp.ge.s32.totalorder %s15_s15, 10  }
 0x2b0   :  { %14 = sbr.rel (!%p12_p5) target bundleno = 1 (0x1), region = 85 }

</bundles_post_ra>
